<compile_context>
chip_gen: v7x
topology: tpu7x:2x2x1
jax: 0.10.0
libtpu: 0.0.40
codegen_flags: <defaults>
</compile_context>

<pallas_src>
import functools

import jax
import jax.numpy as jnp
from jax.experimental import pallas as pl
from jax.experimental.pallas import tpu as pltpu


# ----------------------------- fused Pallas kernel ---------------------------

def _mnist_fused_kernel(p_ref, w1_ref, b1_ref, w2_ref, b2_ref,
                        fc1w_ref, fc1b_ref, fc2w_ref, fc2b_ref, o_ref):
    TB = o_ref.shape[0]
    R2 = TB * 11 * 11          # conv2 output positions per tile

    # ---- conv1 + ReLU + 2x2 pool: ONE (TB*169, 36) @ (36, 128) matmul -------
    # Patch rows arrive pre-flattened and already bf16 (no in-kernel reshape or
    # cast -> no sublane relayout, half the DMA bytes).
    y1 = jnp.dot(p_ref[...], w1_ref[...], preferred_element_type=jnp.float32)
    y1 = jnp.maximum(y1 + b1_ref[...], 0.0)                       # (TB*169, 128)
    # 2x2 max-pool == max over the 4 pool-offset groups of 32 lanes
    # (ReLU commutes with max).
    m = jnp.maximum(jnp.maximum(y1[:, 0:32], y1[:, 32:64]),
                    jnp.maximum(y1[:, 64:96], y1[:, 96:128]))      # (TB*169, 32)
    h1 = m.astype(jnp.bfloat16).reshape(TB, 13, 13, 32)

    # ---- conv2 (3x3, 32->64): in-VMEM im2col -> ONE K=288 matmul ------------
    cols = [h1[:, ky:ky + 11, kx:kx + 11, :].reshape(R2, 32)
            for ky in range(3) for kx in range(3)]
    x2 = jnp.concatenate(cols, axis=-1)                            # (R2, 288) bf16
    h2 = jnp.dot(x2, w2_ref[...], preferred_element_type=jnp.float32)
    h2 = jnp.maximum(h2 + b2_ref[...], 0.0)                        # (R2, 64)
    h2 = h2.astype(jnp.bfloat16).reshape(TB, 11, 11, 64)

    # ---- 2x2 max-pool with floor (11 -> 5): drop last row/col, pair-max -----
    h2 = h2[:, :10, :10, :]
    h2 = jnp.max(h2.reshape(TB, 10, 5, 2, 64), axis=3)             # pool width
    h2 = jnp.max(h2.reshape(TB, 5, 2, 5, 64), axis=2)              # pool height
    # (TB, 5, 5, 64), lane = channel, rows ordered (h, w)

    # ---- fc1 (+ReLU): ONE K=1600 matmul -------------------------------------
    # Lane-concat the 25 (h, w) positions to (TB, 1600); fc1 weight rows were
    # permuted at init to this (h, w, c) order.
    a1 = jnp.concatenate([h2[:, r // 5, r % 5, :] for r in range(25)], axis=-1)
    z = jnp.dot(a1, fc1w_ref[...], preferred_element_type=jnp.float32)
    z = jnp.maximum(z + fc1b_ref[...], 0.0)                        # (TB, 128)

    # ---- fc2: logits zero-padded to 128 lanes -> lane-dense store -----------
    o_ref[...] = (jnp.dot(z.astype(jnp.bfloat16), fc2w_ref[...],
                          preferred_element_type=jnp.float32) + fc2b_ref[...])


# ------------------------------ JAX glue -------------------------------------

def _conv1_patches(x):
    """x: (B,28,28) f32 -> (B,169,36): (4 pool offsets x 9 taps) packed in lanes."""
    taps = [x[:, ky:ky + 26, kx:kx + 26] for ky in range(3) for kx in range(3)]
    pat = jnp.stack(taps, axis=-1)                                 # (B,26,26,9)
    offs = [pat[:, a:26:2, b:26:2, :] for a in (0, 1) for b in (0, 1)]
    return jnp.concatenate(offs, axis=-1).reshape(x.shape[0], 13 * 13, 36)


def _choose_tile(B):
    """Pick (TB, Bp).  Multi-step grids need TB % 8 == 0 so the (TB*169, 36)
    patch block stays 8-sublane aligned; small batches run as one full block.
    TB is capped at 32 to stay well inside v7x's 64 MiB VMEM, and for B > 8 we
    aim at >= 2 grid steps so both v7x TensorCores get work."""
    if B <= 8:
        return B, B
    tb = min(32, max(8, ((B + 15) // 16) * 8))     # ~ceil(B/2) rounded to 8
    bp = ((B + tb - 1) // tb) * tb
    return tb, bp


def mnist_forward(params, x):
    # PyTorch shape normalization: (H,W)->(1,1,H,W), (B,H,W)->(B,1,H,W)
    if x.ndim == 2:
        x = x[None, None]
    elif x.ndim == 3:
        x = x[:, None]
    B = x.shape[0]
    x = x.reshape(B, 28, 28).astype(jnp.float32)          # Cin == 1

    # TODO(synk): conv1's im2col packing stays as cheap XLA glue; move it
    # in-kernel (raw bf16 images) only if profiling still shows DMA-bound.
    p = _conv1_patches(x).astype(jnp.bfloat16).reshape(B * 169, 36)

    TB, Bp = _choose_tile(B)
    if Bp != B:
        p = jnp.pad(p, ((0, (Bp - B) * 169), (0, 0)))

    # NOTE: weight index maps are constant; pipeline_mode=pl.Buffered(1) would
    # shave their second pipeline buffer (~0.5 MB) once near the VMEM ceiling.
    out = pl.pallas_call(
        _mnist_fused_kernel,
        out_shape=jax.ShapeDtypeStruct((Bp, 128), jnp.float32),
        grid=(Bp // TB,),
        in_specs=[
            pl.BlockSpec((TB * 169, 36), lambda i: (i, 0)),   # bf16 conv1 patches
            pl.BlockSpec((36, 128), lambda i: (0, 0)),        # resident weights:
            pl.BlockSpec((1, 128), lambda i: (0, 0)),
            pl.BlockSpec((288, 64), lambda i: (0, 0)),
            pl.BlockSpec((1, 64), lambda i: (0, 0)),
            pl.BlockSpec((1600, 128), lambda i: (0, 0)),
            pl.BlockSpec((1, 128), lambda i: (0, 0)),
            pl.BlockSpec((128, 128), lambda i: (0, 0)),
            pl.BlockSpec((1, 128), lambda i: (0, 0)),
        ],
        out_specs=pl.BlockSpec((TB, 128), lambda i: (i, 0)),
        compiler_params=pltpu.CompilerParams(
            dimension_semantics=("parallel",),
            vmem_limit_bytes=48 * 1024 * 1024),
    )(p, params["w1blk"], params["b1blk"], params["w2"], params["b2"],
      params["fc1w"], params["fc1b"], params["fc2w"], params["fc2b"])

    return out[:B, :10]


# --------------------------- parameters --------------------------------------

def init_torch_params(key):
    """PyTorch-shaped parameters (same init scheme as nn.Conv2d/nn.Linear)."""
    ks = jax.random.split(key, 8)

    def u(k, shape, fan_in):
        bound = 1.0 / jnp.sqrt(float(fan_in))
        return jax.random.uniform(k, shape, jnp.float32, -bound, bound)

    return {
        "conv1_w": u(ks[0], (32, 1, 3, 3), 9),
        "conv1_b": u(ks[1], (32,), 9),
        "conv2_w": u(ks[2], (64, 32, 3, 3), 288),
        "conv2_b": u(ks[3], (64,), 288),
        "fc1_w": u(ks[4], (128, 64 * 5 * 5), 1600),
        "fc1_b": u(ks[5], (128,), 1600),
        "fc2_w": u(ks[6], (10, 128), 128),
        "fc2_b": u(ks[7], (10,), 128),
    }


def pack_params(raw):
    """One-time host-side repacking into the kernel's fused-matmul layouts."""
    # conv1 (32,1,3,3) -> (9,32) tap-major, block-diag over the 4 pool offsets
    w1m = jnp.transpose(raw["conv1_w"][:, 0], (1, 2, 0)).reshape(9, 32)
    w1blk = jnp.kron(jnp.eye(4, dtype=jnp.float32), w1m)             # (36,128)
    b1blk = jnp.tile(raw["conv1_b"], 4).reshape(1, 128)

    # conv2 (64,32,3,3) -> (288,64): rows ordered (tap, cin) = im2col lane order
    w2 = jnp.transpose(raw["conv2_w"], (2, 3, 1, 0)).reshape(288, 64)

    # fc1 (128,1600) torch (c,h,w) flatten -> (1600,128) in (h,w,c) flatten order
    fc1 = jnp.transpose(raw["fc1_w"].reshape(128, 64, 5, 5),
                        (2, 3, 1, 0)).reshape(1600, 128)

    # fc2 (10,128) -> (128,128) zero-padded so the final store is lane-dense
    fc2 = jnp.zeros((128, 128), jnp.float32).at[:, :10].set(raw["fc2_w"].T)
    fc2b = jnp.zeros((1, 128), jnp.float32).at[0, :10].set(raw["fc2_b"])

    return {
        "w1blk": w1blk.astype(jnp.bfloat16),
        "b1blk": b1blk,
        "w2": w2.astype(jnp.bfloat16),
        "b2": raw["conv2_b"].reshape(1, 64),
        "fc1w": fc1.astype(jnp.bfloat16),
        "fc1b": raw["fc1_b"].reshape(1, 128),
        "fc2w": fc2.astype(jnp.bfloat16),
        "fc2b": fc2b,
    }


# --------------------------- pure-JAX reference -------------------------------

def _conv2d_valid(x, w, b):
    y = jax.lax.conv_general_dilated(
        x, w, window_strides=(1, 1), padding="VALID",
        dimension_numbers=("NCHW", "OIHW", "NCHW"))
    return y + b[None, :, None, None]


def _maxpool2(x):
    return jax.lax.reduce_window(x, -jnp.inf, jax.lax.max,
                                 (1, 1, 2, 2), (1, 1, 2, 2), "VALID")


def reference_forward(raw, x):
    if x.ndim == 2:
        x = x[None, None]
    elif x.ndim == 3:
        x = x[:, None]
    y = _maxpool2(jax.nn.relu(_conv2d_valid(x, raw["conv1_w"], raw["conv1_b"])))
    y = _maxpool2(jax.nn.relu(_conv2d_valid(y, raw["conv2_w"], raw["conv2_b"])))
    y = y.reshape(y.shape[0], -1)                       # NCHW flatten = (c,h,w)
    y = jax.nn.relu(y @ raw["fc1_w"].T + raw["fc1_b"])
    return y @ raw["fc2_w"].T + raw["fc2_b"]


# --------------------------------- main ---------------------------------------

if __name__ == "__main__":
    key = jax.random.PRNGKey(0)
    pkey, xkey = jax.random.split(key)
    raw = init_torch_params(pkey)
    params = pack_params(raw)

    # MNIST geometry is baked into fc1 (64*5*5), so spatial must be 28x28, Cin=1.
    x = jax.random.normal(xkey, (2, 1, 28, 28), jnp.float32)

    fwd = jax.jit(functools.partial(mnist_forward, params))
    out = jax.block_until_ready(fwd(x))

    assert out.shape == (2, 10) and out.dtype == jnp.float32

    # Tolerance-based check vs. the pure-f32 reference (bf16 matmul path).
    ref = reference_forward(raw, x)
    err = float(jnp.max(jnp.abs(out - ref)))
    scale = float(jnp.max(jnp.abs(ref)))
    assert err <= 0.05 * scale + 5e-3, f"mismatch: err={err} scale={scale}"

    print("KERNEL_OK")
</pallas_src>

<mosaic_0001>
module attributes {stable_mosaic.version = 11 : i64} {
  func.func @_mnist_fused_kernel(%arg0: i32, %arg1: memref<338x36xbf16, #tpu.memory_space<vmem>>, %arg2: memref<36x128xbf16, #tpu.memory_space<vmem>>, %arg3: memref<1x128xf32, #tpu.memory_space<vmem>>, %arg4: memref<288x64xbf16, #tpu.memory_space<vmem>>, %arg5: memref<1x64xf32, #tpu.memory_space<vmem>>, %arg6: memref<1600x128xbf16, #tpu.memory_space<vmem>>, %arg7: memref<1x128xf32, #tpu.memory_space<vmem>>, %arg8: memref<128x128xbf16, #tpu.memory_space<vmem>>, %arg9: memref<1x128xf32, #tpu.memory_space<vmem>>, %arg10: memref<2x128xf32, #tpu.memory_space<vmem>>) attributes {dimension_semantics = [#tpu.dimension_semantics<parallel>], iteration_bounds = array<i64: 1>, scalar_prefetch = 0 : i64, scratch_operands = 0 : i64, tpu.core_type = #tpu.core_type<tc>, window_params = [{transform_indices = @transform_0, window_bounds = array<i64: 338, 36>}, {pipeline_mode = #tpu.pipeline_mode<synchronous>, transform_indices = @transform_1, window_bounds = array<i64: 36, 128>}, {pipeline_mode = #tpu.pipeline_mode<synchronous>, transform_indices = @transform_2, window_bounds = array<i64: 1, 128>}, {pipeline_mode = #tpu.pipeline_mode<synchronous>, transform_indices = @transform_3, window_bounds = array<i64: 288, 64>}, {pipeline_mode = #tpu.pipeline_mode<synchronous>, transform_indices = @transform_4, window_bounds = array<i64: 1, 64>}, {pipeline_mode = #tpu.pipeline_mode<synchronous>, transform_indices = @transform_5, window_bounds = array<i64: 1600, 128>}, {pipeline_mode = #tpu.pipeline_mode<synchronous>, transform_indices = @transform_6, window_bounds = array<i64: 1, 128>}, {pipeline_mode = #tpu.pipeline_mode<synchronous>, transform_indices = @transform_7, window_bounds = array<i64: 128, 128>}, {pipeline_mode = #tpu.pipeline_mode<synchronous>, transform_indices = @transform_8, window_bounds = array<i64: 1, 128>}, {transform_indices = @transform_9, window_bounds = array<i64: 2, 128>}]} {
    %c0 = arith.constant 0 : index
    %c0_0 = arith.constant 0 : index
    %0 = vector.load %arg1[%c0, %c0_0] : memref<338x36xbf16, #tpu.memory_space<vmem>>, vector<338x36xbf16>
    %c0_1 = arith.constant 0 : index
    %c0_2 = arith.constant 0 : index
    %1 = vector.load %arg2[%c0_1, %c0_2] : memref<36x128xbf16, #tpu.memory_space<vmem>>, vector<36x128xbf16>
    %cst = arith.constant dense<0.000000e+00> : vector<338x128xf32>
    %2 = tpu.matmul %0, %1, %cst {dimension_numbers = #tpu.dot_dimension_numbers<[1], [0], [0], [1], [0, 0, 1, 1], [], []>} : vector<338x36xbf16>, vector<36x128xbf16>, vector<338x128xf32> -> vector<338x128xf32>
    %c0_3 = arith.constant 0 : index
    %c0_4 = arith.constant 0 : index
    %3 = vector.load %arg3[%c0_3, %c0_4] : memref<1x128xf32, #tpu.memory_space<vmem>>, vector<1x128xf32>
    %4 = vector.broadcast %3 : vector<1x128xf32> to vector<338x128xf32>
    %5 = arith.addf %2, %4 : vector<338x128xf32>
    %cst_5 = arith.constant 0.000000e+00 : f32
    %6 = vector.broadcast %cst_5 : f32 to vector<338x128xf32>
    %7 = arith.maximumf %5, %6 : vector<338x128xf32>
    %8 = vector.extract_strided_slice %7 {offsets = [0, 0], sizes = [338, 32], strides = [1, 1]} : vector<338x128xf32> to vector<338x32xf32>
    %9 = vector.extract_strided_slice %7 {offsets = [0, 32], sizes = [338, 32], strides = [1, 1]} : vector<338x128xf32> to vector<338x32xf32>
    %10 = arith.maximumf %8, %9 : vector<338x32xf32>
    %11 = vector.extract_strided_slice %7 {offsets = [0, 64], sizes = [338, 32], strides = [1, 1]} : vector<338x128xf32> to vector<338x32xf32>
    %12 = vector.extract_strided_slice %7 {offsets = [0, 96], sizes = [338, 32], strides = [1, 1]} : vector<338x128xf32> to vector<338x32xf32>
    %13 = arith.maximumf %11, %12 : vector<338x32xf32>
    %14 = arith.maximumf %10, %13 : vector<338x32xf32>
    %15 = arith.truncf %14 : vector<338x32xf32> to vector<338x32xbf16>
    %16 = vector.shape_cast %15 : vector<338x32xbf16> to vector<2x13x13x32xbf16>
    %17 = vector.extract_strided_slice %16 {offsets = [0, 0, 0, 0], sizes = [2, 11, 11, 32], strides = [1, 1, 1, 1]} : vector<2x13x13x32xbf16> to vector<2x11x11x32xbf16>
    %18 = vector.shape_cast %17 : vector<2x11x11x32xbf16> to vector<242x32xbf16>
    %19 = vector.extract_strided_slice %16 {offsets = [0, 0, 1, 0], sizes = [2, 11, 11, 32], strides = [1, 1, 1, 1]} : vector<2x13x13x32xbf16> to vector<2x11x11x32xbf16>
    %20 = vector.shape_cast %19 : vector<2x11x11x32xbf16> to vector<242x32xbf16>
    %21 = vector.extract_strided_slice %16 {offsets = [0, 0, 2, 0], sizes = [2, 11, 11, 32], strides = [1, 1, 1, 1]} : vector<2x13x13x32xbf16> to vector<2x11x11x32xbf16>
    %22 = vector.shape_cast %21 : vector<2x11x11x32xbf16> to vector<242x32xbf16>
    %23 = vector.extract_strided_slice %16 {offsets = [0, 1, 0, 0], sizes = [2, 11, 11, 32], strides = [1, 1, 1, 1]} : vector<2x13x13x32xbf16> to vector<2x11x11x32xbf16>
    %24 = vector.shape_cast %23 : vector<2x11x11x32xbf16> to vector<242x32xbf16>
    %25 = vector.extract_strided_slice %16 {offsets = [0, 1, 1, 0], sizes = [2, 11, 11, 32], strides = [1, 1, 1, 1]} : vector<2x13x13x32xbf16> to vector<2x11x11x32xbf16>
    %26 = vector.shape_cast %25 : vector<2x11x11x32xbf16> to vector<242x32xbf16>
    %27 = vector.extract_strided_slice %16 {offsets = [0, 1, 2, 0], sizes = [2, 11, 11, 32], strides = [1, 1, 1, 1]} : vector<2x13x13x32xbf16> to vector<2x11x11x32xbf16>
    %28 = vector.shape_cast %27 : vector<2x11x11x32xbf16> to vector<242x32xbf16>
    %29 = vector.extract_strided_slice %16 {offsets = [0, 2, 0, 0], sizes = [2, 11, 11, 32], strides = [1, 1, 1, 1]} : vector<2x13x13x32xbf16> to vector<2x11x11x32xbf16>
    %30 = vector.shape_cast %29 : vector<2x11x11x32xbf16> to vector<242x32xbf16>
    %31 = vector.extract_strided_slice %16 {offsets = [0, 2, 1, 0], sizes = [2, 11, 11, 32], strides = [1, 1, 1, 1]} : vector<2x13x13x32xbf16> to vector<2x11x11x32xbf16>
    %32 = vector.shape_cast %31 : vector<2x11x11x32xbf16> to vector<242x32xbf16>
    %33 = vector.extract_strided_slice %16 {offsets = [0, 2, 2, 0], sizes = [2, 11, 11, 32], strides = [1, 1, 1, 1]} : vector<2x13x13x32xbf16> to vector<2x11x11x32xbf16>
    %34 = vector.shape_cast %33 : vector<2x11x11x32xbf16> to vector<242x32xbf16>
    %35 = tpu.concatenate %18, %20, %22, %24, %26, %28, %30, %32, %34 in 1 : vector<242x32xbf16>, vector<242x32xbf16>, vector<242x32xbf16>, vector<242x32xbf16>, vector<242x32xbf16>, vector<242x32xbf16>, vector<242x32xbf16>, vector<242x32xbf16>, vector<242x32xbf16> -> vector<242x288xbf16>
    %c0_6 = arith.constant 0 : index
    %c0_7 = arith.constant 0 : index
    %36 = vector.load %arg4[%c0_6, %c0_7] : memref<288x64xbf16, #tpu.memory_space<vmem>>, vector<288x64xbf16>
    %cst_8 = arith.constant dense<0.000000e+00> : vector<242x64xf32>
    %37 = tpu.matmul %35, %36, %cst_8 {dimension_numbers = #tpu.dot_dimension_numbers<[1], [0], [0], [1], [0, 0, 1, 1], [], []>} : vector<242x288xbf16>, vector<288x64xbf16>, vector<242x64xf32> -> vector<242x64xf32>
    %c0_9 = arith.constant 0 : index
    %c0_10 = arith.constant 0 : index
    %38 = vector.load %arg5[%c0_9, %c0_10] : memref<1x64xf32, #tpu.memory_space<vmem>>, vector<1x64xf32>
    %39 = vector.broadcast %38 : vector<1x64xf32> to vector<242x64xf32>
    %40 = arith.addf %37, %39 : vector<242x64xf32>
    %cst_11 = arith.constant 0.000000e+00 : f32
    %41 = vector.broadcast %cst_11 : f32 to vector<242x64xf32>
    %42 = arith.maximumf %40, %41 : vector<242x64xf32>
    %43 = arith.truncf %42 : vector<242x64xf32> to vector<242x64xbf16>
    %44 = vector.shape_cast %43 : vector<242x64xbf16> to vector<2x11x11x64xbf16>
    %45 = vector.extract_strided_slice %44 {offsets = [0, 0, 0, 0], sizes = [2, 10, 10, 64], strides = [1, 1, 1, 1]} : vector<2x11x11x64xbf16> to vector<2x10x10x64xbf16>
    %46 = vector.shape_cast %45 : vector<2x10x10x64xbf16> to vector<2x10x5x2x64xbf16>
    %cst_12 = arith.constant dense<0xFF80> : vector<2x10x5x64xbf16>
    %47 = vector.multi_reduction <maximumf>, %46, %cst_12 [3] : vector<2x10x5x2x64xbf16> to vector<2x10x5x64xbf16>
    %48 = vector.shape_cast %47 : vector<2x10x5x64xbf16> to vector<2x5x2x5x64xbf16>
    %cst_13 = arith.constant dense<0xFF80> : vector<2x5x5x64xbf16>
    %49 = vector.multi_reduction <maximumf>, %48, %cst_13 [2] : vector<2x5x2x5x64xbf16> to vector<2x5x5x64xbf16>
    %50 = vector.extract_strided_slice %49 {offsets = [0, 0, 0, 0], sizes = [2, 1, 1, 64], strides = [1, 1, 1, 1]} : vector<2x5x5x64xbf16> to vector<2x1x1x64xbf16>
    %51 = vector.shape_cast %50 : vector<2x1x1x64xbf16> to vector<2x64xbf16>
    %52 = vector.extract_strided_slice %49 {offsets = [0, 0, 1, 0], sizes = [2, 1, 1, 64], strides = [1, 1, 1, 1]} : vector<2x5x5x64xbf16> to vector<2x1x1x64xbf16>
    %53 = vector.shape_cast %52 : vector<2x1x1x64xbf16> to vector<2x64xbf16>
    %54 = vector.extract_strided_slice %49 {offsets = [0, 0, 2, 0], sizes = [2, 1, 1, 64], strides = [1, 1, 1, 1]} : vector<2x5x5x64xbf16> to vector<2x1x1x64xbf16>
    %55 = vector.shape_cast %54 : vector<2x1x1x64xbf16> to vector<2x64xbf16>
    %56 = vector.extract_strided_slice %49 {offsets = [0, 0, 3, 0], sizes = [2, 1, 1, 64], strides = [1, 1, 1, 1]} : vector<2x5x5x64xbf16> to vector<2x1x1x64xbf16>
    %57 = vector.shape_cast %56 : vector<2x1x1x64xbf16> to vector<2x64xbf16>
    %58 = vector.extract_strided_slice %49 {offsets = [0, 0, 4, 0], sizes = [2, 1, 1, 64], strides = [1, 1, 1, 1]} : vector<2x5x5x64xbf16> to vector<2x1x1x64xbf16>
    %59 = vector.shape_cast %58 : vector<2x1x1x64xbf16> to vector<2x64xbf16>
    %60 = vector.extract_strided_slice %49 {offsets = [0, 1, 0, 0], sizes = [2, 1, 1, 64], strides = [1, 1, 1, 1]} : vector<2x5x5x64xbf16> to vector<2x1x1x64xbf16>
    %61 = vector.shape_cast %60 : vector<2x1x1x64xbf16> to vector<2x64xbf16>
    %62 = vector.extract_strided_slice %49 {offsets = [0, 1, 1, 0], sizes = [2, 1, 1, 64], strides = [1, 1, 1, 1]} : vector<2x5x5x64xbf16> to vector<2x1x1x64xbf16>
    %63 = vector.shape_cast %62 : vector<2x1x1x64xbf16> to vector<2x64xbf16>
    %64 = vector.extract_strided_slice %49 {offsets = [0, 1, 2, 0], sizes = [2, 1, 1, 64], strides = [1, 1, 1, 1]} : vector<2x5x5x64xbf16> to vector<2x1x1x64xbf16>
    %65 = vector.shape_cast %64 : vector<2x1x1x64xbf16> to vector<2x64xbf16>
    %66 = vector.extract_strided_slice %49 {offsets = [0, 1, 3, 0], sizes = [2, 1, 1, 64], strides = [1, 1, 1, 1]} : vector<2x5x5x64xbf16> to vector<2x1x1x64xbf16>
    %67 = vector.shape_cast %66 : vector<2x1x1x64xbf16> to vector<2x64xbf16>
    %68 = vector.extract_strided_slice %49 {offsets = [0, 1, 4, 0], sizes = [2, 1, 1, 64], strides = [1, 1, 1, 1]} : vector<2x5x5x64xbf16> to vector<2x1x1x64xbf16>
    %69 = vector.shape_cast %68 : vector<2x1x1x64xbf16> to vector<2x64xbf16>
    %70 = vector.extract_strided_slice %49 {offsets = [0, 2, 0, 0], sizes = [2, 1, 1, 64], strides = [1, 1, 1, 1]} : vector<2x5x5x64xbf16> to vector<2x1x1x64xbf16>
    %71 = vector.shape_cast %70 : vector<2x1x1x64xbf16> to vector<2x64xbf16>
    %72 = vector.extract_strided_slice %49 {offsets = [0, 2, 1, 0], sizes = [2, 1, 1, 64], strides = [1, 1, 1, 1]} : vector<2x5x5x64xbf16> to vector<2x1x1x64xbf16>
    %73 = vector.shape_cast %72 : vector<2x1x1x64xbf16> to vector<2x64xbf16>
    %74 = vector.extract_strided_slice %49 {offsets = [0, 2, 2, 0], sizes = [2, 1, 1, 64], strides = [1, 1, 1, 1]} : vector<2x5x5x64xbf16> to vector<2x1x1x64xbf16>
    %75 = vector.shape_cast %74 : vector<2x1x1x64xbf16> to vector<2x64xbf16>
    %76 = vector.extract_strided_slice %49 {offsets = [0, 2, 3, 0], sizes = [2, 1, 1, 64], strides = [1, 1, 1, 1]} : vector<2x5x5x64xbf16> to vector<2x1x1x64xbf16>
    %77 = vector.shape_cast %76 : vector<2x1x1x64xbf16> to vector<2x64xbf16>
    %78 = vector.extract_strided_slice %49 {offsets = [0, 2, 4, 0], sizes = [2, 1, 1, 64], strides = [1, 1, 1, 1]} : vector<2x5x5x64xbf16> to vector<2x1x1x64xbf16>
    %79 = vector.shape_cast %78 : vector<2x1x1x64xbf16> to vector<2x64xbf16>
    %80 = vector.extract_strided_slice %49 {offsets = [0, 3, 0, 0], sizes = [2, 1, 1, 64], strides = [1, 1, 1, 1]} : vector<2x5x5x64xbf16> to vector<2x1x1x64xbf16>
    %81 = vector.shape_cast %80 : vector<2x1x1x64xbf16> to vector<2x64xbf16>
    %82 = vector.extract_strided_slice %49 {offsets = [0, 3, 1, 0], sizes = [2, 1, 1, 64], strides = [1, 1, 1, 1]} : vector<2x5x5x64xbf16> to vector<2x1x1x64xbf16>
    %83 = vector.shape_cast %82 : vector<2x1x1x64xbf16> to vector<2x64xbf16>
    %84 = vector.extract_strided_slice %49 {offsets = [0, 3, 2, 0], sizes = [2, 1, 1, 64], strides = [1, 1, 1, 1]} : vector<2x5x5x64xbf16> to vector<2x1x1x64xbf16>
    %85 = vector.shape_cast %84 : vector<2x1x1x64xbf16> to vector<2x64xbf16>
    %86 = vector.extract_strided_slice %49 {offsets = [0, 3, 3, 0], sizes = [2, 1, 1, 64], strides = [1, 1, 1, 1]} : vector<2x5x5x64xbf16> to vector<2x1x1x64xbf16>
    %87 = vector.shape_cast %86 : vector<2x1x1x64xbf16> to vector<2x64xbf16>
    %88 = vector.extract_strided_slice %49 {offsets = [0, 3, 4, 0], sizes = [2, 1, 1, 64], strides = [1, 1, 1, 1]} : vector<2x5x5x64xbf16> to vector<2x1x1x64xbf16>
    %89 = vector.shape_cast %88 : vector<2x1x1x64xbf16> to vector<2x64xbf16>
    %90 = vector.extract_strided_slice %49 {offsets = [0, 4, 0, 0], sizes = [2, 1, 1, 64], strides = [1, 1, 1, 1]} : vector<2x5x5x64xbf16> to vector<2x1x1x64xbf16>
    %91 = vector.shape_cast %90 : vector<2x1x1x64xbf16> to vector<2x64xbf16>
    %92 = vector.extract_strided_slice %49 {offsets = [0, 4, 1, 0], sizes = [2, 1, 1, 64], strides = [1, 1, 1, 1]} : vector<2x5x5x64xbf16> to vector<2x1x1x64xbf16>
    %93 = vector.shape_cast %92 : vector<2x1x1x64xbf16> to vector<2x64xbf16>
    %94 = vector.extract_strided_slice %49 {offsets = [0, 4, 2, 0], sizes = [2, 1, 1, 64], strides = [1, 1, 1, 1]} : vector<2x5x5x64xbf16> to vector<2x1x1x64xbf16>
    %95 = vector.shape_cast %94 : vector<2x1x1x64xbf16> to vector<2x64xbf16>
    %96 = vector.extract_strided_slice %49 {offsets = [0, 4, 3, 0], sizes = [2, 1, 1, 64], strides = [1, 1, 1, 1]} : vector<2x5x5x64xbf16> to vector<2x1x1x64xbf16>
    %97 = vector.shape_cast %96 : vector<2x1x1x64xbf16> to vector<2x64xbf16>
    %98 = vector.extract_strided_slice %49 {offsets = [0, 4, 4, 0], sizes = [2, 1, 1, 64], strides = [1, 1, 1, 1]} : vector<2x5x5x64xbf16> to vector<2x1x1x64xbf16>
    %99 = vector.shape_cast %98 : vector<2x1x1x64xbf16> to vector<2x64xbf16>
    %100 = tpu.concatenate %51, %53, %55, %57, %59, %61, %63, %65, %67, %69, %71, %73, %75, %77, %79, %81 in 1 : vector<2x64xbf16>, vector<2x64xbf16>, vector<2x64xbf16>, vector<2x64xbf16>, vector<2x64xbf16>, vector<2x64xbf16>, vector<2x64xbf16>, vector<2x64xbf16>, vector<2x64xbf16>, vector<2x64xbf16>, vector<2x64xbf16>, vector<2x64xbf16>, vector<2x64xbf16>, vector<2x64xbf16>, vector<2x64xbf16>, vector<2x64xbf16> -> vector<2x1024xbf16>
    %101 = tpu.concatenate %83, %85, %87, %89, %91, %93, %95, %97, %99 in 1 : vector<2x64xbf16>, vector<2x64xbf16>, vector<2x64xbf16>, vector<2x64xbf16>, vector<2x64xbf16>, vector<2x64xbf16>, vector<2x64xbf16>, vector<2x64xbf16>, vector<2x64xbf16> -> vector<2x576xbf16>
    %102 = tpu.concatenate %100, %101 in 1 : vector<2x1024xbf16>, vector<2x576xbf16> -> vector<2x1600xbf16>
    %c0_14 = arith.constant 0 : index
    %c0_15 = arith.constant 0 : index
    %103 = vector.load %arg6[%c0_14, %c0_15] : memref<1600x128xbf16, #tpu.memory_space<vmem>>, vector<1600x128xbf16>
    %cst_16 = arith.constant dense<0.000000e+00> : vector<2x128xf32>
    %104 = tpu.matmul %102, %103, %cst_16 {dimension_numbers = #tpu.dot_dimension_numbers<[1], [0], [0], [1], [0, 0, 1, 1], [], []>} : vector<2x1600xbf16>, vector<1600x128xbf16>, vector<2x128xf32> -> vector<2x128xf32>
    %c0_17 = arith.constant 0 : index
    %c0_18 = arith.constant 0 : index
    %105 = vector.load %arg7[%c0_17, %c0_18] : memref<1x128xf32, #tpu.memory_space<vmem>>, vector<1x128xf32>
    %106 = vector.broadcast %105 : vector<1x128xf32> to vector<2x128xf32>
    %107 = arith.addf %104, %106 : vector<2x128xf32>
    %cst_19 = arith.constant 0.000000e+00 : f32
    %108 = vector.broadcast %cst_19 : f32 to vector<2x128xf32>
    %109 = arith.maximumf %107, %108 : vector<2x128xf32>
    %110 = arith.truncf %109 : vector<2x128xf32> to vector<2x128xbf16>
    %c0_20 = arith.constant 0 : index
    %c0_21 = arith.constant 0 : index
    %111 = vector.load %arg8[%c0_20, %c0_21] : memref<128x128xbf16, #tpu.memory_space<vmem>>, vector<128x128xbf16>
    %cst_22 = arith.constant dense<0.000000e+00> : vector<2x128xf32>
    %112 = tpu.matmul %110, %111, %cst_22 {dimension_numbers = #tpu.dot_dimension_numbers<[1], [0], [0], [1], [0, 0, 1, 1], [], []>} : vector<2x128xbf16>, vector<128x128xbf16>, vector<2x128xf32> -> vector<2x128xf32>
    %c0_23 = arith.constant 0 : index
    %c0_24 = arith.constant 0 : index
    %113 = vector.load %arg9[%c0_23, %c0_24] : memref<1x128xf32, #tpu.memory_space<vmem>>, vector<1x128xf32>
    %114 = vector.broadcast %113 : vector<1x128xf32> to vector<2x128xf32>
    %115 = arith.addf %112, %114 : vector<2x128xf32>
    %c0_25 = arith.constant 0 : index
    %c0_26 = arith.constant 0 : index
    %116 = vector.load %arg10[%c0_25, %c0_26] : memref<2x128xf32, #tpu.memory_space<vmem>>, vector<2x128xf32>
    tpu.vector_store %arg10[%c0_25, %c0_26], %115 {strides = array<i32>} : memref<2x128xf32, #tpu.memory_space<vmem>>, vector<2x128xf32>,
    return
  }
  func.func @transform_0(%arg0: i32) -> (i32, i32) {
    %c0_i32 = arith.constant 0 : i32
    %c0_i32_0 = arith.constant 0 : i32
    return %arg0, %c0_i32 : i32, i32
  }
  func.func @transform_1(%arg0: i32) -> (i32, i32) {
    %c0_i32 = arith.constant 0 : i32
    %c0_i32_0 = arith.constant 0 : i32
    %c0_i32_1 = arith.constant 0 : i32
    return %c0_i32, %c0_i32_0 : i32, i32
  }
  func.func @transform_2(%arg0: i32) -> (i32, i32) {
    %c0_i32 = arith.constant 0 : i32
    %c0_i32_0 = arith.constant 0 : i32
    %c0_i32_1 = arith.constant 0 : i32
    return %c0_i32, %c0_i32_0 : i32, i32
  }
  func.func @transform_3(%arg0: i32) -> (i32, i32) {
    %c0_i32 = arith.constant 0 : i32
    %c0_i32_0 = arith.constant 0 : i32
    %c0_i32_1 = arith.constant 0 : i32
    return %c0_i32, %c0_i32_0 : i32, i32
  }
  func.func @transform_4(%arg0: i32) -> (i32, i32) {
    %c0_i32 = arith.constant 0 : i32
    %c0_i32_0 = arith.constant 0 : i32
    %c0_i32_1 = arith.constant 0 : i32
    return %c0_i32, %c0_i32_0 : i32, i32
  }
  func.func @transform_5(%arg0: i32) -> (i32, i32) {
    %c0_i32 = arith.constant 0 : i32
    %c0_i32_0 = arith.constant 0 : i32
    %c0_i32_1 = arith.constant 0 : i32
    return %c0_i32, %c0_i32_0 : i32, i32
  }
  func.func @transform_6(%arg0: i32) -> (i32, i32) {
    %c0_i32 = arith.constant 0 : i32
    %c0_i32_0 = arith.constant 0 : i32
    %c0_i32_1 = arith.constant 0 : i32
    return %c0_i32, %c0_i32_0 : i32, i32
  }
  func.func @transform_7(%arg0: i32) -> (i32, i32) {
    %c0_i32 = arith.constant 0 : i32
    %c0_i32_0 = arith.constant 0 : i32
    %c0_i32_1 = arith.constant 0 : i32
    return %c0_i32, %c0_i32_0 : i32, i32
  }
  func.func @transform_8(%arg0: i32) -> (i32, i32) {
    %c0_i32 = arith.constant 0 : i32
    %c0_i32_0 = arith.constant 0 : i32
    %c0_i32_1 = arith.constant 0 : i32
    return %c0_i32, %c0_i32_0 : i32, i32
  }
  func.func @transform_9(%arg0: i32) -> (i32, i32) {
    %c0_i32 = arith.constant 0 : i32
    %c0_i32_0 = arith.constant 0 : i32
    return %arg0, %c0_i32 : i32, i32
  }
}

</mosaic_0001>

<bundles_post_ra>
// kernel: mnist_forward.1
= control target key start
LH: loop header
LB: loop body
LE: loop exit
PB: predicated region body
PF: predicated region fallthrough
CT: control target
= control target key end

     0   :  { %vm213_vm0 = vcmask 293888   ;;  %vm280_vm1 = vcmask 1041408   ;;  %s22308_s0 = inlined_call_operand.vmem [shape: bf16[338,36], index: 0, kind: input, shape index: {}]   ;;  %s22309_s1 = inlined_call_operand.vmem [shape: bf16[36,128], index: 1, kind: input, shape index: {}]   ;;  %s22310_s2 = inlined_call_operand.vmem [shape: f32[1,128], index: 2, kind: input, shape index: {}]   ;;  %s22311_s3 = inlined_call_operand.vmem [shape: bf16[288,64], index: 3, kind: input, shape index: {}]   ;;  %s22312_s4 = inlined_call_operand.vmem [shape: f32[1,64], index: 4, kind: input, shape index: {}]   ;;  %s22313_s5 = inlined_call_operand.vmem [shape: bf16[1600,128], index: 5, kind: input, shape index: {}]   ;;  %s22314_s6 = inlined_call_operand.vmem [shape: f32[1,128], index: 6, kind: input, shape index: {}]   ;;  %s22315_s7 = inlined_call_operand.vmem [shape: bf16[128,128], index: 7, kind: input, shape index: {}]   ;;  %s22316_s8 = inlined_call_operand.vmem [shape: f32[1,128], index: 8, kind: input, shape index: {}]   ;;  %s22317_s9 = inlined_call_operand.hbm [shape: f32[2,128], index: 9, kind: output, shape index: {}]  }
   0x1   :  { %v15817_v0 = vld [vmem:[%s22309_s1] sm:$0xff]   ;;  %v15818_v1 = vld [vmem:[%s22309_s1 + $0x8] sm:$0xff]   ;;  %v15819_v2 = vld [vmem:[%s22309_s1 + $0x10] ss:$0 sps:$4 sm:$0x33]  }
   0x2   :  { %15481 = vmatprep.subr.bf16.mxu0 %v15817_v0  ;;  %v15820_v3 = vld [vmem:[%s22308_s0] sm:$0xff]   ;;  %v282_v4 = vsel %vm280_vm1, %v15819_v2, 0  ;;  %v15821_v5 = vld [vmem:[%s22308_s0 + $0x8] sm:$0xff]   ;;  %v15822_v6 = vld [vmem:[%s22308_s0 + $0x10] sm:$0xff]  }
   0x3   :  { %15482 = vmatpush3.bf16.msra.mxu0 %v15817_v0  ;;  %15487 = vmatprep.mubr.msk.bf16.mxu0 %vm213_vm0, %v15820_v3  ;;  %v15823_v7 = vld [vmem:[%s22308_s0 + $0x18] sm:$0xff]   ;;  %v15824_v8 = vld [vmem:[%s22308_s0 + $0x20] sm:$0xff]   ;;  %v15825_v9 = vld [vmem:[%s22308_s0 + $0x28] sm:$0xff]  }
   0x4   :  { %15483 = vmatprep.subr.bf16.mxu0 %v15818_v1  ;;  %v15826_v10 = vld [vmem:[%s22308_s0 + $0x30] sm:$0xff]   ;;  %v15827_v11 = vld [vmem:[%s22308_s0 + $0x38] sm:$0xff]   ;;  %v15828_v12 = vld [vmem:[%s22308_s0 + $0x40] sm:$0xff]  }
   0x5   :  { %v15829_v13 = vld [vmem:[%s22308_s0 + $0x48] sm:$0xff]   ;;  %v15830_v14 = vld [vmem:[%s22308_s0 + $0x50] sm:$0xff]   ;;  %v15831_v15 = vld [vmem:[%s22308_s0 + $0x58] sm:$0xff]  }
   0x6   :  { %v15832_v16 = vld [vmem:[%s22308_s0 + $0x60] sm:$0xff]   ;;  %v15833_v17 = vld [vmem:[%s22308_s0 + $0x68] sm:$0xff]   ;;  %v15834_v18 = vld [vmem:[%s22308_s0 + $0x70] sm:$0xff]  }
   0x7   :  { %15484 = vmatpush3.bf16.msra.mxu0 %v15818_v1  ;;  %v15835_v19 = vld [vmem:[%s22308_s0 + $0x78] sm:$0xff]   ;;  %v15836_v20 = vld [vmem:[%s22308_s0 + $0x80] sm:$0xff]   ;;  %v15837_v21 = vld [vmem:[%s22308_s0 + $0x88] sm:$0xff]  }
   0x8   :  { %15599 = vmatprep.subr.msk.bf16.mxu0 %vm280_vm1, %v15819_v2  ;;  %v15838_v22 = vld [vmem:[%s22308_s0 + $0x90] sm:$0xff]   ;;  %v15839_v23 = vld [vmem:[%s22308_s0 + $0x98] sm:$0xff]   ;;  %v15840_v24 = vld [vmem:[%s22308_s0 + $0xa0] sm:$0xff]  }
   0x9   :  { %v15841_v25 = vld [vmem:[%s22308_s0 + $0xa8] ss:$0 sps:$4 sm:$0x11]  }
   0xb   :  { %15486 = vmatpush3.bf16.msra.mxu0 %v282_v4 }
   0xe   :  { %15488 = vmatmul.mubr.msk.bf16.vlgmr.msra.gmra.mrb[0].mxu0 %vm213_vm0, %v15821_v5 }
   0xf   :  { %15491 = vmatprep.mubr.msk.bf16.mxu0 %vm213_vm0, %v15822_v6 }
  0x16   :  { %15492 = vmatmul.mubr.msk.bf16.gmra.mrb[4].mxu0 %vm213_vm0, %v15823_v7 }
  0x17   :  { %15495 = vmatprep.mubr.msk.bf16.mxu0 %vm213_vm0, %v15824_v8 }
  0x1e   :  { %15496 = vmatmul.mubr.msk.bf16.gmra.mrb[8].mxu0 %vm213_vm0, %v15825_v9 }
  0x1f   :  { %15499 = vmatprep.mubr.msk.bf16.mxu0 %vm213_vm0, %v15826_v10 }
  0x26   :  { %15500 = vmatmul.mubr.msk.bf16.gmra.mrb[12].mxu0 %vm213_vm0, %v15827_v11 }
  0x27   :  { %15503 = vmatprep.mubr.msk.bf16.mxu0 %vm213_vm0, %v15828_v12 }
  0x2e   :  { %15504 = vmatmul.mubr.msk.bf16.gmra.mrb[16].mxu0 %vm213_vm0, %v15829_v13 }
  0x2f   :  { %15507 = vmatprep.mubr.msk.bf16.mxu0 %vm213_vm0, %v15830_v14 }
  0x36   :  { %15508 = vmatmul.mubr.msk.bf16.gmra.mrb[20].mxu0 %vm213_vm0, %v15831_v15 }
  0x37   :  { %15511 = vmatprep.mubr.msk.bf16.mxu0 %vm213_vm0, %v15832_v16 }
  0x3e   :  { %15512 = vmatmul.mubr.msk.bf16.gmra.mrb[24].mxu0 %vm213_vm0, %v15833_v17 }
  0x3f   :  { %15515 = vmatprep.mubr.msk.bf16.mxu0 %vm213_vm0, %v15834_v18 }
  0x46   :  { %15516 = vmatmul.mubr.msk.bf16.gmra.mrb[28].mxu0 %vm213_vm0, %v15835_v19 }
  0x47   :  { %15519 = vmatprep.mubr.msk.bf16.mxu0 %vm213_vm0, %v15836_v20 }
  0x4e   :  { %15520 = vmatmul.mubr.msk.bf16.gmra.mrb[32].mxu0 %vm213_vm0, %v15837_v21 }
  0x4f   :  { %15523 = vmatprep.mubr.msk.bf16.mxu0 %vm213_vm0, %v15838_v22 }
  0x56   :  { %15524 = vmatmul.mubr.msk.bf16.gmra.mrb[36].mxu0 %vm213_vm0, %v15839_v23 }
  0x57   :  { %15527 = vmatprep.mubr.msk.bf16.mxu0 %vm213_vm0, %v15840_v24 }
  0x5e   :  { %15528 = vmatmul.mubr.msk.bf16.gmra.mrb[40].mxu0 %vm213_vm0, %v15841_v25 }
  0x5f   :  { %14 = vsyncpa [#allocation3], 0  ;;  %v16151_v26 = vld [vmem:[%s22310_s2] ss:$0 sm:$0xff]  ;;  %s15994_s0 = smov 96   ;;  %s15995_s2 = smov 64  }
  0x60   :  { %s15997_s1 = smov 32   ;;  %vm8330_vm2 = vcmask 261120   ;;  %vm8379_vm3 = vcmask 523264   ;;  %vm8412_vm4 = vcmask 785408   ;;  %vm11550_vm5 = vcmask 516096   ;;  %s16000_s29 = smov [#allocation2]  }
  0x61   :  { %vm13206_vm6 = vcmask 1041409   ;;  %vm15999_vm7 = vmmov 0   ;;  %s14635_s30 = sshll.u32 %s16000_s29, 4  ;;  %s14636_s30 = int_to_ptr.vmem [resolvable:$true] %s14635_s30 }
  0x62   :  { %s15970_s10 = scalar_lea.vmem %s14636_s30, 32  ;;  %p15975_p1 = scmp.lt.s32.totalorder %s14636_s30, %s14636_s30 }
  0x63   :  { %p15971_p0 = scmp.ne.s32.totalorder %s14636_s30, %s15970_s10  ;;  %p15976_p2 = scmp.lt.s32.totalorder %s15970_s10, %s15970_s10 }
  0x65   :  { %p15977_p3 = por %p15976_p2, %p15975_p1 }
  0x67   :  { %p15978_p4 = pnand %p15977_p3, %p15971_p0 }
  0xe1   :  { %v15489_v27 = vpop.f32.mrb[0].mxu0 }
  0xe2   :  { %v318_v28 = vpop.f32.mrb[1].mxu0  ;;  %v16154_v29 = vadd.f32 %v15489_v27, %v16151_v26 }
  0xe3   :  { %v15490_v30 = vpop.f32.mrb[2].mxu0  ;;  %v16157_v32 = vadd.f32 %v16151_v26, %v318_v28 }
  0xe4   :  { %v321_v31 = vpop.f32.mrb[3].mxu0  ;;  %v16160_v33 = vadd.f32 %v15490_v30, %v16151_v26  ;;  %v494_v35 = vmax.f32 %v16154_v29, 0.0 }
  0xe5   :  { %v16163_v34 = vadd.f32 %v16151_v26, %v321_v31  ;;  %v492_v37 = vmax.f32 %v16157_v32, 0.0 }
  0xe6   :  { %v495_v38 = vmax.f32 %v16160_v33, 0.0 }
  0xe7   :  { %v493_v36 = vmax.f32 %v16163_v34, 0.0 }
  0xe8   :  { %v15612_v45 = vpack.i.bf16 %v492_v37, %v495_v38 }
  0xe9   :  { %v15493_v39 = vpop.f32.mrb[4].mxu0  ;;  %v15607_v40 = vpack.i.bf16 %v494_v35, %v493_v36 }
  0xea   :  { %v334_v41 = vpop.f32.mrb[5].mxu0  ;;  %v16188_v48 = vadd.f32 %v15493_v39, %v16151_v26 }
  0xeb   :  { %v16174_v42 = vadd.f32 %v16151_v26, %v334_v41  ;;  %v15494_v43 = vpop.f32.mrb[6].mxu0  ;;  %15608 = vrot.lane.b32.xlu0 %v15607_v40, %s15994_s0 }
  0xec   :  { %v337_v44 = vpop.f32.mrb[7].mxu0  ;;  %v16182_v46 = vadd.f32 %v15494_v43, %v16151_v26  ;;  %v498_v56 = vmax.f32 %v16188_v48, 0.0 }
  0xed   :  { %v16185_v47 = vadd.f32 %v16151_v26, %v337_v44  ;;  %v496_v49 = vmax.f32 %v16174_v42, 0.0 }
  0xee   :  { %v499_v51 = vmax.f32 %v16182_v46, 0.0 }
  0xef   :  { %v497_v50 = vmax.f32 %v16185_v47, 0.0  ;;  %15613 = vrot.lane.b32.xlu0 %v15612_v45, %s15994_s0 }
  0xf0   :  { %v15622_v62 = vpack.i.bf16 %v499_v51, %v498_v56 }
  0xf1   :  { %v15497_v52 = vpop.f32.mrb[8].mxu0  ;;  %v15617_v53 = vpack.i.bf16 %v497_v50, %v496_v49 }
  0xf2   :  { %v16199_v54 = vadd.f32 %v15497_v52, %v16151_v26  ;;  %v350_v55 = vpop.f32.mrb[9].mxu0 }
  0xf3   :  { %v16203_v57 = vadd.f32 %v16151_v26, %v350_v55  ;;  %v15498_v58 = vpop.f32.mrb[10].mxu0  ;;  %15618 = vrot.lane.b32.xlu1 %v15617_v53, %s15994_s0 }
  0xf4   :  { %v502_v59 = vmax.f32 %v16199_v54, 0.0  ;;  %v16208_v60 = vadd.f32 %v15498_v58, %v16151_v26  ;;  %v353_v61 = vpop.f32.mrb[11].mxu0 }
  0xf5   :  { %v22342_v63 = vmax.f32 %v16203_v57, 0.0  ;;  %v16216_v0 = vadd.f32 %v16151_v26, %v353_v61 }
  0xf6   :  { %v503_v1 = vmax.f32 %v16208_v60, 0.0 }
  0xf7   :  { %v22345_v2 = vmax.f32 %v16216_v0, 0.0  ;;  %15623 = vrot.lane.b32.xlu1 %v15622_v62, %s15994_s0 }
  0xf8   :  { %v15632_v3 = vpack.i.bf16 %v503_v1, %v502_v59 }
  0xf9   :  { %v15627_v4 = vpack.i.bf16 %v22345_v2, %v22342_v63  ;;  %v15501_v5 = vpop.f32.mrb[12].mxu0 }
  0xfa   :  { %v16230_v6 = vadd.f32 %v15501_v5, %v16151_v26  ;;  %v366_v7 = vpop.f32.mrb[13].mxu0 }
  0xfb   :  { %v16233_v8 = vadd.f32 %v16151_v26, %v366_v7  ;;  %v15502_v9 = vpop.f32.mrb[14].mxu0  ;;  %15633 = vrot.lane.b32.xlu1 %v15632_v3, %s15994_s0  ;;  %15628 = vrot.lane.b32.xlu0 %v15627_v4, %s15994_s0 }
  0xfc   :  { %v22334_v10 = vmax.f32 %v16230_v6, 0.0  ;;  %v16239_v11 = vadd.f32 %v15502_v9, %v16151_v26  ;;  %v369_v12 = vpop.f32.mrb[15].mxu0 }
  0xfd   :  { %v22340_v13 = vmax.f32 %v16233_v8, 0.0  ;;  %v16243_v14 = vadd.f32 %v16151_v26, %v369_v12 }
  0xfe   :  { %v22339_v15 = vmax.f32 %v16239_v11, 0.0 }
  0xff   :  { %v22341_v16 = vmax.f32 %v16243_v14, 0.0 }
 0x100   :  { %v15637_v17 = vpack.i.bf16 %v22339_v15, %v22334_v10 }
 0x101   :  { %v15642_v18 = vpack.i.bf16 %v22341_v16, %v22340_v13  ;;  %v15505_v19 = vpop.f32.mrb[16].mxu0 }
 0x102   :  { %v16256_v20 = vadd.f32 %v15505_v19, %v16151_v26  ;;  %v382_v21 = vpop.f32.mrb[17].mxu0  ;;  %15638 = vrot.lane.b32.xlu1 %v15637_v17, %s15994_s0 }
 0x103   :  { %v16260_v22 = vadd.f32 %v16151_v26, %v382_v21  ;;  %v15506_v23 = vpop.f32.mrb[18].mxu0  ;;  %15643 = vrot.lane.b32.xlu0 %v15642_v18, %s15994_s0 }
 0x104   :  { %v22332_v24 = vmax.f32 %v16256_v20, 0.0  ;;  %v16265_v25 = vadd.f32 %v15506_v23, %v16151_v26  ;;  %v385_v27 = vpop.f32.mrb[19].mxu0 }
 0x105   :  { %v22326_v28 = vmax.f32 %v16260_v22, 0.0  ;;  %v16269_v30 = vadd.f32 %v16151_v26, %v385_v27 }
 0x106   :  { %v22333_v31 = vmax.f32 %v16265_v25, 0.0 }
 0x107   :  { %v22329_v39 = vmax.f32 %v16269_v30, 0.0 }
 0x108   :  { %v15647_v40 = vpack.i.bf16 %v22333_v31, %v22332_v24 }
 0x109   :  { %v15652_v41 = vpack.i.bf16 %v22329_v39, %v22326_v28  ;;  %v15509_v43 = vpop.f32.mrb[20].mxu0 }
 0x10a   :  { %v398_v44 = vpop.f32.mrb[21].mxu0  ;;  %15648 = vrot.lane.b32.xlu1 %v15647_v40, %s15994_s0  ;;  %v16299_v5 = vadd.f32 %v15509_v43, %v16151_v26 }
 0x10b   :  { %v16283_v45 = vadd.f32 %v16151_v26, %v398_v44  ;;  %v15510_v52 = vpop.f32.mrb[22].mxu0  ;;  %15653 = vrot.lane.b32.xlu0 %v15652_v41, %s15994_s0 }
 0x10c   :  { %v401_v53 = vpop.f32.mrb[23].mxu0  ;;  %v16291_v61 = vadd.f32 %v15510_v52, %v16151_v26  ;;  %v22323_v41 = vmax.f32 %v16299_v5, 0.0 }
 0x10d   :  { %v22325_v55 = vmax.f32 %v16283_v45, 0.0  ;;  %v16288_v58 = vadd.f32 %v16151_v26, %v401_v53 }
 0x10e   :  { %v22318_v12 = vmax.f32 %v16291_v61, 0.0 }
 0x10f   :  { %v22324_v62 = vmax.f32 %v16288_v58, 0.0 }
 0x111   :  { %v15657_v3 = vpack.i.bf16 %v22325_v55, %v22324_v62  ;;  %v15513_v4 = vpop.f32.mrb[24].mxu0 }
 0x112   :  { %v16302_v7 = vadd.f32 %v15513_v4, %v16151_v26  ;;  %v414_v9 = vpop.f32.mrb[25].mxu0 }
 0x113   :  { %v16306_v17 = vadd.f32 %v16151_v26, %v414_v9  ;;  %v15514_v18 = vpop.f32.mrb[26].mxu0  ;;  %15658 = vrot.lane.b32.xlu0 %v15657_v3, %s15994_s0 }
 0x114   :  { %v22319_v19 = vmax.f32 %v16302_v7, 0.0  ;;  %v16311_v21 = vadd.f32 %v15514_v18, %v16151_v26  ;;  %v417_v23 = vpop.f32.mrb[27].mxu0 }
 0x115   :  { %v22321_v27 = vmax.f32 %v16306_v17, 0.0  ;;  %v16315_v40 = vadd.f32 %v16151_v26, %v417_v23 }
 0x116   :  { %v22320_v43 = vmax.f32 %v16311_v21, 0.0 }
 0x117   :  { %v15662_v44 = vpack.i.bf16 %v22321_v27, %v22318_v12  ;;  %v22322_v52 = vmax.f32 %v16315_v40, 0.0 }
 0x118   :  { %v15667_v53 = vpack.i.bf16 %v22320_v43, %v22319_v19 }
 0x119   :  { %v15517_v3 = vpop.f32.mrb[28].mxu0  ;;  %15663 = vrot.lane.b32.xlu1 %v15662_v44, %s15994_s0  ;;  %v15672_v4 = vpack.i.bf16 %v22323_v41, %v22322_v52 }
 0x11a   :  { %v16334_v9 = vadd.f32 %v15517_v3, %v16151_v26  ;;  %v430_v18 = vpop.f32.mrb[29].mxu0  ;;  %15668 = vrot.lane.b32.xlu0 %v15667_v53, %s15994_s0 }
 0x11b   :  { %v16338_v23 = vadd.f32 %v16151_v26, %v430_v18  ;;  %v15518_v12 = vpop.f32.mrb[30].mxu0 }
 0x11c   :  { %v22327_v19 = vmax.f32 %v16334_v9, 0.0  ;;  %v16342_v43 = vadd.f32 %v15518_v12, %v16151_v26  ;;  %v433_v44 = vpop.f32.mrb[31].mxu0 }
 0x11d   :  { %v16345_v27 = vadd.f32 %v16151_v26, %v433_v44  ;;  %v22330_v52 = vmax.f32 %v16338_v23, 0.0 }
 0x11e   :  { %v22328_v3 = vmax.f32 %v16342_v43, 0.0  ;;  %15673 = vrot.lane.b32.xlu0 %v15672_v4, %s15994_s0 }
 0x11f   :  { %v22331_v53 = vmax.f32 %v16345_v27, 0.0 }
 0x120   :  { %v15677_v18 = vpack.i.bf16 %v22328_v3, %v22327_v19 }
 0x121   :  { %v15521_v41 = vpop.f32.mrb[32].mxu0  ;;  %v15682_v12 = vpack.i.bf16 %v22331_v53, %v22330_v52 }
 0x122   :  { %v16360_v44 = vadd.f32 %v15521_v41, %v16151_v26  ;;  %v446_v62 = vpop.f32.mrb[33].mxu0  ;;  %15678 = vrot.lane.b32.xlu0 %v15677_v18, %s15994_s0 }
 0x123   :  { %v16364_v4 = vadd.f32 %v16151_v26, %v446_v62  ;;  %v15522_v55 = vpop.f32.mrb[34].mxu0 }
 0x124   :  { %v22335_v28 = vmax.f32 %v16360_v44, 0.0  ;;  %v16368_v19 = vadd.f32 %v15522_v55, %v16151_v26  ;;  %v449_v3 = vpop.f32.mrb[35].mxu0 }
 0x125   :  { %v22337_v39 = vmax.f32 %v16364_v4, 0.0  ;;  %v16372_v52 = vadd.f32 %v16151_v26, %v449_v3 }
 0x126   :  { %v22336_v41 = vmax.f32 %v16368_v19, 0.0  ;;  %15683 = vrot.lane.b32.xlu0 %v15682_v12, %s15994_s0 }
 0x127   :  { %v22338_v18 = vmax.f32 %v16372_v52, 0.0 }
 0x128   :  { %v15687_v62 = vpack.i.bf16 %v22336_v41, %v22335_v28 }
 0x129   :  { %v15692_v55 = vpack.i.bf16 %v22338_v18, %v22337_v39  ;;  %v15525_v53 = vpop.f32.mrb[36].mxu0 }
 0x12a   :  { %v462_v24 = vpop.f32.mrb[37].mxu0  ;;  %15688 = vrot.lane.b32.xlu1 %v15687_v62, %s15994_s0 }
 0x12b   :  { %v16387_v3 = vadd.f32 %v16151_v26, %v462_v24  ;;  %v15526_v12 = vpop.f32.mrb[38].mxu0  ;;  %15693 = vrot.lane.b32.xlu0 %v15692_v55, %s15994_s0 }
 0x12c   :  { %v465_v31 = vpop.f32.mrb[39].mxu0  ;;  %v16414_v2 = vadd.f32 %v15526_v12, %v16151_v26 }
 0x12d   :  { %v22343_v10 = vmax.f32 %v16387_v3, 0.0  ;;  %v16392_v28 = vadd.f32 %v16151_v26, %v465_v31 }
 0x12e   :  { %v531_v32 = vmax.f32 %v16414_v2, 0.0 }
 0x12f   :  { %v22344_v41 = vmax.f32 %v16392_v28, 0.0 }
 0x131   :  { %v15697_v39 = vpack.i.bf16 %v22344_v41, %v22343_v10  ;;  %v16399_v62 = vpop.f32.mrb[40].mxu0  ;;  %v16411_v10 = vadd.f32 %v15525_v53, %v16151_v26 }
 0x132   :  { %v478_v24 = vpop.f32.mrb[41].mxu0 }
 0x133   :  { %15698 = vrot.lane.b32.xlu1 %v15697_v39, %s15994_s0  ;;  %v15530_v18 = vpop.f32.mrb[42].mxu0 }
 0x134   :  { %v481_v55 = vpop.f32.mrb[43].mxu0 }
 0x15d   :  { %v15609_v15 = vpop.permute.xlu0 %15608 }
 0x15e   :  { %v15611_v13 = vunpack.i.h.bf16 %v15609_v15  ;;  %v15610_v16 = vunpack.i.l.bf16 %v15609_v15 }
 0x160   :  { %v16404_v31 = vmax.f32 %v494_v35, %v15611_v13  ;;  %v16408_v63 = vmax.f32 %v493_v36, %v15610_v16  ;;  %v16428_v35 = vadd.f32 %v16151_v26, %v478_v24  ;;  %v16431_v36 = vadd.f32 %v16151_v26, %v481_v55 }
 0x161   :  { %v15614_v41 = vpop.permute.xlu0 %15613  ;;  %v22346_v16 = vmax.f32 %v16411_v10, 0.0 }
 0x162   :  { %v15616_v39 = vunpack.i.h.bf16 %v15614_v41  ;;  %v15615_v18 = vunpack.i.l.bf16 %v15614_v41  ;;  %v15717_v15 = vpack.i.bf16 %v16404_v31, %v16408_v63  ;;  %v22347_v33 = vmax.f32 %v16428_v35, 0.0 }
 0x163   :  { %v15707_v41 = vpack.i.bf16 %v531_v32, %v22346_v16 }
 0x164   :  { %v16420_v29 = vmax.f32 %v492_v37, %v15616_v39  ;;  %v16424_v34 = vmax.f32 %v495_v38, %v15615_v18  ;;  %15718 = vrot.lane.b32.xlu1 %v15717_v15, %s15995_s2  ;;  %v22348_v38 = vmax.f32 %v16431_v36, 0.0 }
 0x165   :  { %v15619_v13 = vpop.permute.xlu1 %15618 }
 0x166   :  { %v15702_v37 = vpack.i.bf16 %v16420_v29, %v16424_v34  ;;  %v15621_v12 = vunpack.i.h.bf16 %v15619_v13  ;;  %v15620_v39 = vunpack.i.l.bf16 %v15619_v13  ;;  %v15712_v18 = vpack.i.bf16 %v22348_v38, %v22347_v33 }
 0x168   :  { %15703 = vrot.lane.b32.xlu0 %v15702_v37, %s15995_s2  ;;  %v16463_v13 = vmax.f32 %v496_v49, %v15620_v39 }
 0x169   :  { %v15624_v53 = vpop.permute.xlu1 %15623 }
 0x16a   :  { %v15626_v24 = vunpack.i.h.bf16 %v15624_v53  ;;  %v15625_v55 = vunpack.i.l.bf16 %v15624_v53  ;;  %v16459_v53 = vmax.f32 %v497_v50, %v15621_v12 }
 0x16c   :  { %v16450_v15 = vmax.f32 %v499_v51, %v15626_v24  ;;  %v16454_v37 = vmax.f32 %v498_v56, %v15625_v55  ;;  %15708 = vrot.lane.b32.xlu0 %v15707_v41, %s15994_s0  ;;  %v15727_v50 = vpack.i.bf16 %v16459_v53, %v16463_v13  ;;  %v22822_v41 = vmax.f32 %v16216_v0, 0.0 }
 0x16d   :  { %v15634_v16 = vpop.permute.xlu1 %15633  ;;  %v15629_v46 = vpop.permute.xlu0 %15628  ;;  %v22824_v55 = vmax.f32 %v16243_v14, 0.0 }
 0x16e   :  { %v15636_v33 = vunpack.i.h.bf16 %v15634_v16  ;;  %v15635_v38 = vunpack.i.l.bf16 %v15634_v16  ;;  %v15722_v51 = vpack.i.bf16 %v16450_v15, %v16454_v37  ;;  %v15631_v48 = vunpack.i.h.bf16 %v15629_v46 }
 0x16f   :  { %v15630_v49 = vunpack.i.l.bf16 %v15629_v46  ;;  %v22826_v46 = vmax.f32 %v16239_v11, 0.0  ;;  %v22828_v11 = vmax.f32 %v16265_v25, 0.0 }
 0x170   :  { %15713 = vrot.lane.b32.xlu0 %v15712_v18, %s15994_s0  ;;  %15723 = vrot.lane.b32.xlu1 %v15722_v51, %s15995_s2  ;;  %v16471_v47 = vmax.f32 %v503_v1, %v15636_v33  ;;  %v16475_v42 = vmax.f32 %v502_v59, %v15635_v38  ;;  %v16482_v12 = vmax.f32 %v22822_v41, %v15631_v48  ;;  %v22823_v1 = vmax.f32 %v16203_v57, 0.0 }
 0x171   :  { %v22825_v18 = vmax.f32 %v16233_v8, 0.0  ;;  %v22827_v48 = vmax.f32 %v16230_v6, 0.0  ;;  %v22829_v6 = vmax.f32 %v16256_v20, 0.0 }
 0x172   :  { %v16486_v33 = vmax.f32 %v22823_v1, %v15630_v49  ;;  %v15732_v38 = vpack.i.bf16 %v16471_v47, %v16475_v42 }
 0x174   :  { %v15639_v56 = vpop.permute.xlu1 %15638  ;;  %15728 = vrot.lane.b32.xlu1 %v15727_v50, %s15995_s2  ;;  %v15737_v14 = vpack.i.bf16 %v16482_v12, %v16486_v33 }
 0x175   :  { %v15644_v16 = vpop.permute.xlu0 %15643  ;;  %v15641_v54 = vunpack.i.h.bf16 %v15639_v56  ;;  %v15640_v59 = vunpack.i.l.bf16 %v15639_v56 }
 0x176   :  { %v15646_v24 = vunpack.i.h.bf16 %v15644_v16  ;;  %v15645_v60 = vunpack.i.l.bf16 %v15644_v16 }
 0x177   :  { %v16503_v51 = vmax.f32 %v22826_v46, %v15641_v54  ;;  %v16507_v49 = vmax.f32 %v22827_v48, %v15640_v59  ;;  %v22830_v59 = vmax.f32 %v16269_v30, 0.0  ;;  %v22832_v30 = vmax.f32 %v16283_v45, 0.0 }
 0x178   :  { %v16492_v39 = vmax.f32 %v22824_v55, %v15646_v24  ;;  %v16496_v0 = vmax.f32 %v22825_v18, %v15645_v60  ;;  %15733 = vrot.lane.b32.xlu1 %v15732_v38, %s15995_s2  ;;  %v22831_v55 = vmax.f32 %v16260_v22, 0.0 }
 0x179   :  { %v15742_v54 = vpack.i.bf16 %v16503_v51, %v16507_v49 }
 0x17a   :  { %v15747_v57 = vpack.i.bf16 %v16492_v39, %v16496_v0 }
 0x17c   :  { %v15649_v50 = vpop.permute.xlu1 %15648  ;;  %15748 = vrot.lane.b32.xlu0 %v15747_v57, %s15995_s2  ;;  %15738 = vrot.lane.b32.xlu1 %v15737_v14, %s15995_s2  ;;  %v22833_v14 = vmax.f32 %v16288_v58, 0.0 }
 0x17d   :  { %v15651_v8 = vunpack.i.h.bf16 %v15649_v50  ;;  %v15650_v56 = vunpack.i.l.bf16 %v15649_v50  ;;  %v15654_v16 = vpop.permute.xlu0 %15653 }
 0x17e   :  { %v15656_v41 = vunpack.i.h.bf16 %v15654_v16  ;;  %v15655_v24 = vunpack.i.l.bf16 %v15654_v16 }
 0x17f   :  { %v16515_v60 = vmax.f32 %v22828_v11, %v15651_v8  ;;  %v16519_v1 = vmax.f32 %v22829_v6, %v15650_v56 }
 0x180   :  { %v16525_v38 = vmax.f32 %v22830_v59, %v15656_v41  ;;  %v16529_v18 = vmax.f32 %v22831_v55, %v15655_v24  ;;  %15743 = vrot.lane.b32.xlu1 %v15742_v54, %s15995_s2  ;;  %v22834_v54 = vmax.f32 %v16306_v17, 0.0  ;;  %v22835_v59 = vmax.f32 %v16291_v61, 0.0  ;;  %v15842_v17 = vld [vmem:[%s22311_s3 + $0x80] sm:$0xff]  }
 0x181   :  { %v15752_v25 = vpack.i.bf16 %v16515_v60, %v16519_v1  ;;  %v22836_v55 = vmax.f32 %v16311_v21, 0.0  ;;  %15531 = vmatprep.subr.bf16.mxu0 %v15842_v17  ;;  %v22838_v21 = vmax.f32 %v16299_v5, 0.0  ;;  %v22840_v5 = vmax.f32 %v16342_v43, 0.0 }
 0x182   :  { %v15757_v57 = vpack.i.bf16 %v16525_v38, %v16529_v18  ;;  %15532 = vmatpush3.bf16.msra.mxu0 %v15842_v17  ;;  %v22846_v43 = vmax.f32 %v16338_v23, 0.0 }
 0x183   :  { %15753 = vrot.lane.b32.xlu0 %v15752_v25, %s15995_s2 }
 0x185   :  { %v15659_v20 = vpop.permute.xlu0 %15658 }
 0x186   :  { %v15661_v46 = vunpack.i.h.bf16 %v15659_v20  ;;  %v15660_v48 = vunpack.i.l.bf16 %v15659_v20  ;;  %v22837_v20 = vmax.f32 %v16302_v7, 0.0  ;;  %v22839_v7 = vmax.f32 %v16315_v40, 0.0 }
 0x187   :  { %15758 = vrot.lane.b32.xlu0 %v15757_v57, %s15995_s2  ;;  %v22842_v40 = vmax.f32 %v16334_v9, 0.0 }
 0x188   :  { %v16540_v22 = vmax.f32 %v22832_v30, %v15661_v46  ;;  %v16544_v50 = vmax.f32 %v22833_v14, %v15660_v48 }
 0x18a   :  { %v15762_v8 = vpack.i.bf16 %v16540_v22, %v16544_v50 }
 0x18b   :  { %v15664_v56 = vpop.permute.xlu1 %15663 }
 0x18c   :  { %v15666_v16 = vunpack.i.h.bf16 %v15664_v56  ;;  %v15665_v41 = vunpack.i.l.bf16 %v15664_v56  ;;  %v15669_v24 = vpop.permute.xlu0 %15668  ;;  %15763 = vrot.lane.b32.xlu1 %v15762_v8, %s15995_s2 }
 0x18d   :  { %v15671_v11 = vunpack.i.h.bf16 %v15669_v24  ;;  %v15670_v6 = vunpack.i.l.bf16 %v15669_v24 }
 0x18e   :  { %v16551_v45 = vmax.f32 %v22834_v54, %v15666_v16  ;;  %v16555_v58 = vmax.f32 %v22835_v59, %v15665_v41 }
 0x18f   :  { %v16559_v25 = vmax.f32 %v22836_v55, %v15671_v11  ;;  %v16563_v57 = vmax.f32 %v22837_v20, %v15670_v6 }
 0x190   :  { %v15674_v46 = vpop.permute.xlu0 %15673  ;;  %v15767_v48 = vpack.i.bf16 %v16551_v45, %v16555_v58 }
 0x191   :  { %v15676_v30 = vunpack.i.h.bf16 %v15674_v46  ;;  %v15675_v61 = vunpack.i.l.bf16 %v15674_v46  ;;  %v15772_v16 = vpack.i.bf16 %v16559_v25, %v16563_v57 }
 0x192   :  { %15768 = vrot.lane.b32.xlu0 %v15767_v48, %s15995_s2  ;;  %v22844_v48 = vmax.f32 %v16345_v27, 0.0 }
 0x193   :  { %v16573_v14 = vmax.f32 %v22838_v21, %v15676_v30  ;;  %v16577_v8 = vmax.f32 %v22839_v7, %v15675_v61 }
 0x194   :  { %v15679_v56 = vpop.permute.xlu0 %15678 }
 0x195   :  { %v15681_v41 = vunpack.i.h.bf16 %v15679_v56  ;;  %v15680_v24 = vunpack.i.l.bf16 %v15679_v56  ;;  %v15777_v11 = vpack.i.bf16 %v16573_v14, %v16577_v8 }
 0x196   :  { %15773 = vrot.lane.b32.xlu0 %v15772_v16, %s15995_s2 }
 0x197   :  { %v16586_v6 = vmax.f32 %v22840_v5, %v15681_v41  ;;  %v16590_v54 = vmax.f32 %v22842_v40, %v15680_v24  ;;  %15778 = vrot.lane.b32.xlu1 %v15777_v11, %s15995_s2  ;;  %v22848_v24 = vmax.f32 %v16368_v19, 0.0  ;;  %v22850_v11 = vmax.f32 %v16360_v44, 0.0  ;;  %v15843_v5 = vld [vmem:[%s22311_s3 + $0x88] sm:$0xff]  }
 0x198   :  { %v15684_v59 = vpop.permute.xlu0 %15683  ;;  %v22852_v40 = vmax.f32 %v16372_v52, 0.0  ;;  %15533 = vmatprep.subr.bf16.mxu0 %v15843_v5 }
 0x199   :  { %22841 = vst [vmem:[#allocation5_spill] sm:$0xff] %v16586_v6  ;;  %22843 = vst [vmem:[#allocation6_spill] sm:$0xff] %v16590_v54  ;;  %v15686_v55 = vunpack.i.h.bf16 %v15684_v59  ;;  %v15685_v20 = vunpack.i.l.bf16 %v15684_v59  ;;  %v15782_v46 = vpack.i.bf16 %v16586_v6, %v16590_v54  ;;  %15534 = vmatpush3.bf16.msra.mxu0 %v15843_v5 }
 0x19b   :  { %v16597_v17 = vmax.f32 %v22844_v48, %v15686_v55  ;;  %v16601_v30 = vmax.f32 %v22846_v43, %v15685_v20  ;;  %15783 = vrot.lane.b32.xlu1 %v15782_v46, %s15995_s2  ;;  %v22854_v55 = vmax.f32 %v16364_v4, 0.0  ;;  %v15996_v46 = vmov 1966171168  }
 0x19c   :  { %v15689_v9 = vpop.permute.xlu1 %15688  ;;  %v1011_v52 = vunpack.c.l.s4 %v15996_v46  ;;  %v1013_v48 = vlaneseq }
 0x19d   :  { %22845 = vst [vmem:[#allocation7_spill] sm:$0xff] %v16597_v17  ;;  %22847 = vst [vmem:[#allocation8_spill] sm:$0xff] %v16601_v30  ;;  %v15691_v61 = vunpack.i.h.bf16 %v15689_v9  ;;  %v15690_v21 = vunpack.i.l.bf16 %v15689_v9  ;;  %v15694_v7 = vpop.permute.xlu0 %15693  ;;  %v15787_v56 = vpack.i.bf16 %v16597_v17, %v16601_v30 }
 0x19e   :  { %v15696_v16 = vunpack.i.h.bf16 %v15694_v7  ;;  %v15695_v41 = vunpack.i.l.bf16 %v15694_v7  ;;  %v1012_v9 = vunpack.c.0.s8 %v1011_v52  ;;  %v1014_v4 = vshrl.u32 %v1013_v48, 7 }
 0x19f   :  { %v16608_v27 = vmax.f32 %v22848_v24, %v15691_v61  ;;  %v16612_v23 = vmax.f32 %v22850_v11, %v15690_v21  ;;  %15788 = vrot.lane.b32.xlu1 %v15787_v56, %s15995_s2  ;;  %v16637_v11 = vadd.f32 %v16399_v62, %v16151_v26  ;;  %v22860_v52 = vmax.f32 %v16387_v3, 0.0 }
 0x1a0   :  { %v16620_v59 = vmax.f32 %v22852_v40, %v15696_v16  ;;  %v16624_v20 = vmax.f32 %v22854_v55, %v15695_v41  ;;  %v16632_v16 = vsub.s32 %v1012_v9, %v1014_v4 }
 0x1a1   :  { %22849 = vst [vmem:[#allocation9_spill] sm:$0xff] %v16608_v27  ;;  %22851 = vst [vmem:[#allocation10_spill] sm:$0xff] %v16612_v23  ;;  %v15792_v19 = vpack.i.bf16 %v16608_v27, %v16612_v23 }
 0x1a2   :  { %22853 = vst [vmem:[#allocation11_spill] sm:$0xff] %v16620_v59  ;;  %22855 = vst [vmem:[#allocation12_spill] sm:$0xff] %v16624_v20  ;;  %v15797_v44 = vpack.i.bf16 %v16620_v59, %v16624_v20 }
 0x1a3   :  { %15793 = vrot.lane.b32.xlu1 %v15792_v19, %s15995_s2  ;;  %22856 = vst [vmem:[#allocation13_spill] sm:$0xff] %v16632_v16  ;;  %22857 = vst [vmem:[#allocation14_spill] sm:$0xff] %v16637_v11 }
 0x1a4   :  { %15798 = vrot.lane.b32.xlu0 %v15797_v44, %s15995_s2  ;;  %v22858_v44 = vmax.f32 %v16392_v28, 0.0 }
 0x1a5   :  { %v15699_v43 = vpop.permute.xlu1 %15698 }
 0x1a6   :  { %v15701_v7 = vunpack.i.h.bf16 %v15699_v43  ;;  %v15700_v56 = vunpack.i.l.bf16 %v15699_v43 }
 0x1a8   :  { %v16641_v46 = vmax.f32 %v22858_v44, %v15701_v7  ;;  %v16645_v48 = vmax.f32 %v22860_v52, %v15700_v56 }
 0x1aa   :  { %22859 = vst [vmem:[#allocation15_spill] sm:$0xff] %v16641_v46  ;;  %22861 = vst [vmem:[#allocation16_spill] sm:$0xff] %v16645_v48 }
 0x1d6   :  { %v15719_v61 = vpop.permute.xlu1 %15718 }
 0x1d7   :  { %v15720_v21 = vunpack.i.l.bf16 %v15719_v61  ;;  %v15721_v41 = vunpack.i.h.bf16 %v15719_v61 }
 0x1d9   :  { %v923_v24 = vmax.f32 %v16408_v63, %v15720_v21  ;;  %v924_v43 = vmax.f32 %v16404_v31, %v15721_v41  ;;  %v15807_v31 = vpack.i.bf16 %v16641_v46, %v16645_v48 }
 0x1da   :  { %v15704_v5 = vpop.permute.xlu0 %15703 }
 0x1db   :  { %v14691_v40 = vpack.c.bf16 %v923_v24, %v923_v24  ;;  %v15706_v55 = vunpack.i.h.bf16 %v15704_v5  ;;  %v15705_v19 = vunpack.i.l.bf16 %v15704_v5 }
 0x1dd   :  { %v1023_v63 = vrot.slane %v14691_v40, %v16632_v16  ;;  %v922_v9 = vmax.f32 %v16420_v29, %v15706_v55  ;;  %v925_v26 = vmax.f32 %v16424_v34, %v15705_v19  ;;  %v22865_v19 = vmax.f32 %v16411_v10, 0.0 }
 0x1de   :  { %v15709_v4 = vpop.permute.xlu0 %15708 }
 0x1df   :  { %v1025_v61 = vcombine.high %v1023_v63, %v1023_v63  ;;  %v16653_v28 = vrot.slane %v1023_v63, %v16632_v16  ;;  %v965_v21 = vpack.c.bf16 %v923_v24, %v922_v9  ;;  %v966_v7 = vpack.c.bf16 %v925_v26, %v924_v43 }
 0x1e0   :  { %v14692_v3 = vpack.c.bf16 %v925_v26, %v925_v26  ;;  %v15711_v56 = vunpack.i.h.bf16 %v15709_v4  ;;  %v15710_v5 = vunpack.i.l.bf16 %v15709_v4 }
 0x1e1   :  { %22862 = vst [vmem:[#allocation17_spill] sm:$0xff] %v16653_v28  ;;  %v16658_v41 = vrot.slane %v1025_v61, %v16632_v16  ;;  %v1016_v29 = vrot.slane %v965_v21, %v16632_v16  ;;  %v1065_v34 = vrot.slane %v966_v7, %v16632_v16  ;;  %v16674_v43 = vcombine.high %v16653_v28, %v16653_v28 }
 0x1e2   :  { %v1072_v55 = vrot.slane %v14692_v3, %v16632_v16  ;;  %v16666_v24 = vmax.f32 %v531_v32, %v15711_v56  ;;  %v16670_v44 = vmax.f32 %v22865_v19, %v15710_v5  ;;  %v15714_v52 = vpop.permute.xlu0 %15713  ;;  %v15724_v2 = vpop.permute.xlu1 %15723 }
 0x1e3   :  { %22863 = vst [vmem:[#allocation18_spill] sm:$0xff] %v16658_v41  ;;  %22867 = vst [vmem:[#allocation21_spill] sm:$0xff] %v16674_v43  ;;  %v1024_v63 = vcombine.high %v1016_v29, %v1016_v29  ;;  %v16677_v9 = vrot.slane %v1016_v29, %v16632_v16  ;;  %v1073_v26 = vcombine.high %v1065_v34, %v1065_v34  ;;  %v15726_v10 = vunpack.i.h.bf16 %v15724_v2 }
 0x1e4   :  { %22864 = vst [vmem:[#allocation19_spill] sm:$0xff] %v16666_v24  ;;  %22866 = vst [vmem:[#allocation20_spill] sm:$0xff] %v16670_v44  ;;  %v16680_v4 = vrot.slane %v1065_v34, %v16632_v16  ;;  %v1074_v32 = vcombine.high %v1072_v55, %v1072_v55  ;;  %v16683_v61 = vrot.slane %v1072_v55, %v16632_v16  ;;  %v15725_v21 = vunpack.i.l.bf16 %v15724_v2 }
 0x1e5   :  { %22868 = vst [vmem:[#allocation22_spill] sm:$0xff] %v16677_v9  ;;  %v16686_v7 = vrot.slane %v1024_v63, %v16632_v16  ;;  %v16689_v3 = vrot.slane %v1073_v26, %v16632_v16  ;;  %v15716_v56 = vunpack.i.h.bf16 %v15714_v52  ;;  %v15715_v5 = vunpack.i.l.bf16 %v15714_v52 }
 0x1e6   :  { %22869 = vst [vmem:[#allocation23_spill] sm:$0xff] %v16680_v4  ;;  %22870 = vst [vmem:[#allocation24_spill] sm:$0xff] %v16683_v61  ;;  %v16692_v29 = vrot.slane %v1074_v32, %v16632_v16  ;;  %v929_v34 = vmax.f32 %v16450_v15, %v15726_v10  ;;  %v928_v19 = vmax.f32 %v16454_v37, %v15725_v21  ;;  %v22874_v2 = vmax.f32 %v16431_v36, 0.0  ;;  %v15729_v40 = vpop.permute.xlu1 %15728 }
 0x1e7   :  { %22871 = vst [vmem:[#allocation25_spill] sm:$0xff] %v16686_v7  ;;  %22872 = vst [vmem:[#allocation26_spill] sm:$0xff] %v16689_v3  ;;  %v15802_v55 = vpack.i.bf16 %v16666_v24, %v16670_v44  ;;  %v22876_v63 = vmax.f32 %v16428_v35, 0.0  ;;  %v16708_v52 = vcombine.high %v16677_v9, %v16677_v9  ;;  %v16712_v15 = vcombine.high %v16686_v7, %v16686_v7 }
 0x1e8   :  { %22873 = vst [vmem:[#allocation27_spill] sm:$0xff] %v16692_v29  ;;  %v16700_v62 = vmax.f32 %v22874_v2, %v15716_v56  ;;  %v14694_v37 = vpack.c.bf16 %v929_v34, %v929_v34  ;;  %v968_v32 = vpack.c.bf16 %v929_v34, %v928_v19  ;;  %v15731_v36 = vunpack.i.h.bf16 %v15729_v40 }
 0x1e9   :  { %v16704_v26 = vmax.f32 %v22876_v63, %v15715_v5  ;;  %15803 = vrot.lane.b32.xlu1 %v15802_v55, %s15995_s2  ;;  %v15730_v10 = vunpack.i.l.bf16 %v15729_v40  ;;  %v16719_v21 = vcombine.high %v16658_v41, %v16658_v41  ;;  %v2053_v56 = vunpack.i.h.s16 %v16677_v9 }
 0x1ea   :  { %22875 = vst [vmem:[#allocation28_spill] sm:$0xff] %v16700_v62  ;;  %v1170_v2 = vrot.slane %v14694_v37, %v16632_v16  ;;  %v1163_v63 = vrot.slane %v968_v32, %v16632_v16  ;;  %v927_v34 = vmax.f32 %v16459_v53, %v15731_v36  ;;  %v15734_v40 = vpop.permute.xlu1 %15733  ;;  %v22891_v27 = vunpack.i.h.s16 %v16686_v7 }
 0x1eb   :  { %22877 = vst [vmem:[#allocation29_spill] sm:$0xff] %v16704_v26  ;;  %v15812_v35 = vpack.i.bf16 %v16700_v62, %v16704_v26  ;;  %22878 = vst [vmem:[#allocation30_spill] sm:$0xff] %v16719_v21  ;;  %v926_v19 = vmax.f32 %v16463_v13, %v15730_v10  ;;  %v15736_v10 = vunpack.i.h.bf16 %v15734_v40  ;;  %v16747_v55 = vpack.i.b16 %v16686_v7, %v2053_v56 }
 0x1ec   :  { %v1172_v5 = vcombine.high %v1170_v2, %v1170_v2  ;;  %v16733_v37 = vrot.slane %v1170_v2, %v16632_v16  ;;  %v1171_v32 = vcombine.high %v1163_v63, %v1163_v63  ;;  %v16736_v53 = vrot.slane %v1163_v63, %v16632_v16 }
 0x1ed   :  { %15813 = vrot.lane.b32.xlu0 %v15812_v35, %s15995_s2  ;;  %15808 = vrot.lane.b32.xlu1 %v15807_v31, %s15995_s2  ;;  %v14693_v13 = vpack.c.bf16 %v927_v34, %v927_v34  ;;  %v967_v36 = vpack.c.bf16 %v927_v34, %v926_v19  ;;  %v15735_v35 = vunpack.i.l.bf16 %v15734_v40  ;;  %v933_v34 = vmax.f32 %v16471_v47, %v15736_v10 }
 0x1ee   :  { %22879 = vst [vmem:[#allocation31_spill] sm:$0xff] %v16733_v37  ;;  %22880 = vst [vmem:[#allocation32_spill] sm:$0xff] %v16736_v53  ;;  %v16740_v11 = vrot.slane %v1172_v5, %v16632_v16  ;;  %v16743_v48 = vrot.slane %v1171_v32, %v16632_v16  ;;  %v15749_v9 = vpop.permute.xlu0 %15748  ;;  %v15739_v40 = vpop.permute.xlu1 %15738  ;;  %v14736_v30 = vpack.i.b16 %v16708_v52, %v22891_v27 }
 0x1ef   :  { %v1121_v63 = vrot.slane %v14693_v13, %v16632_v16  ;;  %v1114_v31 = vrot.slane %v967_v36, %v16632_v16  ;;  %v932_v19 = vmax.f32 %v16475_v42, %v15735_v35  ;;  %v15741_v5 = vunpack.i.h.bf16 %v15739_v40 }
 0x1f0   :  { %22881 = vst [vmem:[#allocation33_spill] sm:$0xff] %v16740_v11  ;;  %22882 = vst [vmem:[#allocation34_spill] sm:$0xff] %v16743_v48  ;;  %v15740_v46 = vunpack.i.l.bf16 %v15739_v40  ;;  %v15751_v26 = vunpack.i.h.bf16 %v15749_v9  ;;  %v15750_v32 = vunpack.i.l.bf16 %v15749_v9  ;;  %v14696_v13 = vpack.c.bf16 %v933_v34, %v933_v34 }
 0x1f1   :  { %v1123_v62 = vcombine.high %v1121_v63, %v1121_v63  ;;  %v16754_v44 = vrot.slane %v1121_v63, %v16632_v16  ;;  %v1122_v2 = vcombine.high %v1114_v31, %v1114_v31  ;;  %v16757_v56 = vrot.slane %v1114_v31, %v16632_v16 }
 0x1f2   :  { %v970_v24 = vpack.c.bf16 %v933_v34, %v932_v19  ;;  %v931_v36 = vmax.f32 %v16482_v12, %v15741_v5  ;;  %v930_v47 = vmax.f32 %v16486_v33, %v15740_v46  ;;  %v935_v35 = vmax.f32 %v16492_v39, %v15751_v26  ;;  %v15744_v63 = vpop.permute.xlu1 %15743 }
 0x1f3   :  { %22883 = vst [vmem:[#allocation35_spill] sm:$0xff] %v16754_v44  ;;  %v16762_v42 = vrot.slane %v1123_v62, %v16632_v16  ;;  %v16765_v10 = vrot.slane %v1122_v2, %v16632_v16  ;;  %v16769_v9 = vcombine.high %v16757_v56, %v16757_v56  ;;  %v1268_v31 = vrot.slane %v14696_v13, %v16632_v16 }
 0x1f4   :  { %v1261_v34 = vrot.slane %v970_v24, %v16632_v16  ;;  %v14695_v12 = vpack.c.bf16 %v931_v36, %v931_v36  ;;  %v969_v19 = vpack.c.bf16 %v931_v36, %v930_v47  ;;  %v14697_v33 = vpack.c.bf16 %v935_v35, %v935_v35 }
 0x1f5   :  { %22884 = vst [vmem:[#allocation36_spill] sm:$0xff] %v16769_v9  ;;  %v934_v46 = vmax.f32 %v16496_v0, %v15750_v32  ;;  %v15746_v62 = vunpack.i.h.bf16 %v15744_v63  ;;  %v15745_v40 = vunpack.i.l.bf16 %v15744_v63  ;;  %v1270_v2 = vcombine.high %v1268_v31, %v1268_v31 }
 0x1f6   :  { %v16776_v5 = vrot.slane %v1268_v31, %v16632_v16  ;;  %v1269_v20 = vcombine.high %v1261_v34, %v1261_v34  ;;  %v16779_v59 = vrot.slane %v1261_v34, %v16632_v16  ;;  %v1219_v39 = vrot.slane %v14695_v12, %v16632_v16 }
 0x1f7   :  { %v1212_v26 = vrot.slane %v969_v19, %v16632_v16  ;;  %v1317_v24 = vrot.slane %v14697_v33, %v16632_v16  ;;  %v971_v13 = vpack.c.bf16 %v935_v35, %v934_v46  ;;  %v16785_v36 = vrot.slane %v1270_v2, %v16632_v16  ;;  %v15754_v46 = vpop.permute.xlu0 %15753 }
 0x1f8   :  { %22885 = vst [vmem:[#allocation37_spill] sm:$0xff] %v16776_v5  ;;  %v16788_v0 = vrot.slane %v1269_v20, %v16632_v16  ;;  %v937_v32 = vmax.f32 %v16503_v51, %v15746_v62  ;;  %v936_v47 = vmax.f32 %v16507_v49, %v15745_v40  ;;  %v1221_v63 = vcombine.high %v1219_v39, %v1219_v39 }
 0x1f9   :  { %v16793_v31 = vrot.slane %v1219_v39, %v16632_v16  ;;  %v1220_v34 = vcombine.high %v1212_v26, %v1212_v26  ;;  %v16796_v12 = vrot.slane %v1212_v26, %v16632_v16  ;;  %v1319_v19 = vcombine.high %v1317_v24, %v1317_v24 }
 0x1fa   :  { %v16799_v35 = vrot.slane %v1317_v24, %v16632_v16  ;;  %v1310_v33 = vrot.slane %v971_v13, %v16632_v16  ;;  %v14698_v20 = vpack.c.bf16 %v937_v32, %v937_v32  ;;  %v16803_v51 = vrot.slane %v1221_v63, %v16632_v16 }
 0x1fb   :  { %v16807_v49 = vcombine.high %v16793_v31, %v16793_v31  ;;  %v16810_v62 = vrot.slane %v1220_v34, %v16632_v16  ;;  %v972_v40 = vpack.c.bf16 %v937_v32, %v936_v47  ;;  %v16813_v2 = vrot.slane %v1319_v19, %v16632_v16 }
 0x1fc   :  { %22886 = vst [vmem:[#allocation38_spill] sm:$0xff] %v16799_v35  ;;  %22887 = vst [vmem:[#allocation39_spill] sm:$0xff] %v16803_v51  ;;  %v1318_v39 = vcombine.high %v1310_v33, %v1310_v33  ;;  %v16816_v26 = vrot.slane %v1310_v33, %v16632_v16  ;;  %v1366_v24 = vrot.slane %v14698_v20, %v16632_v16  ;;  %v15756_v63 = vunpack.i.h.bf16 %v15754_v46 }
 0x1fd   :  { %22888 = vst [vmem:[#allocation40_spill] sm:$0xff] %v16807_v49  ;;  %22889 = vst [vmem:[#allocation41_spill] sm:$0xff] %v16810_v62  ;;  %v1359_v13 = vrot.slane %v972_v40, %v16632_v16  ;;  %v15755_v23 = vunpack.i.l.bf16 %v15754_v46  ;;  %v22893_v19 = vunpack.i.h.s16 %v16708_v52 }
 0x1fe   :  { %22890 = vst [vmem:[#allocation42_spill] sm:$0xff] %v16813_v2  ;;  %v16824_v34 = vrot.slane %v1318_v39, %v16632_v16  ;;  %v1368_v32 = vcombine.high %v1366_v24, %v1366_v24  ;;  %v16827_v47 = vrot.slane %v1366_v24, %v16632_v16  ;;  %v941_v46 = vmax.f32 %v16515_v60, %v15756_v63  ;;  %v15759_v2 = vpop.permute.xlu0 %15758 }
 0x1ff   :  { %v14737_v33 = vpack.i.b16 %v16712_v15, %v22893_v19  ;;  %v1367_v20 = vcombine.high %v1359_v13, %v1359_v13  ;;  %v16833_v40 = vrot.slane %v1359_v13, %v16632_v16  ;;  %v940_v17 = vmax.f32 %v16519_v1, %v15755_v23 }
 0x200   :  { %22892 = vst [vmem:[#allocation43_spill] sm:$0xff] %v16827_v47  ;;  %v16838_v27 = vrot.slane %v1368_v32, %v16632_v16  ;;  %v22896_v39 = vunpack.i.h.s16 %v16712_v15  ;;  %v22897_v47 = vunpack.i.h.s16 %v16653_v28  ;;  %v22898_v19 = vunpack.i.h.s16 %v16658_v41 }
 0x201   :  { %22894 = vst [vmem:[#allocation44_spill] sm:$0xff] %v16833_v40  ;;  %v16850_v60 = vrot.slane %v1367_v20, %v16632_v16  ;;  %v14700_v1 = vpack.c.bf16 %v941_v46, %v941_v46  ;;  %v974_v23 = vpack.c.bf16 %v941_v46, %v940_v17  ;;  %v22900_v63 = vunpack.i.h.s16 %v16719_v21 }
 0x202   :  { %22895 = vst [vmem:[#allocation45_spill] sm:$0xff] %v16838_v27  ;;  %v14738_v24 = vpack.i.b16 %v16653_v28, %v22896_v39  ;;  %v14739_v35 = vpack.i.b16 %v16658_v41, %v22897_v47  ;;  %v14740_v13 = vpack.i.b16 %v16719_v21, %v22898_v19  ;;  %v22901_v39 = vunpack.i.h.s16 %v16680_v4 }
 0x203   :  { %22899 = vst [vmem:[#allocation46_spill] sm:$0xff] %v16850_v60  ;;  %v16855_v32 = vpack.i.b16 %v16680_v4, %v22900_v63  ;;  %v3381_v47 = vcombine.low %v16747_v55, %v14736_v30  ;;  %v16865_v20 = vcombine.high %v16850_v60, %v16850_v60  ;;  %v1464_v17 = vrot.slane %v14700_v1, %v16632_v16 }
 0x204   :  { %v16860_v27 = vpack.i.b16 %v16689_v3, %v22901_v39  ;;  %v3382_v40 = vcombine.low %v14737_v33, %v14738_v24  ;;  %v3383_v19 = vcombine.low %v14739_v35, %v14740_v13  ;;  %v1457_v46 = vrot.slane %v974_v23, %v16632_v16 }
 0x205   :  { %22902 = vst [vmem:[#allocation47_spill] sm:$0xff] %v16865_v20  ;;  %v15761_v54 = vunpack.i.h.bf16 %v15759_v2  ;;  %v3391_v6 = vrot.slane %v3381_v47, %v16632_v16  ;;  %v1466_v55 = vcombine.high %v1464_v17, %v1464_v17  ;;  %v16875_v35 = vrot.slane %v1464_v17, %v16632_v16 }
 0x206   :  { %v3384_v63 = vcombine.low %v16855_v32, %v16860_v27  ;;  %v3398_v39 = vrot.slane %v3382_v40, %v16632_v16  ;;  %v3405_v30 = vrot.slane %v3383_v19, %v16632_v16  ;;  %v1465_v33 = vcombine.high %v1457_v46, %v1457_v46 }
 0x207   :  { %22903 = vst [vmem:[#allocation48_spill] sm:$0xff] %v16875_v35  ;;  %v16878_v24 = vrot.slane %v1457_v46, %v16632_v16  ;;  %v939_v23 = vmax.f32 %v16525_v38, %v15761_v54  ;;  %v15760_v60 = vunpack.i.l.bf16 %v15759_v2  ;;  %v16885_v47 = vrot.slane %v1466_v55, %v16632_v16 }
 0x208   :  { %v16881_v13 = vrot.slane %v3384_v63, %v16632_v16  ;;  %v3413_v1 = vcombine.low %v3391_v6, %v3398_v39  ;;  %v16888_v40 = vrot.slane %v1465_v33, %v16632_v16  ;;  %v22907_v19 = vunpack.i.h.s16 %v16719_v21 }
 0x209   :  { %22904 = vst [vmem:[#allocation49_spill] sm:$0xff] %v16878_v24  ;;  %22905 = vst [vmem:[#allocation50_spill] sm:$0xff] %v16885_v47  ;;  %v4195_v46 = vcombine.low %v16686_v7, %v16708_v52  ;;  %v14699_v39 = vpack.c.bf16 %v939_v23, %v939_v23  ;;  %v938_v38 = vmax.f32 %v16529_v18, %v15760_v60  ;;  %v2077_v7 = vunpack.i.h.s16 %v16683_v61 }
 0x20a   :  { %22906 = vst [vmem:[#allocation51_spill] sm:$0xff] %v16888_v40  ;;  %v14856_v17 = vpack.i.b16 %v22907_v19, %v16674_v43  ;;  %v3414_v63 = vcombine.low %v3405_v30, %v16881_v13  ;;  %v3421_v6 = vrot.slane %v3413_v1, %v16632_v16  ;;  %v4196_v54 = vcombine.low %v16712_v15, %v16653_v28 }
 0x20b   :  { %v4198_v55 = vcombine.low %v16680_v4, %v16689_v3  ;;  %v4205_v33 = vrot.slane %v4195_v46, %v16632_v16  ;;  %v1415_v52 = vrot.slane %v14699_v39, %v16632_v16  ;;  %v973_v30 = vpack.c.bf16 %v939_v23, %v938_v38 }
 0x20c   :  { %v4197_v2 = vcombine.low %v16658_v41, %v14856_v17  ;;  %v3428_v19 = vrot.slane %v3414_v63, %v16632_v16  ;;  %v16908_v1 = vcombine.high %v16680_v4, %v16680_v4  ;;  %v4212_v18 = vrot.slane %v4196_v54, %v16632_v16 }
 0x20d   :  { %v4226_v60 = vrot.slane %v4198_v55, %v16632_v16  ;;  %v16915_v17 = vcombine.high %v16683_v61, %v16683_v61  ;;  %v1417_v28 = vcombine.high %v1415_v52, %v1415_v52  ;;  %v16918_v63 = vrot.slane %v1415_v52, %v16632_v16 }
 0x20e   :  { %22908 = vst [vmem:[#allocation52_spill] sm:$0xff] %v16908_v1  ;;  %v4219_v15 = vrot.slane %v4197_v2, %v16632_v16  ;;  %v3429_v46 = vcombine.low %v3421_v6, %v3428_v19  ;;  %v1408_v23 = vrot.slane %v973_v30, %v16632_v16  ;;  %v4227_v39 = vcombine.low %v4205_v33, %v4212_v18 }
 0x20f   :  { %22909 = vst [vmem:[#allocation53_spill] sm:$0xff] %v16918_v63  ;;  %v16923_v54 = vcombine.high %v16689_v3, %v16689_v3  ;;  %v16927_v2 = vcombine.high %v16692_v29, %v16692_v29  ;;  %v16931_v6 = vrot.slane %v1417_v28, %v16632_v16  ;;  %v16935_v55 = vcombine.high %v16918_v63, %v16918_v63 }
 0x210   :  { %v4228_v38 = vcombine.low %v4219_v15, %v4226_v60  ;;  %4130 = vrot.lane.b32.xlu0 %v3429_v46, %s15997_s1  ;;  %v1416_v33 = vcombine.high %v1408_v23, %v1408_v23  ;;  %v16938_v19 = vrot.slane %v1408_v23, %v16632_v16  ;;  %v4235_v52 = vrot.slane %v4227_v39, %v16632_v16  ;;  %v15764_v60 = vpop.permute.xlu1 %15763 }
 0x211   :  { %22910 = vst [vmem:[#allocation54_spill] sm:$0xff] %v16923_v54  ;;  %22911 = vst [vmem:[#allocation55_spill] sm:$0xff] %v16931_v6  ;;  %v2071_v18 = vunpack.i.h.s16 %v16689_v3  ;;  %v2073_v15 = vunpack.i.h.s16 %v16908_v1  ;;  %v2075_v46 = vunpack.i.h.s16 %v16923_v54  ;;  %v2081_v41 = vunpack.i.h.s16 %v16915_v17 }
 0x212   :  { %22912 = vst [vmem:[#allocation56_spill] sm:$0xff] %v16935_v55  ;;  %22913 = vst [vmem:[#allocation57_spill] sm:$0xff] %v16938_v19  ;;  %v4242_v30 = vrot.slane %v4228_v38, %v16632_v16  ;;  %v16945_v28 = vrot.slane %v1416_v33, %v16632_v16  ;;  %v2083_v55 = vunpack.i.h.s16 %v16927_v2  ;;  %v14920_v33 = vpack.i.b16 %v16915_v17, %v2077_v7 }
 0x213   :  { %v14743_v39 = vpack.i.b16 %v16908_v1, %v2071_v18  ;;  %v14744_v38 = vpack.i.b16 %v16923_v54, %v2073_v15  ;;  %v16954_v35 = vpack.i.b16 %v16683_v61, %v2075_v46  ;;  %v14747_v47 = vpack.i.b16 %v16927_v2, %v2081_v41 }
 0x214   :  { %22914 = vst [vmem:[#allocation58_spill] sm:$0xff] %v16945_v28  ;;  %v4243_v23 = vcombine.low %v4235_v52, %v4242_v30  ;;  %v15766_v40 = vunpack.i.h.bf16 %v15764_v60  ;;  %v16960_v24 = vpack.i.b16 %v16757_v56, %v2083_v55  ;;  %v15765_v30 = vunpack.i.l.bf16 %v15764_v60 }
 0x215   :  { %v3430_v52 = vcombine.low %v14743_v39, %v14744_v38  ;;  %v22388_v63 = vunpack.i.h.s16 %v16674_v43  ;;  %v6301_v18 = vcombine.low %v16954_v35, %v14920_v33  ;;  %v22390_v54 = vunpack.i.h.s16 %v16692_v29 }
 0x216   :  { %4944 = vrot.lane.b32.xlu0 %v4243_v23, %s15995_s2  ;;  %v942_v15 = vmax.f32 %v16540_v22, %v15766_v40  ;;  %v14878_v41 = vpack.i.b16 %v16692_v29, %v2075_v46  ;;  %v3432_v7 = vcombine.low %v14747_v47, %v16960_v24  ;;  %v943_v55 = vmax.f32 %v16544_v50, %v15765_v30 }
 0x217   :  { %v16969_v1 = vrot.slane %v3430_v52, %v16632_v16  ;;  %v14877_v60 = vpack.i.b16 %v16719_v21, %v22388_v63  ;;  %v6308_v23 = vrot.slane %v6301_v18, %v16632_v16  ;;  %v16979_v22 = vpack.i.b16 %v16915_v17, %v22390_v54 }
 0x218   :  { %v5008_v40 = vcombine.low %v16860_v27, %v14743_v39  ;;  %v5009_v46 = vcombine.low %v14744_v38, %v14878_v41  ;;  %v16983_v33 = vrot.slane %v3432_v7, %v16632_v16  ;;  %v975_v52 = vpack.c.bf16 %v943_v55, %v942_v15 }
 0x219   :  { %v6309_v50 = vcombine.low %v16881_v13, %v16969_v1  ;;  %v14701_v30 = vpack.c.bf16 %v943_v55, %v943_v55  ;;  %v5007_v63 = vcombine.low %v14877_v60, %v16855_v32  ;;  %v5010_v18 = vcombine.low %v16979_v22, %v14747_v47 }
 0x21a   :  { %v5024_v21 = vrot.slane %v5008_v40, %v16632_v16  ;;  %v5031_v54 = vrot.slane %v5009_v46, %v16632_v16  ;;  %v6310_v43 = vcombine.low %v6308_v23, %v16983_v33  ;;  %v1506_v39 = vrot.slane %v975_v52, %v16632_v16 }
 0x21b   :  { %v6317_v27 = vrot.slane %v6309_v50, %v16632_v16  ;;  %v1513_v38 = vrot.slane %v14701_v30, %v16632_v16  ;;  %v5017_v13 = vrot.slane %v5007_v63, %v16632_v16  ;;  %v16997_v15 = vrot.slane %v5010_v18, %v16632_v16 }
 0x21c   :  { %v17001_v32 = vcombine.high %v16754_v44, %v16754_v44  ;;  %v17005_v47 = vcombine.high %v16765_v10, %v16765_v10  ;;  %v6324_v41 = vrot.slane %v6310_v43, %v16632_v16  ;;  %v1514_v7 = vcombine.high %v1506_v39, %v1506_v39 }
 0x21d   :  { %v1515_v55 = vcombine.high %v1513_v38, %v1513_v38  ;;  %v17009_v60 = vrot.slane %v1506_v39, %v16632_v16  ;;  %v17012_v63 = vrot.slane %v1513_v38, %v16632_v16  ;;  %v5039_v23 = vcombine.low %v5017_v13, %v5024_v21 }
 0x21e   :  { %v5040_v40 = vcombine.low %v5031_v54, %v16997_v15  ;;  %v22392_v46 = vunpack.i.h.s16 %v16754_v44  ;;  %v6325_v50 = vcombine.low %v6317_v27, %v6324_v41  ;;  %v17017_v52 = vrot.slane %v1514_v7, %v16632_v16 }
 0x21f   :  { %22915 = vst [vmem:[#allocation59_spill] sm:$0xff] %v17009_v60  ;;  %22916 = vst [vmem:[#allocation60_spill] sm:$0xff] %v17012_v63  ;;  %v17020_v30 = vrot.slane %v1515_v55, %v16632_v16  ;;  %v14724_v43 = vcombine.high %v16683_v61, %v16692_v29  ;;  %v5047_v18 = vrot.slane %v5039_v23, %v16632_v16 }
 0x220   :  { %22917 = vst [vmem:[#allocation61_spill] sm:$0xff] %v17017_v52  ;;  %v5054_v39 = vrot.slane %v5040_v40, %v16632_v16  ;;  %v2563_v21 = vcombine.low %v16757_v56, %v16765_v10  ;;  %v2610_v54 = vcombine.low %v16762_v42, %v17001_v32  ;;  %6770 = vrot.lane.b32.xlu1 %v6325_v50, %s15997_s1 }
 0x221   :  { %22918 = vst [vmem:[#allocation62_spill] sm:$0xff] %v17020_v30  ;;  %v17032_v27 = vrot.slane %v14724_v43, %v16632_v16  ;;  %v17037_v38 = vpack.i.b16 %v22392_v46, %v17005_v47  ;;  %v17041_v13 = vcombine.high %v16736_v53, %v16736_v53  ;;  %v17045_v41 = vcombine.high %v16733_v37, %v16733_v37 }
 0x222   :  { %v5055_v7 = vcombine.low %v5047_v18, %v5054_v39  ;;  %v17048_v55 = vrot.slane %v2563_v21, %v16632_v16  ;;  %v17051_v23 = vrot.slane %v2610_v54, %v16632_v16  ;;  %v17055_v40 = vcombine.high %v16743_v48, %v16743_v48 }
 0x223   :  { %22919 = vst [vmem:[#allocation63_spill] sm:$0xff] %v17032_v27  ;;  %22920 = vst [vmem:[#allocation64_spill] sm:$0xff] %v17041_v13  ;;  %v7901_v50 = vcombine.low %v16769_v9, %v17037_v38  ;;  %v14868_v43 = vcombine.high %v16754_v44, %v16762_v42  ;;  %v4342_v18 = vcombine.low %v16740_v11, %v17045_v41 }
 0x224   :  { %22921 = vst [vmem:[#allocation65_spill] sm:$0xff] %v17045_v41  ;;  %22922 = vst [vmem:[#allocation66_spill] sm:$0xff] %v17048_v55  ;;  %v6857_v39 = vcombine.low %v16736_v53, %v17041_v13  ;;  %5756 = vrot.lane.b32.xlu0 %v5055_v7, %s15994_s0  ;;  %v2593_v21 = vcombine.low %v17032_v27, %v17048_v55  ;;  %v4296_v54 = vcombine.low %v17055_v40, %v16733_v37 }
 0x225   :  { %22923 = vst [vmem:[#allocation67_spill] sm:$0xff] %v17051_v23  ;;  %22924 = vst [vmem:[#allocation68_spill] sm:$0xff] %v17055_v40  ;;  %v17072_v46 = vcombine.high %v16762_v42, %v16762_v42  ;;  %v2658_v30 = vcombine.low %v16733_v37, %v16740_v11  ;;  %v7908_v63 = vrot.slane %v7901_v50, %v16632_v16 }
 0x226   :  { %v17078_v60 = vrot.slane %v14868_v43, %v16632_v16  ;;  %v17081_v7 = vrot.slane %v4342_v18, %v16632_v16  ;;  %v6864_v55 = vrot.slane %v6857_v39, %v16632_v16  ;;  %v17085_v27 = vrot.slane %v2593_v21, %v16632_v16 }
 0x227   :  { %v17088_v52 = vrot.slane %v4296_v54, %v16632_v16  ;;  %v2611_v6 = vcombine.low %v17072_v46, %v16736_v53  ;;  %v17093_v19 = vrot.slane %v2658_v30, %v16632_v16  ;;  %v7909_v50 = vcombine.low %v7908_v63, %v17051_v23 }
 0x228   :  { %22925 = vst [vmem:[#allocation69_spill] sm:$0xff] %v17081_v7  ;;  %22926 = vst [vmem:[#allocation70_spill] sm:$0xff] %v17085_v27  ;;  %v6865_v43 = vcombine.low %v17078_v60, %v6864_v55  ;;  %v14919_v18 = vcombine.high %v16733_v37, %v16740_v11  ;;  %v7918_v39 = vcombine.low %v16743_v48, %v17055_v40  ;;  %v15769_v11 = vpop.permute.xlu0 %15768 }
 0x229   :  { %22927 = vst [vmem:[#allocation71_spill] sm:$0xff] %v17093_v19  ;;  %v6866_v21 = vcombine.low %v17088_v52, %v17081_v7  ;;  %v17104_v54 = vrot.slane %v2611_v6, %v16632_v16  ;;  %v14867_v30 = vcombine.high %v16680_v4, %v16689_v3  ;;  %v4245_v63 = vcombine.low %v16683_v61, %v16915_v17 }
 0x22a   :  { %v7916_v55 = vrot.slane %v7909_v50, %v16632_v16  ;;  %v6873_v23 = vrot.slane %v6865_v43, %v16632_v16  ;;  %v17113_v28 = vrot.slane %v14919_v18, %v16632_v16  ;;  %v7925_v41 = vrot.slane %v7918_v39, %v16632_v16 }
 0x22b   :  { %22928 = vst [vmem:[#allocation72_spill] sm:$0xff] %v17104_v54  ;;  %v6880_v7 = vrot.slane %v6866_v21, %v16632_v16  ;;  %v4246_v6 = vcombine.low %v16927_v2, %v16757_v56  ;;  %v4247_v3 = vcombine.low %v16765_v10, %v16769_v9  ;;  %v4254_v61 = vrot.slane %v14867_v30, %v16632_v16 }
 0x22c   :  { %22929 = vst [vmem:[#allocation73_spill] sm:$0xff] %v17113_v28  ;;  %v7917_v50 = vcombine.low %v17085_v27, %v7916_v55  ;;  %v7926_v43 = vcombine.low %v17104_v54, %v7925_v41  ;;  %v7927_v18 = vcombine.low %v17093_v19, %v17113_v28  ;;  %v4261_v39 = vrot.slane %v4245_v63, %v16632_v16 }
 0x22d   :  { %v6881_v4 = vcombine.low %v6873_v23, %v6880_v7  ;;  %v17128_v21 = vrot.slane %v4246_v6, %v16632_v16  ;;  %v4275_v2 = vrot.slane %v4247_v3, %v16632_v16  ;;  %v15771_v37 = vunpack.i.h.bf16 %v15769_v11 }
 0x22e   :  { %15535 = vmatprep.mubr.msk.bf16.mxu0 %vm8330_vm2, %v7917_v50  ;;  %v7934_v30 = vrot.slane %v7926_v43, %v16632_v16  ;;  %v7941_v55 = vrot.slane %v7927_v18, %v16632_v16  ;;  %v4276_v27 = vcombine.low %v4254_v61, %v4261_v39  ;;  %v15770_v41 = vunpack.i.l.bf16 %v15769_v11 }
 0x22f   :  { %7351 = vrot.lane.b32.xlu1 %v6881_v4, %s15995_s2  ;;  %v4277_v19 = vcombine.low %v17128_v21, %v4275_v2  ;;  %v17137_v23 = vmax.f32 %v16551_v45, %v15771_v37  ;;  %v2085_v7 = vunpack.i.h.s16 %v16757_v56  ;;  %v2087_v3 = vunpack.i.h.s16 %v16765_v10  ;;  %v15774_v37 = vpop.permute.xlu0 %15773 }
 0x230   :  { %v7942_v63 = vcombine.low %v7934_v30, %v7941_v55  ;;  %v4284_v6 = vrot.slane %v4276_v27, %v16632_v16  ;;  %v17143_v50 = vmax.f32 %v16555_v58, %v15770_v41  ;;  %v22417_v61 = vunpack.i.h.s16 %v16769_v9 }
 0x231   :  { %v4291_v11 = vrot.slane %v4277_v19, %v16632_v16  ;;  %v2095_v4 = vunpack.i.h.s16 %v16762_v42  ;;  %v14749_v43 = vpack.i.b16 %v16765_v10, %v2085_v7  ;;  %v17150_v45 = vpack.i.b16 %v16769_v9, %v2087_v3 }
 0x232   :  { %15536 = vmatmul.mubr.msk.bf16.vlgmr.msra.gmra.mrb[44].mxu0 %vm8330_vm2, %v7942_v63  ;;  %v14702_v56 = vpack.c.bf16 %v17143_v50, %v17143_v50  ;;  %v17158_v58 = vpack.i.b16 %v16754_v44, %v22417_v61  ;;  %v22930_v19 = vunpack.i.h.s16 %v16754_v44  ;;  %v3431_v18 = vcombine.low %v16954_v35, %v16979_v22 }
 0x233   :  { %v4292_v39 = vcombine.low %v4284_v6, %v4291_v11  ;;  %v17168_v2 = vpack.i.b16 %v17001_v32, %v2095_v4  ;;  %v5056_v30 = vcombine.low %v16960_v24, %v14749_v43  ;;  %v3433_v55 = vcombine.low %v14749_v43, %v17150_v45  ;;  %v15779_v11 = vpop.permute.xlu1 %15778 }
 0x234   :  { %v17163_v27 = vpack.i.b16 %v16762_v42, %v22930_v19  ;;  %v1562_v41 = vrot.slane %v14702_v56, %v16632_v16  ;;  %v7394_v7 = vcombine.low %v17150_v45, %v17158_v58  ;;  %v3447_v3 = vrot.slane %v3431_v18, %v16632_v16 }
 0x235   :  { %v15776_v63 = vunpack.i.h.bf16 %v15774_v37  ;;  %4946 = vrot.lane.b32.xlu0 %v4292_v39, %s15995_s2  ;;  %v17180_v22 = vrot.slane %v5056_v30, %v16632_v16  ;;  %v17183_v24 = vrot.slane %v3433_v55, %v16632_v16  ;;  %v15775_v6 = vunpack.i.l.bf16 %v15774_v37 }
 0x236   :  { %v5058_v35 = vcombine.low %v17163_v27, %v17168_v2  ;;  %v1564_v4 = vcombine.high %v1562_v41, %v1562_v41  ;;  %v17186_v43 = vrot.slane %v1562_v41, %v16632_v16  ;;  %v7401_v56 = vrot.slane %v7394_v7, %v16632_v16 }
 0x237   :  { %v3462_v19 = vcombine.low %v16969_v1, %v3447_v3  ;;  %v7402_v39 = vcombine.low %v16997_v15, %v17180_v22  ;;  %v3463_v30 = vcombine.low %v16983_v33, %v17183_v24  ;;  %v949_v37 = vmax.f32 %v16559_v25, %v15776_v63 }
 0x238   :  { %22931 = vst [vmem:[#allocation74_spill] sm:$0xff] %v17186_v43  ;;  %v17191_v18 = vrot.slane %v5058_v35, %v16632_v16  ;;  %v17199_v55 = vrot.slane %v1564_v4, %v16632_v16  ;;  %v948_v7 = vmax.f32 %v16563_v57, %v15775_v6  ;;  %v15781_v61 = vunpack.i.h.bf16 %v15779_v11 }
 0x239   :  { %v3470_v41 = vrot.slane %v3462_v19, %v16632_v16  ;;  %v7410_v3 = vrot.slane %v7402_v39, %v16632_v16  ;;  %v3477_v35 = vrot.slane %v3463_v30, %v16632_v16  ;;  %v14704_v15 = vpack.c.bf16 %v949_v37, %v949_v37 }
 0x23a   :  { %22932 = vst [vmem:[#allocation75_spill] sm:$0xff] %v17199_v55  ;;  %v7403_v1 = vcombine.low %v7401_v56, %v17191_v18  ;;  %v978_v28 = vpack.c.bf16 %v949_v37, %v948_v7  ;;  %v944_v33 = vmax.f32 %v16573_v14, %v15781_v61  ;;  %v15780_v54 = vunpack.i.l.bf16 %v15779_v11 }
 0x23b   :  { %v17209_v25 = vcombine.high %v16796_v12, %v16796_v12  ;;  %v3478_v4 = vcombine.low %v3470_v41, %v3477_v35  ;;  %v1660_v57 = vrot.slane %v14704_v15, %v16632_v16  ;;  %v17215_v6 = vcombine.high %v16810_v62, %v16810_v62 }
 0x23c   :  { %v7417_v63 = vrot.slane %v7403_v1, %v16632_v16  ;;  %v1653_v56 = vrot.slane %v978_v28, %v16632_v16  ;;  %v947_v19 = vmax.f32 %v16577_v8, %v15780_v54  ;;  %v976_v14 = vpack.c.bf16 %v17143_v50, %v944_v33 }
 0x23d   :  { %22933 = vst [vmem:[#allocation76_spill] sm:$0xff] %v17209_v25  ;;  %v22421_v61 = vunpack.i.h.s16 %v16810_v62  ;;  %4132 = vrot.lane.b32.xlu0 %v3478_v4, %s15997_s1  ;;  %v1662_v39 = vcombine.high %v1660_v57, %v1660_v57  ;;  %v17223_v30 = vrot.slane %v1660_v57, %v16632_v16  ;;  %v2661_v37 = vcombine.low %v17215_v6, %v16793_v31 }
 0x23e   :  { %v7418_v11 = vcombine.low %v7410_v3, %v7417_v63  ;;  %v1661_v41 = vcombine.high %v1653_v56, %v1653_v56  ;;  %v17228_v7 = vrot.slane %v1653_v56, %v16632_v16  ;;  %v977_v8 = vpack.c.bf16 %v947_v19, %v17137_v23 }
 0x23f   :  { %22934 = vst [vmem:[#allocation77_spill] sm:$0xff] %v17223_v30  ;;  %v1555_v28 = vrot.slane %v976_v14, %v16632_v16  ;;  %v17234_v54 = vrot.slane %v1662_v39, %v16632_v16  ;;  %v14703_v50 = vpack.c.bf16 %v947_v19, %v947_v19  ;;  %v17237_v1 = vrot.slane %v2661_v37, %v16632_v16  ;;  %v22952_v30 = vld [vmem:[#allocation6_spill] sm:$0xff] }
 0x240   :  { %22935 = vst [vmem:[#allocation78_spill] sm:$0xff] %v17228_v7  ;;  %7863 = vrot.lane.b32.xlu1 %v7418_v11, %s15994_s0  ;;  %v2708_v3 = vcombine.low %v16779_v59, %v16788_v0  ;;  %v17242_v35 = vrot.slane %v1661_v41, %v16632_v16  ;;  %v1604_v33 = vrot.slane %v977_v8, %v16632_v16  ;;  %v22422_v39 = vunpack.i.h.s16 %v17005_v47 }
 0x241   :  { %22936 = vst [vmem:[#allocation79_spill] sm:$0xff] %v17234_v54  ;;  %22937 = vst [vmem:[#allocation80_spill] sm:$0xff] %v17237_v1  ;;  %v1563_v15 = vcombine.high %v1555_v28, %v1555_v28  ;;  %v17245_v23 = vrot.slane %v1555_v28, %v16632_v16  ;;  %v1611_v63 = vrot.slane %v14703_v50, %v16632_v16 }
 0x242   :  { %22938 = vst [vmem:[#allocation81_spill] sm:$0xff] %v17242_v35  ;;  %v17250_v4 = vrot.slane %v2708_v3, %v16632_v16  ;;  %v17255_v57 = vpack.i.b16 %v22421_v61, %v16796_v12  ;;  %v7944_v56 = vcombine.low %v16803_v51, %v16807_v49  ;;  %v1612_v14 = vcombine.high %v1604_v33, %v1604_v33  ;;  %v22951_v35 = vld [vmem:[#allocation5_spill] sm:$0xff] }
 0x243   :  { %22939 = vst [vmem:[#allocation82_spill] sm:$0xff] %v17245_v23  ;;  %v17260_v19 = vrot.slane %v1563_v15, %v16632_v16  ;;  %v17263_v11 = vrot.slane %v1604_v33, %v16632_v16  ;;  %v1613_v37 = vcombine.high %v1611_v63, %v1611_v63  ;;  %v17267_v41 = vrot.slane %v1611_v63, %v16632_v16 }
 0x244   :  { %22940 = vst [vmem:[#allocation83_spill] sm:$0xff] %v17250_v4  ;;  %v7943_v8 = vcombine.low %v17255_v57, %v17209_v25  ;;  %v7958_v28 = vrot.slane %v7944_v56, %v16632_v16  ;;  %v17273_v50 = vrot.slane %v1612_v14, %v16632_v16  ;;  %v17278_v3 = vpack.i.b16 %v22422_v39, %v16769_v9 }
 0x245   :  { %22941 = vst [vmem:[#allocation84_spill] sm:$0xff] %v17260_v19  ;;  %22942 = vst [vmem:[#allocation85_spill] sm:$0xff] %v17263_v11  ;;  %v6816_v15 = vcombine.low %v16692_v29, %v16915_v17  ;;  %v6818_v33 = vcombine.low %v16754_v44, %v16762_v42  ;;  %v17285_v63 = vrot.slane %v1613_v37, %v16632_v16  ;;  %v22974_v11 = vld [vmem:[#allocation65_spill] sm:$0xff] }
 0x246   :  { %22943 = vst [vmem:[#allocation86_spill] sm:$0xff] %v17267_v41  ;;  %22944 = vst [vmem:[#allocation87_spill] sm:$0xff] %v17273_v50  ;;  %v7951_v61 = vrot.slane %v7943_v8, %v16632_v16  ;;  %v7960_v56 = vcombine.low %v7958_v28, %v17250_v4  ;;  %v17291_v14 = vcombine.high %v16776_v5, %v16776_v5 }
 0x247   :  { %22945 = vst [vmem:[#allocation88_spill] sm:$0xff] %v17278_v3  ;;  %22946 = vst [vmem:[#allocation89_spill] sm:$0xff] %v17285_v63  ;;  %v6817_v39 = vcombine.low %v16765_v10, %v17278_v3  ;;  %v6825_v19 = vrot.slane %v6816_v15, %v16632_v16  ;;  %v6839_v17 = vrot.slane %v6818_v33, %v16632_v16  ;;  %v22971_v63 = vld [vmem:[#allocation7_spill] sm:$0xff] }
 0x248   :  { %22947 = vst [vmem:[#allocation90_spill] sm:$0xff] %v17291_v14  ;;  %v17299_v29 = vcombine.high %v16785_v36, %v16785_v36  ;;  %v7959_v37 = vcombine.low %v7951_v61, %v17237_v1  ;;  %v7974_v8 = vrot.slane %v7960_v56, %v16632_v16  ;;  %v17305_v28 = vcombine.high %v16816_v26, %v16816_v26 }
 0x249   :  { %v22435_v4 = vunpack.i.h.s16 %v17291_v14  ;;  %v6832_v10 = vrot.slane %v6817_v39, %v16632_v16  ;;  %v6840_v15 = vcombine.low %v6825_v19, %v17128_v21  ;;  %v14726_v33 = vcombine.high %v16779_v59, %v16788_v0  ;;  %v15784_v21 = vpop.permute.xlu1 %15783 }
 0x24a   :  { %v2756_v3 = vcombine.low %v17299_v29, %v16816_v26  ;;  %v7967_v61 = vrot.slane %v7959_v37, %v16632_v16  ;;  %v2757_v56 = vcombine.low %v16824_v34, %v17305_v28  ;;  %v4293_v39 = vcombine.low %v17037_v38, %v16762_v42 }
 0x24b   :  { %v17320_v1 = vpack.i.b16 %v22435_v4, %v16785_v36  ;;  %v6841_v19 = vcombine.low %v6832_v10, %v6839_v17  ;;  %v6848_v23 = vrot.slane %v6840_v15, %v16632_v16  ;;  %v17326_v55 = vrot.slane %v14726_v33, %v16632_v16 }
 0x24c   :  { %v17329_v37 = vrot.slane %v2756_v3, %v16632_v16  ;;  %v7975_v43 = vcombine.low %v7967_v61, %v7974_v8  ;;  %v17332_v54 = vrot.slane %v2757_v56, %v16632_v16  ;;  %v4295_v42 = vcombine.low %v16736_v53, %v16743_v48 }
 0x24d   :  { %22948 = vst [vmem:[#allocation91_spill] sm:$0xff] %v17326_v55  ;;  %v7976_v4 = vcombine.low %v16776_v5, %v17320_v1  ;;  %v6855_v38 = vrot.slane %v6841_v19, %v16632_v16  ;;  %v4303_v17 = vrot.slane %v4293_v39, %v16632_v16  ;;  %v15786_v10 = vunpack.i.h.bf16 %v15784_v21 }
 0x24e   :  { %22949 = vst [vmem:[#allocation92_spill] sm:$0xff] %v17329_v37  ;;  %22950 = vst [vmem:[#allocation93_spill] sm:$0xff] %v17332_v54  ;;  %v15785_v15 = vunpack.i.l.bf16 %v15784_v21  ;;  %15539 = vmatprep.mubr.msk.bf16.mxu0 %vm8330_vm2, %v7975_v43  ;;  %v2788_v3 = vcombine.low %v17329_v37, %v17332_v54  ;;  %v4317_v33 = vrot.slane %v4295_v42, %v16632_v16  ;;  %v2097_v61 = vunpack.i.h.s16 %v17001_v32  ;;  %v15789_v37 = vpop.permute.xlu1 %15788 }
 0x24f   :  { %v7983_v8 = vrot.slane %v7976_v4, %v16632_v16  ;;  %v6856_v56 = vcombine.low %v6848_v23, %v6855_v38  ;;  %v4325_v14 = vcombine.low %v4303_v17, %v17078_v60  ;;  %v953_v19 = vmax.f32 %v22951_v35, %v15786_v10 }
 0x250   :  { %v952_v39 = vmax.f32 %v22952_v30, %v15785_v15  ;;  %v17350_v21 = vrot.slane %v2788_v3, %v16632_v16  ;;  %v4326_v54 = vcombine.low %v4317_v33, %v17088_v52  ;;  %v2099_v4 = vunpack.i.h.s16 %v17072_v46 }
 0x251   :  { %v7984_v43 = vcombine.low %v17326_v55, %v7983_v8  ;;  %7349 = vrot.lane.b32.xlu1 %v6856_v56, %s15995_s2  ;;  %v4333_v32 = vrot.slane %v4325_v14, %v16632_v16  ;;  %v14706_v23 = vpack.c.bf16 %v953_v19, %v953_v19  ;;  %v22441_v60 = vunpack.i.h.s16 %v16736_v53 }
 0x252   :  { %22953 = vst [vmem:[#allocation5_spill] sm:$0xff] %v17350_v21  ;;  %v980_v42 = vpack.c.bf16 %v953_v19, %v952_v39  ;;  %v4340_v30 = vrot.slane %v4326_v54, %v16632_v16  ;;  %v17361_v38 = vpack.i.b16 %v17072_v46, %v2097_v61  ;;  %v17364_v17 = vpack.i.b16 %v16736_v53, %v2099_v4 }
 0x253   :  { %v7991_v35 = vrot.slane %v7984_v43, %v16632_v16  ;;  %v1758_v52 = vrot.slane %v14706_v23, %v16632_v16  ;;  %v17371_v14 = vpack.i.b16 %v16743_v48, %v22441_v60  ;;  %v22954_v15 = vunpack.i.h.s16 %v16769_v9 }
 0x254   :  { %v1751_v10 = vrot.slane %v980_v42, %v16632_v16  ;;  %v4341_v46 = vcombine.low %v4333_v32, %v4340_v30  ;;  %v3480_v8 = vcombine.low %v17168_v2, %v17361_v38  ;;  %v17381_v33 = vcombine.high %v16824_v34, %v16824_v34  ;;  %v22961_v30 = vld [vmem:[#allocation44_spill] sm:$0xff] }
 0x255   :  { %v14921_v3 = vpack.i.b16 %v17005_v47, %v22954_v15  ;;  %v7992_v54 = vcombine.low %v7991_v35, %v17350_v21  ;;  %v1760_v61 = vcombine.high %v1758_v52, %v1758_v52  ;;  %v17384_v56 = vrot.slane %v1758_v52, %v16632_v16 }
 0x256   :  { %22955 = vst [vmem:[#allocation6_spill] sm:$0xff] %v17381_v33  ;;  %v1759_v19 = vcombine.high %v1751_v10, %v1751_v10  ;;  %v17387_v39 = vrot.slane %v1751_v10, %v16632_v16  ;;  %4948 = vrot.lane.b32.xlu0 %v4341_v46, %s15995_s2  ;;  %v3481_v43 = vcombine.low %v17364_v17, %v17371_v14  ;;  %v22449_v32 = vunpack.i.h.s16 %v16865_v20 }
 0x257   :  { %22956 = vst [vmem:[#allocation94_spill] sm:$0xff] %v17384_v56  ;;  %15540 = vmatmul.mubr.msk.bf16.gmra.mrb[48].mxu0 %vm8330_vm2, %v7992_v54  ;;  %v3496_v2 = vrot.slane %v3480_v8, %v16632_v16  ;;  %v6326_v4 = vcombine.low %v14921_v3, %v17163_v27  ;;  %v17397_v23 = vrot.slane %v1760_v61, %v16632_v16  ;;  %v22963_v3 = vld [vmem:[#allocation42_spill] sm:$0xff]  ;;  %v22458_v21 = vunpack.i.h.s16 %v17041_v13 }
 0x258   :  { %22957 = vst [vmem:[#allocation95_spill] sm:$0xff] %v17387_v39  ;;  %v17400_v42 = vrot.slane %v1759_v19, %v16632_v16  ;;  %v17404_v35 = vcombine.high %v17387_v39, %v17387_v39  ;;  %v17408_v52 = vcombine.high %v22961_v30, %v22961_v30  ;;  %v3503_v10 = vrot.slane %v3481_v43, %v16632_v16  ;;  %v22964_v54 = vld [vmem:[#allocation38_spill] sm:$0xff]  ;;  %v22970_v39 = vld [vmem:[#allocation31_spill] sm:$0xff] }
 0x259   :  { %22958 = vst [vmem:[#allocation96_spill] sm:$0xff] %v17397_v23  ;;  %v6333_v15 = vrot.slane %v6326_v4, %v16632_v16  ;;  %v14727_v46 = vcombine.high %v22964_v54, %v22963_v3  ;;  %v22965_v8 = vld [vmem:[#allocation46_spill] sm:$0xff]  ;;  %v7993_v60 = vcombine.low %v17381_v33, %v22963_v3  ;;  %v2107_v43 = vunpack.i.h.s16 %v17055_v40  ;;  %v22969_v23 = vld [vmem:[#allocation43_spill] sm:$0xff] }
 0x25a   :  { %22959 = vst [vmem:[#allocation97_spill] sm:$0xff] %v17400_v42  ;;  %22960 = vst [vmem:[#allocation98_spill] sm:$0xff] %v17404_v35  ;;  %v5950_v61 = vcombine.low %v22961_v30, %v22965_v8  ;;  %v17419_v19 = vpack.i.b16 %v22449_v32, %v17408_v52  ;;  %v6335_v55 = vcombine.low %v3496_v2, %v3503_v10 }
 0x25b   :  { %22962 = vst [vmem:[#allocation99_spill] sm:$0xff] %v17408_v52  ;;  %v6334_v4 = vcombine.low %v17183_v24, %v6333_v15  ;;  %v17427_v9 = vrot.slane %v14727_v46, %v16632_v16  ;;  %v8001_v42 = vrot.slane %v7993_v60, %v16632_v16  ;;  %v17438_v56 = vpack.i.b16 %v17055_v40, %v22458_v21 }
 0x25c   :  { %22966 = vst [vmem:[#allocation46_spill] sm:$0xff] %v17419_v19  ;;  %v17430_v35 = vrot.slane %v5950_v61, %v16632_v16  ;;  %v7994_v32 = vcombine.low %v17419_v19, %v22969_v23  ;;  %v17441_v33 = vpack.i.b16 %v22970_v39, %v2107_v43  ;;  %v6349_v15 = vrot.slane %v6335_v55, %v16632_v16 }
 0x25d   :  { %22967 = vst [vmem:[#allocation100_spill] sm:$0xff] %v17427_v9  ;;  %v6342_v24 = vrot.slane %v6334_v4, %v16632_v16  ;;  %v3479_v46 = vcombine.low %v17158_v58, %v17163_v27  ;;  %v15791_v61 = vunpack.i.h.bf16 %v15789_v37  ;;  %v8009_v60 = vcombine.low %v8001_v42, %v17427_v9  ;;  %v22972_v4 = vld [vmem:[#allocation33_spill] sm:$0xff]  ;;  %v22973_v42 = vld [vmem:[#allocation8_spill] sm:$0xff] }
 0x25e   :  { %22968 = vst [vmem:[#allocation101_spill] sm:$0xff] %v17430_v35  ;;  %v8008_v19 = vrot.slane %v7994_v32, %v16632_v16  ;;  %v3482_v7 = vcombine.low %v17438_v56, %v17441_v33  ;;  %v15790_v21 = vunpack.i.l.bf16 %v15789_v37  ;;  %v17455_v55 = vcombine.high %v22972_v4, %v22972_v4 }
 0x25f   :  { %v6350_v41 = vcombine.low %v6342_v24, %v6349_v15  ;;  %v3489_v43 = vrot.slane %v3479_v46, %v16632_v16  ;;  %v951_v20 = vmax.f32 %v22971_v63, %v15791_v61  ;;  %v8017_v27 = vrot.slane %v8009_v60, %v16632_v16 }
 0x260   :  { %v8010_v58 = vcombine.low %v17430_v35, %v8008_v19  ;;  %v3510_v32 = vrot.slane %v3482_v7, %v16632_v16  ;;  %v950_v9 = vmax.f32 %v22973_v42, %v15790_v21  ;;  %v2109_v15 = vunpack.i.h.s16 %v22970_v39 }
 0x261   :  { %6772 = vrot.lane.b32.xlu1 %v6350_v41, %s15997_s1  ;;  %v3511_v37 = vcombine.low %v3489_v43, %v3496_v2  ;;  %v14705_v24 = vpack.c.bf16 %v951_v20, %v951_v20  ;;  %v2111_v63 = vunpack.i.h.s16 %v22972_v4  ;;  %v2113_v19 = vunpack.i.h.s16 %v22974_v11 }
 0x262   :  { %v8024_v46 = vrot.slane %v8010_v58, %v16632_v16  ;;  %v3512_v61 = vcombine.low %v3503_v10, %v3510_v32  ;;  %v979_v50 = vpack.c.bf16 %v951_v20, %v950_v9  ;;  %v14759_v21 = vpack.i.b16 %v22972_v4, %v2109_v15 }
 0x263   :  { %v3519_v60 = vrot.slane %v3511_v37, %v16632_v16  ;;  %v1709_v7 = vrot.slane %v14705_v24, %v16632_v16  ;;  %v14760_v41 = vpack.i.b16 %v22974_v11, %v2111_v63  ;;  %v17473_v42 = vpack.i.b16 %v17455_v55, %v2113_v19 }
 0x264   :  { %v8025_v2 = vcombine.low %v8017_v27, %v8024_v46  ;;  %v3526_v43 = vrot.slane %v3512_v61, %v16632_v16  ;;  %v1702_v39 = vrot.slane %v979_v50, %v16632_v16  ;;  %v5059_v20 = vcombine.low %v17361_v38, %v17364_v17  ;;  %v22980_v61 = vld [vmem:[#allocation45_spill] sm:$0xff] }
 0x265   :  { %v1711_v10 = vcombine.high %v1709_v7, %v1709_v7  ;;  %v17476_v9 = vrot.slane %v1709_v7, %v16632_v16  ;;  %v5106_v58 = vcombine.low %v17441_v33, %v14759_v21  ;;  %v5107_v50 = vcombine.low %v14760_v41, %v17473_v42  ;;  %v22982_v7 = vld [vmem:[#allocation58_spill] sm:$0xff] }
 0x266   :  { %15543 = vmatprep.mubr.msk.bf16.mxu0 %vm8330_vm2, %v8025_v2  ;;  %v3527_v4 = vcombine.low %v3519_v60, %v3526_v43  ;;  %v1710_v27 = vcombine.high %v1702_v39, %v1702_v39  ;;  %v17483_v32 = vrot.slane %v1702_v39, %v16632_v16  ;;  %v17490_v24 = vrot.slane %v5059_v20, %v16632_v16  ;;  %v22984_v43 = vld [vmem:[#allocation55_spill] sm:$0xff]  ;;  %v22985_v39 = vld [vmem:[#allocation53_spill] sm:$0xff] }
 0x267   :  { %22975 = vst [vmem:[#allocation31_spill] sm:$0xff] %v17476_v9  ;;  %v17487_v37 = vrot.slane %v1711_v10, %v16632_v16  ;;  %v17493_v15 = vrot.slane %v5106_v58, %v16632_v16  ;;  %v7419_v38 = vcombine.low %v17371_v14, %v17438_v56  ;;  %v17502_v63 = vrot.slane %v5107_v50, %v16632_v16  ;;  %v22983_v14 = vld [vmem:[#allocation57_spill] sm:$0xff] }
 0x268   :  { %22976 = vst [vmem:[#allocation7_spill] sm:$0xff] %v17483_v32  ;;  %4134 = vrot.lane.b32.xlu0 %v3527_v4, %s15997_s1  ;;  %v17499_v17 = vrot.slane %v1710_v27, %v16632_v16  ;;  %v17506_v46 = vcombine.high %v22969_v23, %v22969_v23  ;;  %v17510_v19 = vcombine.high %v22980_v61, %v22980_v61  ;;  %v2103_v20 = vunpack.i.h.s16 %v16743_v48 }
 0x269   :  { %22977 = vst [vmem:[#allocation33_spill] sm:$0xff] %v17487_v37  ;;  %v7426_v60 = vrot.slane %v7419_v38, %v16632_v16  ;;  %v14728_v2 = vcombine.high %v22983_v14, %v22982_v7  ;;  %v2855_v10 = vcombine.low %v22985_v39, %v22984_v43  ;;  %v7428_v58 = vcombine.low %v17493_v15, %v17502_v63 }
 0x26a   :  { %22978 = vst [vmem:[#allocation8_spill] sm:$0xff] %v17499_v17  ;;  %22979 = vst [vmem:[#allocation102_spill] sm:$0xff] %v17506_v46  ;;  %v2807_v4 = vcombine.low %v22980_v61, %v17506_v46  ;;  %v8026_v27 = vcombine.low %v17510_v19, %v22983_v14  ;;  %v2121_v48 = vunpack.i.h.s16 %v17209_v25  ;;  %v22989_v14 = vunpack.i.h.s16 %v16810_v62 }
 0x26b   :  { %22981 = vst [vmem:[#allocation103_spill] sm:$0xff] %v17510_v19  ;;  %v7427_v38 = vcombine.low %v17490_v24, %v7426_v60  ;;  %v17527_v35 = vrot.slane %v14728_v2, %v16632_v16  ;;  %v17530_v11 = vrot.slane %v2855_v10, %v16632_v16  ;;  %v7442_v39 = vrot.slane %v7428_v58, %v16632_v16 }
 0x26c   :  { %v17535_v7 = vrot.slane %v2807_v4, %v16632_v16  ;;  %v8033_v46 = vrot.slane %v8026_v27, %v16632_v16  ;;  %v17541_v50 = vpack.i.b16 %v17209_v25, %v22989_v14  ;;  %v17547_v10 = vpack.i.b16 %v17215_v6, %v2121_v48 }
 0x26d   :  { %22986 = vst [vmem:[#allocation104_spill] sm:$0xff] %v17527_v35  ;;  %22987 = vst [vmem:[#allocation105_spill] sm:$0xff] %v17530_v11  ;;  %v7435_v60 = vrot.slane %v7427_v38, %v16632_v16  ;;  %v2886_v2 = vcombine.low %v17527_v35, %v17530_v11  ;;  %v3528_v19 = vcombine.low %v14759_v21, %v14760_v41  ;;  %v22990_v27 = vunpack.i.h.s16 %v17455_v55  ;;  %v22997_v11 = vld [vmem:[#allocation50_spill] sm:$0xff] }
 0x26e   :  { %22988 = vst [vmem:[#allocation106_spill] sm:$0xff] %v17535_v7  ;;  %v8034_v58 = vcombine.low %v17535_v7, %v8033_v46  ;;  %v14922_v4 = vpack.i.b16 %v17055_v40, %v2103_v20  ;;  %v17556_v14 = vcombine.high %v22984_v43, %v22984_v43  ;;  %v3530_v48 = vcombine.low %v17541_v50, %v17547_v10 }
 0x26f   :  { %v14923_v61 = vpack.i.b16 %v16796_v12, %v22990_v27  ;;  %v7443_v38 = vcombine.low %v7435_v60, %v7442_v39  ;;  %v17559_v25 = vrot.slane %v2886_v2, %v16632_v16  ;;  %v17564_v21 = vrot.slane %v3528_v19, %v16632_v16  ;;  %v22993_v27 = vld [vmem:[#allocation49_spill] sm:$0xff]  ;;  %v15794_v39 = vpop.permute.xlu1 %15793  ;;  %v22995_v2 = vld [vmem:[#allocation51_spill] sm:$0xff] }
 0x270   :  { %22991 = vst [vmem:[#allocation107_spill] sm:$0xff] %v17556_v14  ;;  %v8041_v41 = vrot.slane %v8034_v58, %v16632_v16  ;;  %v6351_v46 = vcombine.low %v14922_v4, %v17441_v33  ;;  %v17571_v35 = vcombine.high %v22993_v27, %v22993_v27  ;;  %v17575_v60 = vrot.slane %v3530_v48, %v16632_v16  ;;  %v22999_v48 = vld [vmem:[#allocation48_spill] sm:$0xff] }
 0x271   :  { %22992 = vst [vmem:[#allocation108_spill] sm:$0xff] %v17559_v25  ;;  %v6352_v20 = vcombine.low %v17473_v42, %v14923_v61  ;;  %7865 = vrot.lane.b32.xlu1 %v7443_v38, %s15994_s0  ;;  %v17579_v19 = vcombine.high %v22995_v2, %v22995_v2  ;;  %v17583_v58 = vcombine.high %v22997_v11, %v22997_v11  ;;  %v22492_v33 = vunpack.i.h.s16 %v22993_v27 }
 0x272   :  { %22994 = vst [vmem:[#allocation109_spill] sm:$0xff] %v17571_v35  ;;  %v8042_v61 = vcombine.low %v8041_v41, %v17559_v25  ;;  %v6359_v4 = vrot.slane %v6351_v46, %v16632_v16  ;;  %v6008_v38 = vcombine.low %v22995_v2, %v17571_v35  ;;  %v15796_v32 = vunpack.i.h.bf16 %v15794_v39  ;;  %v23002_v35 = vld [vmem:[#allocation56_spill] sm:$0xff]  ;;  %v23004_v2 = vld [vmem:[#allocation10_spill] sm:$0xff] }
 0x273   :  { %22996 = vst [vmem:[#allocation110_spill] sm:$0xff] %v17579_v19  ;;  %22998 = vst [vmem:[#allocation111_spill] sm:$0xff] %v17583_v58  ;;  %v6366_v7 = vrot.slane %v6352_v20, %v16632_v16  ;;  %v6009_v40 = vcombine.low %v17579_v19, %v22999_v48  ;;  %v14963_v43 = vpack.i.b16 %v22492_v33, %v17556_v14  ;;  %v15795_v25 = vunpack.i.l.bf16 %v15794_v39  ;;  %v23003_v14 = vld [vmem:[#allocation9_spill] sm:$0xff] }
 0x274   :  { %v8044_v23 = vcombine.low %v22997_v11, %v17583_v58  ;;  %15544 = vmatmul.mubr.msk.bf16.gmra.mrb[52].mxu0 %vm8330_vm2, %v8042_v61  ;;  %v6367_v41 = vcombine.low %v6359_v4, %v17564_v21  ;;  %v17602_v20 = vrot.slane %v6008_v38, %v16632_v16  ;;  %v957_v58 = vmax.f32 %v23003_v14, %v15796_v32  ;;  %v15799_v11 = vpop.permute.xlu0 %15798 }
 0x275   :  { %v6368_v46 = vcombine.low %v6366_v7, %v17575_v60  ;;  %v17605_v19 = vrot.slane %v6009_v40, %v16632_v16  ;;  %v8043_v27 = vcombine.low %v23002_v35, %v14963_v43  ;;  %v956_v7 = vmax.f32 %v23004_v2, %v15795_v25 }
 0x276   :  { %23000 = vst [vmem:[#allocation112_spill] sm:$0xff] %v17602_v20  ;;  %v8058_v33 = vrot.slane %v8044_v23, %v16632_v16  ;;  %v6375_v61 = vrot.slane %v6367_v41, %v16632_v16  ;;  %v23005_v38 = vunpack.i.h.s16 %v17005_v47  ;;  %v14708_v43 = vpack.c.bf16 %v957_v58, %v957_v58 }
 0x277   :  { %23001 = vst [vmem:[#allocation113_spill] sm:$0xff] %v17605_v19  ;;  %v6382_v4 = vrot.slane %v6368_v46, %v16632_v16  ;;  %v8051_v40 = vrot.slane %v8043_v27, %v16632_v16  ;;  %v5089_v23 = vcombine.low %v17191_v18, %v17490_v24  ;;  %v982_v14 = vpack.c.bf16 %v957_v58, %v956_v7  ;;  %v23006_v18 = vld [vmem:[#allocation11_spill] sm:$0xff] }
 0x278   :  { %v14879_v39 = vpack.i.b16 %v16754_v44, %v23005_v38  ;;  %v8060_v48 = vcombine.low %v17605_v19, %v8058_v33  ;;  %v15801_v35 = vunpack.i.h.bf16 %v15799_v11  ;;  %v1856_v47 = vrot.slane %v14708_v43, %v16632_v16 }
 0x279   :  { %v6383_v32 = vcombine.low %v6375_v61, %v6382_v4  ;;  %v8059_v46 = vcombine.low %v8051_v40, %v17602_v20  ;;  %v5103_v2 = vrot.slane %v5089_v23, %v16632_v16  ;;  %v1849_v27 = vrot.slane %v982_v14, %v16632_v16 }
 0x27a   :  { %v5057_v41 = vcombine.low %v17150_v45, %v14879_v39  ;;  %v8074_v25 = vrot.slane %v8060_v48, %v16632_v16  ;;  %v955_v24 = vmax.f32 %v23006_v18, %v15801_v35  ;;  %v15800_v58 = vunpack.i.l.bf16 %v15799_v11  ;;  %v23011_v35 = vld [vmem:[#allocation12_spill] sm:$0xff] }
 0x27b   :  { %6774 = vrot.lane.b32.xlu0 %v6383_v32, %s15997_s1  ;;  %v8067_v45 = vrot.slane %v8059_v46, %v16632_v16  ;;  %v1858_v61 = vcombine.high %v1856_v47, %v1856_v47  ;;  %v17631_v4 = vrot.slane %v1856_v47, %v16632_v16  ;;  %v2117_v48 = vunpack.i.h.s16 %v16796_v12 }
 0x27c   :  { %v5073_v33 = vrot.slane %v5057_v41, %v16632_v16  ;;  %v1857_v7 = vcombine.high %v1849_v27, %v1849_v27  ;;  %v17635_v38 = vrot.slane %v1849_v27, %v16632_v16  ;;  %v14707_v40 = vpack.c.bf16 %v955_v24, %v955_v24 }
 0x27d   :  { %23007 = vst [vmem:[#allocation9_spill] sm:$0xff] %v17631_v4  ;;  %v8075_v43 = vcombine.low %v8067_v45, %v8074_v25  ;;  %v17639_v23 = vrot.slane %v1858_v61, %v16632_v16  ;;  %v17643_v11 = vcombine.high %v17631_v4, %v17631_v4  ;;  %v954_v32 = vmax.f32 %v23011_v35, %v15800_v58  ;;  %v23023_v4 = vld [vmem:[#allocation69_spill] sm:$0xff] }
 0x27e   :  { %23008 = vst [vmem:[#allocation10_spill] sm:$0xff] %v17635_v38  ;;  %v5088_v39 = vcombine.low %v17180_v22, %v5073_v33  ;;  %v17647_v14 = vrot.slane %v1857_v7, %v16632_v16  ;;  %v1807_v46 = vrot.slane %v14707_v40, %v16632_v16  ;;  %v23013_v22 = vunpack.i.h.s16 %v16736_v53 }
 0x27f   :  { %23009 = vst [vmem:[#allocation11_spill] sm:$0xff] %v17639_v23  ;;  %23010 = vst [vmem:[#allocation114_spill] sm:$0xff] %v17643_v11  ;;  %15547 = vmatprep.mubr.msk.bf16.mxu0 %vm8330_vm2, %v8075_v43  ;;  %v981_v47 = vpack.c.bf16 %v955_v24, %v954_v32  ;;  %v14881_v27 = vpack.i.b16 %v16810_v62, %v2117_v48  ;;  %v17658_v33 = vcombine.high %v16803_v51, %v16803_v51 }
 0x280   :  { %23012 = vst [vmem:[#allocation12_spill] sm:$0xff] %v17647_v14  ;;  %v5096_v41 = vrot.slane %v5088_v39, %v16632_v16  ;;  %v14880_v25 = vpack.i.b16 %v17041_v13, %v23013_v22  ;;  %v17661_v18 = vpack.i.b16 %v2117_v48, %v17455_v55  ;;  %v1809_v45 = vcombine.high %v1807_v46, %v1807_v46  ;;  %v23037_v14 = vld [vmem:[#allocation60_spill] sm:$0xff] }
 0x281   :  { %23014 = vst [vmem:[#allocation115_spill] sm:$0xff] %v17658_v33  ;;  %v17664_v61 = vrot.slane %v1807_v46, %v16632_v16  ;;  %v1800_v39 = vrot.slane %v981_v47, %v16632_v16  ;;  %v5108_v24 = vcombine.low %v14881_v27, %v17541_v50  ;;  %v14869_v40 = vcombine.high %v16796_v12, %v16810_v62 }
 0x282   :  { %23015 = vst [vmem:[#allocation116_spill] sm:$0xff] %v17661_v18  ;;  %v5104_v58 = vcombine.low %v5096_v41, %v5103_v2  ;;  %v5105_v7 = vcombine.low %v14880_v25, %v17438_v56  ;;  %v4345_v43 = vcombine.low %v16793_v31, %v16803_v51  ;;  %v17675_v2 = vrot.slane %v1809_v45, %v16632_v16 }
 0x283   :  { %23016 = vst [vmem:[#allocation117_spill] sm:$0xff] %v17664_v61  ;;  %v6882_v56 = vcombine.low %v17661_v18, %v16810_v62  ;;  %v6883_v35 = vcombine.low %v17658_v33, %v16779_v59  ;;  %v1808_v32 = vcombine.high %v1800_v39, %v1800_v39  ;;  %v17683_v41 = vrot.slane %v1800_v39, %v16632_v16 }
 0x284   :  { %5758 = vrot.lane.b32.xlu1 %v5104_v58, %s15994_s0  ;;  %23017 = vst [vmem:[#allocation118_spill] sm:$0xff] %v17675_v2  ;;  %v5115_v48 = vrot.slane %v5105_v7, %v16632_v16  ;;  %v5136_v12 = vrot.slane %v5108_v24, %v16632_v16  ;;  %v17687_v46 = vrot.slane %v14869_v40, %v16632_v16  ;;  %v23020_v18 = vunpack.i.h.s16 %v16803_v51 }
 0x285   :  { %23018 = vst [vmem:[#allocation119_spill] sm:$0xff] %v17683_v41  ;;  %v17691_v25 = vrot.slane %v4345_v43, %v16632_v16  ;;  %v6890_v47 = vrot.slane %v6882_v56, %v16632_v16  ;;  %v6897_v27 = vrot.slane %v6883_v35, %v16632_v16  ;;  %v17696_v58 = vrot.slane %v1808_v32, %v16632_v16 }
 0x286   :  { %v5137_v22 = vcombine.low %v5115_v48, %v17493_v15  ;;  %v5138_v45 = vcombine.low %v17502_v63, %v5136_v12  ;;  %v1299_v7 = vcombine.high %v16779_v59, %v16779_v59  ;;  %v17703_v39 = vcombine.high %v16788_v0, %v16788_v0 }
 0x287   :  { %23019 = vst [vmem:[#allocation120_spill] sm:$0xff] %v17696_v58  ;;  %v6898_v24 = vcombine.low %v6890_v47, %v17687_v46  ;;  %v6899_v40 = vcombine.low %v17691_v25, %v6897_v27  ;;  %v2123_v43 = vunpack.i.h.s16 %v17215_v6  ;;  %v2125_v56 = vunpack.i.h.s16 %v16793_v31 }
 0x288   :  { %v5145_v15 = vrot.slane %v5137_v22, %v16632_v16  ;;  %v5152_v48 = vrot.slane %v5138_v45, %v16632_v16  ;;  %v2129_v35 = vunpack.i.h.s16 %v16807_v49  ;;  %v2133_v22 = vunpack.i.h.s16 %v16779_v59 }
 0x289   :  { %v6906_v32 = vrot.slane %v6898_v24, %v16632_v16  ;;  %v6913_v12 = vrot.slane %v6899_v40, %v16632_v16  ;;  %v2135_v47 = vunpack.i.h.s16 %v16788_v0  ;;  %v2137_v27 = vunpack.i.h.s16 %v1299_v7 }
 0x28a   :  { %v5153_v20 = vcombine.low %v5145_v15, %v5152_v48  ;;  %v2139_v6 = vunpack.i.h.s16 %v17703_v39  ;;  %v17719_v45 = vpack.i.b16 %v16793_v31, %v2123_v43  ;;  %v17722_v63 = vpack.i.b16 %v16803_v51, %v2125_v56 }
 0x28b   :  { %v6914_v19 = vcombine.low %v6906_v32, %v6913_v12  ;;  %v17727_v24 = vpack.i.b16 %v16807_v49, %v23020_v18  ;;  %v17730_v40 = vpack.i.b16 %v16788_v0, %v2133_v22  ;;  %v17733_v15 = vpack.i.b16 %v1299_v7, %v2135_v47 }
 0x28c   :  { %5760 = vrot.lane.b32.xlu0 %v5153_v20, %s15994_s0  ;;  %v17736_v48 = vpack.i.b16 %v17703_v39, %v2137_v27  ;;  %v17739_v31 = vpack.i.b16 %v16776_v5, %v2139_v6  ;;  %v14924_v43 = vpack.i.b16 %v16779_v59, %v2129_v35  ;;  %v3531_v18 = vcombine.low %v17719_v45, %v17722_v63 }
 0x28d   :  { %7353 = vrot.lane.b32.xlu1 %v6914_v19, %s15995_s2  ;;  %v4391_v56 = vcombine.low %v16807_v49, %v16779_v59  ;;  %v4392_v20 = vcombine.low %v16788_v0, %v1299_v7  ;;  %v4393_v32 = vcombine.low %v17703_v39, %v16776_v5  ;;  %v3578_v12 = vcombine.low %v17730_v40, %v17733_v15 }
 0x28e   :  { %v3579_v22 = vcombine.low %v17736_v48, %v17739_v31  ;;  %v6384_v35 = vcombine.low %v17727_v24, %v14924_v43  ;;  %v4394_v19 = vcombine.low %v17320_v1, %v17299_v29  ;;  %v17758_v47 = vrot.slane %v3531_v18, %v16632_v16 }
 0x28f   :  { %v4401_v27 = vrot.slane %v4391_v56, %v16632_v16  ;;  %v4408_v0 = vrot.slane %v4392_v20, %v16632_v16  ;;  %v4415_v7 = vrot.slane %v4393_v32, %v16632_v16  ;;  %v17764_v6 = vrot.slane %v3578_v12, %v16632_v16 }
 0x290   :  { %v17767_v49 = vrot.slane %v3579_v22, %v16632_v16  ;;  %v6391_v43 = vrot.slane %v6384_v35, %v16632_v16  ;;  %v4422_v13 = vrot.slane %v4394_v19, %v16632_v16  ;;  %v22508_v18 = vunpack.i.h.s16 %v16785_v36 }
 0x291   :  { %v4423_v1 = vcombine.low %v4401_v27, %v4408_v0  ;;  %v4440_v56 = vcombine.low %v16816_v26, %v16824_v34  ;;  %v14946_v20 = vcombine.high %v16776_v5, %v16785_v36  ;;  %v4343_v35 = vcombine.low %v17455_v55, %v17255_v57 }
 0x292   :  { %v6392_v32 = vcombine.low %v17758_v47, %v6391_v43  ;;  %v6393_v12 = vcombine.low %v17764_v6, %v17767_v49  ;;  %v4424_v22 = vcombine.low %v4415_v7, %v4422_v13  ;;  %v17785_v27 = vpack.i.b16 %v22508_v18, %v16776_v5 }
 0x293   :  { %v4431_v19 = vrot.slane %v4423_v1, %v16632_v16  ;;  %v17788_v53 = vrot.slane %v4440_v56, %v16632_v16  ;;  %v6930_v44 = vrot.slane %v14946_v20, %v16632_v16  ;;  %v4359_v57 = vrot.slane %v4343_v35, %v16632_v16 }
 0x294   :  { %23021 = vst [vmem:[#allocation121_spill] sm:$0xff] %v17785_v27  ;;  %v6400_v43 = vrot.slane %v6392_v32, %v16632_v16  ;;  %v6407_v11 = vrot.slane %v6393_v12, %v16632_v16  ;;  %v4438_v13 = vrot.slane %v4424_v22, %v16632_v16  ;;  %v6915_v7 = vcombine.low %v17703_v39, %v17785_v27 }
 0x295   :  { %23022 = vst [vmem:[#allocation122_spill] sm:$0xff] %v17788_v53  ;;  %v6932_v1 = vcombine.low %v6930_v44, %v17788_v53  ;;  %v4375_v18 = vcombine.low %v17687_v46, %v17691_v25  ;;  %v17802_v56 = vcombine.high %v22964_v54, %v22964_v54  ;;  %v4374_v12 = vcombine.low %v23023_v4, %v4359_v57  ;;  %v23025_v57 = vld [vmem:[#allocation85_spill] sm:$0xff] }
 0x296   :  { %v6408_v20 = vcombine.low %v6400_v43, %v6407_v11  ;;  %v4439_v32 = vcombine.low %v4431_v19, %v4438_v13  ;;  %v17807_v22 = vcombine.high %v22963_v3, %v22963_v3  ;;  %v6923_v35 = vrot.slane %v6915_v7, %v16632_v16 }
 0x297   :  { %v6946_v39 = vrot.slane %v6932_v1, %v16632_v16  ;;  %v4389_v44 = vrot.slane %v4375_v18, %v16632_v16  ;;  %v22511_v46 = vunpack.i.h.s16 %v17408_v52  ;;  %v4382_v11 = vrot.slane %v4374_v12, %v16632_v16 }
 0x298   :  { %6776 = vrot.lane.b32.xlu0 %v6408_v20, %s15997_s1  ;;  %4952 = vrot.lane.b32.xlu1 %v4439_v32, %s15995_s2  ;;  %v4442_v4 = vcombine.low %v22963_v3, %v17802_v56  ;;  %v4443_v25 = vcombine.low %v17807_v22, %v22961_v30  ;;  %v6931_v43 = vcombine.low %v4408_v0, %v6923_v35  ;;  %v23027_v0 = vld [vmem:[#allocation87_spill] sm:$0xff] }
 0x299   :  { %v17824_v18 = vpack.i.b16 %v22511_v46, %v22965_v8  ;;  %v6948_v13 = vcombine.low %v17305_v28, %v22964_v54  ;;  %v17830_v7 = vcombine.high %v23025_v57, %v23025_v57  ;;  %v4390_v1 = vcombine.low %v4382_v11, %v4389_v44  ;;  %v23029_v46 = vld [vmem:[#allocation47_spill] sm:$0xff]  ;;  %v23031_v44 = vld [vmem:[#allocation89_spill] sm:$0xff]  ;;  %v23032_v11 = vld [vmem:[#allocation86_spill] sm:$0xff] }
 0x29a   :  { %v17833_v20 = vrot.slane %v4442_v4, %v16632_v16  ;;  %v17836_v32 = vrot.slane %v4443_v25, %v16632_v16  ;;  %v17840_v12 = vcombine.high %v23027_v0, %v23027_v0  ;;  %v6939_v35 = vrot.slane %v6931_v43, %v16632_v16  ;;  %v23033_v25 = vld [vmem:[#allocation61_spill] sm:$0xff]  ;;  %v23034_v57 = vld [vmem:[#allocation59_spill] sm:$0xff]  ;;  %v23035_v43 = vld [vmem:[#allocation78_spill] sm:$0xff] }
 0x29b   :  { %23024 = vst [vmem:[#allocation69_spill] sm:$0xff] %v17824_v18  ;;  %23026 = vst [vmem:[#allocation123_spill] sm:$0xff] %v17830_v7  ;;  %v6949_v19 = vcombine.low %v17824_v18, %v23029_v46  ;;  %v6956_v27 = vrot.slane %v6948_v13, %v16632_v16  ;;  %v17847_v23 = vunpack.i.h.s16 %v17830_v7  ;;  %v2953_v4 = vcombine.low %v23032_v11, %v23031_v44 }
 0x29c   :  { %23028 = vst [vmem:[#allocation124_spill] sm:$0xff] %v17840_v12  ;;  %4950 = vrot.lane.b32.xlu1 %v4390_v1, %s15995_s2  ;;  %v8076_v53 = vcombine.low %v23034_v57, %v23033_v25  ;;  %v14966_v0 = vcombine.high %v23034_v57, %v23033_v25  ;;  %v17858_v38 = vcombine.high %v23035_v43, %v23035_v43  ;;  %v23039_v25 = vld [vmem:[#allocation77_spill] sm:$0xff] }
 0x29d   :  { %23030 = vst [vmem:[#allocation125_spill] sm:$0xff] %v17847_v23  ;;  %v6947_v18 = vcombine.low %v6939_v35, %v6946_v39  ;;  %v6963_v13 = vrot.slane %v6949_v19, %v16632_v16  ;;  %v6964_v7 = vcombine.low %v6956_v27, %v17833_v20  ;;  %v14964_v1 = vpack.i.b16 %v17847_v23, %v23037_v14  ;;  %v23040_v35 = vld [vmem:[#allocation81_spill] sm:$0xff] }
 0x29e   :  { %23036 = vst [vmem:[#allocation86_spill] sm:$0xff] %v17858_v38  ;;  %v17865_v2 = vrot.slane %v2953_v4, %v16632_v16  ;;  %v8085_v61 = vrot.slane %v8076_v53, %v16632_v16  ;;  %v8092_v52 = vrot.slane %v14966_v0, %v16632_v16  ;;  %v17871_v57 = vcombine.high %v23039_v25, %v23039_v25  ;;  %v23042_v53 = vld [vmem:[#allocation79_spill] sm:$0xff] }
 0x29f   :  { %7355 = vrot.lane.b32.xlu0 %v6947_v18, %s15995_s2  ;;  %v6965_v39 = vcombine.low %v17836_v32, %v6963_v13  ;;  %v6972_v27 = vrot.slane %v6964_v7, %v16632_v16  ;;  %v8078_v19 = vcombine.low %v14964_v1, %v17840_v12  ;;  %v17879_v4 = vcombine.high %v23040_v35, %v23040_v35 }
 0x2a0   :  { %23038 = vst [vmem:[#allocation126_spill] sm:$0xff] %v17865_v2  ;;  %v8100_v23 = vcombine.low %v8085_v61, %v8092_v52  ;;  %v17883_v0 = vcombine.high %v23042_v53, %v23042_v53  ;;  %v2955_v14 = vcombine.low %v23040_v35, %v17858_v38  ;;  %v14967_v18 = vcombine.high %v23032_v11, %v23031_v44 }
 0x2a1   :  { %23041 = vst [vmem:[#allocation127_spill] sm:$0xff] %v17879_v4  ;;  %v6979_v13 = vrot.slane %v6965_v39, %v16632_v16  ;;  %v8099_v7 = vrot.slane %v8078_v19, %v16632_v16  ;;  %v3001_v1 = vcombine.low %v17879_v4, %v23039_v25  ;;  %v23044_v12 = vunpack.i.h.s16 %v17455_v55 }
 0x2a2   :  { %23043 = vst [vmem:[#allocation128_spill] sm:$0xff] %v17883_v0  ;;  %v8108_v61 = vrot.slane %v8100_v23, %v16632_v16  ;;  %v22536_v43 = vunpack.i.h.s16 %v17883_v0  ;;  %v17899_v38 = vrot.slane %v2955_v14, %v16632_v16  ;;  %v8125_v44 = vrot.slane %v14967_v18, %v16632_v16 }
 0x2a3   :  { %v14762_v52 = vpack.i.b16 %v16810_v62, %v23044_v12  ;;  %v6980_v35 = vcombine.low %v6972_v27, %v6979_v13  ;;  %v8101_v39 = vcombine.low %v8099_v7, %v17865_v2  ;;  %v17904_v19 = vrot.slane %v3001_v1, %v16632_v16 }
 0x2a4   :  { %23045 = vst [vmem:[#allocation129_spill] sm:$0xff] %v17899_v38  ;;  %v23047_v4 = vunpack.i.h.s16 %v17658_v33  ;;  %v17914_v23 = vpack.i.b16 %v22536_v43, %v17871_v57  ;;  %v8133_v14 = vcombine.low %v8125_v44, %v17899_v38  ;;  %v5154_v12 = vcombine.low %v17547_v10, %v17719_v45 }
 0x2a5   :  { %23046 = vst [vmem:[#allocation130_spill] sm:$0xff] %v17904_v19  ;;  %v7444_v27 = vcombine.low %v14762_v52, %v17541_v50  ;;  %7357 = vrot.lane.b32.xlu0 %v6980_v35, %s15995_s2  ;;  %v8115_v18 = vrot.slane %v8101_v39, %v16632_v16  ;;  %v2141_v13 = vunpack.i.h.s16 %v16776_v5  ;;  %v2147_v1 = vunpack.i.h.s16 %v17299_v29 }
 0x2a6   :  { %v17909_v55 = vpack.i.b16 %v16779_v59, %v23047_v4  ;;  %23048 = vst [vmem:[#allocation131_spill] sm:$0xff] %v17914_v23  ;;  %v7445_v4 = vcombine.low %v17722_v63, %v17727_v24  ;;  %v8118_v44 = vcombine.low %v23042_v53, %v17914_v23  ;;  %v8141_v7 = vrot.slane %v8133_v14, %v16632_v16  ;;  %v23062_v23 = vld [vmem:[#allocation96_spill] sm:$0xff] }
 0x2a7   :  { %v17931_v10 = vrot.slane %v5154_v12, %v16632_v16  ;;  %v7452_v50 = vrot.slane %v7444_v27, %v16632_v16  ;;  %v8116_v45 = vcombine.low %v8108_v61, %v8115_v18  ;;  %v2149_v2 = vunpack.i.h.s16 %v16816_v26  ;;  %v23049_v61 = vld [vmem:[#allocation90_spill] sm:$0xff] }
 0x2a8   :  { %v5156_v59 = vcombine.low %v17909_v55, %v17730_v40  ;;  %v7459_v40 = vrot.slane %v7445_v4, %v16632_v16  ;;  %v8132_v39 = vrot.slane %v8118_v44, %v16632_v16  ;;  %v2151_v14 = vunpack.i.h.s16 %v16824_v34 }
 0x2a9   :  { %v7460_v43 = vcombine.low %v7452_v50, %v17931_v10  ;;  %15548 = vmatmul.mubr.msk.bf16.gmra.mrb[56].mxu0 %vm8330_vm2, %v8116_v45  ;;  %v17946_v27 = vpack.i.b16 %v23049_v61, %v2141_v13  ;;  %v23050_v18 = vunpack.i.h.s16 %v23049_v61  ;;  %v14775_v4 = vpack.i.b16 %v16816_v26, %v2147_v1 }
 0x2aa   :  { %v17935_v35 = vrot.slane %v5156_v59, %v16632_v16  ;;  %v8134_v44 = vcombine.low %v17904_v19, %v8132_v39  ;;  %v14776_v38 = vpack.i.b16 %v16824_v34, %v2149_v2  ;;  %v14777_v45 = vpack.i.b16 %v17305_v28, %v2151_v14 }
 0x2ab   :  { %v17951_v59 = vpack.i.b16 %v17299_v29, %v23050_v18  ;;  %v7468_v50 = vrot.slane %v7460_v43, %v16632_v16  ;;  %v5157_v5 = vcombine.low %v17733_v15, %v17736_v48  ;;  %v7477_v29 = vcombine.low %v17739_v31, %v17946_v27 }
 0x2ac   :  { %v7461_v12 = vcombine.low %v7459_v40, %v17935_v35  ;;  %v8148_v1 = vrot.slane %v8134_v44, %v16632_v16  ;;  %v5205_v18 = vcombine.low %v14776_v38, %v14777_v45  ;;  %v3529_v39 = vcombine.low %v17473_v42, %v14762_v52 }
 0x2ad   :  { %v5204_v62 = vcombine.low %v17951_v59, %v14775_v4  ;;  %v3561_v2 = vcombine.low %v17575_v60, %v17758_v47  ;;  %v17969_v14 = vrot.slane %v5157_v5, %v16632_v16  ;;  %v7484_v15 = vrot.slane %v7477_v29, %v16632_v16  ;;  %v23051_v47 = vld [vmem:[#allocation6_spill] sm:$0xff] }
 0x2ae   :  { %v7475_v40 = vrot.slane %v7461_v12, %v16632_v16  ;;  %v8149_v48 = vcombine.low %v8141_v7, %v8148_v1  ;;  %v17976_v19 = vrot.slane %v5205_v18, %v16632_v16  ;;  %v3545_v44 = vrot.slane %v3529_v39, %v16632_v16 }
 0x2af   :  { %v17972_v12 = vrot.slane %v5204_v62, %v16632_v16  ;;  %v3575_v42 = vrot.slane %v3561_v2, %v16632_v16  ;;  %v7485_v60 = vcombine.low %v17969_v14, %v7484_v15  ;;  %v22545_v5 = vunpack.i.h.s16 %v17305_v28 }
 0x2b0   :  { %v7476_v43 = vcombine.low %v7468_v50, %v7475_v40  ;;  %v2155_v52 = vunpack.i.h.s16 %v23051_v47  ;;  %v2159_v62 = vunpack.i.h.s16 %v22963_v3  ;;  %15551 = vmatprep.mubr.msk.bf16.mxu0 %vm8330_vm2, %v8149_v48  ;;  %v3560_v50 = vcombine.low %v17564_v21, %v3545_v44 }
 0x2b1   :  { %v7486_v7 = vcombine.low %v17972_v12, %v17976_v19  ;;  %v3626_v40 = vcombine.low %v14775_v4, %v14776_v38  ;;  %v14925_v29 = vpack.i.b16 %v16785_v36, %v2141_v13  ;;  %v7493_v1 = vrot.slane %v7485_v60, %v16632_v16 }
 0x2b2   :  { %7867 = vrot.lane.b32.xlu1 %v7476_v43, %s15994_s0  ;;  %v17994_v18 = vpack.i.b16 %v23051_v47, %v22545_v5  ;;  %v17997_v39 = vpack.i.b16 %v17802_v56, %v2159_v62  ;;  %v14926_v2 = vpack.i.b16 %v22963_v3, %v2155_v52  ;;  %v3568_v15 = vrot.slane %v3560_v50, %v16632_v16 }
 0x2b3   :  { %v7500_v43 = vrot.slane %v7486_v7, %v16632_v16  ;;  %v18003_v21 = vrot.slane %v3626_v40, %v16632_v16  ;;  %v6409_v38 = vcombine.low %v14925_v29, %v17951_v59  ;;  %v18010_v48 = vcombine.high %v17476_v9, %v17476_v9  ;;  %v23054_v7 = vld [vmem:[#allocation7_spill] sm:$0xff] }
 0x2b4   :  { %v3627_v13 = vcombine.low %v14777_v45, %v17994_v18  ;;  %v6410_v4 = vcombine.low %v14926_v2, %v17997_v39  ;;  %v18014_v44 = vcombine.high %v17487_v37, %v17487_v37  ;;  %v3576_v52 = vcombine.low %v3568_v15, %v3575_v42  ;;  %v23055_v2 = vld [vmem:[#allocation95_spill] sm:$0xff]  ;;  %v23057_v15 = vld [vmem:[#allocation94_spill] sm:$0xff] }
 0x2b5   :  { %23052 = vst [vmem:[#allocation132_spill] sm:$0xff] %v18010_v48  ;;  %v7501_v60 = vcombine.low %v7493_v1, %v7500_v43  ;;  %v6417_v62 = vrot.slane %v6409_v38, %v16632_v16  ;;  %v3003_v50 = vcombine.low %v23054_v7, %v17499_v17  ;;  %v14731_v29 = vcombine.high %v23054_v7, %v17499_v17  ;;  %v23063_v38 = vld [vmem:[#allocation98_spill] sm:$0xff] }
 0x2b6   :  { %23053 = vst [vmem:[#allocation133_spill] sm:$0xff] %v18014_v44  ;;  %v18020_v40 = vrot.slane %v3627_v13, %v16632_v16  ;;  %v6424_v45 = vrot.slane %v6410_v4, %v16632_v16  ;;  %v3051_v5 = vcombine.low %v18014_v44, %v23055_v2  ;;  %4136 = vrot.lane.b32.xlu1 %v3576_v52, %s15997_s1 }
 0x2b7   :  { %7869 = vrot.lane.b32.xlu0 %v7501_v60, %s15994_s0  ;;  %v6425_v42 = vcombine.low %v6417_v62, %v18003_v21  ;;  %v18031_v1 = vrot.slane %v3003_v50, %v16632_v16  ;;  %v8150_v43 = vcombine.low %v17476_v9, %v18010_v48  ;;  %v18038_v4 = vrot.slane %v14731_v29, %v16632_v16  ;;  %v23060_v60 = vld [vmem:[#allocation97_spill] sm:$0xff] }
 0x2b8   :  { %v6426_v13 = vcombine.low %v18020_v40, %v6424_v45  ;;  %v18041_v47 = vrot.slane %v3051_v5, %v16632_v16  ;;  %v18045_v52 = vcombine.high %v23060_v60, %v23060_v60  ;;  %v14732_v2 = vcombine.high %v23057_v15, %v23062_v23  ;;  %v15844_v29 = vld [vmem:[%s22311_s3 + $0x40] sm:$0xff]  }
 0x2b9   :  { %23056 = vst [vmem:[#allocation134_spill] sm:$0xff] %v18031_v1  ;;  %23058 = vst [vmem:[#allocation135_spill] sm:$0xff] %v18038_v4  ;;  %v6433_v62 = vrot.slane %v6425_v42, %v16632_v16  ;;  %v8157_v50 = vrot.slane %v8150_v43, %v16632_v16  ;;  %v6108_v45 = vcombine.low %v23060_v60, %v23063_v38  ;;  %v23064_v42 = vunpack.i.h.s16 %v23057_v15 }
 0x2ba   :  { %23059 = vst [vmem:[#allocation136_spill] sm:$0xff] %v18041_v47  ;;  %23061 = vst [vmem:[#allocation137_spill] sm:$0xff] %v18045_v52  ;;  %v6440_v5 = vrot.slane %v6426_v13, %v16632_v16  ;;  %v3034_v44 = vcombine.low %v18031_v1, %v18038_v4  ;;  %v8168_v43 = vcombine.low %v17683_v41, %v17696_v58  ;;  %v23068_v13 = vunpack.i.h.s16 %v16803_v51 }
 0x2bb   :  { %v18062_v48 = vpack.i.b16 %v23064_v42, %v18045_v52  ;;  %v8158_v9 = vcombine.low %v8157_v50, %v18041_v47  ;;  %v18068_v38 = vrot.slane %v14732_v2, %v16632_v16  ;;  %v18071_v60 = vrot.slane %v6108_v45, %v16632_v16  ;;  %15205 = vmatprep.subr.bf16.mxu1 %v15844_v29 }
 0x2bc   :  { %v14882_v4 = vpack.i.b16 %v17658_v33, %v23068_v13  ;;  %v6441_v1 = vcombine.low %v6433_v62, %v6440_v5  ;;  %v18077_v42 = vrot.slane %v3034_v44, %v16632_v16  ;;  %v8182_v50 = vrot.slane %v8168_v43, %v16632_v16  ;;  %v15845_v62 = vld [vmem:[%s22311_s3] sm:$0xff]   ;;  %v15846_v44 = vld [vmem:[%s22311_s3 + $0x48] sm:$0xff]  }
 0x2bd   :  { %23065 = vst [vmem:[#allocation138_spill] sm:$0xff] %v18062_v48  ;;  %23066 = vst [vmem:[#allocation139_spill] sm:$0xff] %v18068_v38  ;;  %v8167_v41 = vcombine.low %v18062_v48, %v23062_v23  ;;  %v8165_v2 = vrot.slane %v8158_v9, %v16632_v16  ;;  %v5187_v45 = vcombine.low %v17935_v35, %v17969_v14  ;;  %v22563_v51 = vunpack.i.h.s16 %v22964_v54 }
 0x2be   :  { %23067 = vst [vmem:[#allocation140_spill] sm:$0xff] %v18071_v60  ;;  %23069 = vst [vmem:[#allocation141_spill] sm:$0xff] %v18077_v42  ;;  %v5155_v47 = vcombine.low %v17722_v63, %v14882_v4  ;;  %6778 = vrot.lane.b32.xlu0 %v6441_v1, %s15997_s1  ;;  %v8184_v9 = vcombine.low %v18068_v38, %v8182_v50  ;;  %v2161_v63 = vunpack.i.h.s16 %v17802_v56  ;;  %v2163_v35 = vunpack.i.h.s16 %v17807_v22 }
 0x2bf   :  { %v8175_v29 = vrot.slane %v8167_v41, %v16632_v16  ;;  %v8166_v14 = vcombine.low %v18077_v42, %v8165_v2  ;;  %v5201_v5 = vrot.slane %v5187_v45, %v16632_v16  ;;  %v2165_v43 = vunpack.i.h.s16 %v22961_v30  ;;  %15206 = vmatpush3.bf16.msra.mxu1 %v15845_v62  ;;  %v15847_v62 = vld [vmem:[%s22311_s3 + $0x8] sm:$0xff]  }
 0x2c0   :  { %v5171_v4 = vrot.slane %v5155_v47, %v16632_v16  ;;  %v8198_v1 = vrot.slane %v8184_v9, %v16632_v16  ;;  %v2167_v41 = vunpack.i.h.s16 %v22965_v8  ;;  %v18108_v56 = vpack.i.b16 %v22963_v3, %v22563_v51  ;;  %15207 = vmatprep.subr.bf16.mxu1 %v15846_v44  ;;  %v23081_v3 = vld [vmem:[#allocation12_spill] sm:$0xff] }
 0x2c1   :  { %v8183_v13 = vcombine.low %v18071_v60, %v8175_v29  ;;  %15552 = vmatmul.mubr.msk.bf16.gmra.mrb[60].mxu0 %vm8330_vm2, %v8166_v14  ;;  %v14781_v50 = vpack.i.b16 %v17807_v22, %v2161_v63  ;;  %v14782_v2 = vpack.i.b16 %v22961_v30, %v2163_v35  ;;  %v18115_v45 = vpack.i.b16 %v22965_v8, %v2165_v43  ;;  %v23071_v14 = vld [vmem:[#allocation43_spill] sm:$0xff] }
 0x2c2   :  { %v5186_v47 = vcombine.low %v17931_v10, %v5171_v4  ;;  %v18122_v9 = vpack.i.b16 %v23029_v46, %v2167_v41  ;;  %v23070_v44 = vunpack.i.h.s16 %v23029_v46  ;;  %v7502_v22 = vcombine.low %v17994_v18, %v18108_v56  ;;  %v15848_v18 = vld [vmem:[%s22311_s3 + $0x50] sm:$0xff]  }
 0x2c3   :  { %v8191_v29 = vrot.slane %v8183_v13, %v16632_v16  ;;  %v5252_v35 = vcombine.low %v17997_v39, %v14781_v50  ;;  %v5253_v4 = vcombine.low %v14782_v2, %v18115_v45  ;;  %v3577_v43 = vcombine.low %v17727_v24, %v17909_v55  ;;  %15208 = vmatpush3.bf16.msra.mxu1 %v15847_v62 }
 0x2c4   :  { %v18127_v10 = vpack.i.b16 %v23071_v14, %v23070_v44  ;;  %v5194_v63 = vrot.slane %v5186_v47, %v16632_v16  ;;  %v7510_v44 = vrot.slane %v7502_v22, %v16632_v16  ;;  %v3580_v38 = vcombine.low %v17946_v27, %v17951_v59  ;;  %v23072_v59 = vld [vmem:[#allocation45_spill] sm:$0xff]  ;;  %15209 = vmatprep.subr.bf16.mxu1 %v15848_v18 }
 0x2c5   :  { %v8199_v13 = vcombine.low %v8191_v29, %v8198_v1  ;;  %v18145_v42 = vrot.slane %v5252_v35, %v16632_v16  ;;  %v18148_v24 = vrot.slane %v5253_v4, %v16632_v16  ;;  %v3587_v55 = vrot.slane %v3577_v43, %v16632_v16 }
 0x2c6   :  { %v7503_v51 = vcombine.low %v18122_v9, %v18127_v10  ;;  %v5202_v47 = vcombine.low %v5194_v63, %v5201_v5  ;;  %v3608_v62 = vrot.slane %v3580_v38, %v16632_v16  ;;  %v2173_v27 = vunpack.i.h.s16 %v23071_v14  ;;  %v23073_v63 = vld [vmem:[#allocation102_spill] sm:$0xff] }
 0x2c7   :  { %15555 = vmatprep.mubr.msk.bf16.mxu0 %vm8330_vm2, %v8199_v13  ;;  %v2175_v29 = vunpack.i.h.s16 %v23072_v59  ;;  %v7518_v5 = vcombine.low %v7510_v44, %v18145_v42  ;;  %v3609_v22 = vcombine.low %v3587_v55, %v17764_v6  ;;  %v2177_v35 = vunpack.i.h.s16 %v23073_v63  ;;  %v23074_v44 = vld [vmem:[#allocation103_spill] sm:$0xff] }
 0x2c8   :  { %v7517_v1 = vrot.slane %v7503_v51, %v16632_v16  ;;  %5762 = vrot.lane.b32.xlu1 %v5202_v47, %s15994_s0  ;;  %v3629_v4 = vcombine.low %v14781_v50, %v14782_v2  ;;  %v3610_v51 = vcombine.low %v17767_v49, %v3608_v62  ;;  %v18163_v38 = vpack.i.b16 %v23072_v59, %v2173_v27  ;;  %v23075_v55 = vld [vmem:[#allocation99_spill] sm:$0xff] }
 0x2c9   :  { %v18166_v13 = vpack.i.b16 %v23073_v63, %v2175_v29  ;;  %v7526_v18 = vrot.slane %v7518_v5, %v16632_v16  ;;  %v3617_v47 = vrot.slane %v3609_v22, %v16632_v16  ;;  %v18171_v60 = vpack.i.b16 %v23074_v44, %v2177_v35  ;;  %v15849_v62 = vld [vmem:[%s22311_s3 + $0x10] sm:$0xff]   ;;  %v23076_v29 = vld [vmem:[#allocation117_spill] sm:$0xff] }
 0x2ca   :  { %v7519_v43 = vcombine.low %v18148_v24, %v7517_v1  ;;  %v18174_v6 = vrot.slane %v3629_v4, %v16632_v16  ;;  %v3624_v49 = vrot.slane %v3610_v51, %v16632_v16  ;;  %v3676_v2 = vcombine.low %v18127_v10, %v18163_v38  ;;  %v23079_v63 = vld [vmem:[#allocation118_spill] sm:$0xff]  ;;  %15210 = vmatpush3.bf16.msra.mxu1 %v15849_v62 }
 0x2cb   :  { %v14927_v1 = vpack.i.b16 %v23075_v55, %v2167_v41  ;;  %v3677_v27 = vcombine.low %v18166_v13, %v18171_v60  ;;  %v18188_v5 = vcombine.high %v23076_v29, %v23076_v29  ;;  %v18192_v22 = vcombine.high %v17696_v58, %v17696_v58 }
 0x2cc   :  { %v7533_v50 = vrot.slane %v7519_v43, %v16632_v16  ;;  %v18196_v35 = vcombine.high %v23079_v63, %v23079_v63  ;;  %v3625_v4 = vcombine.low %v3617_v47, %v3624_v49  ;;  %v18199_v43 = vrot.slane %v3676_v2, %v16632_v16  ;;  %v23082_v47 = vld [vmem:[#allocation10_spill] sm:$0xff]  ;;  %v23083_v2 = vld [vmem:[#allocation55_spill] sm:$0xff] }
 0x2cd   :  { %23077 = vst [vmem:[#allocation45_spill] sm:$0xff] %v18188_v5  ;;  %23078 = vst [vmem:[#allocation102_spill] sm:$0xff] %v18192_v22  ;;  %v6442_v51 = vcombine.low %v18115_v45, %v14927_v1  ;;  %v18203_v30 = vrot.slane %v3677_v27, %v16632_v16  ;;  %v22577_v33 = vunpack.i.h.s16 %v23081_v3  ;;  %v3101_v58 = vcombine.low %v18192_v22, %v23076_v29 }
 0x2ce   :  { %23080 = vst [vmem:[#allocation99_spill] sm:$0xff] %v18196_v35  ;;  %v7534_v41 = vcombine.low %v7526_v18, %v7533_v50  ;;  %v3102_v23 = vcombine.low %v23079_v63, %v18188_v5  ;;  %4138 = vrot.lane.b32.xlu1 %v3625_v4, %s15997_s1  ;;  %v14733_v50 = vcombine.high %v23082_v47, %v23081_v3  ;;  %v2191_v1 = vunpack.i.h.s16 %v23083_v2  ;;  %v23088_v5 = vld [vmem:[#allocation57_spill] sm:$0xff] }
 0x2cf   :  { %v6449_v18 = vrot.slane %v6442_v51, %v16632_v16  ;;  %v14870_v49 = vcombine.high %v16816_v26, %v16824_v34  ;;  %v6451_v62 = vcombine.low %v18199_v43, %v18203_v30  ;;  %v18221_v27 = vrot.slane %v3101_v58, %v16632_v16  ;;  %v15850_v26 = vld [vmem:[%s22311_s3 + $0x58] sm:$0xff]  }
 0x2d0   :  { %7871 = vrot.lane.b32.xlu0 %v7534_v41, %s15994_s0  ;;  %v18224_v41 = vrot.slane %v3102_v23, %v16632_v16  ;;  %v18229_v4 = vpack.i.b16 %v22577_v33, %v23082_v47  ;;  %v18236_v51 = vrot.slane %v14733_v50, %v16632_v16  ;;  %v4473_v23 = vcombine.low %v17833_v20, %v17836_v32  ;;  %v23089_v50 = vld [vmem:[#allocation122_spill] sm:$0xff] }
 0x2d1   :  { %23084 = vst [vmem:[#allocation55_spill] sm:$0xff] %v18221_v27  ;;  %v6450_v34 = vcombine.low %v18174_v6, %v6449_v18  ;;  %v4457_v58 = vrot.slane %v14870_v49, %v16632_v16  ;;  %v6465_v22 = vrot.slane %v6451_v62, %v16632_v16  ;;  %v18248_v29 = vcombine.high %v23088_v5, %v23088_v5  ;;  %v23090_v20 = vld [vmem:[#allocation58_spill] sm:$0xff] }
 0x2d2   :  { %23085 = vst [vmem:[#allocation142_spill] sm:$0xff] %v18224_v41  ;;  %23086 = vst [vmem:[#allocation143_spill] sm:$0xff] %v18229_v4  ;;  %v3132_v33 = vcombine.low %v18221_v27, %v18224_v41  ;;  %v8200_v3 = vcombine.low %v18196_v35, %v18229_v4  ;;  %15211 = vmatprep.subr.bf16.mxu1 %v15850_v26  ;;  %v4487_v63 = vrot.slane %v4473_v23, %v16632_v16 }
 0x2d3   :  { %23087 = vst [vmem:[#allocation144_spill] sm:$0xff] %v18236_v51  ;;  %v6458_v18 = vrot.slane %v6450_v34, %v16632_v16  ;;  %v4472_v49 = vcombine.low %v23089_v50, %v4457_v58  ;;  %v18255_v32 = vcombine.high %v23090_v20, %v23090_v20  ;;  %v4490_v27 = vcombine.low %v23071_v14, %v23072_v59  ;;  %v23092_v50 = vld [vmem:[#allocation53_spill] sm:$0xff] }
 0x2d4   :  { %v18258_v62 = vrot.slane %v3132_v33, %v16632_v16  ;;  %v8207_v41 = vrot.slane %v8200_v3, %v16632_v16  ;;  %v14871_v26 = vcombine.high %v23071_v14, %v23072_v59  ;;  %v6981_v4 = vcombine.low %v23090_v20, %v18248_v29  ;;  %v15851_v33 = vld [vmem:[%s22311_s3 + $0x18] sm:$0xff]   ;;  %v15852_v3 = vld [vmem:[%s22311_s3 + $0x60] sm:$0xff]  }
 0x2d5   :  { %v6466_v34 = vcombine.low %v6458_v18, %v6465_v22  ;;  %v4480_v58 = vrot.slane %v4472_v49, %v16632_v16  ;;  %v4538_v23 = vcombine.low %v18255_v32, %v23092_v50  ;;  %v18278_v59 = vrot.slane %v4490_v27, %v16632_v16  ;;  %15212 = vmatpush3.bf16.msra.mxu1 %v15851_v33 }
 0x2d6   :  { %23091 = vst [vmem:[#allocation122_spill] sm:$0xff] %v18258_v62  ;;  %v8208_v35 = vcombine.low %v8207_v41, %v18236_v51  ;;  %v18281_v22 = vrot.slane %v14871_v26, %v16632_v16  ;;  %v23093_v18 = vunpack.i.h.s16 %v16785_v36  ;;  %v6988_v48 = vrot.slane %v6981_v4, %v16632_v16  ;;  %v23096_v4 = vld [vmem:[#allocation56_spill] sm:$0xff]  ;;  %15213 = vmatprep.subr.bf16.mxu1 %v15852_v3 }
 0x2d7   :  { %6780 = vrot.lane.b32.xlu0 %v6466_v34, %s15997_s1  ;;  %v4488_v14 = vcombine.low %v4480_v58, %v4487_v63  ;;  %v18288_v47 = vrot.slane %v4538_v23, %v16632_v16  ;;  %v23094_v41 = vunpack.i.h.s16 %v17305_v28  ;;  %v18306_v58 = vunpack.i.h.s16 %v23096_v4 }
 0x2d8   :  { %v14883_v49 = vpack.i.b16 %v23049_v61, %v23093_v18  ;;  %v8215_v51 = vrot.slane %v8208_v35, %v16632_v16  ;;  %v6989_v26 = vcombine.low %v18278_v59, %v18281_v22  ;;  %v23095_v18 = vld [vmem:[#allocation48_spill] sm:$0xff]  ;;  %v23097_v35 = vld [vmem:[#allocation51_spill] sm:$0xff]  ;;  %v23098_v61 = vld [vmem:[#allocation109_spill] sm:$0xff] }
 0x2d9   :  { %v14884_v27 = vpack.i.b16 %v22964_v54, %v23094_v41  ;;  %v18300_v34 = vcombine.high %v23095_v18, %v23095_v18  ;;  %4954 = vrot.lane.b32.xlu1 %v4488_v14, %s15995_s2  ;;  %v6990_v63 = vcombine.low %v6988_v48, %v18288_v47  ;;  %v2199_v23 = vunpack.i.h.s16 %v23097_v35  ;;  %v23099_v54 = vld [vmem:[#allocation110_spill] sm:$0xff] }
 0x2da   :  { %v5203_v36 = vcombine.low %v17739_v31, %v14883_v49  ;;  %v8216_v41 = vcombine.low %v18258_v62, %v8215_v51  ;;  %v6997_v31 = vrot.slane %v6989_v26, %v16632_v16  ;;  %v2201_v33 = vunpack.i.h.s16 %v23098_v61 }
 0x2db   :  { %v5206_v28 = vcombine.low %v14884_v27, %v18108_v56  ;;  %v7004_v14 = vrot.slane %v6990_v63, %v16632_v16  ;;  %v2203_v27 = vunpack.i.h.s16 %v23099_v54  ;;  %v22601_v15 = vunpack.i.h.s16 %v23095_v18 }
 0x2dc   :  { %v5213_v49 = vrot.slane %v5203_v36, %v16632_v16  ;;  %15556 = vmatmul.mubr.msk.bf16.gmra.mrb[64].mxu0 %vm8330_vm2, %v8216_v41  ;;  %v2209_v51 = vunpack.i.h.s16 %v18300_v34  ;;  %v18321_v26 = vpack.i.b16 %v23096_v4, %v2191_v1  ;;  %v23100_v36 = vld [vmem:[#allocation49_spill] sm:$0xff]  ;;  %v18330_v37 = vpack.i.b16 %v23098_v61, %v2199_v23 }
 0x2dd   :  { %v5234_v48 = vrot.slane %v5206_v28, %v16632_v16  ;;  %v23101_v62 = vunpack.i.h.s16 %v23100_v36  ;;  %v7005_v63 = vcombine.low %v6997_v31, %v7004_v14  ;;  %v18333_v41 = vpack.i.b16 %v23099_v54, %v2201_v33  ;;  %v15854_v1 = vld [vmem:[%s22311_s3 + $0x68] sm:$0xff]   ;;  %v23103_v33 = vld [vmem:[#allocation111_spill] sm:$0xff] }
 0x2de   :  { %v5235_v3 = vcombine.low %v5213_v49, %v17972_v12  ;;  %v15853_v12 = vld [vmem:[%s22311_s3 + $0x20] sm:$0xff]   ;;  %v18343_v31 = vpack.i.b16 %v23095_v18, %v2203_v27  ;;  %v14950_v54 = vpack.i.b16 %v23100_v36, %v18306_v58  ;;  %v14951_v14 = vpack.i.b16 %v23103_v33, %v2209_v51 }
 0x2df   :  { %v18326_v52 = vpack.i.b16 %v23097_v35, %v23101_v62  ;;  %v5236_v28 = vcombine.low %v17976_v19, %v5234_v48  ;;  %v23102_v19 = vld [vmem:[#allocation50_spill] sm:$0xff]  ;;  %7359 = vrot.lane.b32.xlu0 %v7005_v63, %s15995_s2  ;;  %v3628_v48 = vcombine.low %v18108_v56, %v17997_v39  ;;  %v22606_v63 = vunpack.i.h.s16 %v23074_v44  ;;  %15214 = vmatpush3.bf16.msra.mxu1 %v15853_v12 }
 0x2e0   :  { %v5243_v62 = vrot.slane %v5235_v3, %v16632_v16  ;;  %v18348_v61 = vpack.i.b16 %v23102_v19, %v22601_v15  ;;  %v5351_v27 = vcombine.low %v18333_v41, %v18343_v31  ;;  %v7560_v3 = vcombine.low %v18321_v26, %v14950_v54  ;;  %15215 = vmatprep.subr.bf16.mxu1 %v15854_v1  ;;  %v15855_v39 = vld [vmem:[%s22311_s3 + $0x28] sm:$0xff]  }
 0x2e1   :  { %v5250_v23 = vrot.slane %v5236_v28, %v16632_v16  ;;  %v5350_v49 = vcombine.low %v18326_v52, %v18330_v37  ;;  %v3658_v15 = vcombine.low %v18003_v21, %v18020_v40  ;;  %v3650_v7 = vrot.slane %v3628_v48, %v16632_v16 }
 0x2e2   :  { %v7561_v51 = vcombine.low %v18348_v61, %v14951_v14  ;;  %v18374_v56 = vrot.slane %v5351_v27, %v16632_v16  ;;  %v7568_v21 = vrot.slane %v7560_v3, %v16632_v16  ;;  %v22605_v12 = vunpack.i.h.s16 %v23090_v20 }
 0x2e3   :  { %v5251_v28 = vcombine.low %v5243_v62, %v5250_v23  ;;  %v18366_v17 = vrot.slane %v5350_v49, %v16632_v16  ;;  %v3666_v40 = vrot.slane %v3658_v15, %v16632_v16  ;;  %v3659_v54 = vcombine.low %v3650_v7, %v18174_v6  ;;  %15216 = vmatpush3.bf16.msra.mxu1 %v15855_v39 }
 0x2e4   :  { %v7575_v62 = vrot.slane %v7561_v51, %v16632_v16  ;;  %v2185_v1 = vunpack.i.h.s16 %v18248_v29  ;;  %v2187_v23 = vunpack.i.h.s16 %v18255_v32  ;;  %v2189_v14 = vunpack.i.h.s16 %v23092_v50 }
 0x2e5   :  { %5764 = vrot.lane.b32.xlu1 %v5251_v28, %s15994_s0  ;;  %v7576_v49 = vcombine.low %v7568_v21, %v18366_v17  ;;  %v18389_v15 = vpack.i.b16 %v23088_v5, %v22606_v63  ;;  %v18394_v48 = vpack.i.b16 %v18248_v29, %v22605_v12  ;;  %v3673_v6 = vrot.slane %v3659_v54, %v16632_v16 }
 0x2e6   :  { %v7577_v7 = vcombine.low %v18374_v56, %v7575_v62  ;;  %v14791_v27 = vpack.i.b16 %v18255_v32, %v2185_v1  ;;  %v14792_v3 = vpack.i.b16 %v23092_v50, %v2187_v23  ;;  %v14793_v51 = vpack.i.b16 %v23083_v2, %v2189_v14 }
 0x2e7   :  { %v7584_v28 = vrot.slane %v7576_v49, %v16632_v16  ;;  %v5255_v21 = vcombine.low %v18163_v38, %v18166_v13  ;;  %v7535_v12 = vcombine.low %v18171_v60, %v18389_v15  ;;  %v3674_v63 = vcombine.low %v3666_v40, %v3673_v6 }
 0x2e8   :  { %v7591_v39 = vrot.slane %v7577_v7, %v16632_v16  ;;  %v5302_v62 = vcombine.low %v18394_v48, %v14791_v27  ;;  %v23104_v54 = vunpack.i.h.s16 %v23075_v55  ;;  %v5303_v1 = vcombine.low %v14792_v3, %v14793_v51 }
 0x2e9   :  { %v5283_v50 = vrot.slane %v5255_v21, %v16632_v16  ;;  %v7542_v23 = vrot.slane %v7535_v12, %v16632_v16  ;;  %v5284_v38 = vcombine.low %v18145_v42, %v18148_v24  ;;  %4140 = vrot.lane.b32.xlu1 %v3674_v63, %s15997_s1  ;;  %v2181_v55 = vunpack.i.h.s16 %v23088_v5 }
 0x2ea   :  { %v14885_v32 = vpack.i.b16 %v23029_v46, %v23104_v54  ;;  %v7592_v13 = vcombine.low %v7584_v28, %v7591_v39  ;;  %v18417_v49 = vrot.slane %v5302_v62, %v16632_v16  ;;  %v18422_v14 = vrot.slane %v5303_v1, %v16632_v16  ;;  %v23105_v28 = vld [vmem:[#allocation107_spill] sm:$0xff] }
 0x2eb   :  { %v7543_v7 = vcombine.low %v5283_v50, %v7542_v23  ;;  %v5292_v6 = vrot.slane %v5284_v38, %v16632_v16  ;;  %v3724_v12 = vcombine.low %v14791_v27, %v14792_v3  ;;  %v3725_v24 = vcombine.low %v14793_v51, %v18321_v26  ;;  %v23106_v27 = vld [vmem:[#allocation46_spill] sm:$0xff] }
 0x2ec   :  { %v5254_v40 = vcombine.low %v14885_v32, %v18127_v10  ;;  %7875 = vrot.lane.b32.xlu0 %v7592_v13, %s15994_s0  ;;  %v14928_v63 = vpack.i.b16 %v18248_v29, %v2181_v55  ;;  %v14929_v10 = vpack.i.b16 %v23105_v28, %v18306_v58  ;;  %v7544_v21 = vcombine.low %v18417_v49, %v18422_v14 }
 0x2ed   :  { %v7551_v39 = vrot.slane %v7543_v7, %v16632_v16  ;;  %v18435_v62 = vrot.slane %v3724_v12, %v16632_v16  ;;  %v4489_v3 = vcombine.low %v22965_v8, %v23106_v27  ;;  %v18440_v32 = vrot.slane %v3725_v24, %v16632_v16  ;;  %v15856_v24 = vld [vmem:[%s22311_s3 + $0x70] sm:$0xff]  }
 0x2ee   :  { %v5276_v42 = vrot.slane %v5254_v40, %v16632_v16  ;;  %v6467_v51 = vcombine.low %v18389_v15, %v14928_v63  ;;  %v6468_v1 = vcombine.low %v14929_v10, %v18326_v52  ;;  %v7558_v23 = vrot.slane %v7544_v21, %v16632_v16  ;;  %15217 = vmatprep.subr.bf16.mxu1 %v15856_v24 }
 0x2ef   :  { %v4492_v38 = vcombine.low %v23088_v5, %v18248_v29  ;;  %v4499_v13 = vrot.slane %v4489_v3, %v16632_v16  ;;  %v2195_v40 = vunpack.i.h.s16 %v23105_v28  ;;  %v7007_v7 = vcombine.low %v23100_v36, %v23097_v35 }
 0x2f0   :  { %v5285_v54 = vcombine.low %v5276_v42, %v5283_v50  ;;  %v6475_v8 = vrot.slane %v6467_v51, %v16632_v16  ;;  %v6482_v50 = vrot.slane %v6468_v1, %v16632_v16  ;;  %v7559_v12 = vcombine.low %v7551_v39, %v7558_v23  ;;  %v15857_v39 = vld [vmem:[%s22311_s3 + $0x30] sm:$0xff]  }
 0x2f1   :  { %v4520_v52 = vrot.slane %v4492_v38, %v16632_v16  ;;  %v4521_v42 = vcombine.low %v4499_v13, %v18278_v59  ;;  %v14943_v29 = vpack.i.b16 %v2195_v40, %v23096_v4  ;;  %v14947_v27 = vcombine.high %v23100_v36, %v23097_v35  ;;  %15218 = vmatpush3.bf16.msra.mxu1 %v15857_v39 }
 0x2f2   :  { %v5299_v55 = vrot.slane %v5285_v54, %v16632_v16  ;;  %v6483_v10 = vcombine.low %v6475_v8, %v18435_v62  ;;  %v6484_v21 = vcombine.low %v18440_v32, %v6482_v50  ;;  %7873 = vrot.lane.b32.xlu0 %v7559_v12, %s15994_s0  ;;  %v7023_v1 = vrot.slane %v7007_v7, %v16632_v16 }
 0x2f3   :  { %v4522_v59 = vcombine.low %v18281_v22, %v4520_v52  ;;  %v4529_v3 = vrot.slane %v4521_v42, %v16632_v16  ;;  %v7006_v54 = vcombine.low %v23083_v2, %v14943_v29  ;;  %v7030_v23 = vrot.slane %v14947_v27, %v16632_v16  ;;  %v23110_v27 = vld [vmem:[#allocation75_spill] sm:$0xff] }
 0x2f4   :  { %v5300_v63 = vcombine.low %v5292_v6, %v5299_v55  ;;  %v7009_v6 = vcombine.low %v23095_v18, %v18300_v34  ;;  %v6491_v51 = vrot.slane %v6483_v10, %v16632_v16  ;;  %v6498_v35 = vrot.slane %v6484_v21, %v16632_v16 }
 0x2f5   :  { %v4536_v38 = vrot.slane %v4522_v59, %v16632_v16  ;;  %v7016_v22 = vrot.slane %v7006_v54, %v16632_v16  ;;  %v3675_v55 = vcombine.low %v18115_v45, %v18122_v9  ;;  %v3678_v8 = vcombine.low %v18389_v15, %v18394_v48  ;;  %v23108_v48 = vld [vmem:[#allocation74_spill] sm:$0xff] }
 0x2f6   :  { %5766 = vrot.lane.b32.xlu1 %v5300_v63, %s15994_s0  ;;  %v7037_v13 = vrot.slane %v7009_v6, %v16632_v16  ;;  %v6499_v34 = vcombine.low %v6491_v51, %v6498_v35  ;;  %v23107_v50 = vunpack.i.h.s16 %v23074_v44  ;;  %v14887_v12 = vpack.i.b16 %v23100_v36, %v2195_v40 }
 0x2f7   :  { %v4537_v52 = vcombine.low %v4529_v3, %v4536_v38  ;;  %v7038_v42 = vcombine.low %v7016_v22, %v7023_v1  ;;  %v3685_v63 = vrot.slane %v3675_v55, %v16632_v16  ;;  %v3706_v45 = vrot.slane %v3678_v8, %v16632_v16  ;;  %v15858_v38 = vld [vmem:[%s22311_s3 + $0x78] sm:$0xff]  }
 0x2f8   :  { %v14886_v7 = vpack.i.b16 %v23090_v20, %v23107_v50  ;;  %v7039_v29 = vcombine.low %v7030_v23, %v7037_v13  ;;  %6782 = vrot.lane.b32.xlu0 %v6499_v34, %s15997_s1  ;;  %v5304_v15 = vcombine.low %v18321_v26, %v14887_v12  ;;  %v18496_v24 = vcombine.high %v23108_v48, %v23108_v48  ;;  %v15859_v22 = vld [vmem:[%s22311_s3 + $0x38] sm:$0xff]  }
 0x2f9   :  { %v7046_v40 = vrot.slane %v7038_v42, %v16632_v16  ;;  %v3707_v21 = vcombine.low %v3685_v63, %v18199_v43  ;;  %v18504_v39 = vcombine.high %v23110_v27, %v23110_v27  ;;  %v2207_v3 = vunpack.i.h.s16 %v23102_v19  ;;  %15219 = vmatprep.subr.bf16.mxu1 %v15858_v38 }
 0x2fa   :  { %v5301_v9 = vcombine.low %v18171_v60, %v14886_v7  ;;  %23109 = vst [vmem:[#allocation53_spill] sm:$0xff] %v18496_v24  ;;  %4956 = vrot.lane.b32.xlu1 %v4537_v52, %s15995_s2  ;;  %v7053_v10 = vrot.slane %v7039_v29, %v16632_v16  ;;  %v3708_v60 = vcombine.low %v18203_v30, %v3706_v45  ;;  %v2237_v51 = vunpack.i.h.s16 %v23108_v48  ;;  %v23113_v45 = vld [vmem:[#allocation81_spill] sm:$0xff] }
 0x2fb   :  { %23111 = vst [vmem:[#allocation48_spill] sm:$0xff] %v18504_v39  ;;  %v5332_v59 = vrot.slane %v5304_v15, %v16632_v16  ;;  %v3715_v6 = vrot.slane %v3707_v21, %v16632_v16  ;;  %v2239_v35 = vunpack.i.h.s16 %v23110_v27  ;;  %v2241_v30 = vunpack.i.h.s16 %v18496_v24  ;;  %15220 = vmatpush3.bf16.msra.mxu1 %v15859_v22 }
 0x2fc   :  { %v5311_v26 = vrot.slane %v5301_v9, %v16632_v16  ;;  %v7054_v54 = vcombine.low %v7046_v40, %v7053_v10  ;;  %v3722_v43 = vrot.slane %v3708_v60, %v16632_v16  ;;  %v18525_v13 = vpack.i.b16 %v23110_v27, %v2237_v51  ;;  %v23114_v9 = vld [vmem:[#allocation78_spill] sm:$0xff]  ;;  %v23115_v40 = vld [vmem:[#allocation89_spill] sm:$0xff] }
 0x2fd   :  { %v5334_v23 = vcombine.low %v18422_v14, %v5332_v59  ;;  %v18528_v55 = vpack.i.b16 %v18496_v24, %v2239_v35  ;;  %v6500_v14 = vcombine.low %v18330_v37, %v18333_v41  ;;  %v18536_v7 = vpack.i.b16 %v18504_v39, %v2241_v30 }
 0x2fe   :  { %v5333_v1 = vcombine.low %v5311_v26, %v18417_v49  ;;  %7361 = vrot.lane.b32.xlu0 %v7054_v54, %s15995_s2  ;;  %v14931_v49 = vpack.i.b16 %v23108_v48, %v2207_v3  ;;  %v3723_v34 = vcombine.low %v3715_v6, %v3722_v43  ;;  %v6501_v12 = vcombine.low %v18343_v31, %v18348_v61  ;;  %v23117_v3 = vld [vmem:[#allocation60_spill] sm:$0xff]  ;;  %v23118_v43 = vld [vmem:[#allocation62_spill] sm:$0xff] }
 0x2ff   :  { %v5348_v50 = vrot.slane %v5334_v23, %v16632_v16  ;;  %v6509_v42 = vrot.slane %v6500_v14, %v16632_v16  ;;  %v18544_v29 = vcombine.high %v23032_v11, %v23032_v11  ;;  %v3775_v41 = vcombine.low %v18528_v55, %v18536_v7 }
 0x300   :  { %v5341_v8 = vrot.slane %v5333_v1, %v16632_v16  ;;  %v6502_v52 = vcombine.low %v14931_v49, %v18525_v13  ;;  %4142 = vrot.lane.b32.xlu1 %v3723_v34, %s15997_s1  ;;  %v22607_v63 = vunpack.i.h.s16 %v17871_v57  ;;  %v14873_v31 = vcombine.high %v23114_v9, %v23113_v45  ;;  %v23119_v34 = vld [vmem:[#allocation82_spill] sm:$0xff] }
 0x301   :  { %23112 = vst [vmem:[#allocation51_spill] sm:$0xff] %v18544_v29  ;;  %v6516_v61 = vrot.slane %v6501_v12, %v16632_v16  ;;  %v4637_v10 = vcombine.low %v23115_v40, %v18544_v29  ;;  %v7096_v21 = vcombine.low %v23114_v9, %v23113_v45  ;;  %v18560_v60 = vrot.slane %v3775_v41, %v16632_v16 }
 0x302   :  { %v5349_v37 = vcombine.low %v5341_v8, %v5348_v50  ;;  %v6523_v15 = vrot.slane %v6502_v52, %v16632_v16  ;;  %v18565_v26 = vpack.i.b16 %v22607_v63, %v23042_v53  ;;  %v18568_v59 = vrot.slane %v14873_v31, %v16632_v16  ;;  %v23120_v50 = vld [vmem:[#allocation59_spill] sm:$0xff] }
 0x303   :  { %v18572_v54 = vcombine.high %v23117_v3, %v23117_v3  ;;  %v6524_v6 = vcombine.low %v6509_v42, %v6516_v61  ;;  %v18575_v51 = vrot.slane %v4637_v10, %v16632_v16  ;;  %v7104_v35 = vrot.slane %v7096_v21, %v16632_v16  ;;  %v23121_v61 = vld [vmem:[#allocation61_spill] sm:$0xff]  ;;  %v23122_v10 = vld [vmem:[#allocation87_spill] sm:$0xff] }
 0x304   :  { %5768 = vrot.lane.b32.xlu0 %v5349_v37, %s15994_s0  ;;  %23116 = vst [vmem:[#allocation109_spill] sm:$0xff] %v18565_v26  ;;  %v18580_v1 = vcombine.high %v23118_v43, %v23118_v43  ;;  %v6525_v23 = vcombine.low %v6523_v15, %v18560_v60  ;;  %v7097_v30 = vcombine.low %v23039_v25, %v18565_v26  ;;  %v22608_v38 = vunpack.i.h.s16 %v23118_v43 }
 0x305   :  { %v4539_v22 = vcombine.low %v23083_v2, %v23096_v4  ;;  %v6532_v49 = vrot.slane %v6524_v6, %v16632_v16  ;;  %v7112_v14 = vcombine.low %v18575_v51, %v7104_v35  ;;  %v18594_v12 = vcombine.high %v23120_v50, %v23120_v50 }
 0x306   :  { %v4541_v8 = vcombine.low %v18580_v1, %v23119_v34  ;;  %v6539_v52 = vrot.slane %v6525_v23, %v16632_v16  ;;  %v7111_v42 = vrot.slane %v7097_v30, %v16632_v16  ;;  %v14861_v37 = vpack.i.b16 %v22608_v38, %v23105_v28  ;;  %v23124_v30 = vld [vmem:[#allocation124_spill] sm:$0xff]  ;;  %v23127_v38 = vld [vmem:[#allocation123_spill] sm:$0xff] }
 0x307   :  { %v4555_v2 = vrot.slane %v4539_v22, %v16632_v16  ;;  %v7120_v41 = vrot.slane %v7112_v14, %v16632_v16  ;;  %v18606_v15 = vcombine.high %v23121_v61, %v23121_v61  ;;  %v18609_v21 = vunpack.i.h.s16 %v23122_v10 }
 0x308   :  { %v4569_v31 = vrot.slane %v4541_v8, %v16632_v16  ;;  %v6540_v6 = vcombine.low %v6532_v49, %v6539_v52  ;;  %v7113_v35 = vcombine.low %v18568_v59, %v7111_v42  ;;  %v4540_v23 = vcombine.low %v14861_v37, %v18572_v54  ;;  %v23125_v42 = vld [vmem:[#allocation84_spill] sm:$0xff] }
 0x309   :  { %23123 = vst [vmem:[#allocation110_spill] sm:$0xff] %v18609_v21  ;;  %v4570_v28 = vcombine.low %v18288_v47, %v4555_v2  ;;  %v4636_v22 = vcombine.low %v23124_v30, %v23032_v11  ;;  %v14944_v14 = vpack.i.b16 %v18609_v21, %v18606_v15  ;;  %v7055_v8 = vcombine.low %v23103_v33, %v23120_v50 }
 0x30a   :  { %v7056_v63 = vcombine.low %v23121_v61, %v18594_v12  ;;  %6784 = vrot.lane.b32.xlu1 %v6540_v6, %s15997_s1  ;;  %v7127_v49 = vrot.slane %v7113_v35, %v16632_v16  ;;  %v4562_v52 = vrot.slane %v4540_v23, %v16632_v16  ;;  %v18628_v37 = vcombine.high %v23125_v42, %v23125_v42  ;;  %v15804_v6 = vpop.permute.xlu1 %15803 }
 0x30b   :  { %v4578_v47 = vrot.slane %v4570_v28, %v16632_v16  ;;  %v18631_v2 = vrot.slane %v4636_v22, %v16632_v16  ;;  %v7057_v26 = vcombine.low %v14944_v14, %v23127_v38  ;;  %v7064_v19 = vrot.slane %v7055_v8, %v16632_v16 }
 0x30c   :  { %23126 = vst [vmem:[#allocation111_spill] sm:$0xff] %v18628_v37  ;;  %v7071_v24 = vrot.slane %v7056_v63, %v16632_v16  ;;  %v7128_v44 = vcombine.low %v7120_v41, %v7127_v49  ;;  %v4571_v35 = vcombine.low %v4562_v52, %v4569_v31  ;;  %v22615_v23 = vunpack.i.h.s16 %v18628_v37  ;;  %v23130_v49 = vld [vmem:[#allocation20_spill] sm:$0xff] }
 0x30d   :  { %v23128_v28 = vunpack.i.h.s16 %v23095_v18  ;;  %v7078_v36 = vrot.slane %v7057_v26, %v16632_v16  ;;  %v5353_v22 = vcombine.low %v18525_v13, %v18528_v55  ;;  %v5382_v14 = vcombine.low %v18366_v17, %v18374_v56  ;;  %v23129_v56 = vld [vmem:[#allocation19_spill] sm:$0xff] }
 0x30e   :  { %v7079_v3 = vcombine.low %v7064_v19, %v7071_v24  ;;  %7365 = vrot.lane.b32.xlu0 %v7128_v44, %s15995_s2  ;;  %v4585_v63 = vrot.slane %v4571_v35, %v16632_v16  ;;  %v18650_v41 = vpack.i.b16 %v23108_v48, %v22615_v23  ;;  %v15806_v18 = vunpack.i.h.bf16 %v15804_v6  ;;  %v15809_v46 = vpop.permute.xlu1 %15808 }
 0x30f   :  { %v14892_v4 = vpack.i.b16 %v18628_v37, %v23128_v28  ;;  %v15805_v31 = vunpack.i.l.bf16 %v15804_v6  ;;  %v7080_v26 = vcombine.low %v7078_v36, %v18631_v2  ;;  %v5381_v24 = vrot.slane %v5353_v22, %v16632_v16 }
 0x310   :  { %v7087_v19 = vrot.slane %v7079_v3, %v16632_v16  ;;  %v5390_v55 = vrot.slane %v5382_v14, %v16632_v16  ;;  %v4586_v17 = vcombine.low %v4578_v47, %v4585_v63  ;;  %v961_v8 = vmax.f32 %v23129_v56, %v15806_v18  ;;  %v23132_v18 = vld [vmem:[#allocation86_spill] sm:$0xff] }
 0x311   :  { %v5352_v44 = vcombine.low %v14892_v4, %v18650_v41  ;;  %v960_v52 = vmax.f32 %v23130_v49, %v15805_v31  ;;  %v7094_v35 = vrot.slane %v7080_v26, %v16632_v16  ;;  %v18662_v6 = vcombine.high %v23115_v40, %v23115_v40  ;;  %v23133_v26 = vld [vmem:[#allocation127_spill] sm:$0xff] }
 0x312   :  { %v2255_v36 = vunpack.i.h.s16 %v23115_v40  ;;  %4958 = vrot.lane.b32.xlu1 %v4586_v17, %s15995_s2  ;;  %v14710_v28 = vpack.c.bf16 %v961_v8, %v961_v8  ;;  %v22616_v22 = vunpack.i.h.s16 %v23114_v9  ;;  %v2263_v63 = vunpack.i.h.s16 %v23113_v45 }
 0x313   :  { %23131 = vst [vmem:[#allocation107_spill] sm:$0xff] %v18662_v6  ;;  %v5374_v47 = vrot.slane %v5352_v44, %v16632_v16  ;;  %v984_v4 = vpack.c.bf16 %v961_v8, %v960_v52  ;;  %v7095_v14 = vcombine.low %v7087_v19, %v7094_v35  ;;  %v2265_v31 = vunpack.i.h.s16 %v23132_v18 }
 0x314   :  { %v2267_v56 = vunpack.i.h.s16 %v23133_v26  ;;  %v1954_v23 = vrot.slane %v14710_v28, %v16632_v16  ;;  %v2269_v17 = vunpack.i.h.s16 %v23039_v25  ;;  %v18678_v8 = vpack.i.b16 %v18544_v29, %v2255_v36 }
 0x315   :  { %v5383_v49 = vcombine.low %v5374_v47, %v5381_v24  ;;  %v1947_v3 = vrot.slane %v984_v4, %v16632_v16  ;;  %7363 = vrot.lane.b32.xlu0 %v7095_v14, %s15995_s2  ;;  %v23134_v19 = vunpack.i.h.s16 %v18544_v29  ;;  %v18688_v24 = vpack.i.b16 %v23113_v45, %v22616_v22 }
 0x316   :  { %v1956_v47 = vcombine.high %v1954_v23, %v1954_v23  ;;  %v18692_v28 = vrot.slane %v1954_v23, %v16632_v16  ;;  %v18698_v14 = vpack.i.b16 %v23132_v18, %v2263_v63  ;;  %v18704_v44 = vpack.i.b16 %v23039_v25, %v2267_v56 }
 0x317   :  { %v18683_v52 = vpack.i.b16 %v18662_v6, %v23134_v19  ;;  %23135 = vst [vmem:[#allocation46_spill] sm:$0xff] %v18688_v24  ;;  %v5397_v35 = vrot.slane %v5383_v49, %v16632_v16  ;;  %v1955_v4 = vcombine.high %v1947_v3, %v1947_v3  ;;  %v18695_v36 = vrot.slane %v1947_v3, %v16632_v16 }
 0x318   :  { %23136 = vst [vmem:[#allocation81_spill] sm:$0xff] %v18692_v28  ;;  %v18701_v19 = vpack.i.b16 %v23133_v26, %v2265_v31  ;;  %v18707_v49 = vrot.slane %v1956_v47, %v16632_v16  ;;  %v18713_v37 = vpack.i.b16 %v23042_v53, %v2269_v17  ;;  %v23140_v3 = vunpack.i.h.s16 %v23042_v53 }
 0x319   :  { %23137 = vst [vmem:[#allocation89_spill] sm:$0xff] %v18695_v36  ;;  %v5398_v22 = vcombine.low %v5390_v55, %v5397_v35  ;;  %v18710_v23 = vrot.slane %v1955_v4, %v16632_v16  ;;  %v5448_v18 = vcombine.low %v18688_v24, %v18698_v14  ;;  %v7634_v31 = vcombine.low %v18678_v8, %v18683_v52  ;;  %v15814_v4 = vpop.permute.xlu0 %15813 }
 0x31a   :  { %23138 = vst [vmem:[#allocation59_spill] sm:$0xff] %v18707_v49  ;;  %v18718_v63 = vpack.i.b16 %v17883_v0, %v23140_v3  ;;  %v5449_v55 = vcombine.low %v18701_v19, %v18704_v44  ;;  %v2225_v26 = vunpack.i.h.s16 %v18572_v54  ;;  %v2227_v56 = vunpack.i.h.s16 %v18580_v1 }
 0x31b   :  { %23139 = vst [vmem:[#allocation61_spill] sm:$0xff] %v18710_v23  ;;  %5770 = vrot.lane.b32.xlu1 %v5398_v22, %s15994_s0  ;;  %v14795_v17 = vpack.i.b16 %v23118_v43, %v18306_v58  ;;  %v23142_v35 = vunpack.i.h.s16 %v23118_v43  ;;  %v18735_v3 = vrot.slane %v5448_v18, %v16632_v16  ;;  %v7642_v5 = vrot.slane %v7634_v31, %v16632_v16 }
 0x31c   :  { %23141 = vst [vmem:[#allocation124_spill] sm:$0xff] %v18718_v63  ;;  %v18738_v20 = vrot.slane %v5449_v55, %v16632_v16  ;;  %v7635_v22 = vcombine.low %v18713_v37, %v18718_v63  ;;  %v14797_v49 = vpack.i.b16 %v18580_v1, %v2225_v26  ;;  %v14798_v58 = vpack.i.b16 %v23119_v34, %v2227_v56  ;;  %v23143_v56 = vld [vmem:[#allocation28_spill] sm:$0xff] }
 0x31d   :  { %v14796_v47 = vpack.i.b16 %v18572_v54, %v23142_v35  ;;  %v3756_v54 = vcombine.low %v18435_v62, %v18440_v32  ;;  %v7650_v35 = vcombine.low %v7642_v5, %v18735_v3  ;;  %v15816_v55 = vunpack.i.h.bf16 %v15814_v4 }
 0x31e   :  { %v7649_v18 = vrot.slane %v7635_v22, %v16632_v16  ;;  %v15815_v36 = vunpack.i.l.bf16 %v15814_v4  ;;  %v3727_v23 = vcombine.low %v14797_v49, %v14798_v58  ;;  %v15811_v28 = vunpack.i.h.bf16 %v15809_v46  ;;  %v23145_v22 = vld [vmem:[#allocation15_spill] sm:$0xff] }
 0x31f   :  { %v3726_v43 = vcombine.low %v14795_v17, %v14796_v47  ;;  %v3764_v31 = vrot.slane %v3756_v54, %v16632_v16  ;;  %v7658_v26 = vrot.slane %v7650_v35, %v16632_v16  ;;  %v963_v17 = vmax.f32 %v23143_v56, %v15816_v55  ;;  %v23144_v47 = vld [vmem:[#allocation29_spill] sm:$0xff]  ;;  %v23146_v35 = vld [vmem:[#allocation16_spill] sm:$0xff] }
 0x320   :  { %v7651_v1 = vcombine.low %v18738_v20, %v7649_v18  ;;  %v962_v62 = vmax.f32 %v23144_v47, %v15815_v36  ;;  %v3755_v32 = vrot.slane %v3727_v23, %v16632_v16  ;;  %v959_v5 = vmax.f32 %v23145_v22, %v15811_v28 }
 0x321   :  { %v3748_v63 = vrot.slane %v3726_v43, %v16632_v16  ;;  %v15810_v25 = vunpack.i.l.bf16 %v15809_v46  ;;  %v2211_v49 = vunpack.i.h.s16 %v23103_v33  ;;  %v14711_v4 = vpack.c.bf16 %v963_v17, %v963_v17 }
 0x322   :  { %v7665_v43 = vrot.slane %v7651_v1, %v16632_v16  ;;  %v985_v58 = vpack.c.bf16 %v963_v17, %v962_v62  ;;  %v2213_v54 = vunpack.i.h.s16 %v23120_v50  ;;  %v14709_v24 = vpack.c.bf16 %v959_v5, %v959_v5 }
 0x323   :  { %v3757_v18 = vcombine.low %v3748_v63, %v3755_v32  ;;  %v958_v53 = vmax.f32 %v23146_v35, %v15810_v25  ;;  %v2215_v55 = vunpack.i.h.s16 %v23121_v61  ;;  %v2003_v23 = vrot.slane %v14711_v4, %v16632_v16  ;;  %v23154_v35 = vld [vmem:[#allocation125_spill] sm:$0xff] }
 0x324   :  { %v7666_v36 = vcombine.low %v7658_v26, %v7665_v43  ;;  %v1996_v28 = vrot.slane %v985_v58, %v16632_v16  ;;  %v2217_v46 = vunpack.i.h.s16 %v18594_v12  ;;  %v1905_v1 = vrot.slane %v14709_v24, %v16632_v16 }
 0x325   :  { %v3771_v33 = vrot.slane %v3757_v18, %v16632_v16  ;;  %v983_v56 = vpack.c.bf16 %v959_v5, %v958_v53  ;;  %v2219_v17 = vunpack.i.h.s16 %v18606_v15  ;;  %v2005_v63 = vcombine.high %v2003_v23, %v2003_v23 }
 0x326   :  { %7879 = vrot.lane.b32.xlu0 %v7666_v36, %s15994_s0  ;;  %v18770_v25 = vrot.slane %v2003_v23, %v16632_v16  ;;  %v2004_v26 = vcombine.high %v1996_v28, %v1996_v28  ;;  %v18773_v47 = vrot.slane %v1996_v28, %v16632_v16  ;;  %v1907_v32 = vcombine.high %v1905_v1, %v1905_v1 }
 0x327   :  { %v3772_v62 = vcombine.low %v3764_v31, %v3771_v33  ;;  %v18776_v22 = vrot.slane %v1905_v1, %v16632_v16  ;;  %v1898_v24 = vrot.slane %v983_v56, %v16632_v16  ;;  %v18780_v53 = vrot.slane %v2005_v63, %v16632_v16 }
 0x328   :  { %23147 = vst [vmem:[#allocation123_spill] sm:$0xff] %v18770_v25  ;;  %23148 = vst [vmem:[#allocation19_spill] sm:$0xff] %v18773_v47  ;;  %v18783_v5 = vrot.slane %v2004_v26, %v16632_v16  ;;  %v2251_v43 = vunpack.i.h.s16 %v23124_v30  ;;  %v2253_v4 = vunpack.i.h.s16 %v23032_v11  ;;  %v18789_v31 = vrot.slane %v1907_v32, %v16632_v16 }
 0x329   :  { %23149 = vst [vmem:[#allocation20_spill] sm:$0xff] %v18776_v22  ;;  %23150 = vst [vmem:[#allocation86_spill] sm:$0xff] %v18780_v53  ;;  %4144 = vrot.lane.b32.xlu1 %v3772_v62, %s15997_s1  ;;  %v1906_v58 = vcombine.high %v1898_v24, %v1898_v24  ;;  %v18792_v18 = vrot.slane %v1898_v24, %v16632_v16  ;;  %v18796_v36 = vpack.i.b16 %v23124_v30, %v23154_v35 }
 0x32a   :  { %23151 = vst [vmem:[#allocation127_spill] sm:$0xff] %v18783_v5  ;;  %23152 = vst [vmem:[#allocation28_spill] sm:$0xff] %v18789_v31  ;;  %v14808_v23 = vpack.i.b16 %v23032_v11, %v2251_v43  ;;  %v14809_v28 = vpack.i.b16 %v23115_v40, %v2253_v4  ;;  %v14952_v33 = vpack.i.b16 %v23120_v50, %v2211_v49  ;;  %v2229_v40 = vunpack.i.h.s16 %v23119_v34 }
 0x32b   :  { %23153 = vst [vmem:[#allocation29_spill] sm:$0xff] %v18792_v18  ;;  %v14953_v1 = vpack.i.b16 %v23121_v61, %v2213_v54  ;;  %v18803_v56 = vrot.slane %v1906_v58, %v16632_v16  ;;  %v14954_v63 = vpack.i.b16 %v18594_v12, %v2215_v55  ;;  %v14955_v26 = vpack.i.b16 %v18606_v15, %v2217_v46  ;;  %v23156_v55 = vld [vmem:[#allocation85_spill] sm:$0xff] }
 0x32c   :  { %v14956_v62 = vpack.i.b16 %v23127_v38, %v2219_v17  ;;  %v5401_v32 = vcombine.low %v14808_v23, %v14809_v28  ;;  %v18810_v11 = vcombine.high %v23119_v34, %v23119_v34  ;;  %v2231_v49 = vunpack.i.h.s16 %v23125_v42 }
 0x32d   :  { %23155 = vst [vmem:[#allocation15_spill] sm:$0xff] %v18803_v56  ;;  %v7593_v30 = vcombine.low %v14952_v33, %v14953_v1  ;;  %v7594_v50 = vcombine.low %v14954_v63, %v14955_v26  ;;  %v2243_v54 = vunpack.i.h.s16 %v18504_v39  ;;  %v2245_v46 = vunpack.i.h.s16 %v23156_v55  ;;  %v23167_v39 = vld [vmem:[#allocation22_spill] sm:$0xff] }
 0x32e   :  { %v7595_v61 = vcombine.low %v14956_v62, %v18796_v36  ;;  %v18817_v12 = vrot.slane %v5401_v32, %v16632_v16  ;;  %v14799_v17 = vpack.i.b16 %v23125_v42, %v2229_v40  ;;  %v14800_v4 = vpack.i.b16 %v18810_v11, %v2231_v49 }
 0x32f   :  { %v7602_v15 = vrot.slane %v7593_v30, %v16632_v16  ;;  %v7609_v24 = vrot.slane %v7594_v50, %v16632_v16  ;;  %v18826_v58 = vpack.i.b16 %v23156_v55, %v2243_v54  ;;  %v14806_v33 = vpack.i.b16 %v23127_v38, %v2245_v46 }
 0x330   :  { %v7616_v43 = vrot.slane %v7595_v61, %v16632_v16  ;;  %v3774_v1 = vcombine.low %v18650_v41, %v18525_v13  ;;  %v2259_v63 = vunpack.i.h.s16 %v18662_v6  ;;  %v3822_v26 = vcombine.low %v18796_v36, %v14808_v23 }
 0x331   :  { %v7617_v62 = vcombine.low %v7602_v15, %v7609_v24  ;;  %v3773_v30 = vcombine.low %v14799_v17, %v14800_v4  ;;  %v3823_v40 = vcombine.low %v14809_v28, %v18678_v8  ;;  %v3776_v50 = vcombine.low %v18826_v58, %v14806_v33 }
 0x332   :  { %v7618_v32 = vcombine.low %v7616_v43, %v18817_v12  ;;  %v3790_v61 = vrot.slane %v3774_v1, %v16632_v16  ;;  %v18838_v49 = vrot.slane %v3822_v26, %v16632_v16  ;;  %v14932_v54 = vpack.i.b16 %v23122_v10, %v2245_v46  ;;  %v23157_v1 = vld [vmem:[#allocation7_spill] sm:$0xff] }
 0x333   :  { %v7625_v13 = vrot.slane %v7617_v62, %v16632_v16  ;;  %v3783_v23 = vrot.slane %v3773_v30, %v16632_v16  ;;  %v18845_v15 = vrot.slane %v3823_v40, %v16632_v16  ;;  %v3804_v28 = vrot.slane %v3776_v50, %v16632_v16  ;;  %v23158_v50 = vld [vmem:[#allocation8_spill] sm:$0xff] }
 0x334   :  { %v7632_v41 = vrot.slane %v7618_v32, %v16632_v16  ;;  %v14933_v17 = vpack.i.b16 %v23113_v45, %v2259_v63  ;;  %v6541_v24 = vcombine.low %v18826_v58, %v14932_v54  ;;  %v4638_v43 = vcombine.low %v18662_v6, %v23113_v45 }
 0x335   :  { %v3805_v46 = vcombine.low %v3783_v23, %v3790_v61  ;;  %v4668_v33 = vcombine.low %v18631_v2, %v18575_v51  ;;  %v18856_v26 = vcombine.high %v23157_v1, %v23157_v1  ;;  %v3806_v62 = vcombine.low %v18560_v60, %v3804_v28  ;;  %v23159_v23 = vld [vmem:[#allocation33_spill] sm:$0xff]  ;;  %v23160_v28 = vld [vmem:[#allocation31_spill] sm:$0xff] }
 0x336   :  { %v7633_v4 = vcombine.low %v7625_v13, %v7632_v41  ;;  %v6542_v32 = vcombine.low %v18683_v52, %v14933_v17  ;;  %v6549_v63 = vrot.slane %v6541_v24, %v16632_v16  ;;  %v4660_v30 = vrot.slane %v4638_v43, %v16632_v16 }
 0x337   :  { %v3813_v45 = vrot.slane %v3805_v46, %v16632_v16  ;;  %v4676_v40 = vrot.slane %v4668_v33, %v16632_v16  ;;  %v18867_v51 = vcombine.high %v23158_v50, %v23158_v50  ;;  %v4687_v2 = vcombine.low %v23158_v50, %v18856_v26 }
 0x338   :  { %7877 = vrot.lane.b32.xlu0 %v7633_v4, %s15994_s0  ;;  %v3820_v60 = vrot.slane %v3806_v62, %v16632_v16  ;;  %v6556_v61 = vrot.slane %v6542_v32, %v16632_v16  ;;  %v6557_v54 = vcombine.low %v6549_v63, %v18838_v49  ;;  %v4669_v13 = vcombine.low %v4660_v30, %v18568_v59 }
 0x339   :  { %v18876_v41 = vrot.slane %v4687_v2, %v16632_v16  ;;  %v14874_v17 = vcombine.high %v23160_v28, %v23159_v23  ;;  %v7129_v24 = vcombine.low %v17883_v0, %v23157_v1  ;;  %v7130_v43 = vcombine.low %v18867_v51, %v23159_v23 }
 0x33a   :  { %v3821_v4 = vcombine.low %v3813_v45, %v3820_v60  ;;  %v6558_v46 = vcombine.low %v18845_v15, %v6556_v61  ;;  %v6565_v33 = vrot.slane %v6557_v54, %v16632_v16  ;;  %v4683_v62 = vrot.slane %v4669_v13, %v16632_v16 }
 0x33b   :  { %v18888_v59 = vrot.slane %v14874_v17, %v16632_v16  ;;  %v7137_v32 = vrot.slane %v7129_v24, %v16632_v16  ;;  %v7144_v63 = vrot.slane %v7130_v43, %v16632_v16  ;;  %v14862_v30 = vpack.i.b16 %v23154_v35, %v23122_v10  ;;  %v18905_v24 = vpop.permute.xlu0 %4130 }
 0x33c   :  { %4146 = vrot.lane.b32.xlu1 %v3821_v4, %s15997_s1  ;;  %v6572_v45 = vrot.slane %v6558_v46, %v16632_v16  ;;  %v4684_v2 = vcombine.low %v4676_v40, %v4683_v62  ;;  %v4587_v60 = vcombine.low %v23125_v42, %v18810_v11  ;;  %v4588_v61 = vcombine.low %v23108_v48, %v23110_v27 }
 0x33d   :  { %v7145_v54 = vcombine.low %v7137_v32, %v18876_v41  ;;  %v7146_v13 = vcombine.low %v7144_v63, %v18888_v59  ;;  %v14872_v17 = vcombine.high %v23108_v48, %v23110_v27  ;;  %v4590_v35 = vcombine.low %v23156_v55, %v14862_v30  ;;  %v23205_v55 = vld [vmem:[#allocation61_spill] sm:$0xff]  ;;  %v23207_v27 = vld [vmem:[#allocation59_spill] sm:$0xff] }
 0x33e   :  { %v6573_v43 = vcombine.low %v6565_v33, %v6572_v45  ;;  %v4597_v40 = vrot.slane %v4587_v60, %v16632_v16  ;;  %v4604_v4 = vrot.slane %v4588_v61, %v16632_v16  ;;  %v2277_v11 = vunpack.i.h.s16 %v23157_v1 }
 0x33f   :  { %v7153_v46 = vrot.slane %v7145_v54, %v16632_v16  ;;  %v7160_v62 = vrot.slane %v7146_v13, %v16632_v16  ;;  %v4611_v32 = vrot.slane %v14872_v17, %v16632_v16  ;;  %v4618_v63 = vrot.slane %v4590_v35, %v16632_v16 }
 0x340   :  { %6786 = vrot.lane.b32.xlu0 %v6573_v43, %s15997_s1  ;;  %4962 = vrot.lane.b32.xlu1 %v4684_v2, %s15995_s2  ;;  %v4619_v30 = vcombine.low %v4597_v40, %v4604_v4  ;;  %v23161_v33 = vunpack.i.h.s16 %v17883_v0  ;;  %v14819_v60 = vpack.i.b16 %v23158_v50, %v2277_v11  ;;  %v2279_v61 = vunpack.i.h.s16 %v23158_v50  ;;  %v23163_v4 = vld [vmem:[#allocation18_spill] sm:$0xff]  ;;  %v23166_v11 = vld [vmem:[#allocation25_spill] sm:$0xff] }
 0x341   :  { %v7161_v54 = vcombine.low %v7153_v46, %v7160_v62  ;;  %v4620_v13 = vcombine.low %v4611_v32, %v4618_v63  ;;  %v23162_v17 = vunpack.i.h.s16 %v17871_v57  ;;  %v5480_v43 = vcombine.low %v18735_v3, %v18738_v20  ;;  %v4945_v3 = vpop.permute.xlu0 %4944 }
 0x342   :  { %v18919_v45 = vpack.i.b16 %v23157_v1, %v23161_v33  ;;  %v4627_v2 = vrot.slane %v4619_v30, %v16632_v16  ;;  %v23164_v33 = vld [vmem:[#allocation21_spill] sm:$0xff]  ;;  %v2511_v50 = vcombine.low %v23167_v39, %v23166_v11  ;;  %v14723_v20 = vcombine.high %v23167_v39, %v23166_v11 }
 0x343   :  { %v14895_v35 = vpack.i.b16 %v17883_v0, %v23162_v17  ;;  %v23165_v6 = vunpack.i.h.s16 %v23164_v33  ;;  %v4634_v46 = vrot.slane %v4620_v13, %v16632_v16  ;;  %v5488_v32 = vrot.slane %v5480_v43, %v16632_v16  ;;  %v23168_v30 = vld [vmem:[#allocation17_spill] sm:$0xff]  ;;  %v23169_v17 = vld [vmem:[#allocation23_spill] sm:$0xff]  ;;  %v18948_v0 = vpop.permute.xlu1 %6770 }
 0x344   :  { %v5451_v40 = vcombine.low %v18919_v45, %v14819_v60  ;;  %7367 = vrot.lane.b32.xlu0 %v7161_v54, %s15995_s2  ;;  %v2521_v13 = vrot.slane %v2511_v50, %v16632_v16  ;;  %v2528_v39 = vrot.slane %v14723_v20, %v16632_v16  ;;  %v14893_v54 = vpack.i.b16 %v23127_v38, %v18609_v21 }
 0x345   :  { %v14712_v10 = vpack.i.b16 %v23165_v6, %v23163_v4  ;;  %v5450_v62 = vcombine.low %v18713_v37, %v14895_v35  ;;  %v23170_v4 = vld [vmem:[#allocation30_spill] sm:$0xff]  ;;  %v4635_v35 = vcombine.low %v4627_v2, %v4634_v46  ;;  %v5399_v50 = vcombine.low %v18536_v7, %v18826_v58 }
 0x346   :  { %v18942_v63 = vrot.slane %v5451_v40, %v16632_v16  ;;  %v2514_v33 = vcombine.low %v23170_v4, %v23169_v17  ;;  %v2543_v46 = vcombine.low %v2521_v13, %v2528_v39  ;;  %v18965_v38 = vpack.i.b16 %v18856_v26, %v2279_v61  ;;  %v18976_v13 = vpop.permute.xlu0 %5756 }
 0x347   :  { %v2513_v6 = vcombine.low %v23168_v30, %v14712_v10  ;;  %v5472_v43 = vrot.slane %v5450_v62, %v16632_v16  ;;  %v23171_v10 = vunpack.i.h.s16 %v18544_v29  ;;  %4960 = vrot.lane.b32.xlu1 %v4635_v35, %s15995_s2  ;;  %v5400_v62 = vcombine.low %v14893_v54, %v18796_v36 }
 0x348   :  { %v2542_v11 = vrot.slane %v2514_v33, %v16632_v16  ;;  %v5409_v17 = vrot.slane %v5399_v50, %v16632_v16  ;;  %v3825_v4 = vcombine.low %v18698_v14, %v18701_v19  ;;  %v2551_v58 = vrot.slane %v2543_v46, %v16632_v16  ;;  %v18984_v19 = vpop.permute.xlu1 %7351  ;;  %v23174_v46 = vld [vmem:[#allocation52_spill] sm:$0xff] }
 0x349   :  { %v2535_v40 = vrot.slane %v2513_v6, %v16632_v16  ;;  %v14894_v30 = vpack.i.b16 %v23114_v9, %v23171_v10  ;;  %v5481_v2 = vcombine.low %v5472_v43, %v18942_v63  ;;  %v5416_v33 = vrot.slane %v5400_v62, %v16632_v16  ;;  %v23175_v62 = vld [vmem:[#allocation26_spill] sm:$0xff] }
 0x34a   :  { %v3871_v36 = vcombine.low %v18704_v44, %v18713_v37  ;;  %v18981_v35 = vrot.slane %v3825_v4, %v16632_v16  ;;  %v3873_v14 = vcombine.low %v14819_v60, %v18965_v38  ;;  %v2285_v42 = vunpack.i.h.s16 %v23160_v28 }
 0x34b   :  { %v2544_v20 = vcombine.low %v2535_v40, %v2542_v11  ;;  %v5402_v6 = vcombine.low %v18678_v8, %v14894_v30  ;;  %v5495_v7 = vrot.slane %v5481_v2, %v16632_v16  ;;  %v5431_v39 = vcombine.low %v5409_v17, %v5416_v33  ;;  %v23172_v40 = vld [vmem:[#allocation79_spill] sm:$0xff] }
 0x34c   :  { %v18987_v54 = vrot.slane %v3871_v36, %v16632_v16  ;;  %v23173_v37 = vunpack.i.h.s16 %v23172_v40  ;;  %v18994_v50 = vrot.slane %v3873_v14, %v16632_v16  ;;  %v23177_v17 = vld [vmem:[#allocation27_spill] sm:$0xff]  ;;  %v19018_v14 = vpop.permute.xlu0 %4946 }
 0x34d   :  { %v2558_v61 = vrot.slane %v2544_v20, %v16632_v16  ;;  %v5430_v8 = vrot.slane %v5402_v6, %v16632_v16  ;;  %v5496_v43 = vcombine.low %v5488_v32, %v5495_v7  ;;  %v5439_v60 = vrot.slane %v5431_v39, %v16632_v16  ;;  %v23176_v6 = vld [vmem:[#allocation24_spill] sm:$0xff] }
 0x34e   :  { %v14934_v44 = vpack.i.b16 %v17871_v57, %v23173_v37  ;;  %v6582_v2 = vcombine.low %v18981_v35, %v18987_v54  ;;  %v2560_v20 = vcombine.low %v23175_v62, %v23174_v46  ;;  %v23178_v4 = vunpack.i.h.s16 %v23177_v17 }
 0x34f   :  { %v2559_v10 = vcombine.low %v2551_v58, %v2558_v61  ;;  %v5432_v30 = vcombine.low %v18817_v12, %v5430_v8  ;;  %5774 = vrot.lane.b32.xlu0 %v5496_v43, %s15994_s0  ;;  %v2281_v58 = vunpack.i.h.s16 %v18856_v26  ;;  %v23179_v43 = vld [vmem:[#allocation54_spill] sm:$0xff]  ;;  %v22638_v37 = vunpack.i.h.s16 %v18867_v51  ;;  %v19023_v26 = vpop.permute.xlu1 %7863 }
 0x350   :  { %v6574_v32 = vcombine.low %v14934_v44, %v18919_v45  ;;  %v14908_v7 = vpack.i.b16 %v23178_v4, %v23176_v6  ;;  %v6590_v36 = vrot.slane %v6582_v2, %v16632_v16  ;;  %v19016_v8 = vrot.slane %v2560_v20, %v16632_v16  ;;  %v23181_v2 = vld [vmem:[#allocation133_spill] sm:$0xff]  ;;  %v23182_v4 = vld [vmem:[#allocation95_spill] sm:$0xff] }
 0x351   :  { %v8333_v57 = vsel %vm8330_vm2, %v2559_v10, %v18905_v24  ;;  %v5446_v12 = vrot.slane %v5432_v30, %v16632_v16  ;;  %v22637_v44 = vunpack.i.h.s16 %v23159_v23  ;;  %v2291_v46 = vunpack.i.h.s16 %v23181_v2 }
 0x352   :  { %v6581_v33 = vrot.slane %v6574_v32, %v16632_v16  ;;  %v19013_v61 = vsel %vm8379_vm3, %v8333_v57, %v4945_v3  ;;  %v5809_v39 = vcombine.low %v23179_v43, %v14908_v7  ;;  %v5817_v30 = vcombine.low %v2542_v11, %v19016_v8  ;;  %v23180_v3 = vld [vmem:[#allocation132_spill] sm:$0xff] }
 0x353   :  { %v5447_v24 = vcombine.low %v5439_v60, %v5446_v12  ;;  %v2289_v32 = vunpack.i.h.s16 %v23180_v3  ;;  %v19032_v62 = vpack.i.b16 %v18867_v51, %v2281_v58  ;;  %v19037_v20 = vpack.i.b16 %v23160_v28, %v22638_v37  ;;  %v23183_v58 = vld [vmem:[#allocation63_spill] sm:$0xff] }
 0x354   :  { %v6583_v10 = vcombine.low %v6581_v33, %v18994_v50  ;;  %v5816_v60 = vrot.slane %v5809_v39, %v16632_v16  ;;  %v19042_v11 = vpack.i.b16 %v23180_v3, %v22637_v44  ;;  %v5825_v12 = vrot.slane %v5817_v30, %v16632_v16  ;;  %v23184_v44 = vld [vmem:[#allocation46_spill] sm:$0xff] }
 0x355   :  { %5772 = vrot.lane.b32.xlu1 %v5447_v24, %s15994_s0  ;;  %v19047_v6 = vpack.i.b16 %v23181_v2, %v2289_v32  ;;  %v19050_v7 = vpack.i.b16 %v23182_v4, %v2291_v46  ;;  %v5497_v24 = vcombine.low %v18965_v38, %v19032_v62  ;;  %v3824_v37 = vcombine.low %v18683_v52, %v23184_v44  ;;  %v23185_v2 = vld [vmem:[#allocation77_spill] sm:$0xff]  ;;  %v23186_v38 = vld [vmem:[#allocation14_spill] sm:$0xff] }
 0x356   :  { %v6597_v57 = vrot.slane %v6583_v10, %v16632_v16  ;;  %v5818_v33 = vcombine.low %v5816_v60, %v23183_v58  ;;  %v7667_v39 = vcombine.low %v19037_v20, %v19042_v11  ;;  %v3854_v32 = vcombine.low %v18838_v49, %v18845_v15  ;;  %v19065_v60 = vpop.permute.xlu0 %4132 }
 0x357   :  { %v5499_v30 = vcombine.low %v19047_v6, %v19050_v7  ;;  %v4685_v46 = vcombine.low %v23185_v2, %v23172_v40  ;;  %v23187_v58 = vmax.f32 %v23186_v38, 0.0  ;;  %v19072_v52 = vrot.slane %v5497_v24, %v16632_v16  ;;  %v23188_v2 = vld [vmem:[#allocation131_spill] sm:$0xff] }
 0x358   :  { %v6598_v10 = vcombine.low %v6590_v36, %v6597_v57  ;;  %v5832_v29 = vrot.slane %v5818_v33, %v16632_v16  ;;  %v7674_v36 = vrot.slane %v7667_v39, %v16632_v16  ;;  %v3846_v44 = vrot.slane %v3824_v37, %v16632_v16  ;;  %v19076_v57 = vpop.permute.xlu1 %7349 }
 0x359   :  { %662 = vrot.lane.b32.xlu1 %v23187_v58, %s15994_s0  ;;  %v19080_v49 = vrot.slane %v5499_v30, %v16632_v16  ;;  %v3862_v15 = vrot.slane %v3854_v32, %v16632_v16  ;;  %v4686_v58 = vcombine.low %v23188_v2, %v23157_v1  ;;  %v4688_v33 = vcombine.low %v18867_v51, %v23160_v28  ;;  %v23191_v2 = vld [vmem:[#allocation11_spill] sm:$0xff] }
 0x35a   :  { %6788 = vrot.lane.b32.xlu0 %v6598_v10, %s15997_s1  ;;  %v5833_v24 = vcombine.low %v5825_v12, %v5832_v29  ;;  %v7675_v39 = vcombine.low %v18942_v63, %v19072_v52  ;;  %v3855_v37 = vcombine.low %v3846_v44, %v18981_v35  ;;  %v4695_v38 = vrot.slane %v4685_v46, %v16632_v16  ;;  %v19112_v40 = vpop.permute.xlu0 %4948 }
 0x35b   :  { %v7676_v10 = vcombine.low %v7674_v36, %v19080_v49  ;;  %v4702_v30 = vrot.slane %v4686_v58, %v16632_v16  ;;  %v4716_v32 = vrot.slane %v4688_v33, %v16632_v16  ;;  %v19096_v1 = vcombine.high %v18792_v18, %v18792_v18  ;;  %v23192_v58 = vld [vmem:[#allocation9_spill] sm:$0xff]  ;;  %23193 = vst [vmem:[#allocation7_spill] sm:$0xff] %v19112_v40 }
 0x35c   :  { %v19100_v29 = vsel %vm8330_vm2, %v5833_v24, %v18948_v0  ;;  %v7683_v63 = vrot.slane %v7675_v39, %v16632_v16  ;;  %v3869_v35 = vrot.slane %v3855_v37, %v16632_v16  ;;  %v19106_v12 = vcombine.high %v18803_v56, %v18803_v56  ;;  %v23194_v37 = vld [vmem:[#allocation114_spill] sm:$0xff]  ;;  %v19120_v34 = vpop.permute.xlu1 %6772 }
 0x35d   :  { %23189 = vst [vmem:[#allocation16_spill] sm:$0xff] %v19096_v1  ;;  %v7690_v46 = vrot.slane %v7676_v10, %v16632_v16  ;;  %v4717_v36 = vcombine.low %v4695_v38, %v4702_v30  ;;  %v4718_v44 = vcombine.low %v18876_v41, %v4716_v32  ;;  %v3150_v33 = vcombine.low %v23192_v58, %v23191_v2 }
 0x35e   :  { %23190 = vst [vmem:[#allocation125_spill] sm:$0xff] %v19106_v12  ;;  %v3870_v0 = vcombine.low %v3862_v15, %v3869_v35  ;;  %v3197_v24 = vcombine.low %v18803_v56, %v19096_v1  ;;  %v6191_v39 = vcombine.low %v19106_v12, %v18776_v22  ;;  %v8217_v9 = vcombine.low %v23194_v37, %v18792_v18 }
 0x35f   :  { %v7691_v38 = vcombine.low %v7683_v63, %v7690_v46  ;;  %v4725_v41 = vrot.slane %v4717_v36, %v16632_v16  ;;  %v4732_v10 = vrot.slane %v4718_v44, %v16632_v16  ;;  %v19125_v30 = vrot.slane %v3150_v33, %v16632_v16  ;;  %v23198_v36 = vld [vmem:[#allocation97_spill] sm:$0xff]  ;;  %v23199_v33 = vld [vmem:[#allocation98_spill] sm:$0xff] }
 0x360   :  { %4148 = vrot.lane.b32.xlu1 %v3870_v0, %s15997_s1  ;;  %v19129_v15 = vrot.slane %v3197_v24, %v16632_v16  ;;  %v19132_v32 = vrot.slane %v6191_v39, %v16632_v16  ;;  %v8224_v35 = vrot.slane %v8217_v9, %v16632_v16  ;;  %v2293_v46 = vunpack.i.h.s16 %v23182_v4 }
 0x361   :  { %23195 = vst [vmem:[#allocation8_spill] sm:$0xff] %v19125_v30  ;;  %7881 = vrot.lane.b32.xlu0 %v7691_v38, %s15994_s0  ;;  %v4733_v63 = vcombine.low %v4725_v41, %v4732_v10  ;;  %v2295_v44 = vunpack.i.h.s16 %v23198_v36  ;;  %v22649_v21 = vunpack.i.h.s16 %v23199_v33  ;;  %v3874_v39 = vcombine.low %v19032_v62, %v19037_v20  ;;  %v23200_v41 = vld [vmem:[#allocation137_spill] sm:$0xff] }
 0x362   :  { %23196 = vst [vmem:[#allocation18_spill] sm:$0xff] %v19129_v15  ;;  %23197 = vst [vmem:[#allocation21_spill] sm:$0xff] %v19132_v32  ;;  %v8225_v0 = vcombine.low %v19125_v30, %v8224_v35  ;;  %v8226_v24 = vcombine.low %v19129_v15, %v19132_v32  ;;  %v14935_v9 = vpack.i.b16 %v23180_v3, %v2285_v42  ;;  %v19159_v15 = vpop.permute.xlu0 %4134 }
 0x363   :  { %v19147_v28 = vpack.i.b16 %v23198_v36, %v2293_v46  ;;  %v19150_v38 = vpack.i.b16 %v23199_v33, %v2295_v44  ;;  %v14936_v10 = vpack.i.b16 %v23200_v41, %v22649_v21  ;;  %v19157_v35 = vcombine.high %v18776_v22, %v18776_v22  ;;  %v19167_v44 = vpop.permute.xlu1 %7865 }
 0x364   :  { %v8233_v62 = vrot.slane %v8225_v0, %v16632_v16  ;;  %v8240_v42 = vrot.slane %v8226_v24, %v16632_v16  ;;  %v19164_v20 = vrot.slane %v3874_v39, %v16632_v16  ;;  %v6599_v46 = vcombine.low %v14935_v9, %v19047_v6  ;;  %v23203_v0 = vld [vmem:[#allocation81_spill] sm:$0xff] }
 0x365   :  { %23201 = vst [vmem:[#allocation25_spill] sm:$0xff] %v19157_v35  ;;  %4964 = vrot.lane.b32.xlu0 %v4733_v63, %s15995_s2  ;;  %v3921_v21 = vcombine.low %v19050_v7, %v19147_v28  ;;  %v6600_v32 = vcombine.low %v19150_v38, %v14936_v10  ;;  %v19175_v30 = vcombine.high %v18789_v31, %v18789_v31  ;;  %v22662_v3 = vunpack.i.h.s16 %v19157_v35  ;;  %v23206_v63 = vld [vmem:[#allocation89_spill] sm:$0xff] }
 0x366   :  { %v19179_v24 = vcombine.high %v23203_v0, %v23203_v0  ;;  %v8241_v39 = vcombine.low %v8233_v62, %v8240_v42  ;;  %v6607_v9 = vrot.slane %v6599_v46, %v16632_v16  ;;  %v3200_v48 = vcombine.low %v23206_v63, %v23205_v55  ;;  %v23210_v46 = vld [vmem:[#allocation94_spill] sm:$0xff] }
 0x367   :  { %23202 = vst [vmem:[#allocation22_spill] sm:$0xff] %v19175_v30  ;;  %v19186_v7 = vrot.slane %v3921_v21, %v16632_v16  ;;  %v6614_v10 = vrot.slane %v6600_v32, %v16632_v16  ;;  %v14968_v0 = vcombine.high %v23206_v63, %v23205_v55  ;;  %v19201_v21 = vpack.i.b16 %v22662_v3, %v18789_v31  ;;  %v23212_v31 = vld [vmem:[#allocation138_spill] sm:$0xff] }
 0x368   :  { %23204 = vst [vmem:[#allocation17_spill] sm:$0xff] %v19179_v24  ;;  %v6224_v40 = vcombine.low %v23207_v27, %v19179_v24  ;;  %15559 = vmatprep.mubr.msk.bf16.mxu0 %vm8330_vm2, %v8241_v39  ;;  %v6615_v62 = vcombine.low %v19164_v20, %v6607_v9  ;;  %v19196_v42 = vrot.slane %v3200_v48, %v16632_v16  ;;  %v19214_v9 = vpop.permute.xlu0 %6774 }
 0x369   :  { %23209 = vst [vmem:[#allocation30_spill] sm:$0xff] %v19201_v21  ;;  %v19205_v32 = vcombine.high %v23210_v46, %v23210_v46  ;;  %v6616_v24 = vcombine.low %v19186_v7, %v6614_v10  ;;  %v8257_v39 = vrot.slane %v14968_v0, %v16632_v16  ;;  %v4735_v48 = vcombine.low %v23182_v4, %v23198_v36  ;;  %v23213_v10 = vld [vmem:[#allocation96_spill] sm:$0xff] }
 0x36a   :  { %23208 = vst [vmem:[#allocation23_spill] sm:$0xff] %v19196_v42  ;;  %v19209_v55 = vrot.slane %v6224_v40, %v16632_v16  ;;  %v6623_v35 = vrot.slane %v6615_v62, %v16632_v16  ;;  %v8242_v3 = vcombine.low %v19201_v21, %v19175_v30  ;;  %v4736_v63 = vcombine.low %v23199_v33, %v23212_v31  ;;  %v19223_v40 = vpop.permute.xlu1 %5758 }
 0x36b   :  { %v4737_v22 = vcombine.low %v23213_v10, %v19205_v32  ;;  %v6630_v0 = vrot.slane %v6616_v24, %v16632_v16  ;;  %v19228_v4 = vrot.slane %v4735_v48, %v16632_v16  ;;  %v19232_v62 = vcombine.high %v23207_v27, %v23207_v27 }
 0x36c   :  { %23211 = vst [vmem:[#allocation52_spill] sm:$0xff] %v19209_v55  ;;  %v8259_v12 = vcombine.low %v8257_v39, %v19209_v55  ;;  %v8250_v36 = vrot.slane %v8242_v3, %v16632_v16  ;;  %v4758_v31 = vrot.slane %v4736_v63, %v16632_v16  ;;  %v19239_v30 = vcombine.high %v18773_v47, %v18773_v47 }
 0x36d   :  { %23214 = vst [vmem:[#allocation26_spill] sm:$0xff] %v19232_v62  ;;  %v4765_v21 = vrot.slane %v4737_v22, %v16632_v16  ;;  %v6631_v24 = vcombine.low %v6623_v35, %v6630_v0  ;;  %v4766_v48 = vcombine.low %v18888_v59, %v19228_v4  ;;  %v19246_v55 = vcombine.high %v18783_v5, %v18783_v5 }
 0x36e   :  { %23215 = vst [vmem:[#allocation24_spill] sm:$0xff] %v19239_v30  ;;  %v8273_v39 = vrot.slane %v8259_v12, %v16632_v16  ;;  %v8258_v3 = vcombine.low %v8250_v36, %v19196_v42  ;;  %v6225_v22 = vcombine.low %v19232_v62, %v18773_v47  ;;  %v8276_v63 = vcombine.low %v18770_v25, %v18780_v53  ;;  %v19260_v36 = vpop.permute.xlu0 %5760 }
 0x36f   :  { %23216 = vst [vmem:[#allocation27_spill] sm:$0xff] %v19246_v55  ;;  %v4767_v27 = vcombine.low %v4758_v31, %v4765_v21  ;;  %6790 = vrot.lane.b32.xlu1 %v6631_v24, %s15997_s1  ;;  %v4774_v12 = vrot.slane %v4766_v48, %v16632_v16  ;;  %v22692_v35 = vunpack.i.h.s16 %v19246_v55  ;;  %v14969_v59 = vcombine.high %v18770_v25, %v18780_v53  ;;  %v19268_v48 = vpop.permute.xlu1 %7353  ;;  %v23250_v55 = vld [vmem:[#allocation12_spill] sm:$0xff] }
 0x370   :  { %v1792_v0 = vcombine.high %v23213_v10, %v23213_v10  ;;  %23217 = vst [vmem:[#allocation54_spill] sm:$0xff] %v19260_v36  ;;  %v8266_v31 = vrot.slane %v8258_v3, %v16632_v16  ;;  %v19265_v47 = vrot.slane %v6225_v22, %v16632_v16  ;;  %v8291_v24 = vrot.slane %v8276_v63, %v16632_v16  ;;  %v23219_v36 = vld [vmem:[#allocation119_spill] sm:$0xff] }
 0x371   :  { %v4781_v42 = vrot.slane %v4767_v27, %v16632_v16  ;;  %v14965_v53 = vpack.i.b16 %v22692_v35, %v19239_v30  ;;  %v8298_v25 = vrot.slane %v14969_v59, %v16632_v16  ;;  %v22694_v62 = vunpack.i.h.s16 %v23200_v41 }
 0x372   :  { %23218 = vst [vmem:[#allocation133_spill] sm:$0xff] %v19265_v47  ;;  %v4783_v1 = vcombine.low %v1792_v0, %v23219_v36  ;;  %v8274_v3 = vcombine.low %v8266_v31, %v8273_v39  ;;  %v2561_v27 = vcombine.low %v23179_v43, %v23177_v17  ;;  %v8510_v22 = vsel %vm8379_vm3, %v19100_v29, %v19076_v57  ;;  %v23221_v43 = vld [vmem:[#allocation124_spill] sm:$0xff] }
 0x373   :  { %v4782_v18 = vcombine.low %v4774_v12, %v4781_v42  ;;  %v8275_v63 = vcombine.low %v18783_v5, %v14965_v53  ;;  %v8300_v56 = vcombine.low %v8291_v24, %v8298_v25  ;;  %v19285_v59 = vpack.i.b16 %v22694_v62, %v23199_v33 }
 0x374   :  { %v19288_v35 = vrot.slane %v4783_v1, %v16632_v16  ;;  %15560 = vmatmul.mubr.msk.bf16.gmra.mrb[68].mxu0 %vm8330_vm2, %v8274_v3  ;;  %v2577_v17 = vrot.slane %v2561_v27, %v16632_v16  ;;  %v3872_v57 = vcombine.low %v23221_v43, %v18919_v45  ;;  %v3904_v25 = vcombine.low %v18994_v50, %v19164_v20  ;;  %v19309_v20 = vpop.permute.xlu1 %4952 }
 0x375   :  { %23220 = vst [vmem:[#allocation95_spill] sm:$0xff] %v19285_v59  ;;  %4966 = vrot.lane.b32.xlu0 %v4782_v18, %s15995_s2  ;;  %v2303_v53 = vunpack.i.h.s16 %v23213_v10  ;;  %v8284_v29 = vrot.slane %v8275_v63, %v16632_v16  ;;  %v8314_v42 = vrot.slane %v8300_v56, %v16632_v16  ;;  %v7162_v1 = vcombine.low %v19285_v59, %v23210_v46  ;;  %v19303_v18 = vpop.permute.xlu0 %6776 }
 0x376   :  { %v7171_v39 = vcombine.low %v4765_v21, %v19288_v35  ;;  %v2592_v12 = vcombine.low %v19016_v8, %v2577_v17  ;;  %v3888_v45 = vrot.slane %v3872_v57, %v16632_v16  ;;  %v3918_v31 = vrot.slane %v3904_v25, %v16632_v16  ;;  %23222 = vst [vmem:[#allocation63_spill] sm:$0xff] %v19309_v20 }
 0x377   :  { %v2305_v50 = vunpack.i.h.s16 %v19205_v32  ;;  %v8299_v24 = vcombine.low %v19265_v47, %v8284_v29  ;;  %v7169_v56 = vrot.slane %v7162_v1, %v16632_v16  ;;  %v2307_v27 = vunpack.i.h.s16 %v1792_v0  ;;  %v23244_v47 = vld [vmem:[#allocation117_spill] sm:$0xff] }
 0x378   :  { %v7185_v3 = vrot.slane %v7171_v39, %v16632_v16  ;;  %v2600_v21 = vrot.slane %v2592_v12, %v16632_v16  ;;  %v3903_v63 = vcombine.low %v18987_v54, %v3888_v45  ;;  %v22693_v8 = vunpack.i.h.s16 %v23219_v36  ;;  %v23225_v54 = vld [vmem:[#allocation70_spill] sm:$0xff] }
 0x379   :  { %v23223_v17 = vunpack.i.h.s16 %v23199_v33  ;;  %v8307_v57 = vrot.slane %v8299_v24, %v16632_v16  ;;  %v7170_v25 = vcombine.low %v19228_v4, %v7169_v56  ;;  %v23224_v29 = vunpack.i.h.s16 %v23210_v46  ;;  %v23226_v56 = vld [vmem:[#allocation120_spill] sm:$0xff] }
 0x37a   :  { %v19330_v39 = vpack.i.b16 %v19205_v32, %v2303_v53  ;;  %v2608_v12 = vcombine.low %v2600_v21, %v23225_v54  ;;  %v3911_v45 = vrot.slane %v3903_v63, %v16632_v16  ;;  %v19334_v33 = vpack.i.b16 %v1792_v0, %v2305_v50  ;;  %v19347_v53 = vpop.permute.xlu0 %7355  ;;  %v19357_v21 = vpop.permute.xlu1 %4950 }
 0x37b   :  { %v19320_v43 = vpack.i.b16 %v23210_v46, %v23223_v17  ;;  %v19327_v1 = vpack.i.b16 %v23213_v10, %v23224_v29  ;;  %v19337_v17 = vpack.i.b16 %v23219_v36, %v2307_v27  ;;  %v8315_v24 = vcombine.low %v8307_v57, %v8314_v42  ;;  %23227 = vst [vmem:[#allocation46_spill] sm:$0xff] %v19347_v53  ;;  %v19373_v54 = vpop.f32.mrb[44].mxu0  ;;  %v23247_v10 = vld [vmem:[#allocation66_spill] sm:$0xff] }
 0x37c   :  { %v7178_v4 = vrot.slane %v7170_v25, %v16632_v16  ;;  %v19343_v29 = vpack.i.b16 %v23226_v56, %v22693_v8  ;;  %v5500_v32 = vcombine.low %v19147_v28, %v19150_v38  ;;  %v19351_v0 = vsel %vm8330_vm2, %v2608_v12, %v19065_v60  ;;  %23228 = vst [vmem:[#allocation77_spill] sm:$0xff] %v19357_v21  ;;  %v23254_v21 = vld [vmem:[#allocation34_spill] sm:$0xff] }
 0x37d   :  { %v3919_v50 = vcombine.low %v3911_v45, %v3918_v31  ;;  %v5547_v42 = vcombine.low %v19330_v39, %v19334_v33  ;;  %v7692_v27 = vcombine.low %v19320_v43, %v19327_v1  ;;  %15563 = vmatprep.mubr.msk.bf16.mxu0 %vm8330_vm2, %v8315_v24  ;;  %v8542_v25 = vsel %vm8412_vm4, %v8510_v22, %v19023_v26  ;;  %v23230_v45 = vld [vmem:[#allocation35_spill] sm:$0xff]  ;;  %v23231_v24 = vld [vmem:[#allocation36_spill] sm:$0xff]  ;;  %v19382_v26 = vpop.f32.mrb[45].mxu0 }
 0x37e   :  { %v7186_v63 = vcombine.low %v7178_v4, %v7185_v3  ;;  %v5528_v28 = vrot.slane %v5500_v32, %v16632_v16  ;;  %v7693_v57 = vcombine.low %v19337_v17, %v19343_v29  ;;  %v8414_v3 = vsel %vm8412_vm4, %v19013_v61, %v18976_v13  ;;  %23229 = vst [vmem:[#allocation131_spill] sm:$0xff] %v19373_v54  ;;  %v23232_v32 = vld [vmem:[#allocation72_spill] sm:$0xff] }
 0x37f   :  { %4150 = vrot.lane.b32.xlu0 %v3919_v50, %s15997_s1  ;;  %v19365_v60 = vrot.slane %v5547_v42, %v16632_v16  ;;  %v7700_v31 = vrot.slane %v7692_v27, %v16632_v16  ;;  %8820 = vmatprep.mubr.bf16.mxu1 %v8542_v25  ;;  %v5834_v4 = vcombine.low %v23231_v24, %v23230_v45  ;;  %v23233_v50 = vld [vmem:[#allocation67_spill] sm:$0xff]  ;;  %v23234_v27 = vld [vmem:[#allocation10_spill] sm:$0xff]  ;;  %v23236_v13 = vunpack.i.h.s16 %v18867_v51  ;;  %v19392_v25 = vpop.f32.mrb[46].mxu0 }
 0x380   :  { %7369 = vrot.lane.b32.xlu1 %v7186_v63, %s15995_s2  ;;  %v7707_v12 = vrot.slane %v7693_v57, %v16632_v16  ;;  %v5843_v42 = vcombine.low %v23233_v50, %v23232_v32  ;;  %23235 = vst [vmem:[#allocation11_spill] sm:$0xff] %v19382_v26  ;;  %8821 = vmatmul.mubr.bf16.vlgmr.msra.gmra.mrb[0].mxu1 %v8414_v3  ;;  %23237 = vst [vmem:[#allocation9_spill] sm:$0xff] %v19392_v25  ;;  %v23239_v3 = vunpack.i.h.s16 %v23234_v27  ;;  %v19411_v26 = vpop.permute.xlu1 %7867 }
 0x381   :  { %v7708_v22 = vcombine.low %v5528_v28, %v7700_v31  ;;  %v14896_v61 = vpack.i.b16 %v23159_v23, %v23236_v13  ;;  %v5530_v63 = vcombine.low %v19080_v49, %v5528_v28  ;;  %v19390_v57 = vcombine.high %v23234_v27, %v23234_v27  ;;  %v23238_v31 = vld [vmem:[#allocation99_spill] sm:$0xff]  ;;  %v19402_v13 = vpop.permute.xlu0 %7357  ;;  %v19404_v49 = vpop.f32.mrb[47].mxu0  ;;  %23245 = vst [vmem:[#allocation138_spill] sm:$0xff] %v19411_v26  ;;  %v23255_v26 = vld [vmem:[#allocation32_spill] sm:$0xff] }
 0x382   :  { %v7709_v24 = vcombine.low %v19365_v60, %v7707_v12  ;;  %v5841_v62 = vrot.slane %v5834_v4, %v16632_v16  ;;  %v5857_v8 = vrot.slane %v5843_v42, %v16632_v16  ;;  %v19400_v51 = vpack.i.b16 %v23239_v3, %v23238_v31  ;;  %23241 = vst [vmem:[#allocation98_spill] sm:$0xff] %v19402_v13  ;;  %v23243_v12 = vld [vmem:[#allocation118_spill] sm:$0xff]  ;;  %v19413_v42 = vpop.f32.mrb[48].mxu0 }
 0x383   :  { %23242 = vst [vmem:[#allocation137_spill] sm:$0xff] %v19404_v49  ;;  %v7716_v28 = vrot.slane %v7708_v22, %v16632_v16  ;;  %v5498_v54 = vcombine.low %v14896_v61, %v19042_v11  ;;  %v5544_v25 = vrot.slane %v5530_v63, %v16632_v16  ;;  %v4785_v4 = vcombine.low %v23244_v47, %v23243_v12  ;;  %v23248_v22 = vld [vmem:[#allocation45_spill] sm:$0xff]  ;;  %v19421_v61 = vpop.f32.mrb[49].mxu0 }
 0x384   :  { %23240 = vst [vmem:[#allocation114_spill] sm:$0xff] %v19400_v51  ;;  %23246 = vst [vmem:[#allocation124_spill] sm:$0xff] %v19413_v42  ;;  %v7723_v3 = vrot.slane %v7709_v24, %v16632_v16  ;;  %v5842_v59 = vcombine.low %v23247_v10, %v5841_v62  ;;  %v14948_v49 = vcombine.high %v23219_v36, %v23226_v56  ;;  %v23251_v24 = vld [vmem:[#allocation88_spill] sm:$0xff]  ;;  %v19431_v10 = vpop.f32.mrb[50].mxu0 }
 0x385   :  { %v7188_v23 = vcombine.low %v23248_v22, %v19400_v51  ;;  %23249 = vst [vmem:[#allocation70_spill] sm:$0xff] %v19421_v61  ;;  %v5514_v63 = vrot.slane %v5498_v54, %v16632_v16  ;;  %v19425_v20 = vrot.slane %v4785_v4, %v16632_v16  ;;  %v7189_v42 = vcombine.low %v23250_v55, %v19390_v57  ;;  %v19436_v5 = vpop.f32.mrb[51].mxu0 }
 0x386   :  { %v2609_v30 = vcombine.low %v23251_v24, %v23230_v45  ;;  %23252 = vst [vmem:[#allocation35_spill] sm:$0xff] %v19431_v10  ;;  %v7724_v62 = vcombine.low %v7716_v28, %v7723_v3  ;;  %v5850_v13 = vrot.slane %v5842_v59, %v16632_v16  ;;  %v7196_v51 = vrot.slane %v14948_v49, %v16632_v16  ;;  %v19443_v24 = vpop.f32.mrb[52].mxu0  ;;  %v19451_v28 = vpop.permute.xlu0 %7869 }
 0x387   :  { %v7203_v61 = vrot.slane %v7188_v23, %v16632_v16  ;;  %23253 = vst [vmem:[#allocation36_spill] sm:$0xff] %v19436_v5  ;;  %v5529_v54 = vcombine.low %v19072_v52, %v5514_v63  ;;  %v7210_v4 = vrot.slane %v7189_v42, %v16632_v16  ;;  %v14725_v53 = vcombine.high %v23255_v26, %v23254_v21  ;;  %v19453_v42 = vpop.f32.mrb[53].mxu0  ;;  %v23289_v5 = vld [vmem:[#allocation80_spill] sm:$0xff] }
 0x388   :  { %v2619_v45 = vrot.slane %v2609_v30, %v16632_v16  ;;  %23256 = vst [vmem:[#allocation72_spill] sm:$0xff] %v19443_v24  ;;  %7883 = vrot.lane.b32.xlu1 %v7724_v62, %s15994_s0  ;;  %v5858_v59 = vcombine.low %v5850_v13, %v5857_v8  ;;  %v7211_v49 = vcombine.low %v7196_v51, %v19425_v20  ;;  %23257 = vst [vmem:[#allocation67_spill] sm:$0xff] %v19453_v42  ;;  %v19458_v8 = vpop.permute.xlu1 %4136  ;;  %v19460_v51 = vpop.f32.mrb[54].mxu0  ;;  %v23284_v42 = vld [vmem:[#allocation39_spill] sm:$0xff] }
 0x389   :  { %v3920_v23 = vcombine.low %v19042_v11, %v19047_v6  ;;  %v3922_v52 = vcombine.low %v19150_v38, %v19320_v43  ;;  %v5537_v26 = vrot.slane %v5529_v54, %v16632_v16  ;;  %v7212_v30 = vcombine.low %v7203_v61, %v7210_v4  ;;  %23258 = vst [vmem:[#allocation10_spill] sm:$0xff] %v19460_v51  ;;  %v19468_v13 = vpop.f32.mrb[55].mxu0 }
 0x38a   :  { %v2640_v3 = vrot.slane %v14725_v53, %v16632_v16  ;;  %v2641_v63 = vcombine.low %v2619_v45, %v23233_v50  ;;  %v8466_v11 = vsel %vm8330_vm2, %v5858_v59, %v19120_v34  ;;  %v7219_v6 = vrot.slane %v7211_v49, %v16632_v16  ;;  %23259 = vst [vmem:[#allocation118_spill] sm:$0xff] %v19468_v13  ;;  %v15549_v54 = vpop.f32.mrb[56].mxu0  ;;  %v23260_v49 = vld [vmem:[#allocation102_spill] sm:$0xff] }
 0x38b   :  { %v3923_v38 = vcombine.low %v19327_v1, %v19330_v39  ;;  %v3930_v43 = vrot.slane %v3920_v23, %v16632_v16  ;;  %v5545_v61 = vcombine.low %v5537_v26, %v5544_v25  ;;  %v7226_v53 = vrot.slane %v7212_v30, %v16632_v16 }
 0x38c   :  { %v2642_v50 = vcombine.low %v23232_v32, %v2640_v3  ;;  %v2649_v62 = vrot.slane %v2641_v63, %v16632_v16  ;;  %v3944_v4 = vrot.slane %v3922_v52, %v16632_v16  ;;  %v2311_v39 = vunpack.i.h.s16 %v23226_v56 }
 0x38d   :  { %v3951_v34 = vrot.slane %v3923_v38, %v16632_v16  ;;  %v3952_v45 = vcombine.low %v3930_v43, %v19186_v7  ;;  %5776 = vrot.lane.b32.xlu0 %v5545_v61, %s15994_s0  ;;  %v7227_v59 = vcombine.low %v7219_v6, %v7226_v53  ;;  %v2315_v23 = vunpack.i.h.s16 %v23260_v49  ;;  %v19485_v7 = vpop.permute.xlu0 %6778  ;;  %v19494_v61 = vpop.permute.xlu1 %5762 }
 0x38e   :  { %v2656_v25 = vrot.slane %v2642_v50, %v16632_v16  ;;  %v2317_v32 = vunpack.i.h.s16 %v23244_v47  ;;  %v3969_v52 = vcombine.low %v19334_v33, %v19337_v17  ;;  %v14937_v3 = vpack.i.b16 %v23260_v49, %v2311_v39  ;;  %v23263_v39 = vld [vmem:[#allocation64_spill] sm:$0xff] }
 0x38f   :  { %v3953_v26 = vcombine.low %v3944_v4, %v3951_v34  ;;  %v3960_v30 = vrot.slane %v3952_v45, %v16632_v16  ;;  %7371 = vrot.lane.b32.xlu1 %v7227_v59, %s15995_s2  ;;  %v14835_v6 = vpack.i.b16 %v23244_v47, %v2315_v23  ;;  %v8512_v43 = vsel %vm8379_vm3, %v8466_v11, %v18984_v19  ;;  %v23261_v19 = vld [vmem:[#allocation76_spill] sm:$0xff]  ;;  %v23262_v11 = vld [vmem:[#allocation41_spill] sm:$0xff] }
 0x390   :  { %v2657_v63 = vcombine.low %v2649_v62, %v2656_v25  ;;  %v19490_v38 = vpack.i.b16 %v23243_v12, %v2317_v32  ;;  %v19498_v33 = vrot.slane %v3969_v52, %v16632_v16  ;;  %v6632_v50 = vcombine.low %v19343_v29, %v14937_v3  ;;  %v23266_v3 = vld [vmem:[#allocation68_spill] sm:$0xff] }
 0x391   :  { %v3967_v53 = vrot.slane %v3953_v26, %v16632_v16  ;;  %v8545_v62 = vsel %vm8412_vm4, %v8512_v43, %v19167_v44  ;;  %v2660_v45 = vcombine.low %v23262_v11, %v23261_v19  ;;  %v23264_v59 = vunpack.i.h.s16 %v23263_v39  ;;  %v23269_v11 = vld [vmem:[#allocation73_spill] sm:$0xff] }
 0x392   :  { %v19505_v54 = vsel %vm8330_vm2, %v2657_v63, %v19159_v15  ;;  %v3971_v4 = vcombine.low %v14835_v6, %v19490_v38  ;;  %8828 = vmatprep.mubr.bf16.mxu1 %v8545_v62  ;;  %v6639_v32 = vrot.slane %v6632_v50, %v16632_v16  ;;  %v6640_v26 = vcombine.low %v3951_v34, %v19498_v33 }
 0x393   :  { %v14909_v25 = vpack.i.b16 %v23264_v59, %v23254_v21  ;;  %v3968_v23 = vcombine.low %v3960_v30, %v3967_v53  ;;  %v19517_v44 = vcombine.high %v23219_v36, %v23219_v36  ;;  %v19523_v52 = vrot.slane %v2660_v45, %v16632_v16  ;;  %v19546_v59 = vpop.permute.xlu1 %4138 }
 0x394   :  { %v19520_v15 = vrot.slane %v3971_v4, %v16632_v16  ;;  %v23267_v43 = vunpack.i.h.s16 %v23200_v41  ;;  %v6648_v34 = vrot.slane %v6640_v26, %v16632_v16  ;;  %v23268_v53 = vunpack.i.h.s16 %v23219_v36  ;;  %v19539_v4 = vpop.permute.xlu0 %7871 }
 0x395   :  { %23265 = vst [vmem:[#allocation117_spill] sm:$0xff] %v19517_v44  ;;  %v5859_v63 = vcombine.low %v14909_v25, %v23266_v3  ;;  %4152 = vrot.lane.b32.xlu0 %v3968_v23, %s15997_s1  ;;  %v22706_v30 = vunpack.i.h.s16 %v19517_v44  ;;  %v19537_v62 = vcombine.high %v23250_v55, %v23250_v55  ;;  %v5876_v45 = vcombine.low %v23269_v11, %v19523_v52 }
 0x396   :  { %v14897_v21 = vpack.i.b16 %v23210_v46, %v23267_v43  ;;  %v14898_v50 = vpack.i.b16 %v19517_v44, %v23268_v53  ;;  %v6641_v41 = vcombine.low %v6639_v32, %v19520_v15  ;;  %v2319_v26 = vunpack.i.h.s16 %v23243_v12 }
 0x397   :  { %v5867_v19 = vrot.slane %v5859_v63, %v16632_v16  ;;  %v19551_v25 = vpack.i.b16 %v23260_v49, %v22706_v30  ;;  %v2321_v32 = vunpack.i.h.s16 %v23248_v22  ;;  %v23270_v63 = vld [vmem:[#allocation71_spill] sm:$0xff]  ;;  %v5890_v53 = vrot.slane %v5876_v45, %v16632_v16 }
 0x398   :  { %v5546_v39 = vcombine.low %v14897_v21, %v19327_v1  ;;  %v5548_v23 = vcombine.low %v19337_v17, %v14898_v50  ;;  %v6655_v3 = vrot.slane %v6641_v41, %v16632_v16  ;;  %v2323_v30 = vunpack.i.h.s16 %v23238_v31 }
 0x399   :  { %v5875_v43 = vcombine.low %v5867_v19, %v23270_v63  ;;  %v5549_v21 = vcombine.low %v19551_v25, %v14835_v6  ;;  %v2329_v17 = vunpack.i.h.s16 %v19390_v57  ;;  %v14837_v41 = vpack.i.b16 %v23248_v22, %v2319_v26 }
 0x39a   :  { %v5556_v1 = vrot.slane %v5546_v39, %v16632_v16  ;;  %v5570_v11 = vrot.slane %v5548_v23, %v16632_v16  ;;  %v6656_v50 = vcombine.low %v6648_v34, %v6655_v3  ;;  %v19569_v45 = vpack.i.b16 %v23238_v31, %v2321_v32  ;;  %v19579_v34 = vpop.permute.xlu0 %6780  ;;  %v19585_v3 = vpop.permute.xlu1 %4954 }
 0x39b   :  { %v5883_v51 = vrot.slane %v5875_v43, %v16632_v16  ;;  %v5577_v19 = vrot.slane %v5549_v21, %v16632_v16  ;;  %v19572_v6 = vpack.i.b16 %v23250_v55, %v2323_v30  ;;  %v23271_v39 = vunpack.i.h.s16 %v23250_v55  ;;  %v19587_v43 = vpop.f32.mrb[57].mxu0 }
 0x39c   :  { %v5578_v24 = vcombine.low %v5556_v1, %v19365_v60  ;;  %6792 = vrot.lane.b32.xlu1 %v6656_v50, %s15997_s1  ;;  %v14841_v26 = vpack.i.b16 %v19537_v62, %v2329_v17  ;;  %v5595_v32 = vcombine.low %v19490_v38, %v14837_v41  ;;  %23272 = vst [vmem:[#allocation66_spill] sm:$0xff] %v19587_v43 }
 0x39d   :  { %v19577_v23 = vpack.i.b16 %v19390_v57, %v23271_v39  ;;  %v5891_v60 = vcombine.low %v5883_v51, %v5890_v53  ;;  %v5579_v1 = vcombine.low %v5570_v11, %v5577_v19  ;;  %v7725_v21 = vcombine.low %v19569_v45, %v19572_v6 }
 0x39e   :  { %v5586_v22 = vrot.slane %v5578_v24, %v16632_v16  ;;  %v8383_v39 = vsel %vm8379_vm3, %v19351_v0, %v19018_v14  ;;  %v4784_v51 = vcombine.low %v23226_v56, %v23260_v49  ;;  %v19596_v24 = vpop.f32.mrb[58].mxu0  ;;  %v19602_v17 = vrot.slane %v5595_v32, %v16632_v16 }
 0x39f   :  { %23273 = vst [vmem:[#allocation45_spill] sm:$0xff] %v19596_v24  ;;  %v8469_v38 = vsel %vm8330_vm2, %v5891_v60, %v19214_v9  ;;  %v5597_v53 = vcombine.low %v19577_v23, %v14841_v26  ;;  %v8417_v11 = vsel %vm8412_vm4, %v8383_v39, %v19223_v40  ;;  %v19606_v50 = vpop.f32.mrb[59].mxu0  ;;  %v5593_v14 = vrot.slane %v5579_v1, %v16632_v16  ;;  %v23278_v24 = vld [vmem:[#allocation40_spill] sm:$0xff] }
 0x3a0   :  { %23274 = vst [vmem:[#allocation88_spill] sm:$0xff] %v19606_v50  ;;  %v7732_v0 = vrot.slane %v7725_v21, %v16632_v16  ;;  %8829 = vmatmul.mubr.bf16.gmra.mrb[4].mxu1 %v8417_v11  ;;  %v19612_v49 = vsel %vm8379_vm3, %v8469_v38, %v19268_v48  ;;  %v14875_v9 = vcombine.high %v23244_v47, %v23243_v12  ;;  %v2331_v39 = vunpack.i.h.s16 %v19537_v62  ;;  %v19625_v38 = vpop.permute.xlu0 %7359 }
 0x3a1   :  { %v19617_v60 = vrot.slane %v5597_v53, %v16632_v16  ;;  %v7733_v32 = vcombine.low %v5577_v19, %v19602_v17  ;;  %v4800_v40 = vrot.slane %v4784_v51, %v16632_v16  ;;  %v5594_v1 = vcombine.low %v5586_v22, %v5593_v14  ;;  %v19633_v51 = vpop.permute.xlu1 %5764  ;;  %v19635_v22 = vpop.f32.mrb[60].mxu0 }
 0x3a2   :  { %v4814_v21 = vrot.slane %v14875_v9, %v16632_v16  ;;  %v2333_v11 = vunpack.i.h.s16 %v23192_v58  ;;  %v22707_v48 = vunpack.i.h.s16 %v23191_v2  ;;  %v19631_v19 = vpack.i.b16 %v23192_v58, %v2331_v39  ;;  %23275 = vst [vmem:[#allocation34_spill] sm:$0xff] %v19635_v22 }
 0x3a3   :  { %v7734_v47 = vcombine.low %v7732_v0, %v19617_v60  ;;  %v7741_v12 = vrot.slane %v7733_v32, %v16632_v16  ;;  %v4815_v53 = vcombine.low %v19288_v35, %v4800_v40  ;;  %5778 = vrot.lane.b32.xlu0 %v5594_v1, %s15994_s0  ;;  %v3972_v35 = vcombine.low %v14837_v41, %v19569_v45  ;;  %v19646_v32 = vpop.f32.mrb[61].mxu0  ;;  %v23279_v41 = vld [vmem:[#allocation115_spill] sm:$0xff] }
 0x3a4   :  { %v4816_v14 = vcombine.low %v19425_v20, %v4814_v21  ;;  %v14843_v9 = vpack.i.b16 %v23191_v2, %v2333_v11  ;;  %v19643_v0 = vpack.i.b16 %v23194_v37, %v22707_v48  ;;  %23276 = vst [vmem:[#allocation32_spill] sm:$0xff] %v19646_v32  ;;  %v4019_v22 = vcombine.low %v14841_v26, %v19631_v19  ;;  %v19652_v20 = vpop.f32.mrb[62].mxu0  ;;  %v23282_v26 = vld [vmem:[#allocation91_spill] sm:$0xff] }
 0x3a5   :  { %v7748_v40 = vrot.slane %v7734_v47, %v16632_v16  ;;  %v4823_v39 = vrot.slane %v4815_v53, %v16632_v16  ;;  %v14938_v1 = vpack.i.b16 %v23234_v27, %v2323_v30  ;;  %23277 = vst [vmem:[#allocation102_spill] sm:$0xff] %v19652_v20  ;;  %v4000_v11 = vrot.slane %v3972_v35, %v16632_v16  ;;  %v19660_v43 = vpop.f32.mrb[63].mxu0  ;;  %v23283_v20 = vld [vmem:[#allocation83_spill] sm:$0xff] }
 0x3a6   :  { %v4830_v21 = vrot.slane %v4816_v14, %v16632_v16  ;;  %v4020_v48 = vcombine.low %v14843_v9, %v19643_v0  ;;  %v23280_v50 = vunpack.i.h.s16 %v23279_v41  ;;  %23281 = vst [vmem:[#allocation76_spill] sm:$0xff] %v19660_v43  ;;  %v19663_v53 = vrot.slane %v4019_v22, %v16632_v16 }
 0x3a7   :  { %v7749_v47 = vcombine.low %v7741_v12, %v7748_v40  ;;  %v6657_v30 = vcombine.low %v14938_v1, %v19577_v23  ;;  %v5901_v13 = vcombine.low %v23283_v20, %v23282_v26  ;;  %v4002_v22 = vcombine.low %v19520_v15, %v4000_v11 }
 0x3a8   :  { %v14910_v32 = vpack.i.b16 %v23280_v50, %v23278_v24  ;;  %v4831_v14 = vcombine.low %v4823_v39, %v4830_v21  ;;  %v19669_v35 = vrot.slane %v4020_v48, %v16632_v16  ;;  %v3970_v24 = vcombine.low %v19343_v29, %v19551_v25  ;;  %v19682_v39 = vpop.permute.xlu0 %7875  ;;  %v19684_v48 = vpop.permute.xlu1 %4140  ;;  %v23287_v21 = vld [vmem:[#allocation15_spill] sm:$0xff] }
 0x3a9   :  { %7885 = vrot.lane.b32.xlu1 %v7749_v47, %s15994_s0  ;;  %v6664_v50 = vrot.slane %v6657_v30, %v16632_v16  ;;  %v5915_v12 = vrot.slane %v5901_v13, %v16632_v16  ;;  %v19680_v40 = vcombine.high %v23191_v2, %v23191_v2  ;;  %23286 = vst [vmem:[#allocation64_spill] sm:$0xff] %v19682_v39  ;;  %v23288_v47 = vld [vmem:[#allocation29_spill] sm:$0xff] }
 0x3aa   :  { %v5892_v10 = vcombine.low %v23284_v42, %v14910_v32  ;;  %4968 = vrot.lane.b32.xlu0 %v4831_v14, %s15995_s2  ;;  %v6666_v29 = vcombine.low %v19663_v53, %v19669_v35  ;;  %v3986_v32 = vrot.slane %v3970_v24, %v16632_v16  ;;  %v4833_v13 = vcombine.low %v19537_v62, %v23192_v58 }
 0x3ab   :  { %23285 = vst [vmem:[#allocation41_spill] sm:$0xff] %v19680_v40  ;;  %v6665_v15 = vcombine.low %v4000_v11, %v6664_v50  ;;  %v4016_v1 = vrot.slane %v4002_v22, %v16632_v16  ;;  %v4835_v30 = vcombine.low %v23288_v47, %v23287_v21  ;;  %v14876_v43 = vcombine.high %v23288_v47, %v23287_v21 }
 0x3ac   :  { %v5899_v25 = vrot.slane %v5892_v10, %v16632_v16  ;;  %v6680_v14 = vrot.slane %v6666_v29, %v16632_v16  ;;  %v4001_v10 = vcombine.low %v19498_v33, %v3986_v32  ;;  %v19702_v24 = vrot.slane %v4833_v13, %v16632_v16  ;;  %v19723_v36 = vpop.permute.xlu0 %7873  ;;  %v19725_v44 = vpop.permute.xlu1 %5766 }
 0x3ad   :  { %v6673_v58 = vrot.slane %v6665_v15, %v16632_v16  ;;  %v19706_v62 = vrot.slane %v4835_v30, %v16632_v16  ;;  %v19709_v11 = vrot.slane %v14876_v43, %v16632_v16  ;;  %v7228_v50 = vcombine.low %v23191_v2, %v19680_v40 }
 0x3ae   :  { %v5900_v31 = vcombine.low %v23289_v5, %v5899_v25  ;;  %v4009_v29 = vrot.slane %v4001_v10, %v16632_v16  ;;  %v23291_v33 = vunpack.i.h.s16 %v23234_v27  ;;  %v5598_v32 = vcombine.low %v19631_v19, %v14843_v9 }
 0x3af   :  { %23290 = vst [vmem:[#allocation68_spill] sm:$0xff] %v19709_v11  ;;  %v6681_v13 = vcombine.low %v6673_v58, %v6680_v14  ;;  %v7235_v15 = vrot.slane %v7228_v50, %v16632_v16  ;;  %v7237_v43 = vcombine.low %v19706_v62, %v19709_v11  ;;  %v22712_v30 = vunpack.i.h.s16 %v19680_v40 }
 0x3b0   :  { %v5908_v22 = vrot.slane %v5900_v31, %v16632_v16  ;;  %v14899_v25 = vpack.i.b16 %v23250_v55, %v23291_v33  ;;  %v4017_v10 = vcombine.low %v4009_v29, %v4016_v1  ;;  %v5626_v33 = vrot.slane %v5598_v32, %v16632_v16  ;;  %v23292_v1 = vld [vmem:[#allocation16_spill] sm:$0xff]  ;;  %v19767_v55 = vpop.permute.xlu0 %6782 }
 0x3b1   :  { %6794 = vrot.lane.b32.xlu1 %v6681_v13, %s15997_s1  ;;  %v7236_v19 = vcombine.low %v19702_v24, %v7235_v15  ;;  %v7251_v9 = vrot.slane %v7237_v43, %v16632_v16  ;;  %v2341_v14 = vunpack.i.h.s16 %v23288_v47  ;;  %v2343_v58 = vunpack.i.h.s16 %v23287_v21  ;;  %v23294_v13 = vld [vmem:[#allocation125_spill] sm:$0xff] }
 0x3b2   :  { %v5916_v31 = vcombine.low %v5908_v22, %v5915_v12  ;;  %v5596_v27 = vcombine.low %v19569_v45, %v14899_v25  ;;  %4154 = vrot.lane.b32.xlu0 %v4017_v10, %s15997_s1  ;;  %v5628_v45 = vcombine.low %v19617_v60, %v5626_v33  ;;  %v2345_v22 = vunpack.i.h.s16 %v23292_v1  ;;  %v23293_v25 = vld [vmem:[#allocation46_spill] sm:$0xff] }
 0x3b3   :  { %v7244_v29 = vrot.slane %v7236_v19, %v16632_v16  ;;  %v2347_v15 = vunpack.i.h.s16 %v23294_v13  ;;  %v19754_v60 = vpack.i.b16 %v23287_v21, %v2341_v14  ;;  %v19757_v10 = vpack.i.b16 %v23292_v1, %v2343_v58  ;;  %v23302_v1 = vld [vmem:[#allocation89_spill] sm:$0xff] }
 0x3b4   :  { %v8472_v50 = vsel %vm8330_vm2, %v5916_v31, %v19303_v18  ;;  %v5612_v12 = vrot.slane %v5596_v27, %v16632_v16  ;;  %v19749_v18 = vpack.i.b16 %v23288_v47, %v22712_v30  ;;  %v5642_v31 = vrot.slane %v5628_v45, %v16632_v16 }
 0x3b5   :  { %v19743_v32 = vsel %vm8379_vm3, %v8472_v50, %v23293_v25  ;;  %23295 = vst [vmem:[#allocation73_spill] sm:$0xff] %v19754_v60  ;;  %23296 = vst [vmem:[#allocation71_spill] sm:$0xff] %v19757_v10  ;;  %v7252_v27 = vcombine.low %v7244_v29, %v7251_v9  ;;  %v19760_v19 = vpack.i.b16 %v23294_v13, %v2345_v22  ;;  %v23298_v50 = vld [vmem:[#allocation20_spill] sm:$0xff] }
 0x3b6   :  { %v5627_v43 = vcombine.low %v19602_v17, %v5612_v12  ;;  %v19763_v25 = vpack.i.b16 %v23298_v50, %v2347_v15  ;;  %v7750_v30 = vcombine.low %v19643_v0, %v19749_v18  ;;  %v19769_v17 = vpop.permute.xlu1 %4956  ;;  %v5645_v14 = vcombine.low %v19754_v60, %v19757_v10  ;;  %v19778_v12 = vpop.f32.mrb[64].mxu0  ;;  %v23304_v29 = vld [vmem:[#allocation28_spill] sm:$0xff]  ;;  %v23317_v10 = vld [vmem:[#allocation138_spill] sm:$0xff] }
 0x3b7   :  { %23297 = vst [vmem:[#allocation40_spill] sm:$0xff] %v19760_v19  ;;  %23300 = vst [vmem:[#allocation91_spill] sm:$0xff] %v19769_v17  ;;  %v4018_v9 = vcombine.low %v19572_v6, %v19577_v23  ;;  %v4021_v58 = vcombine.low %v19749_v18, %v19754_v60  ;;  %7373 = vrot.lane.b32.xlu1 %v7252_v27, %s15995_s2  ;;  %v19786_v22 = vcombine.high %v23302_v1, %v23302_v1  ;;  %v19794_v27 = vpop.f32.mrb[65].mxu0  ;;  %v23321_v17 = vld [vmem:[#allocation65_spill] sm:$0xff] }
 0x3b8   :  { %23299 = vst [vmem:[#allocation115_spill] sm:$0xff] %v19763_v25  ;;  %v5635_v21 = vrot.slane %v5627_v43, %v16632_v16  ;;  %23301 = vst [vmem:[#allocation83_spill] sm:$0xff] %v19778_v12  ;;  %v5646_v0 = vcombine.low %v19760_v19, %v19763_v25  ;;  %v7757_v45 = vrot.slane %v7750_v30, %v16632_v16  ;;  %v22718_v15 = vunpack.i.h.s16 %v23304_v29  ;;  %v23318_v19 = vld [vmem:[#allocation7_spill] sm:$0xff] }
 0x3b9   :  { %23303 = vst [vmem:[#allocation39_spill] sm:$0xff] %v19786_v22  ;;  %v19790_v6 = vrot.slane %v5645_v14, %v16632_v16  ;;  %v4028_v23 = vrot.slane %v4018_v9, %v16632_v16  ;;  %v4049_v12 = vrot.slane %v4021_v58, %v16632_v16  ;;  %23305 = vst [vmem:[#allocation15_spill] sm:$0xff] %v19794_v27  ;;  %v19806_v14 = vpop.f32.mrb[66].mxu0 }
 0x3ba   :  { %v5643_v43 = vcombine.low %v5635_v21, %v5642_v31  ;;  %v19797_v13 = vrot.slane %v5646_v0, %v16632_v16  ;;  %v7758_v30 = vcombine.low %v5626_v33, %v7757_v45  ;;  %v19802_v56 = vpack.i.b16 %v22718_v15, %v23298_v50  ;;  %v23307_v31 = vld [vmem:[#allocation22_spill] sm:$0xff]  ;;  %23308 = vst [vmem:[#allocation16_spill] sm:$0xff] %v19806_v14  ;;  %v23309_v0 = vld [vmem:[#allocation61_spill] sm:$0xff]  ;;  %v23310_v33 = vld [vmem:[#allocation59_spill] sm:$0xff]  ;;  %v19815_v11 = vpop.f32.mrb[67].mxu0 }
 0x3bb   :  { %v4883_v21 = vcombine.low %v23307_v31, %v23302_v1  ;;  %v4050_v9 = vcombine.low %v4028_v23, %v19663_v53  ;;  %v4051_v58 = vcombine.low %v19669_v35, %v4049_v12  ;;  %v4884_v27 = vcombine.low %v23309_v0, %v19786_v22  ;;  %v23311_v45 = vld [vmem:[#allocation81_spill] sm:$0xff]  ;;  %23312 = vst [vmem:[#allocation46_spill] sm:$0xff] %v19815_v11  ;;  %v19825_v35 = vpop.permute.xlu0 %7361  ;;  %v19827_v12 = vpop.permute.xlu1 %4142 }
 0x3bc   :  { %23306 = vst [vmem:[#allocation80_spill] sm:$0xff] %v19802_v56  ;;  %5780 = vrot.lane.b32.xlu0 %v5643_v43, %s15994_s0  ;;  %v7254_v46 = vcombine.low %v23311_v45, %v23310_v33  ;;  %v7759_v15 = vcombine.low %v19790_v6, %v19797_v13  ;;  %v7766_v25 = vrot.slane %v7758_v30, %v16632_v16  ;;  %v23314_v43 = vld [vmem:[#allocation25_spill] sm:$0xff]  ;;  %23315 = vst [vmem:[#allocation28_spill] sm:$0xff] %v19825_v35 }
 0x3bd   :  { %v19821_v14 = vrot.slane %v4883_v21, %v16632_v16  ;;  %v7253_v53 = vcombine.low %v19802_v56, %v23314_v43  ;;  %v4058_v23 = vrot.slane %v4050_v9, %v16632_v16  ;;  %v4065_v60 = vrot.slane %v4051_v58, %v16632_v16 }
 0x3be   :  { %v19832_v11 = vrot.slane %v4884_v27, %v16632_v16  ;;  %v7268_v47 = vrot.slane %v7254_v46, %v16632_v16  ;;  %v7773_v30 = vrot.slane %v7759_v15, %v16632_v16  ;;  %v8548_v56 = vsel %vm8412_vm4, %v19612_v49, %v23317_v10  ;;  %v23319_v27 = vld [vmem:[#allocation54_spill] sm:$0xff]  ;;  %v23320_v46 = vld [vmem:[#allocation116_spill] sm:$0xff]  ;;  %v23322_v10 = vld [vmem:[#allocation143_spill] sm:$0xff] }
 0x3bf   :  { %23313 = vst [vmem:[#allocation89_spill] sm:$0xff] %v19821_v14  ;;  %v7261_v21 = vrot.slane %v7253_v53, %v16632_v16  ;;  %v8385_v50 = vsel %vm8379_vm3, %v19505_v54, %v23318_v19  ;;  %v4066_v9 = vcombine.low %v4058_v23, %v4065_v60  ;;  %8836 = vmatprep.mubr.bf16.mxu1 %v8548_v56 }
 0x3c0   :  { %23316 = vst [vmem:[#allocation22_spill] sm:$0xff] %v19832_v11  ;;  %v7270_v58 = vcombine.low %v19832_v11, %v7268_v47  ;;  %v8420_v39 = vsel %vm8412_vm4, %v8385_v50, %v23319_v27  ;;  %v2659_v15 = vcombine.low %v23321_v17, %v23320_v46  ;;  %v7774_v35 = vcombine.low %v7766_v25, %v7773_v30  ;;  %v19866_v50 = vpop.permute.xlu0 %5768  ;;  %v19868_v25 = vpop.permute.xlu1 %6784 }
 0x3c1   :  { %v7269_v53 = vcombine.low %v7261_v21, %v19821_v14  ;;  %8837 = vmatmul.mubr.bf16.gmra.mrb[8].mxu1 %v8420_v39  ;;  %v2691_v49 = vcombine.low %v19523_v52, %v23289_v5  ;;  %v4832_v54 = vcombine.low %v23322_v10, %v19390_v57  ;;  %4156 = vrot.lane.b32.xlu0 %v4066_v9, %s15997_s1  ;;  %v2357_v39 = vunpack.i.h.s16 %v23302_v1  ;;  %v23326_v21 = vld [vmem:[#allocation90_spill] sm:$0xff]  ;;  %v23327_v9 = vld [vmem:[#allocation37_spill] sm:$0xff] }
 0x3c2   :  { %v7284_v56 = vrot.slane %v7270_v58, %v16632_v16  ;;  %v2675_v47 = vrot.slane %v2659_v15, %v16632_v16  ;;  %v4834_v60 = vcombine.low %v23191_v2, %v23194_v37  ;;  %v8551_v19 = vsel %vm8412_vm4, %v19743_v32, %v19451_v28  ;;  %7887 = vrot.lane.b32.xlu1 %v7774_v35, %s15994_s0  ;;  %v23323_v28 = vld [vmem:[#allocation6_spill] sm:$0xff] }
 0x3c3   :  { %v7277_v5 = vrot.slane %v7269_v53, %v16632_v16  ;;  %v2705_v52 = vrot.slane %v2691_v49, %v16632_v16  ;;  %v4842_v57 = vrot.slane %v4832_v54, %v16632_v16  ;;  %8844 = vmatprep.mubr.bf16.mxu1 %v8551_v19  ;;  %v23324_v32 = vld [vmem:[#allocation38_spill] sm:$0xff]  ;;  %v5917_v58 = vcombine.low %v23327_v9, %v23326_v21 }
 0x3c4   :  { %v2690_v17 = vcombine.low %v23270_v63, %v2675_v47  ;;  %v4856_v23 = vrot.slane %v4834_v60, %v16632_v16  ;;  %v23325_v35 = vunpack.i.h.s16 %v23324_v32  ;;  %v23328_v15 = vunpack.i.h.s16 %v23314_v43  ;;  %v23330_v47 = vld [vmem:[#allocation42_spill] sm:$0xff] }
 0x3c5   :  { %v7285_v27 = vcombine.low %v7277_v5, %v7284_v56  ;;  %v4864_v46 = vcombine.low %v4842_v57, %v19702_v24  ;;  %v23329_v49 = vunpack.i.h.s16 %v23191_v2  ;;  %v5925_v19 = vrot.slane %v5917_v58, %v16632_v16  ;;  %v23333_v58 = vld [vmem:[#allocation121_spill] sm:$0xff] }
 0x3c6   :  { %v14911_v30 = vpack.i.b16 %v23325_v35, %v23323_v28  ;;  %v19881_v53 = vpack.i.b16 %v23307_v31, %v23328_v15  ;;  %v2698_v10 = vrot.slane %v2690_v17, %v16632_v16  ;;  %v4865_v54 = vcombine.low %v4856_v23, %v19706_v62  ;;  %v23332_v28 = vld [vmem:[#allocation92_spill] sm:$0xff]  ;;  %v19908_v15 = vpop.permute.xlu1 %4958 }
 0x3c7   :  { %v14900_v63 = vpack.i.b16 %v19680_v40, %v23329_v49  ;;  %7375 = vrot.lane.b32.xlu1 %v7285_v27, %s15995_s2  ;;  %v4872_v24 = vrot.slane %v4864_v46, %v16632_v16  ;;  %v23331_v56 = vunpack.i.h.s16 %v23304_v29  ;;  %v2707_v57 = vcombine.low %v23284_v42, %v23279_v41 }
 0x3c8   :  { %v5918_v60 = vcombine.low %v14911_v30, %v23330_v47  ;;  %v2706_v17 = vcombine.low %v2698_v10, %v2705_v52  ;;  %v4879_v62 = vrot.slane %v4865_v54, %v16632_v16  ;;  %v5933_v35 = vcombine.low %v5925_v19, %v23332_v28  ;;  %v23334_v52 = vld [vmem:[#allocation93_spill] sm:$0xff] }
 0x3c9   :  { %v14901_v5 = vpack.i.b16 %v23314_v43, %v23331_v56  ;;  %v5644_v2 = vcombine.low %v14900_v63, %v19749_v18  ;;  %v2710_v27 = vcombine.low %v23333_v58, %v23326_v21  ;;  %v2717_v46 = vrot.slane %v2707_v57, %v16632_v16  ;;  %v19906_v18 = vpop.permute.xlu0 %7365 }
 0x3ca   :  { %v5932_v23 = vrot.slane %v5918_v60, %v16632_v16  ;;  %v8342_v42 = vsel %vm8330_vm2, %v2706_v17, %v19458_v8  ;;  %v4880_v41 = vcombine.low %v4872_v24, %v4879_v62  ;;  %v5941_v63 = vrot.slane %v5933_v35, %v16632_v16  ;;  %v23335_v60 = vld [vmem:[#allocation77_spill] sm:$0xff] }
 0x3cb   :  { %v5647_v30 = vcombine.low %v14901_v5, %v19881_v53  ;;  %v5654_v9 = vrot.slane %v5644_v2, %v16632_v16  ;;  %v8387_v21 = vsel %vm8379_vm3, %v8342_v42, %v23335_v60  ;;  %v2738_v19 = vrot.slane %v2710_v27, %v16632_v16 }
 0x3cc   :  { %v5934_v49 = vcombine.low %v23334_v52, %v5932_v23  ;;  %4970 = vrot.lane.b32.xlu0 %v4880_v41, %s15995_s2  ;;  %v8423_v8 = vsel %vm8412_vm4, %v8387_v21, %v19494_v61  ;;  %v2739_v24 = vcombine.low %v2717_v46, %v23283_v20  ;;  %v19926_v5 = vcombine.high %v23309_v0, %v23309_v0  ;;  %v23338_v46 = vld [vmem:[#allocation26_spill] sm:$0xff]  ;;  %v23339_v41 = vld [vmem:[#allocation19_spill] sm:$0xff] }
 0x3cd   :  { %v5675_v10 = vrot.slane %v5647_v30, %v16632_v16  ;;  %v5676_v54 = vcombine.low %v5654_v9, %v19790_v6  ;;  %8845 = vmatmul.mubr.bf16.gmra.mrb[12].mxu1 %v8423_v8  ;;  %v2740_v57 = vcombine.low %v23282_v26, %v2738_v19  ;;  %v2359_v17 = vunpack.i.h.s16 %v23309_v0  ;;  %v23337_v30 = vld [vmem:[#allocation17_spill] sm:$0xff]  ;;  %v19939_v58 = vpop.permute.xlu0 %7363  ;;  %v19941_v26 = vpop.permute.xlu1 %5770 }
 0x3ce   :  { %v5948_v56 = vrot.slane %v5934_v49, %v16632_v16  ;;  %23336 = vst [vmem:[#allocation61_spill] sm:$0xff] %v19926_v5  ;;  %v2747_v23 = vrot.slane %v2739_v24, %v16632_v16  ;;  %v22727_v61 = vunpack.i.h.s16 %v19786_v22  ;;  %v2363_v20 = vunpack.i.h.s16 %v19926_v5 }
 0x3cf   :  { %v5677_v6 = vcombine.low %v19797_v13, %v5675_v10  ;;  %v5684_v2 = vrot.slane %v5676_v54, %v16632_v16  ;;  %v2754_v35 = vrot.slane %v2740_v57, %v16632_v16  ;;  %v2367_v13 = vunpack.i.h.s16 %v23310_v33 }
 0x3d0   :  { %v5949_v62 = vcombine.low %v5941_v63, %v5948_v56  ;;  %v2369_v9 = vunpack.i.h.s16 %v23337_v30  ;;  %v2371_v42 = vunpack.i.h.s16 %v23338_v46  ;;  %v2373_v52 = vunpack.i.h.s16 %v23339_v41  ;;  %v23344_v56 = vld [vmem:[#allocation127_spill] sm:$0xff] }
 0x3d1   :  { %v5691_v28 = vrot.slane %v5677_v6, %v16632_v16  ;;  %v19948_v49 = vpack.i.b16 %v23309_v0, %v2357_v39  ;;  %v2755_v10 = vcombine.low %v2747_v23, %v2754_v35  ;;  %v19951_v54 = vpack.i.b16 %v19786_v22, %v2359_v17  ;;  %v23345_v6 = vld [vmem:[#allocation98_spill] sm:$0xff]  ;;  %v23346_v23 = vld [vmem:[#allocation43_spill] sm:$0xff] }
 0x3d2   :  { %v8475_v27 = vsel %vm8330_vm2, %v5949_v62, %v19485_v7  ;;  %v19956_v60 = vpack.i.b16 %v19926_v5, %v22727_v61  ;;  %v19959_v21 = vpack.i.b16 %v23337_v30, %v2367_v13  ;;  %v14905_v7 = vpack.i.b16 %v23338_v46, %v2369_v9  ;;  %v23350_v30 = vld [vmem:[#allocation100_spill] sm:$0xff]  ;;  %v23354_v61 = vld [vmem:[#allocation106_spill] sm:$0xff] }
 0x3d3   :  { %23340 = vst [vmem:[#allocation81_spill] sm:$0xff] %v19948_v49  ;;  %v5692_v63 = vcombine.low %v5684_v2, %v5691_v28  ;;  %23341 = vst [vmem:[#allocation138_spill] sm:$0xff] %v19951_v54  ;;  %v14906_v19 = vpack.i.b16 %v23339_v41, %v2371_v42  ;;  %v19964_v0 = vpack.i.b16 %v23344_v56, %v2373_v52  ;;  %v23347_v28 = vld [vmem:[#allocation47_spill] sm:$0xff]  ;;  %v19988_v42 = vpop.permute.xlu0 %7879  ;;  %v19990_v52 = vpop.permute.xlu1 %4144 }
 0x3d4   :  { %23342 = vst [vmem:[#allocation7_spill] sm:$0xff] %v19956_v60  ;;  %23343 = vst [vmem:[#allocation54_spill] sm:$0xff] %v19959_v21  ;;  %v8345_v39 = vsel %vm8330_vm2, %v2755_v10, %v19546_v59  ;;  %v4070_v8 = vcombine.low %v19948_v49, %v19951_v54  ;;  %v14941_v24 = vpack.i.b16 %v23310_v33, %v2363_v20  ;;  %v23349_v20 = vld [vmem:[#allocation101_spill] sm:$0xff] }
 0x3d5   :  { %5782 = vrot.lane.b32.xlu0 %v5692_v63, %s15994_s0  ;;  %v8518_v2 = vsel %vm8379_vm3, %v8475_v27, %v23345_v6  ;;  %v6716_v57 = vcombine.low %v19959_v21, %v14905_v7  ;;  %v6717_v17 = vcombine.low %v14906_v19, %v19964_v0  ;;  %v2806_v35 = vcombine.low %v23347_v28, %v23346_v23  ;;  %v23351_v27 = vld [vmem:[#allocation123_spill] sm:$0xff] }
 0x3d6   :  { %v8554_v62 = vsel %vm8412_vm4, %v8518_v2, %v19539_v4  ;;  %v19981_v59 = vrot.slane %v4070_v8, %v16632_v16  ;;  %v6715_v13 = vcombine.low %v19956_v60, %v14941_v24  ;;  %v5958_v9 = vcombine.low %v23350_v30, %v23349_v20  ;;  %v23352_v8 = vld [vmem:[#allocation24_spill] sm:$0xff]  ;;  %v23353_v23 = vld [vmem:[#allocation27_spill] sm:$0xff] }
 0x3d7   :  { %8852 = vmatprep.mubr.bf16.mxu1 %v8554_v62  ;;  %v2035_v46 = vcombine.high %v23351_v27, %v23351_v27  ;;  %v6731_v4 = vrot.slane %v6716_v57, %v16632_v16  ;;  %v6738_v63 = vrot.slane %v6717_v17, %v16632_v16  ;;  %v19995_v10 = vrot.slane %v2806_v35, %v16632_v16  ;;  %v23355_v35 = vld [vmem:[#allocation86_spill] sm:$0xff]  ;;  %v20025_v54 = vpop.permute.xlu1 %4146 }
 0x3d8   :  { %23348 = vst [vmem:[#allocation116_spill] sm:$0xff] %v19981_v59  ;;  %v2377_v24 = vunpack.i.h.s16 %v23352_v8  ;;  %v6724_v6 = vrot.slane %v6715_v13, %v16632_v16  ;;  %v5966_v2 = vrot.slane %v5958_v9, %v16632_v16  ;;  %v14949_v62 = vcombine.high %v23311_v45, %v23310_v33 }
 0x3d9   :  { %v7288_v28 = vcombine.low %v23353_v23, %v23351_v27  ;;  %v6740_v20 = vcombine.low %v6731_v4, %v6738_v63  ;;  %v5959_v57 = vcombine.low %v19995_v10, %v23354_v61  ;;  %v7289_v40 = vcombine.low %v23355_v35, %v2035_v46 }
 0x3da   :  { %v14945_v17 = vpack.i.b16 %v2377_v24, %v23344_v56  ;;  %v6739_v5 = vcombine.low %v19981_v59, %v6724_v6  ;;  %v7296_v13 = vrot.slane %v14949_v62, %v16632_v16  ;;  %v20013_v22 = vcombine.high %v23355_v35, %v23355_v35  ;;  %v20023_v59 = vpop.permute.xlu0 %7877 }
 0x3db   :  { %v7310_v9 = vrot.slane %v7288_v28, %v16632_v16  ;;  %v6754_v14 = vrot.slane %v6740_v20, %v16632_v16  ;;  %v5973_v4 = vrot.slane %v5959_v57, %v16632_v16  ;;  %v7317_v24 = vrot.slane %v7289_v40, %v16632_v16 }
 0x3dc   :  { %v7287_v63 = vcombine.low %v23339_v41, %v14945_v17  ;;  %v6747_v11 = vrot.slane %v6739_v5, %v16632_v16  ;;  %v2375_v6 = vunpack.i.h.s16 %v23344_v56  ;;  %v2381_v62 = vunpack.i.h.s16 %v23351_v27 }
 0x3dd   :  { %v2383_v28 = vunpack.i.h.s16 %v23355_v35  ;;  %v5974_v60 = vcombine.low %v5966_v2, %v5973_v4  ;;  %v7319_v57 = vcombine.low %v7310_v9, %v7317_v24  ;;  %v2385_v21 = vunpack.i.h.s16 %v2035_v46  ;;  %v23358_v24 = vld [vmem:[#allocation57_spill] sm:$0xff] }
 0x3de   :  { %v7303_v20 = vrot.slane %v7287_v63, %v16632_v16  ;;  %v6755_v41 = vcombine.low %v6747_v11, %v6754_v14  ;;  %v5696_v17 = vcombine.low %v14905_v7, %v14906_v19  ;;  %v14957_v40 = vpack.i.b16 %v23353_v23, %v2375_v6 }
 0x3df   :  { %v23356_v5 = vunpack.i.h.s16 %v23353_v23  ;;  %v8478_v49 = vsel %vm8330_vm2, %v5974_v60, %v19579_v34  ;;  %v7333_v43 = vrot.slane %v7319_v57, %v16632_v16  ;;  %v14959_v2 = vpack.i.b16 %v23355_v35, %v2381_v62  ;;  %v23357_v23 = vld [vmem:[#allocation63_spill] sm:$0xff] }
 0x3e0   :  { %v7318_v33 = vcombine.low %v7296_v13, %v7303_v20  ;;  %6798 = vrot.lane.b32.xlu0 %v6755_v41, %s15997_s1  ;;  %v8520_v11 = vsel %vm8379_vm3, %v8478_v49, %v19625_v38  ;;  %v20040_v14 = vrot.slane %v5696_v17, %v16632_v16  ;;  %v14960_v7 = vpack.i.b16 %v2035_v46, %v2383_v28  ;;  %v20052_v46 = vpop.permute.xlu0 %6786  ;;  %v23361_v20 = vld [vmem:[#allocation60_spill] sm:$0xff] }
 0x3e1   :  { %v14958_v56 = vpack.i.b16 %v23351_v27, %v23356_v5  ;;  %v14961_v19 = vpack.i.b16 %v20013_v22, %v2385_v21  ;;  %v7808_v34 = vcombine.low %v19964_v0, %v14957_v40  ;;  %v8389_v13 = vsel %vm8379_vm3, %v8345_v39, %v23357_v23  ;;  %v20054_v21 = vpop.permute.xlu1 %4962  ;;  %v23363_v5 = vld [vmem:[#allocation56_spill] sm:$0xff] }
 0x3e2   :  { %v7326_v27 = vrot.slane %v7318_v33, %v16632_v16  ;;  %v8426_v9 = vsel %vm8412_vm4, %v8389_v13, %v19633_v51  ;;  %v2758_v38 = vcombine.low %v23324_v32, %v23330_v47  ;;  %v14942_v49 = vpack.i.b16 %v23352_v8, %v2375_v6  ;;  %v23359_v6 = vld [vmem:[#allocation58_spill] sm:$0xff] }
 0x3e3   :  { %v7809_v60 = vcombine.low %v14958_v56, %v14959_v2  ;;  %v7810_v35 = vcombine.low %v14960_v7, %v14961_v19  ;;  %v7817_v4 = vrot.slane %v7808_v34, %v16632_v16  ;;  %8853 = vmatmul.mubr.bf16.gmra.mrb[16].mxu1 %v8426_v9  ;;  %v7341_v39 = vrot.slane %v20013_v22, %v16632_v16  ;;  %v23364_v7 = vld [vmem:[#allocation103_spill] sm:$0xff]  ;;  %v23366_v34 = vld [vmem:[#allocation44_spill] sm:$0xff]  ;;  %v23367_v9 = vld [vmem:[#allocation53_spill] sm:$0xff] }
 0x3e4   :  { %v7334_v33 = vcombine.low %v7326_v27, %v7333_v43  ;;  %v2780_v63 = vrot.slane %v2758_v38, %v16632_v16  ;;  %v6762_v32 = vrot.slane %v14942_v49, %v16632_v16  ;;  %v8557_v47 = vsel %vm8412_vm4, %v8520_v11, %v19723_v36  ;;  %v23362_v36 = vld [vmem:[#allocation49_spill] sm:$0xff]  ;;  %v23368_v38 = vld [vmem:[#allocation75_spill] sm:$0xff] }
 0x3e5   :  { %v7824_v56 = vrot.slane %v7809_v60, %v16632_v16  ;;  %v7831_v51 = vrot.slane %v7810_v35, %v16632_v16  ;;  %v7832_v43 = vcombine.low %v20040_v14, %v7817_v4  ;;  %v20068_v8 = vrot.slane %v7341_v39, %v16632_v16  ;;  %8860 = vmatprep.mubr.bf16.mxu1 %v8557_v47  ;;  %v23365_v27 = vld [vmem:[#allocation69_spill] sm:$0xff]  ;;  %v20091_v4 = vpop.permute.xlu1 %4960 }
 0x3e6   :  { %7377 = vrot.lane.b32.xlu0 %v7334_v33, %s15995_s2  ;;  %v23360_v62 = vunpack.i.h.s16 %v23359_v6  ;;  %v2221_v57 = vunpack.i.h.s16 %v23361_v20  ;;  %v2789_v17 = vcombine.low %v2780_v63, %v23350_v30  ;;  %v6769_v40 = vrot.slane %v6762_v32, %v16632_v16  ;;  %v20089_v33 = vpop.permute.xlu0 %7367  ;;  %v23369_v63 = vld [vmem:[#allocation50_spill] sm:$0xff]  ;;  %v23370_v32 = vld [vmem:[#allocation111_spill] sm:$0xff] }
 0x3e7   :  { %v7833_v41 = vcombine.low %v7824_v56, %v7831_v51  ;;  %v5976_v2 = vcombine.low %v23363_v5, %v23362_v36  ;;  %v7840_v11 = vrot.slane %v7832_v43, %v16632_v16  ;;  %v2805_v60 = vcombine.low %v23366_v34, %v23365_v27  ;;  %v23374_v36 = vld [vmem:[#allocation104_spill] sm:$0xff]  ;;  %v23375_v27 = vld [vmem:[#allocation74_spill] sm:$0xff] }
 0x3e8   :  { %v14912_v28 = vpack.i.b16 %v23360_v62, %v23358_v24  ;;  %v2808_v23 = vcombine.low %v23364_v7, %v23359_v6  ;;  %v2803_v35 = vrot.slane %v2789_v17, %v16632_v16  ;;  %v2905_v49 = vcombine.low %v23368_v38, %v23367_v9  ;;  %v23372_v6 = vld [vmem:[#allocation5_spill] sm:$0xff] }
 0x3e9   :  { %v7847_v13 = vrot.slane %v7833_v41, %v16632_v16  ;;  %v5990_v30 = vrot.slane %v5976_v2, %v16632_v16  ;;  %v2815_v39 = vrot.slane %v2805_v60, %v16632_v16  ;;  %v23371_v47 = vunpack.i.h.s16 %v23370_v32 }
 0x3ea   :  { %v5975_v19 = vcombine.low %v23364_v7, %v14912_v28  ;;  %v2836_v51 = vrot.slane %v2808_v23, %v16632_v16  ;;  %v2804_v62 = vcombine.low %v23372_v6, %v2803_v35  ;;  %v23373_v28 = vld [vmem:[#allocation105_spill] sm:$0xff]  ;;  %v2927_v17 = vrot.slane %v2905_v49, %v16632_v16 }
 0x3eb   :  { %v14913_v43 = vpack.i.b16 %v23371_v47, %v23369_v63  ;;  %v7848_v24 = vcombine.low %v7840_v11, %v7847_v13  ;;  %v5992_v41 = vcombine.low %v23373_v28, %v5990_v30  ;;  %v2837_v7 = vcombine.low %v2815_v39, %v19995_v10  ;;  %v23376_v23 = vld [vmem:[#allocation113_spill] sm:$0xff]  ;;  %v23377_v13 = vld [vmem:[#allocation112_spill] sm:$0xff]  ;;  %v23378_v39 = vld [vmem:[#allocation62_spill] sm:$0xff]  ;;  %v20123_v63 = vpop.permute.xlu0 %5774 }
 0x3ec   :  { %v5983_v56 = vrot.slane %v5975_v19, %v16632_v16  ;;  %v2838_v19 = vcombine.low %v23354_v61, %v2836_v51  ;;  %v8348_v60 = vsel %vm8330_vm2, %v2804_v62, %v19684_v48  ;;  %v6032_v35 = vcombine.low %v23377_v13, %v23376_v23  ;;  %v23381_v28 = vld [vmem:[#allocation84_spill] sm:$0xff]  ;;  %v23385_v13 = vld [vmem:[#allocation91_spill] sm:$0xff] }
 0x3ed   :  { %v6010_v34 = vcombine.low %v14913_v43, %v23375_v27  ;;  %7891 = vrot.lane.b32.xlu0 %v7848_v24, %s15994_s0  ;;  %v6006_v11 = vrot.slane %v5992_v41, %v16632_v16  ;;  %v14717_v30 = vpack.i.b16 %v2221_v57, %v23363_v5  ;;  %v8391_v9 = vsel %vm8379_vm3, %v8348_v60, %v19585_v3  ;;  %v20125_v57 = vpop.permute.xlu1 %5772  ;;  %v23379_v43 = vld [vmem:[#allocation85_spill] sm:$0xff]  ;;  %v23380_v24 = vld [vmem:[#allocation110_spill] sm:$0xff] }
 0x3ee   :  { %v5991_v2 = vcombine.low %v5983_v56, %v23374_v36  ;;  %v2845_v61 = vrot.slane %v2837_v7, %v16632_v16  ;;  %v2852_v38 = vrot.slane %v2838_v19, %v16632_v16  ;;  %v8429_v49 = vsel %vm8412_vm4, %v8391_v9, %v19725_v44  ;;  %v23382_v41 = vld [vmem:[#allocation82_spill] sm:$0xff] }
 0x3ef   :  { %v6031_v48 = vrot.slane %v6010_v34, %v16632_v16  ;;  %v6040_v56 = vrot.slane %v6032_v35, %v16632_v16  ;;  %v2856_v51 = vcombine.low %v14717_v30, %v23378_v39  ;;  %8861 = vmatmul.mubr.bf16.gmra.mrb[20].mxu1 %v8429_v49  ;;  %v14729_v47 = vcombine.high %v23361_v20, %v23378_v39  ;;  %v23383_v34 = vld [vmem:[#allocation48_spill] sm:$0xff] }
 0x3f0   :  { %v5999_v10 = vrot.slane %v5991_v2, %v16632_v16  ;;  %v2853_v5 = vcombine.low %v2845_v61, %v2852_v38  ;;  %v14718_v6 = vpack.i.b16 %v23380_v24, %v23379_v43  ;;  %v2903_v36 = vcombine.low %v23382_v41, %v23381_v28  ;;  %v23387_v38 = vld [vmem:[#allocation87_spill] sm:$0xff] }
 0x3f1   :  { %6800 = vrot.lane.b32.xlu0 %v6769_v40, %s15997_s1  ;;  %v6033_v44 = vcombine.low %v6031_v48, %v2927_v17  ;;  %v2878_v62 = vrot.slane %v2856_v51, %v16632_v16  ;;  %v2904_v2 = vcombine.low %v23370_v32, %v23375_v27  ;;  %v2885_v19 = vrot.slane %v14729_v47, %v16632_v16  ;;  %v23384_v40 = vld [vmem:[#allocation28_spill] sm:$0xff]  ;;  %v6789_v48 = vpop.permute.xlu0 %6788  ;;  %v663_v39 = vpop.permute.xlu1 %662  ;;  %v23392_v28 = vld [vmem:[#allocation79_spill] sm:$0xff] }
 0x3f2   :  { %v6007_v3 = vcombine.low %v5999_v10, %v6006_v11  ;;  %v8351_v20 = vsel %vm8330_vm2, %v2853_v5, %v19827_v12  ;;  %v2906_v60 = vcombine.low %v23383_v34, %v14718_v6  ;;  %v2913_v32 = vrot.slane %v2903_v36, %v16632_v16  ;;  %v23386_v27 = vld [vmem:[#allocation64_spill] sm:$0xff]  ;;  %v23388_v5 = vld [vmem:[#allocation107_spill] sm:$0xff] }
 0x3f3   :  { %v6047_v23 = vrot.slane %v6033_v44, %v16632_v16  ;;  %v8393_v35 = vsel %vm8379_vm3, %v8351_v20, %v23385_v13  ;;  %v2887_v30 = vcombine.low %v2878_v62, %v2885_v19  ;;  %v2920_v9 = vrot.slane %v2904_v2, %v16632_v16  ;;  %v23391_v62 = vld [vmem:[#allocation128_spill] sm:$0xff]  ;;  %v23394_v19 = vld [vmem:[#allocation51_spill] sm:$0xff] }
 0x3f4   :  { %v8481_v7 = vsel %vm8330_vm2, %v6007_v3, %v19767_v55  ;;  %v8432_v12 = vsel %vm8412_vm4, %v8393_v35, %v19866_v50  ;;  %v2934_v61 = vrot.slane %v2906_v60, %v16632_v16  ;;  %v14730_v49 = vcombine.high %v23379_v43, %v23387_v38  ;;  %v23389_v50 = vld [vmem:[#allocation78_spill] sm:$0xff]  ;;  %v23393_v2 = vld [vmem:[#allocation108_spill] sm:$0xff] }
 0x3f5   :  { %v8522_v11 = vsel %vm8379_vm3, %v8481_v7, %v23384_v40  ;;  %7379 = vrot.lane.b32.xlu0 %v20068_v8, %s15995_s2  ;;  %v6048_v10 = vcombine.low %v6040_v56, %v6047_v23  ;;  %v2901_v51 = vrot.slane %v2887_v30, %v16632_v16  ;;  %v2935_v3 = vcombine.low %v2913_v32, %v2920_v9  ;;  %v23396_v23 = vld [vmem:[#allocation129_spill] sm:$0xff]  ;;  %v23397_v35 = vld [vmem:[#allocation14_spill] sm:$0xff] }
 0x3f6   :  { %v8560_v55 = vsel %vm8412_vm4, %v8522_v11, %v23386_v27  ;;  %v23390_v47 = vunpack.i.h.s16 %v23389_v50  ;;  %v6049_v6 = vcombine.low %v23383_v34, %v23379_v43  ;;  %v2936_v56 = vcombine.low %v2927_v17, %v2934_v61  ;;  %v23395_v11 = vld [vmem:[#allocation130_spill] sm:$0xff]  ;;  %v4149_v61 = vpop.permute.xlu1 %4148 }
 0x3f7   :  { %8868 = vmatprep.mubr.bf16.mxu1 %v8560_v55  ;;  %v8484_v8 = vsel %vm8330_vm2, %v6048_v10, %v19868_v25  ;;  %v2962_v44 = vrot.slane %v14730_v49, %v16632_v16  ;;  %v6082_v41 = vcombine.low %v23392_v28, %v23391_v62  ;;  %v2902_v7 = vcombine.low %v23393_v2, %v2901_v51  ;;  %v23399_v30 = vld [vmem:[#allocation134_spill] sm:$0xff]  ;;  %v7882_v10 = vpop.permute.xlu0 %7881 }
 0x3f8   :  { %v14914_v24 = vpack.i.b16 %v23390_v47, %v23388_v5  ;;  %8869 = vmatmul.mubr.bf16.gmra.mrb[24].mxu1 %v8432_v12  ;;  %v8524_v36 = vsel %vm8379_vm3, %v8484_v8, %v19939_v58  ;;  %v2943_v20 = vrot.slane %v2935_v3, %v16632_v16  ;;  %v2950_v43 = vrot.slane %v2936_v56, %v16632_v16  ;;  %v23400_v38 = vld [vmem:[#allocation126_spill] sm:$0xff]  ;;  %v23401_v8 = vld [vmem:[#allocation20_spill] sm:$0xff] }
 0x3f9   :  { %v8563_v25 = vsel %vm8412_vm4, %v8524_v36, %v20023_v59  ;;  %v6057_v17 = vrot.slane %v6049_v6, %v16632_v16  ;;  %v6089_v34 = vrot.slane %v6082_v41, %v16632_v16  ;;  %v8354_v40 = vsel %vm8330_vm2, %v2902_v7, %v19990_v52  ;;  %v23402_v7 = vld [vmem:[#allocation40_spill] sm:$0xff] }
 0x3fa   :  { %v6050_v60 = vcombine.low %v23394_v19, %v14914_v24  ;;  %8876 = vmatprep.mubr.bf16.mxu1 %v8563_v25  ;;  %v6090_v13 = vcombine.low %v23396_v23, %v23395_v11  ;;  %v23398_v32 = vmax.f32 %v23397_v35, 0.0  ;;  %v2951_v55 = vcombine.low %v2943_v20, %v2950_v43  ;;  %v23404_v43 = vld [vmem:[#allocation29_spill] sm:$0xff] }
 0x3fb   :  { %v8395_v59 = vsel %vm8379_vm3, %v8354_v40, %v19908_v15  ;;  %v6065_v12 = vcombine.low %v6057_v17, %v2962_v44  ;;  %v6091_v9 = vcombine.low %v6089_v34, %v23399_v30  ;;  %v2984_v47 = vcombine.low %v2962_v44, %v23400_v38  ;;  %v23405_v17 = vld [vmem:[#allocation31_spill] sm:$0xff]  ;;  %v23406_v34 = vld [vmem:[#allocation33_spill] sm:$0xff] }
 0x3fc   :  { %v6064_v58 = vrot.slane %v6050_v60, %v16632_v16  ;;  %v20187_v27 = vmax.f32 %v23398_v32, %v663_v39  ;;  %v8435_v52 = vsel %vm8412_vm4, %v8395_v59, %v19941_v26  ;;  %v6098_v51 = vrot.slane %v6090_v13, %v16632_v16  ;;  %v20219_v60 = vpop.permute.xlu0 %4964  ;;  %v23408_v59 = vld [vmem:[#allocation73_spill] sm:$0xff] }
 0x3fd   :  { %v2954_v39 = vcombine.low %v23394_v19, %v23389_v50  ;;  %v8357_v15 = vsel %vm8330_vm2, %v2951_v55, %v20025_v54  ;;  %v6073_v3 = vrot.slane %v6065_v12, %v16632_v16  ;;  %v6105_v5 = vrot.slane %v6091_v9, %v16632_v16  ;;  %v23409_v9 = vld [vmem:[#allocation115_spill] sm:$0xff] }
 0x3fe   :  { %v6066_v49 = vcombine.low %v23400_v38, %v6064_v58  ;;  %877 = vrot.lane.b32.xlu1 %v20187_v27, %s15995_s2  ;;  %v8397_v24 = vsel %vm8379_vm3, %v8357_v15, %v20091_v4  ;;  %v2349_v56 = vunpack.i.h.s16 %v23401_v8  ;;  %v2337_v54 = vunpack.i.h.s16 %v23194_v37  ;;  %v23403_v4 = vld [vmem:[#allocation71_spill] sm:$0xff]  ;;  %v6791_v58 = vpop.permute.xlu1 %6790  ;;  %v23410_v38 = vld [vmem:[#allocation132_spill] sm:$0xff] }
 0x3ff   :  { %v2976_v6 = vrot.slane %v2954_v39, %v16632_v16  ;;  %v8438_v50 = vsel %vm8412_vm4, %v8397_v24, %v20125_v57  ;;  %v6106_v28 = vcombine.low %v6098_v51, %v6105_v5  ;;  %v2355_v41 = vunpack.i.h.s16 %v23307_v31  ;;  %v23411_v51 = vld [vmem:[#allocation140_spill] sm:$0xff] }
 0x400   :  { %v6080_v26 = vrot.slane %v6066_v49, %v16632_v16  ;;  %8877 = vmatmul.mubr.bf16.gmra.mrb[28].mxu1 %v8435_v52  ;;  %v2992_v2 = vrot.slane %v2984_v47, %v16632_v16  ;;  %v4067_v20 = vcombine.low %v23403_v4, %v23402_v7  ;;  %v14939_v25 = vpack.i.b16 %v23404_v43, %v2337_v54  ;;  %v23412_v39 = vld [vmem:[#allocation136_spill] sm:$0xff]  ;;  %v23413_v54 = vld [vmem:[#allocation25_spill] sm:$0xff] }
 0x401   :  { %v2985_v44 = vcombine.low %v2976_v6, %v23396_v23  ;;  %v8490_v19 = vsel %vm8330_vm2, %v6106_v28, %v6789_v48  ;;  %v14852_v57 = vpack.i.b16 %v23302_v1, %v2355_v41  ;;  %v23407_v31 = vunpack.i.h.s16 %v23406_v34  ;;  %v20256_v28 = vpop.permute.xlu0 %4966 }
 0x402   :  { %v6081_v36 = vcombine.low %v6073_v3, %v6080_v26  ;;  %v8528_v35 = vsel %vm8379_vm3, %v8490_v19, %v20089_v33  ;;  %v14940_v48 = vpack.i.b16 %v23304_v29, %v2349_v56  ;;  %v20236_v55 = vrot.slane %v4067_v20, %v16632_v16  ;;  %v23416_v20 = vld [vmem:[#allocation81_spill] sm:$0xff] }
 0x403   :  { %v14915_v40 = vpack.i.b16 %v23407_v31, %v23405_v17  ;;  %v2999_v13 = vrot.slane %v2985_v44, %v16632_v16  ;;  %v4069_v32 = vcombine.low %v19881_v53, %v14852_v57  ;;  %v6682_v12 = vcombine.low %v14939_v25, %v23408_v59  ;;  %v23417_v17 = vld [vmem:[#allocation54_spill] sm:$0xff] }
 0x404   :  { %v8487_v23 = vsel %vm8330_vm2, %v6081_v36, %v20052_v46  ;;  %v6683_v52 = vcombine.low %v23409_v9, %v14940_v48  ;;  %v6124_v15 = vcombine.low %v23412_v39, %v23411_v51  ;;  %v2365_v3 = vunpack.i.h.s16 %v23311_v45  ;;  %v23414_v36 = vld [vmem:[#allocation59_spill] sm:$0xff]  ;;  %v23421_v59 = vld [vmem:[#allocation30_spill] sm:$0xff] }
 0x405   :  { %v8526_v1 = vsel %vm8379_vm3, %v8487_v23, %v19906_v18  ;;  %v3000_v30 = vcombine.low %v2992_v2, %v2999_v13  ;;  %v6107_v33 = vcombine.low %v14915_v40, %v23410_v38  ;;  %v20244_v49 = vrot.slane %v4069_v32, %v16632_v16  ;;  %v7370_v2 = vpop.permute.xlu1 %7369  ;;  %v23418_v40 = vld [vmem:[#allocation7_spill] sm:$0xff]  ;;  %v23419_v23 = vld [vmem:[#allocation138_spill] sm:$0xff]  ;;  %v4151_v51 = vpop.permute.xlu0 %4150 }
 0x406   :  { %v8566_v46 = vsel %vm8412_vm4, %v8526_v1, %v19988_v42  ;;  %v6690_v18 = vrot.slane %v6682_v12, %v16632_v16  ;;  %v8569_v42 = vsel %vm8412_vm4, %v8528_v35, %v7882_v10  ;;  %v6697_v47 = vrot.slane %v6683_v52, %v16632_v16 }
 0x407   :  { %8884 = vmatprep.mubr.bf16.mxu1 %v8566_v46  ;;  %v8360_v5 = vsel %vm8330_vm2, %v3000_v30, %v4149_v61  ;;  %v6115_v26 = vrot.slane %v6107_v33, %v16632_v16  ;;  %v6138_v6 = vrot.slane %v6124_v15, %v16632_v16  ;;  %v14850_v41 = vpack.i.b16 %v23413_v54, %v2349_v56  ;;  %v23415_v61 = vld [vmem:[#allocation135_spill] sm:$0xff]  ;;  %v23424_v54 = vld [vmem:[#allocation116_spill] sm:$0xff] }
 0x408   :  { %v6698_v24 = vcombine.low %v6690_v18, %v20236_v55  ;;  %v14903_v44 = vpack.i.b16 %v23414_v36, %v2365_v3  ;;  %8885 = vmatmul.mubr.bf16.gmra.mrb[32].mxu1 %v8438_v50  ;;  %v6699_v10 = vcombine.low %v6697_v47, %v20244_v49  ;;  %v8399_v4 = vsel %vm8379_vm3, %v8360_v5, %v20054_v21  ;;  %v23420_v21 = vld [vmem:[#allocation109_spill] sm:$0xff] }
 0x409   :  { %v6123_v7 = vcombine.low %v23415_v61, %v6115_v26  ;;  %v5693_v19 = vcombine.low %v14852_v57, %v23416_v20  ;;  %8892 = vmatprep.mubr.bf16.mxu1 %v8569_v42  ;;  %v7775_v31 = vcombine.low %v14850_v41, %v19881_v53  ;;  %v7776_v13 = vcombine.low %v23419_v23, %v23418_v40  ;;  %v7884_v5 = vpop.permute.xlu1 %7883 }
 0x40a   :  { %v6706_v25 = vrot.slane %v6698_v24, %v16632_v16  ;;  %v5695_v56 = vcombine.low %v14903_v44, %v23417_v17  ;;  %v6713_v50 = vrot.slane %v6699_v10, %v16632_v16  ;;  %v3002_v57 = vcombine.low %v23420_v21, %v23391_v62  ;;  %v23422_v24 = vld [vmem:[#allocation22_spill] sm:$0xff]  ;;  %v23431_v21 = vld [vmem:[#allocation39_spill] sm:$0xff] }
 0x40b   :  { %v6131_v35 = vrot.slane %v6123_v7, %v16632_v16  ;;  %v20275_v48 = vrot.slane %v5693_v19, %v16632_v16  ;;  %v7783_v32 = vrot.slane %v7775_v31, %v16632_v16  ;;  %v7790_v53 = vrot.slane %v7776_v13, %v16632_v16  ;;  %v23425_v7 = vld [vmem:[#allocation68_spill] sm:$0xff]  ;;  %v23426_v19 = vld [vmem:[#allocation95_spill] sm:$0xff] }
 0x40c   :  { %v20280_v1 = vrot.slane %v5695_v56, %v16632_v16  ;;  %v4882_v12 = vcombine.low %v23401_v8, %v23421_v59  ;;  %v6714_v46 = vcombine.low %v6706_v25, %v6713_v50  ;;  %v8441_v52 = vsel %vm8412_vm4, %v8399_v4, %v20123_v63  ;;  %v23423_v63 = vld [vmem:[#allocation89_spill] sm:$0xff]  ;;  %v23429_v13 = vld [vmem:[#allocation96_spill] sm:$0xff]  ;;  %v23430_v50 = vld [vmem:[#allocation94_spill] sm:$0xff]  ;;  %v5777_v59 = vpop.permute.xlu0 %5776 }
 0x40d   :  { %v6139_v30 = vcombine.low %v6131_v35, %v6138_v6  ;;  %v3018_v33 = vrot.slane %v3002_v57, %v16632_v16  ;;  %v7791_v18 = vcombine.low %v7783_v32, %v20275_v48  ;;  %v4068_v42 = vcombine.low %v23409_v9, %v14850_v41  ;;  %v23427_v25 = vld [vmem:[#allocation97_spill] sm:$0xff] }
 0x40e   :  { %v7792_v62 = vcombine.low %v7790_v53, %v20280_v1  ;;  %v4898_v15 = vrot.slane %v4882_v12, %v16632_v16  ;;  %6796 = vrot.lane.b32.xlu1 %v6714_v46, %s15997_s1  ;;  %v4914_v6 = vcombine.low %v23423_v63, %v23422_v24  ;;  %v4100_v36 = vcombine.low %v20244_v49, %v23424_v54  ;;  %v7372_v46 = vpop.permute.xlu1 %7371 }
 0x40f   :  { %v8493_v47 = vsel %vm8330_vm2, %v6139_v30, %v6791_v58  ;;  %v3033_v26 = vcombine.low %v23395_v11, %v3018_v33  ;;  %v7799_v44 = vrot.slane %v7791_v18, %v16632_v16  ;;  %v4084_v11 = vrot.slane %v4068_v42, %v16632_v16 }
 0x410   :  { %v7806_v10 = vrot.slane %v7792_v62, %v16632_v16  ;;  %v8530_v61 = vsel %vm8379_vm3, %v8493_v47, %v7370_v2  ;;  %v4913_v9 = vcombine.low %v23425_v7, %v4898_v15  ;;  %8893 = vmatmul.mubr.bf16.gmra.mrb[36].mxu1 %v8441_v52  ;;  %v3050_v49 = vcombine.low %v23406_v34, %v23410_v38  ;;  %v23428_v2 = vld [vmem:[#allocation141_spill] sm:$0xff]  ;;  %v23433_v15 = vld [vmem:[#allocation120_spill] sm:$0xff] }
 0x411   :  { %v3041_v41 = vrot.slane %v3033_v26, %v16632_v16  ;;  %v8572_v58 = vsel %vm8412_vm4, %v8530_v61, %v7884_v5  ;;  %v3052_v17 = vcombine.low %v23427_v25, %v23426_v19  ;;  %v4099_v31 = vcombine.low %v20236_v55, %v4084_v11  ;;  %v23434_v5 = vld [vmem:[#allocation117_spill] sm:$0xff] }
 0x412   :  { %v7807_v4 = vcombine.low %v7799_v44, %v7806_v10  ;;  %v4921_v20 = vrot.slane %v4913_v9, %v16632_v16  ;;  %8900 = vmatprep.mubr.bf16.mxu1 %v8572_v58  ;;  %v3053_v35 = vcombine.low %v23430_v50, %v23429_v13  ;;  %v23432_v57 = vunpack.i.h.s16 %v23431_v21  ;;  %v23437_v10 = vld [vmem:[#allocation139_spill] sm:$0xff]  ;;  %v23439_v50 = vld [vmem:[#allocation61_spill] sm:$0xff] }
 0x413   :  { %v3049_v56 = vcombine.low %v3041_v41, %v23428_v2  ;;  %v4928_v53 = vrot.slane %v4914_v6, %v16632_v16  ;;  %v4114_v34 = vrot.slane %v4100_v36, %v16632_v16  ;;  %v3074_v38 = vrot.slane %v3052_v17, %v16632_v16  ;;  %v23436_v6 = vld [vmem:[#allocation119_spill] sm:$0xff]  ;;  %v6793_v41 = vpop.permute.xlu1 %6792 }
 0x414   :  { %v14902_v32 = vpack.i.b16 %v23311_v45, %v23432_v57  ;;  %7889 = vrot.lane.b32.xlu1 %v7807_v4, %s15994_s0  ;;  %v3060_v55 = vrot.slane %v3050_v49, %v16632_v16  ;;  %v3081_v30 = vrot.slane %v3053_v35, %v16632_v16  ;;  %v4107_v18 = vrot.slane %v4099_v31, %v16632_v16  ;;  %v23438_v58 = vld [vmem:[#allocation55_spill] sm:$0xff] }
 0x415   :  { %v8363_v12 = vsel %vm8330_vm2, %v3049_v56, %v4151_v51  ;;  %v4929_v33 = vcombine.low %v4921_v20, %v4928_v53  ;;  %v23435_v42 = vunpack.i.h.s16 %v23434_v5  ;;  %v4122_v49 = vrot.slane %v23418_v40, %v16632_v16 }
 0x416   :  { %v5694_v52 = vcombine.low %v23419_v23, %v14902_v32  ;;  %v8401_v62 = vsel %vm8379_vm3, %v8363_v12, %v20219_v60  ;;  %v3082_v51 = vcombine.low %v3060_v55, %v23412_v39  ;;  %v3083_v24 = vcombine.low %v3074_v38, %v3081_v30 }
 0x417   :  { %v14916_v47 = vpack.i.b16 %v23435_v42, %v23433_v15  ;;  %v8444_v26 = vsel %vm8412_vm4, %v8401_v62, %v5777_v59  ;;  %v5726_v23 = vcombine.low %v20280_v1, %v20040_v14  ;;  %v4115_v36 = vcombine.low %v4107_v18, %v4114_v34  ;;  %v4153_v14 = vpop.permute.xlu0 %4152  ;;  %v23440_v59 = vld [vmem:[#allocation12_spill] sm:$0xff]  ;;  %v23441_v34 = vld [vmem:[#allocation99_spill] sm:$0xff]  ;;  %v23442_v62 = vld [vmem:[#allocation142_spill] sm:$0xff] }
 0x418   :  { %v5710_v63 = vrot.slane %v5694_v52, %v16632_v16  ;;  %4972 = vrot.lane.b32.xlu1 %v4929_v33, %s15995_s2  ;;  %8901 = vmatmul.mubr.bf16.gmra.mrb[40].mxu1 %v8444_v26  ;;  %v6148_v61 = vcombine.low %v3081_v30, %v23437_v10  ;;  %v3090_v39 = vrot.slane %v3082_v51, %v16632_v16 }
 0x419   :  { %v6140_v54 = vcombine.low %v23436_v6, %v14916_v47  ;;  %v3097_v7 = vrot.slane %v3083_v24, %v16632_v16  ;;  %v5740_v1 = vrot.slane %v5726_v23, %v16632_v16  ;;  %v4129_v13 = vrot.slane %v4122_v49, %v16632_v16  ;;  %v23444_v47 = vld [vmem:[#allocation144_spill] sm:$0xff] }
 0x41a   :  { %v5725_v60 = vcombine.low %v20275_v48, %v5710_v63  ;;  %v6156_v4 = vrot.slane %v6148_v61, %v16632_v16  ;;  %v4936_v35 = vrot.slane %v23439_v50, %v16632_v16  ;;  %v6165_v38 = vcombine.low %v23441_v34, %v23440_v59 }
 0x41b   :  { %v6147_v44 = vrot.slane %v6140_v54, %v16632_v16  ;;  %v3098_v19 = vcombine.low %v3090_v39, %v3097_v7  ;;  %v7886_v2 = vpop.permute.xlu1 %7885  ;;  %v5779_v31 = vpop.permute.xlu0 %5778  ;;  %v3100_v55 = vcombine.low %v23436_v6, %v23434_v5  ;;  %v23443_v5 = vld [vmem:[#allocation8_spill] sm:$0xff]  ;;  %v23445_v6 = vld [vmem:[#allocation122_spill] sm:$0xff] }
 0x41c   :  { %v5733_v9 = vrot.slane %v5725_v60, %v16632_v16  ;;  %4158 = vrot.lane.b32.xlu1 %v4115_v36, %s15997_s1  ;;  %v4943_v12 = vrot.slane %v4936_v35, %v16632_v16  ;;  %v6172_v30 = vrot.slane %v6165_v38, %v16632_v16  ;;  %v6174_v26 = vcombine.low %v23444_v47, %v23443_v5  ;;  %v23449_v35 = vld [vmem:[#allocation137_spill] sm:$0xff] }
 0x41d   :  { %v6149_v11 = vcombine.low %v6147_v44, %v23438_v58  ;;  %v8366_v17 = vsel %vm8330_vm2, %v3098_v19, %v4153_v14 }
 0x41e   :  { %v5741_v48 = vcombine.low %v5733_v9, %v5740_v1  ;;  %v8403_v32 = vsel %vm8379_vm3, %v8366_v17, %v20256_v28  ;;  %v3116_v28 = vrot.slane %v3100_v55, %v16632_v16  ;;  %v6173_v15 = vcombine.low %v23442_v62, %v6172_v30 }
 0x41f   :  { %v6163_v20 = vrot.slane %v6149_v11, %v16632_v16  ;;  %v8447_v53 = vsel %vm8412_vm4, %v8403_v32, %v5779_v31  ;;  %v4969_v33 = vpop.permute.xlu0 %4968  ;;  %v6188_v23 = vrot.slane %v6174_v26, %v16632_v16 }
 0x420   :  { %5784 = vrot.lane.b32.xlu1 %v5741_v48, %s15994_s0  ;;  %v3131_v42 = vcombine.low %v23437_v10, %v3116_v28 }
 0x421   :  { %v6164_v25 = vcombine.low %v6156_v4, %v6163_v20  ;;  %v20402_v4 = vld [vmem:[%s22312_s4] ss:$0 sm:$0xff] }
 0x422   :  { %v3139_v24 = vrot.slane %v3131_v42, %v16632_v16  ;;  %v14918_v42 = vpack.i.b16 %v2365_v3, %v23439_v50  ;;  %v23452_v50 = vld [vmem:[#allocation114_spill] sm:$0xff] }
 0x423   :  { %v8496_v56 = vsel %vm8330_vm2, %v6164_v25, %v6793_v41  ;;  %v6795_v18 = vpop.permute.xlu1 %6794 }
 0x424   :  { %v8532_v57 = vsel %vm8379_vm3, %v8496_v56, %v7372_v46  ;;  %4160 = vrot.lane.b32.xlu1 %v4129_v13, %s15997_s1  ;;  %v5748_v46 = vrot.slane %v19964_v0, %v16632_v16  ;;  %v6181_v0 = vrot.slane %v6173_v15, %v16632_v16  ;;  %v4155_v51 = vpop.permute.xlu0 %4154  ;;  %v3147_v54 = vcombine.low %v3139_v24, %v23445_v6  ;;  %v23448_v56 = vld [vmem:[#allocation11_spill] sm:$0xff]  ;;  %v23450_v24 = vld [vmem:[#allocation41_spill] sm:$0xff] }
 0x425   :  { %v8575_v40 = vsel %vm8412_vm4, %v8532_v57, %v7886_v2  ;;  %v3151_v6 = vcombine.low %v23450_v24, %v23404_v43  ;;  %v6223_v45 = vcombine.low %v23431_v21, %v14918_v42  ;;  %v23458_v42 = vld [vmem:[#allocation131_spill] sm:$0xff] }
 0x426   :  { %8908 = vmatprep.mubr.bf16.mxu1 %v8575_v40  ;;  %v5755_v52 = vrot.slane %v5748_v46, %v16632_v16  ;;  %v6189_v60 = vcombine.low %v6181_v0, %v6188_v23  ;;  %v8369_v36 = vsel %vm8330_vm2, %v3147_v54, %v4155_v51  ;;  %v14734_v51 = vcombine.high %v23401_v8, %v23304_v29 }
 0x427   :  { %8909 = vmatmul.mubr.bf16.gmra.mrb[44].mxu1 %v8447_v53  ;;  %v8405_v9 = vsel %vm8379_vm3, %v8369_v36, %v4969_v33  ;;  %v2387_v29 = vunpack.i.h.s16 %v20013_v22  ;;  %v3179_v36 = vrot.slane %v3151_v6, %v16632_v16 }
 0x428   :  { %4974 = vrot.lane.b32.xlu1 %v4943_v12, %s15995_s2  ;;  %v8499_v44 = vsel %vm8330_vm2, %v6189_v60, %v6795_v18  ;;  %v3148_v60 = vcombine.low %v23452_v50, %v23440_v59 }
 0x429   :  { %v7374_v63 = vpop.permute.xlu1 %7373 }
 0x42a   :  { %v8534_v10 = vsel %vm8379_vm3, %v8499_v44, %v7374_v63  ;;  %v23451_v63 = vunpack.i.h.s16 %v23450_v24  ;;  %v3158_v22 = vrot.slane %v3148_v60, %v16632_v16 }
 0x42c   :  { %5786 = vrot.lane.b32.xlu1 %v5755_v52, %s15994_s0  ;;  %v14917_v23 = vpack.i.b16 %v23451_v63, %v23194_v37  ;;  %v20450_v37 = vrot.slane %v14734_v51, %v16632_v16  ;;  %v23459_v63 = vld [vmem:[#allocation9_spill] sm:$0xff] }
 0x42e   :  { %v5781_v61 = vpop.permute.xlu0 %5780  ;;  %v6190_v3 = vcombine.low %v14917_v23, %v23404_v43 }
 0x42f   :  { %v8450_v41 = vsel %vm8412_vm4, %v8405_v9, %v5781_v61 }
 0x430   :  { %v6198_v43 = vrot.slane %v6190_v3, %v16632_v16  ;;  %v23461_v3 = vld [vmem:[#allocation125_spill] sm:$0xff] }
 0x433   :  { %v20408_v38 = vpop.permute.xlu0 %4156 }
 0x434   :  { %v7888_v39 = vpop.permute.xlu1 %7887 }
 0x435   :  { %v8578_v7 = vsel %vm8412_vm4, %v8534_v10, %v7888_v39  ;;  %v6232_v39 = vrot.slane %v6223_v45, %v16632_v16  ;;  %v23460_v45 = vld [vmem:[#allocation80_spill] sm:$0xff] }
 0x436   :  { %8916 = vmatprep.mubr.bf16.mxu1 %v8578_v7  ;;  %v23453_v7 = vld [vmem:[#allocation21_spill] sm:$0xff]  ;;  %v3198_v50 = vcombine.low %v23461_v3, %v23460_v45 }
 0x437   :  { %8917 = vmatmul.mubr.bf16.gmra.mrb[48].mxu1 %v8450_v41  ;;  %v6207_v59 = vcombine.low %v23453_v7, %v20450_v37 }
 0x438   :  { %v3214_v7 = vrot.slane %v3198_v50, %v16632_v16 }
 0x439   :  { %v20411_v55 = vpop.permute.xlu1 %7375 }
 0x43e   :  { %v20419_v52 = vpop.permute.xlu0 %4970 }
 0x447   :  { %v20391_v14 = vpop.f32.mrb[68].mxu0  ;;  %v20440_v54 = vpop.permute.xlu0 %5782 }
 0x448   :  { %23446 = vst [vmem:[#allocation65_spill] sm:$0xff] %v20391_v14  ;;  %v20393_v1 = vpop.f32.mrb[69].mxu0 }
 0x449   :  { %v20395_v58 = vpop.f32.mrb[70].mxu0 }
 0x44a   :  { %23447 = vst [vmem:[#allocation143_spill] sm:$0xff] %v20395_v58  ;;  %v20397_v11 = vpop.f32.mrb[71].mxu0 }
 0x452   :  { %v6799_v41 = vpop.permute.xlu0 %6798 }
 0x453   :  { %v15221_v48 = vpop.f32.mrb[0].mxu1 }
 0x454   :  { %v15222_v20 = vpop.f32.mrb[1].mxu1 }
 0x455   :  { %v15223_v49 = vadd.f32 %v15222_v20, %v15221_v48  ;;  %v15224_v19 = vpop.f32.mrb[2].mxu1 }
 0x456   :  { %v15225_v25 = vpop.f32.mrb[3].mxu1 }
 0x457   :  { %v8823_v17 = vadd.f32 %v15223_v49, %v20402_v4  ;;  %v15226_v2 = vadd.f32 %v15225_v25, %v15224_v19  ;;  %v23454_v49 = vld [vmem:[#allocation18_spill] sm:$0xff] }
 0x458   :  { %v6206_v19 = vcombine.low %v6198_v43, %v23454_v49  ;;  %v7378_v24 = vpop.permute.xlu0 %7377 }
 0x459   :  { %v8982_v31 = vadd.f32 %v23448_v56, %v8823_v17  ;;  %v8826_v13 = vadd.f32 %v15226_v2, %v20402_v4  ;;  %v3181_v56 = vcombine.low %v23443_v5, %v3179_v36 }
 0x45b   :  { %v8985_v57 = vadd.f32 %v23449_v35, %v8826_v13  ;;  %v9106_v40 = vmax.f32 %v8982_v31, 0.0  ;;  %v23455_v35 = vld [vmem:[#allocation23_spill] sm:$0xff]  ;;  %v3195_v51 = vrot.slane %v3181_v56, %v16632_v16 }
 0x45d   :  { %v9107_v32 = vmax.f32 %v8985_v57, 0.0  ;;  %v6247_v57 = vcombine.low %v23455_v35, %v6232_v39 }
 0x45f   :  { %v9136_v53 = vpack.c.bf16 %v9107_v32, %v9106_v40  ;;  %v15005_v34 = vpack.c.bf16 %v9107_v32, %v9107_v32  ;;  %v6221_v40 = vrot.slane %v6207_v59, %v16632_v16 }
 0x461   :  { %v9180_v12 = vrot.slane %v15005_v34, %v16632_v16  ;;  %v3180_v34 = vcombine.low %v3158_v22, %v23444_v47  ;;  %v6255_v47 = vrot.slane %v6247_v57, %v16632_v16 }
 0x463   :  { %v9182_v46 = vcombine.high %v9180_v12, %v9180_v12  ;;  %v20414_v30 = vrot.slane %v9180_v12, %v16632_v16  ;;  %v3188_v60 = vrot.slane %v3180_v34, %v16632_v16 }
 0x465   :  { %v20417_v28 = vrot.slane %v9182_v46, %v16632_v16  ;;  %v20423_v18 = vcombine.high %v20414_v30, %v20414_v30  ;;  %v23456_v46 = vld [vmem:[#allocation133_spill] sm:$0xff] }
 0x467   :  { %v9860_v62 = vunpack.i.h.s16 %v20417_v28  ;;  %v9214_v43 = vcombine.high %v20417_v28, %v20417_v28 }
 0x469   :  { %v20431_v26 = vpack.i.b16 %v20423_v18, %v9860_v62  ;;  %v9173_v62 = vrot.slane %v9136_v53, %v16632_v16 }
 0x46b   :  { %v9181_v36 = vcombine.high %v9173_v62, %v9173_v62  ;;  %v9189_v22 = vrot.slane %v9173_v62, %v16632_v16 }
 0x46d   :  { %v9203_v28 = vrot.slane %v9181_v36, %v16632_v16  ;;  %v10226_v36 = vrot.slane %v20431_v26, %v16632_v16 }
 0x46f   :  { %v10170_v34 = vrot.slane %v9203_v28, %v16632_v16  ;;  %v9213_v62 = vcombine.high %v9203_v28, %v9203_v28 }
 0x470   :  { %v878_v33 = vpop.permute.xlu1 %877 }
 0x471   :  { %v964_v15 = vmax.f32 %v20187_v27, %v878_v33  ;;  %v23457_v33 = vld [vmem:[#allocation52_spill] sm:$0xff] }
 0x472   :  { %v6248_v5 = vcombine.low %v23457_v33, %v23456_v46  ;;  %v9211_v46 = vcombine.high %v9189_v22, %v9189_v22 }
 0x473   :  { %v986_v0 = vpack.c.bf16 %v964_v15, %v964_v15  ;;  %v15227_v10 = vpop.f32.mrb[4].mxu1  ;;  %v6214_v15 = vrot.slane %v6206_v19, %v16632_v16 }
 0x474   :  { %v15228_v9 = vpop.f32.mrb[5].mxu1 }
 0x475   :  { %v2044_v27 = vrot.slane %v986_v0, %v16632_v16  ;;  %v15230_v20 = vpop.f32.mrb[6].mxu1  ;;  %v15229_v25 = vadd.f32 %v15228_v9, %v15227_v10  ;;  %v6222_v6 = vcombine.low %v6214_v15, %v6221_v40  ;;  %v7892_v9 = vpop.permute.xlu0 %7891  ;;  %v9862_v15 = vunpack.i.h.s16 %v20423_v18 }
 0x476   :  { %v15231_v17 = vpop.f32.mrb[7].mxu1 }
 0x477   :  { %v2051_v8 = vrot.slane %v2044_v27, %v16632_v16  ;;  %v15232_v31 = vadd.f32 %v15231_v17, %v15230_v20  ;;  %v8831_v32 = vadd.f32 %v15229_v25, %v20402_v4  ;;  %v15020_v18 = vpack.i.b16 %v9214_v43, %v9862_v15 }
 0x479   :  { %v14962_v44 = vpack.i.b16 %v2051_v8, %v2387_v29  ;;  %v8322_v61 = vrot.slane %v2051_v8, %v16632_v16  ;;  %v8834_v12 = vadd.f32 %v15232_v31, %v20402_v4  ;;  %v8990_v0 = vadd.f32 %v23458_v42, %v8831_v32 }
 0x47a   :  { %v6262_v8 = vrot.slane %v6248_v5, %v16632_v16  ;;  %v3229_v32 = vcombine.low %v23454_v49, %v3214_v7  ;;  %v3230_v5 = vcombine.low %v20450_v37, %v23455_v35  ;;  %v10184_v37 = vrot.slane %v9211_v46, %v16632_v16 }
 0x47b   :  { %v7855_v48 = vrot.slane %v14962_v44, %v16632_v16  ;;  %v8329_v2 = vrot.slane %v8322_v61, %v16632_v16  ;;  %v8993_v23 = vadd.f32 %v23459_v63, %v8834_v12  ;;  %v9108_v29 = vmax.f32 %v8990_v0, 0.0  ;;  %v23462_v63 = vld [vmem:[#allocation127_spill] sm:$0xff] }
 0x47c   :  { %v3196_v61 = vcombine.low %v3188_v60, %v3195_v51  ;;  %v6263_v39 = vcombine.low %v6255_v47, %v6262_v8  ;;  %v3237_v51 = vrot.slane %v3229_v32, %v16632_v16  ;;  %v6801_v47 = vpop.permute.xlu0 %6800  ;;  %v3244_v35 = vrot.slane %v3230_v5, %v16632_v16 }
 0x47d   :  { %v7862_v13 = vrot.slane %v7855_v48, %v16632_v16  ;;  %15564 = vmatmul.mubr.msk.bf16.gmra.mrb[72].mxu0 %vm8330_vm2, %v8329_v2  ;;  %v9109_v53 = vmax.f32 %v8993_v23, 0.0  ;;  %v6270_v23 = vrot.slane %v23462_v63, %v16632_v16  ;;  %v10191_v8 = vrot.slane %v10184_v37, %v16632_v16 }
 0x47e   :  { %v8372_v59 = vsel %vm8330_vm2, %v3196_v61, %v20408_v38  ;;  %v8505_v17 = vsel %vm8330_vm2, %v6263_v39, %v6799_v41  ;;  %v10156_v41 = vrot.slane %v9189_v22, %v16632_v16  ;;  %v3245_v50 = vcombine.low %v3237_v51, %v3244_v35 }
 0x47f   :  { %7893 = vrot.lane.b32.xlu0 %v7862_v13, %s15994_s0  ;;  %v9137_v10 = vpack.c.bf16 %v9109_v53, %v9108_v29  ;;  %v8407_v25 = vsel %vm8379_vm3, %v8372_v59, %v20419_v52  ;;  %v8538_v38 = vsel %vm8379_vm3, %v8505_v17, %v7378_v24  ;;  %v9864_v13 = vunpack.i.h.s16 %v9214_v43 }
 0x480   :  { %v6797_v27 = vpop.permute.xlu1 %6796  ;;  %v8584_v52 = vsel %vm8412_vm4, %v8538_v38, %v7892_v9  ;;  %v10163_v42 = vrot.slane %v10156_v41, %v16632_v16  ;;  %v15006_v49 = vpack.c.bf16 %v9109_v53, %v9109_v53  ;;  %v6277_v60 = vrot.slane %v6270_v23, %v16632_v16  ;;  %v7380_v39 = vpop.permute.xlu0 %7379 }
 0x481   :  { %v8502_v44 = vsel %vm8330_vm2, %v6222_v6, %v6797_v27  ;;  %v9222_v19 = vrot.slane %v9137_v10, %v16632_v16  ;;  %v10177_v6 = vrot.slane %v10170_v34, %v16632_v16  ;;  %v10198_v27 = vrot.slane %v9213_v62, %v16632_v16 }
 0x482   :  { %v8536_v20 = vsel %vm8379_vm3, %v8502_v44, %v20411_v55  ;;  %v8453_v55 = vsel %vm8412_vm4, %v8407_v25, %v20440_v54  ;;  %v11553_v45 = vsel %vm11550_vm5, %v10163_v42, 4286644096  ;;  %v9229_v3 = vrot.slane %v15006_v49, %v16632_v16 }
 0x483   :  { %v9230_v56 = vcombine.high %v9222_v19, %v9222_v19  ;;  %v20500_v31 = vrot.slane %v9222_v19, %v16632_v16  ;;  %v10212_v29 = vrot.slane %v20414_v30, %v16632_v16  ;;  %v11566_v53 = vsel %vm11550_vm5, %v10177_v6, 4286644096 }
 0x484   :  { %v3252_v10 = vrot.slane %v23431_v21, %v16632_v16  ;;  %v10205_v43 = vrot.slane %v10198_v27, %v16632_v16  ;;  %v10240_v7 = vrot.slane %v15020_v18, %v16632_v16  ;;  %v11555_v59 = vunpack.i.l.bf16 %v11553_v45 }
 0x485   :  { %v20507_v57 = vrot.slane %v9230_v56, %v16632_v16  ;;  %v20512_v12 = vpack.i.b16 %v20500_v31, %v9864_v13  ;;  %v9260_v54 = vcombine.high %v20500_v31, %v20500_v31  ;;  %v11556_v30 = vunpack.i.h.bf16 %v11553_v45 }
 0x486   :  { %v7890_v48 = vpop.permute.xlu1 %7889  ;;  %v11568_v9 = vunpack.i.l.bf16 %v11566_v53  ;;  %v11569_v22 = vunpack.i.h.bf16 %v11566_v53  ;;  %v8508_v26 = vsel %vm8330_vm2, %v6277_v60, %v6801_v47  ;;  %v10219_v19 = vrot.slane %v10212_v29, %v16632_v16  ;;  %v23466_v47 = vld [vmem:[#allocation70_spill] sm:$0xff]  ;;  %v23467_v29 = vld [vmem:[#allocation36_spill] sm:$0xff] }
 0x487   :  { %v8581_v2 = vsel %vm8412_vm4, %v8536_v20, %v7890_v48  ;;  %v9868_v33 = vunpack.i.h.s16 %v20507_v57  ;;  %v9231_v48 = vcombine.high %v9229_v3, %v9229_v3  ;;  %v9245_v25 = vrot.slane %v9229_v3, %v16632_v16 }
 0x488   :  { %8924 = vmatprep.mubr.bf16.mxu1 %v8581_v2  ;;  %v20550_v28 = vsel %vm8379_vm3, %v8508_v26, %v7380_v39  ;;  %v10233_v2 = vrot.slane %v10226_v36, %v16632_v16  ;;  %v20554_v38 = vrot.slane %v3252_v10, %v16632_v16  ;;  %v20558_v13 = vsel %vm11550_vm5, %v10191_v8, 4286644096 }
 0x489   :  { %8925 = vmatmul.mubr.bf16.gmra.mrb[52].mxu1 %v8453_v55  ;;  %v20521_v0 = vpack.i.b16 %v9260_v54, %v9868_v33  ;;  %v10247_v55 = vrot.slane %v10240_v7, %v16632_v16  ;;  %23463 = vst [vmem:[#allocation6_spill] sm:$0xff] %v20558_v13  ;;  %v20563_v32 = vmax.f32 %v11555_v59, %v11556_v30  ;;  %v9866_v54 = vunpack.i.h.s16 %v20500_v31 }
 0x48a   :  { %v4973_v40 = vpop.permute.xlu1 %4972  ;;  %8932 = vmatprep.mubr.bf16.mxu1 %v8584_v52  ;;  %v20561_v52 = vsel %vm11550_vm5, %v10205_v43, 4286644096  ;;  %v20565_v34 = vmax.f32 %v11568_v9, %v11569_v22  ;;  %v9259_v46 = vrot.slane %v9231_v48, %v16632_v16  ;;  %v11605_v5 = vsel %vm11550_vm5, %v10219_v19, 4286644096 }
 0x48b   :  { %23464 = vst [vmem:[#allocation38_spill] sm:$0xff] %v20563_v32  ;;  %v10310_v62 = vrot.slane %v9245_v25, %v16632_v16  ;;  %v9261_v63 = vcombine.high %v9245_v25, %v9245_v25  ;;  %v20576_v23 = vsel %vm11550_vm5, %v10233_v2, 4286644096  ;;  %v9262_v31 = vcombine.high %v20507_v57, %v20507_v57 }
 0x48c   :  { %23465 = vst [vmem:[#allocation90_spill] sm:$0xff] %v20576_v23  ;;  %v11607_v35 = vunpack.i.l.bf16 %v11605_v5  ;;  %v9263_v18 = vcombine.high %v9259_v46, %v9259_v46  ;;  %v15022_v27 = vpack.i.b16 %v20507_v57, %v9866_v54  ;;  %v10254_v45 = vrot.slane %v20512_v12, %v16632_v16 }
 0x48d   :  { %v11608_v3 = vunpack.i.h.bf16 %v11605_v5  ;;  %v10317_v60 = vrot.slane %v10310_v62, %v16632_v16  ;;  %v20598_v12 = vrot.slane %v9262_v31, %v16632_v16  ;;  %v10282_v25 = vrot.slane %v20521_v0, %v16632_v16 }
 0x48e   :  { %v4159_v24 = vpop.permute.xlu1 %4158  ;;  %v10261_v7 = vrot.slane %v10254_v45, %v16632_v16  ;;  %v10268_v59 = vrot.slane %v15022_v27, %v16632_v16  ;;  %v20604_v30 = vrot.slane %v9263_v18, %v16632_v16 }
 0x48f   :  { %v8375_v44 = vsel %vm8330_vm2, %v3245_v50, %v4159_v24  ;;  %v20586_v50 = vsel %vm11550_vm5, %v10247_v55, 4286644096  ;;  %v20606_v9 = vmax.f32 %v11607_v35, %v11608_v3  ;;  %v11696_v22 = vsel %vm11550_vm5, %v10317_v60, 4286644096 }
 0x490   :  { %v8409_v20 = vsel %vm8379_vm3, %v8375_v44, %v4973_v40  ;;  %v10324_v44 = vrot.slane %v9259_v46, %v16632_v16  ;;  %v10275_v54 = vrot.slane %v10268_v59, %v16632_v16  ;;  %v10359_v0 = vrot.slane %v20604_v30, %v16632_v16 }
 0x491   :  { %23468 = vst [vmem:[#allocation37_spill] sm:$0xff] %v20606_v9  ;;  %v11698_v5 = vunpack.i.l.bf16 %v11696_v22 }
 0x492   :  { %v5785_v61 = vpop.permute.xlu1 %5784 }
 0x493   :  { %v8456_v21 = vsel %vm8412_vm4, %v8409_v20, %v5785_v61  ;;  %v20594_v61 = vrot.slane %v9261_v63, %v16632_v16 }
 0x494   :  { %v15233_v17 = vpop.f32.mrb[8].mxu1  ;;  %8933 = vmatmul.mubr.bf16.gmra.mrb[56].mxu1 %v8456_v21  ;;  %v10331_v21 = vrot.slane %v10324_v44, %v16632_v16 }
 0x495   :  { %v15234_v56 = vpop.f32.mrb[9].mxu1 }
 0x496   :  { %v15235_v41 = vadd.f32 %v15234_v56, %v15233_v17  ;;  %v15236_v40 = vpop.f32.mrb[10].mxu1  ;;  %v10345_v17 = vrot.slane %v20594_v61, %v16632_v16  ;;  %v10303_v56 = vrot.slane %v20598_v12, %v16632_v16  ;;  %v10289_v12 = vrot.slane %v10282_v25, %v16632_v16 }
 0x497   :  { %v15237_v33 = vpop.f32.mrb[11].mxu1 }
 0x498   :  { %v8839_v15 = vadd.f32 %v15235_v41, %v20402_v4  ;;  %v15238_v42 = vadd.f32 %v15237_v33, %v15236_v40  ;;  %v20623_v33 = vsel %vm11550_vm5, %v10261_v7, 4286644096 }
 0x499   :  { %23469 = vst [vmem:[#allocation42_spill] sm:$0xff] %v20623_v33 }
 0x49a   :  { %v8998_v6 = vadd.f32 %v23466_v47, %v8839_v15  ;;  %v8842_v37 = vadd.f32 %v15238_v42, %v20402_v4  ;;  %v11699_v47 = vunpack.i.h.bf16 %v11696_v22 }
 0x49c   :  { %v9001_v53 = vadd.f32 %v23467_v29, %v8842_v37  ;;  %v9110_v10 = vmax.f32 %v8998_v6, 0.0  ;;  %v11709_v6 = vsel %vm11550_vm5, %v10331_v21, 4286644096 }
 0x49e   :  { %v9111_v39 = vmax.f32 %v9001_v53, 0.0  ;;  %v23470_v53 = vld [vmem:[#allocation124_spill] sm:$0xff] }
 0x4a0   :  { %v9138_v48 = vpack.c.bf16 %v9111_v39, %v9110_v10  ;;  %v15007_v20 = vpack.c.bf16 %v9111_v39, %v9111_v39  ;;  %v15239_v26 = vpop.f32.mrb[12].mxu1 }
 0x4a1   :  { %v15240_v2 = vpop.f32.mrb[13].mxu1 }
 0x4a2   :  { %v9271_v55 = vrot.slane %v9138_v48, %v16632_v16  ;;  %v9278_v41 = vrot.slane %v15007_v20, %v16632_v16  ;;  %v15241_v40 = vadd.f32 %v15240_v2, %v15239_v26  ;;  %v15242_v46 = vpop.f32.mrb[14].mxu1  ;;  %v11711_v20 = vunpack.i.l.bf16 %v11709_v6  ;;  %v4161_v26 = vpop.permute.xlu1 %4160 }
 0x4a3   :  { %v15243_v62 = vpop.f32.mrb[15].mxu1 }
 0x4a4   :  { %v9279_v15 = vcombine.high %v9271_v55, %v9271_v55  ;;  %v9280_v42 = vcombine.high %v9278_v41, %v9278_v41  ;;  %v9287_v63 = vrot.slane %v9271_v55, %v16632_v16  ;;  %v9294_v31 = vrot.slane %v9278_v41, %v16632_v16 }
 0x4a5   :  { %v8847_v37 = vadd.f32 %v15241_v40, %v20402_v4  ;;  %v15244_v35 = vadd.f32 %v15243_v62, %v15242_v46  ;;  %v11712_v41 = vunpack.i.h.bf16 %v11709_v6  ;;  %v23471_v62 = vld [vmem:[#allocation35_spill] sm:$0xff] }
 0x4a6   :  { %v9301_v18 = vrot.slane %v9279_v15, %v16632_v16  ;;  %v9308_v27 = vrot.slane %v9280_v42, %v16632_v16  ;;  %v9309_v45 = vcombine.high %v9287_v63, %v9287_v63  ;;  %v9310_v3 = vcombine.high %v9294_v31, %v9294_v31 }
 0x4a7   :  { %v9880_v60 = vunpack.i.h.s16 %v9287_v63  ;;  %v9888_v29 = vunpack.i.h.s16 %v9294_v31  ;;  %v9006_v44 = vadd.f32 %v23470_v53, %v8847_v37  ;;  %v8850_v61 = vadd.f32 %v15244_v35, %v20402_v4 }
 0x4a8   :  { %v9311_v10 = vcombine.high %v9301_v18, %v9301_v18  ;;  %v9882_v39 = vunpack.i.h.s16 %v9301_v18  ;;  %v9884_v7 = vunpack.i.h.s16 %v9309_v45  ;;  %v9312_v59 = vcombine.high %v9308_v27, %v9308_v27 }
 0x4a9   :  { %v15024_v30 = vpack.i.b16 %v9301_v18, %v9880_v60  ;;  %v15028_v22 = vpack.i.b16 %v9308_v27, %v9888_v29  ;;  %v10436_v48 = vrot.slane %v9310_v3, %v16632_v16  ;;  %v9009_v25 = vadd.f32 %v23471_v62, %v8850_v61 }
 0x4aa   :  { %v9886_v21 = vunpack.i.h.s16 %v9311_v10  ;;  %v15025_v2 = vpack.i.b16 %v9309_v45, %v9882_v39  ;;  %v15026_v55 = vpack.i.b16 %v9311_v10, %v9884_v7  ;;  %v20644_v27 = vsel %vm11550_vm5, %v10303_v56, 4286644096  ;;  %v4975_v10 = vpop.permute.xlu1 %4974 }
 0x4ab   :  { %v10366_v40 = vrot.slane %v15024_v30, %v16632_v16  ;;  %v10422_v46 = vrot.slane %v15028_v22, %v16632_v16  ;;  %v10443_v37 = vrot.slane %v10436_v48, %v16632_v16  ;;  %v10450_v6 = vrot.slane %v9312_v59, %v16632_v16 }
 0x4ac   :  { %v15027_v15 = vpack.i.b16 %v9294_v31, %v9886_v21  ;;  %v10380_v42 = vrot.slane %v15025_v2, %v16632_v16  ;;  %v10394_v63 = vrot.slane %v15026_v55, %v16632_v16  ;;  %v20648_v45 = vsel %vm11550_vm5, %v10275_v54, 4286644096 }
 0x4ad   :  { %v20650_v3 = vmax.f32 %v11698_v5, %v11699_v47  ;;  %v20653_v31 = vsel %vm11550_vm5, %v10345_v17, 4286644096  ;;  %v10373_v60 = vrot.slane %v10366_v40, %v16632_v16  ;;  %v20657_v29 = vsel %vm11550_vm5, %v10289_v12, 4286644096 }
 0x4ae   :  { %23473 = vst [vmem:[#allocation121_spill] sm:$0xff] %v20653_v31  ;;  %23474 = vst [vmem:[#allocation93_spill] sm:$0xff] %v20657_v29  ;;  %v20659_v53 = vmax.f32 %v11711_v20, %v11712_v41  ;;  %v20662_v56 = vsel %vm11550_vm5, %v10359_v0, 4286644096  ;;  %v10387_v61 = vrot.slane %v10380_v42, %v16632_v16  ;;  %v10401_v54 = vrot.slane %v10394_v63, %v16632_v16 }
 0x4af   :  { %23472 = vst [vmem:[#allocation92_spill] sm:$0xff] %v20650_v3  ;;  %v10429_v5 = vrot.slane %v10422_v46, %v16632_v16  ;;  %v20668_v17 = vsel %vm11550_vm5, %v10443_v37, 4286644096  ;;  %v9113_v47 = vmax.f32 %v9009_v25, 0.0  ;;  %v10408_v7 = vrot.slane %v15027_v15, %v16632_v16 }
 0x4b0   :  { %23475 = vst [vmem:[#allocation77_spill] sm:$0xff] %v20668_v17  ;;  %v10457_v0 = vrot.slane %v10450_v6, %v16632_v16  ;;  %v8378_v30 = vsel %vm8330_vm2, %v20554_v38, %v4161_v26  ;;  %v20678_v22 = vsel %vm11550_vm5, %v10373_v60, 4286644096  ;;  %v9112_v48 = vmax.f32 %v9006_v44, 0.0 }
 0x4b1   :  { %v20682_v21 = vsel %vm8379_vm3, %v8378_v30, %v4975_v10  ;;  %v20685_v2 = vsel %vm11550_vm5, %v10387_v61, 4286644096  ;;  %v20689_v41 = vsel %vm11550_vm5, %v10401_v54, 4286644096  ;;  %v20692_v40 = vsel %vm11550_vm5, %v10429_v5, 4286644096 }
 0x4b2   :  { %23476 = vst [vmem:[#allocation17_spill] sm:$0xff] %v20685_v2  ;;  %v9139_v38 = vpack.c.bf16 %v9113_v47, %v9112_v48  ;;  %v15008_v26 = vpack.c.bf16 %v9113_v47, %v9113_v47  ;;  %v10415_v44 = vrot.slane %v10408_v7, %v16632_v16  ;;  %v20698_v25 = vsel %vm11550_vm5, %v10457_v0, 4286644096  ;;  %v23479_v54 = vld [vmem:[#allocation118_spill] sm:$0xff] }
 0x4b4   :  { %v9320_v37 = vrot.slane %v9139_v38, %v16632_v16  ;;  %v9327_v6 = vrot.slane %v15008_v26, %v16632_v16  ;;  %v20711_v26 = vsel %vm11550_vm5, %v10415_v44, 4286644096 }
 0x4b5   :  { %23477 = vst [vmem:[#allocation26_spill] sm:$0xff] %v20711_v26 }
 0x4b6   :  { %v15245_v15 = vpop.f32.mrb[16].mxu1  ;;  %v9328_v7 = vcombine.high %v9320_v37, %v9320_v37  ;;  %v9329_v0 = vcombine.high %v9327_v6, %v9327_v6  ;;  %v9336_v30 = vrot.slane %v9320_v37, %v16632_v16  ;;  %v9343_v48 = vrot.slane %v9327_v6, %v16632_v16  ;;  %v23478_v6 = vld [vmem:[#allocation67_spill] sm:$0xff] }
 0x4b7   :  { %v15246_v60 = vpop.f32.mrb[17].mxu1 }
 0x4b8   :  { %v15247_v5 = vadd.f32 %v15246_v60, %v15245_v15  ;;  %v15248_v47 = vpop.f32.mrb[18].mxu1  ;;  %v9350_v15 = vrot.slane %v9328_v7, %v16632_v16  ;;  %v9357_v60 = vrot.slane %v9329_v0, %v16632_v16  ;;  %v9358_v63 = vcombine.high %v9336_v30, %v9336_v30 }
 0x4b9   :  { %v15249_v55 = vpop.f32.mrb[19].mxu1  ;;  %v9902_v61 = vunpack.i.h.s16 %v9343_v48  ;;  %v10464_v37 = vrot.slane %v9336_v30, %v16632_v16  ;;  %v9359_v49 = vcombine.high %v9343_v48, %v9343_v48 }
 0x4ba   :  { %v8855_v62 = vadd.f32 %v15247_v5, %v20402_v4  ;;  %v15250_v39 = vadd.f32 %v15249_v55, %v15248_v47  ;;  %v9360_v44 = vcombine.high %v9350_v15, %v9350_v15  ;;  %v9904_v51 = vunpack.i.h.s16 %v9357_v60 }
 0x4bb   :  { %v10478_v5 = vrot.slane %v9350_v15, %v16632_v16  ;;  %v15030_v47 = vpack.i.b16 %v9357_v60, %v9902_v61  ;;  %v10471_v7 = vrot.slane %v10464_v37, %v16632_v16  ;;  %v10492_v0 = vrot.slane %v9358_v63, %v16632_v16 }
 0x4bc   :  { %v9014_v35 = vadd.f32 %v23478_v6, %v8855_v62  ;;  %v8858_v18 = vadd.f32 %v15250_v39, %v20402_v4  ;;  %v9900_v36 = vunpack.i.h.s16 %v9360_v44  ;;  %v15031_v57 = vpack.i.b16 %v9359_v49, %v9904_v51 }
 0x4bd   :  { %v10485_v30 = vrot.slane %v10478_v5, %v16632_v16  ;;  %v10499_v6 = vrot.slane %v10492_v0, %v16632_v16  ;;  %v10520_v12 = vrot.slane %v15030_v47, %v16632_v16  ;;  %v11839_v15 = vsel %vm11550_vm5, %v10471_v7, 4286644096 }
 0x4be   :  { %v9017_v62 = vadd.f32 %v23479_v54, %v8858_v18  ;;  %v15029_v55 = vpack.i.b16 %v9343_v48, %v9900_v36  ;;  %v10534_v61 = vrot.slane %v15031_v57, %v16632_v16  ;;  %v11841_v37 = vunpack.i.l.bf16 %v11839_v15 }
 0x4bf   :  { %v11842_v59 = vunpack.i.h.bf16 %v11839_v15  ;;  %v9906_v63 = vunpack.i.h.s16 %v9359_v49  ;;  %v11852_v51 = vsel %vm11550_vm5, %v10485_v30, 4286644096  ;;  %v9361_v5 = vcombine.high %v9357_v60, %v9357_v60 }
 0x4c0   :  { %v9115_v44 = vmax.f32 %v9017_v62, 0.0  ;;  %v10506_v54 = vrot.slane %v15029_v55, %v16632_v16  ;;  %v20735_v0 = vsel %vm11550_vm5, %v10499_v6, 4286644096  ;;  %v9114_v47 = vmax.f32 %v9014_v35, 0.0 }
 0x4c1   :  { %23480 = vst [vmem:[#allocation19_spill] sm:$0xff] %v20735_v0  ;;  %v10527_v57 = vrot.slane %v10520_v12, %v16632_v16  ;;  %v10541_v49 = vrot.slane %v10534_v61, %v16632_v16  ;;  %v20740_v48 = vmax.f32 %v11841_v37, %v11842_v59  ;;  %v11854_v62 = vunpack.i.l.bf16 %v11852_v51 }
 0x4c2   :  { %v15251_v20 = vpop.f32.mrb[20].mxu1  ;;  %v10513_v60 = vrot.slane %v10506_v54, %v16632_v16  ;;  %v9140_v15 = vpack.c.bf16 %v9115_v44, %v9114_v47  ;;  %v15009_v39 = vpack.c.bf16 %v9115_v44, %v9115_v44  ;;  %v11855_v18 = vunpack.i.h.bf16 %v11852_v51 }
 0x4c3   :  { %v15252_v7 = vpop.f32.mrb[21].mxu1  ;;  %23481 = vst [vmem:[#allocation98_spill] sm:$0xff] %v20740_v48  ;;  %v15032_v35 = vpack.i.b16 %v9361_v5, %v9906_v63  ;;  %v20751_v54 = vsel %vm11550_vm5, %v10527_v57, 4286644096  ;;  %v20754_v44 = vsel %vm11550_vm5, %v10541_v49, 4286644096 }
 0x4c4   :  { %v15254_v30 = vpop.f32.mrb[22].mxu1  ;;  %v15253_v10 = vadd.f32 %v15252_v7, %v15251_v20  ;;  %v9369_v12 = vrot.slane %v9140_v15, %v16632_v16  ;;  %v9376_v61 = vrot.slane %v15009_v39, %v16632_v16  ;;  %v20748_v37 = vsel %vm11550_vm5, %v10513_v60, 4286644096  ;;  %23483 = vst [vmem:[#allocation47_spill] sm:$0xff] %v20754_v44  ;;  %v23484_v60 = vld [vmem:[#allocation72_spill] sm:$0xff] }
 0x4c5   :  { %v15255_v55 = vpop.f32.mrb[23].mxu1  ;;  %23482 = vst [vmem:[#allocation43_spill] sm:$0xff] %v20748_v37  ;;  %v20759_v15 = vmax.f32 %v11854_v62, %v11855_v18  ;;  %v9908_v39 = vunpack.i.h.s16 %v9361_v5 }
 0x4c6   :  { %v15256_v59 = vadd.f32 %v15255_v55, %v15254_v30  ;;  %v8863_v51 = vadd.f32 %v15253_v10, %v20402_v4  ;;  %v9377_v63 = vcombine.high %v9369_v12, %v9369_v12  ;;  %v9378_v20 = vcombine.high %v9376_v61, %v9376_v61 }
 0x4c7   :  { %v9385_v47 = vrot.slane %v9369_v12, %v16632_v16  ;;  %v9392_v7 = vrot.slane %v9376_v61, %v16632_v16  ;;  %v10548_v30 = vrot.slane %v15032_v35, %v16632_v16 }
 0x4c8   :  { %v20763_v55 = vadd.f32 %v23484_v60, %v8863_v51  ;;  %v9399_v49 = vrot.slane %v9377_v63, %v16632_v16  ;;  %v9406_v6 = vrot.slane %v9378_v20, %v16632_v16 }
 0x4c9   :  { %v9407_v10 = vcombine.high %v9385_v47, %v9385_v47  ;;  %v9408_v36 = vcombine.high %v9392_v7, %v9392_v7  ;;  %v15033_v18 = vpack.i.b16 %v9385_v47, %v9908_v39  ;;  %v10618_v5 = vrot.slane %v9392_v7, %v16632_v16 }
 0x4ca   :  { %v9409_v35 = vcombine.high %v9399_v49, %v9399_v49  ;;  %v20770_v46 = vcombine.high %v9406_v6, %v9406_v6  ;;  %v10576_v60 = vrot.slane %v9399_v49, %v16632_v16  ;;  %v10632_v12 = vrot.slane %v9406_v6, %v16632_v16 }
 0x4cb   :  { %v15257_v57 = vpop.f32.mrb[24].mxu1  ;;  %v9920_v51 = vunpack.i.h.s16 %v9408_v36  ;;  %v10562_v20 = vrot.slane %v15033_v18, %v16632_v16  ;;  %v10590_v42 = vrot.slane %v9407_v10, %v16632_v16  ;;  %v10625_v43 = vrot.slane %v10618_v5, %v16632_v16  ;;  %v5787_v36 = vpop.permute.xlu1 %5786 }
 0x4cc   :  { %v15258_v38 = vpop.f32.mrb[25].mxu1  ;;  %v10555_v7 = vrot.slane %v10548_v30, %v16632_v16  ;;  %v10583_v39 = vrot.slane %v10576_v60, %v16632_v16  ;;  %v10604_v61 = vrot.slane %v9409_v35, %v16632_v16  ;;  %v10639_v18 = vrot.slane %v10632_v12, %v16632_v16 }
 0x4cd   :  { %v15260_v62 = vpop.f32.mrb[26].mxu1  ;;  %v15034_v47 = vpack.i.b16 %v20770_v46, %v9920_v51  ;;  %v10569_v49 = vrot.slane %v10562_v20, %v16632_v16  ;;  %v10597_v19 = vrot.slane %v10590_v42, %v16632_v16  ;;  %v8866_v10 = vadd.f32 %v15256_v59, %v20402_v4 }
 0x4ce   :  { %v15261_v63 = vpop.f32.mrb[27].mxu1  ;;  %v10611_v5 = vrot.slane %v10604_v61, %v16632_v16  ;;  %v11943_v51 = vsel %vm11550_vm5, %v10583_v39, 4286644096  ;;  %v11982_v30 = vsel %vm11550_vm5, %v10625_v43, 4286644096  ;;  %v9116_v61 = vmax.f32 %v20763_v55, 0.0 }
 0x4cf   :  { %v10646_v6 = vrot.slane %v15034_v47, %v16632_v16  ;;  %v20790_v60 = vsel %vm11550_vm5, %v10569_v49, 4286644096  ;;  %v11945_v35 = vunpack.i.l.bf16 %v11943_v51  ;;  %v11946_v24 = vunpack.i.h.bf16 %v11943_v51  ;;  %v23487_v39 = vld [vmem:[#allocation10_spill] sm:$0xff] }
 0x4d0   :  { %23485 = vst [vmem:[#allocation101_spill] sm:$0xff] %v20790_v60  ;;  %v20793_v20 = vsel %vm11550_vm5, %v10597_v19, 4286644096  ;;  %v20797_v59 = vsel %vm11550_vm5, %v10555_v7, 4286644096  ;;  %v20802_v43 = vsel %vm8412_vm4, %v20682_v21, %v5787_v36  ;;  %v11984_v51 = vunpack.i.l.bf16 %v11982_v30 }
 0x4d1   :  { %23486 = vst [vmem:[#allocation100_spill] sm:$0xff] %v20793_v20  ;;  %v10653_v12 = vrot.slane %v10646_v6, %v16632_v16  ;;  %v20807_v19 = vsel %vm11550_vm5, %v10611_v5, 4286644096  ;;  %v11985_v8 = vunpack.i.h.bf16 %v11982_v30  ;;  %v11995_v55 = vsel %vm11550_vm5, %v10639_v18, 4286644096 }
 0x4d2   :  { %v20812_v0 = vmax.f32 %v11945_v35, %v11946_v24  ;;  %v9025_v37 = vadd.f32 %v23487_v39, %v8866_v10  ;;  %v15259_v6 = vadd.f32 %v15258_v38, %v15257_v57  ;;  %v15262_v60 = vadd.f32 %v15261_v63, %v15260_v62 }
 0x4d3   :  { %v15263_v42 = vpop.f32.mrb[28].mxu1  ;;  %v20818_v5 = vsel %vm11550_vm5, %v10653_v12, 4286644096  ;;  %v11997_v7 = vunpack.i.l.bf16 %v11995_v55  ;;  %v11998_v30 = vunpack.i.h.bf16 %v11995_v55  ;;  %v23488_v18 = vunpack.i.h.bf16 %v20561_v52  ;;  %v23492_v55 = vld [vmem:[#allocation88_spill] sm:$0xff] }
 0x4d4   :  { %v15264_v47 = vpop.f32.mrb[29].mxu1  ;;  %v23489_v24 = vunpack.i.l.bf16 %v20561_v52  ;;  %v20825_v21 = vmax.f32 %v11984_v51, %v11985_v8  ;;  %v9117_v36 = vmax.f32 %v9025_v37, 0.0  ;;  %v8871_v49 = vadd.f32 %v15259_v6, %v20402_v4  ;;  %v23493_v6 = vld [vmem:[#allocation45_spill] sm:$0xff] }
 0x4d5   :  { %v15266_v42 = vpop.f32.mrb[30].mxu1  ;;  %v8874_v12 = vadd.f32 %v15262_v60, %v20402_v4  ;;  %v20834_v37 = vmax.f32 %v11997_v7, %v11998_v30 }
 0x4d6   :  { %v15267_v47 = vpop.f32.mrb[31].mxu1  ;;  %v11596_v35 = vmax.f32 %v23489_v24, %v23488_v18  ;;  %23490 = vst [vmem:[#allocation123_spill] sm:$0xff] %v20825_v21  ;;  %v9141_v10 = vpack.c.bf16 %v9117_v36, %v9116_v61  ;;  %v15010_v39 = vpack.c.bf16 %v9117_v36, %v9117_v36  ;;  %v11659_v24 = vunpack.i.l.bf16 %v20648_v45 }
 0x4d7   :  { %v15268_v17 = vadd.f32 %v15267_v47, %v15266_v42  ;;  %v23491_v42 = vld [vmem:[#allocation66_spill] sm:$0xff]  ;;  %v9033_v8 = vadd.f32 %v23492_v55, %v8874_v12 }
 0x4d8   :  { %v11597_v63 = vrot.slane %v11596_v35, 4  ;;  %v9030_v52 = vadd.f32 %v23491_v42, %v8871_v49  ;;  %v9418_v20 = vrot.slane %v9141_v10, %v16632_v16  ;;  %v11660_v49 = vunpack.i.h.bf16 %v20648_v45  ;;  %v23494_v45 = vld [vmem:[#allocation32_spill] sm:$0xff] }
 0x4d9   :  { %v8882_v57 = vadd.f32 %v15268_v17, %v20402_v4  ;;  %v9425_v17 = vrot.slane %v15010_v39, %v16632_v16  ;;  %v20840_v38 = vmax.f32 %v9033_v8, 0.0 }
 0x4da   :  { %v9118_v36 = vmax.f32 %v9030_v52, 0.0  ;;  %v20846_v30 = vmax.f32 %v11596_v35, %v11597_v63  ;;  %v9434_v42 = vrot.slane %v9418_v20, %v16632_v16 }
 0x4db   :  { %v15269_v62 = vpop.f32.mrb[32].mxu1  ;;  %v9041_v47 = vadd.f32 %v23493_v6, %v8882_v57  ;;  %v9426_v57 = vcombine.high %v9418_v20, %v9418_v20  ;;  %v9441_v10 = vrot.slane %v9425_v17, %v16632_v16  ;;  %v15011_v55 = vpack.c.bf16 %v20840_v38, %v20840_v38 }
 0x4dc   :  { %v15270_v51 = vpop.f32.mrb[33].mxu1  ;;  %v9142_v39 = vpack.c.bf16 %v20840_v38, %v9118_v36  ;;  %v9456_v63 = vcombine.high %v9434_v42, %v9434_v42  ;;  %v9924_v6 = vunpack.i.h.s16 %v9434_v42  ;;  %v23495_v20 = vunpack.i.h.s16 %v20770_v46 }
 0x4dd   :  { %v15271_v60 = vadd.f32 %v15270_v51, %v15269_v62  ;;  %v15272_v18 = vpop.f32.mrb[34].mxu1  ;;  %v9427_v62 = vcombine.high %v9425_v17, %v9425_v17  ;;  %v9121_v8 = vmax.f32 %v9041_v47, 0.0  ;;  %v9457_v51 = vcombine.high %v9441_v10, %v9441_v10 }
 0x4de   :  { %v15273_v61 = vpop.f32.mrb[35].mxu1  ;;  %v9467_v17 = vrot.slane %v9142_v39, %v16632_v16 }
 0x4df   :  { %v8887_v12 = vadd.f32 %v15271_v60, %v20402_v4  ;;  %v20844_v7 = vadd.f32 %v15273_v61, %v15272_v18  ;;  %v9448_v4 = vrot.slane %v9426_v57, %v16632_v16  ;;  %v9455_v35 = vrot.slane %v9427_v62, %v16632_v16 }
 0x4e0   :  { %v15035_v60 = vpack.i.b16 %v9434_v42, %v23495_v20  ;;  %v10716_v18 = vrot.slane %v9441_v10, %v16632_v16  ;;  %v10744_v39 = vrot.slane %v9457_v51, %v16632_v16 }
 0x4e1   :  { %v20854_v52 = vadd.f32 %v23494_v45, %v8887_v12  ;;  %v9458_v38 = vcombine.high %v9448_v4, %v9448_v4  ;;  %v9459_v47 = vcombine.high %v9455_v35, %v9455_v35  ;;  %v9926_v36 = vunpack.i.h.s16 %v9448_v4 }
 0x4e2   :  { %v9928_v12 = vunpack.i.h.s16 %v9456_v63  ;;  %v15036_v57 = vpack.i.b16 %v9448_v4, %v9924_v6  ;;  %v10660_v62 = vrot.slane %v15035_v60, %v16632_v16  ;;  %v10723_v21 = vrot.slane %v10716_v18, %v16632_v16 }
 0x4e3   :  { %v20862_v61 = vpop.f32.mrb[36].mxu1  ;;  %v10730_v46 = vrot.slane %v9455_v35, %v16632_v16  ;;  %v15037_v10 = vpack.i.b16 %v9456_v63, %v9926_v36  ;;  %v10758_v44 = vrot.slane %v9459_v47, %v16632_v16  ;;  %v10751_v63 = vrot.slane %v10744_v39, %v16632_v16 }
 0x4e4   :  { %v20864_v45 = vpop.f32.mrb[37].mxu1  ;;  %v15038_v20 = vpack.i.b16 %v9458_v38, %v9928_v12  ;;  %v10667_v26 = vrot.slane %v10660_v62, %v16632_v16  ;;  %v10674_v4 = vrot.slane %v15036_v57, %v16632_v16  ;;  %v12073_v60 = vsel %vm11550_vm5, %v10723_v21, 4286644096 }
 0x4e5   :  { %v20869_v42 = vpop.f32.mrb[38].mxu1  ;;  %v10737_v6 = vrot.slane %v10730_v46, %v16632_v16  ;;  %v10688_v35 = vrot.slane %v15037_v10, %v16632_v16  ;;  %v10765_v51 = vrot.slane %v10758_v44, %v16632_v16  ;;  %v12075_v36 = vunpack.i.l.bf16 %v12073_v60 }
 0x4e6   :  { %v20873_v48 = vpop.f32.mrb[39].mxu1  ;;  %v10702_v18 = vrot.slane %v15038_v20, %v16632_v16  ;;  %v10681_v38 = vrot.slane %v10674_v4, %v16632_v16  ;;  %v20885_v47 = vsel %vm11550_vm5, %v10667_v26, 4286644096  ;;  %v12076_v12 = vunpack.i.h.bf16 %v12073_v60 }
 0x4e7   :  { %23496 = vst [vmem:[#allocation24_spill] sm:$0xff] %v20885_v47  ;;  %v10695_v57 = vrot.slane %v10688_v35, %v16632_v16  ;;  %v15012_v62 = vpack.c.bf16 %v9121_v8, %v9121_v8  ;;  %v20889_v46 = vmax.f32 %v11659_v24, %v11660_v49  ;;  %v12086_v44 = vsel %vm11550_vm5, %v10737_v6, 4286644096 }
 0x4e8   :  { %v20892_v10 = vrot.slane %v10702_v18, %v16632_v16  ;;  %v20897_v39 = vsel %vm11550_vm5, %v10751_v63, 4286644096  ;;  %v20901_v4 = vsel %vm11550_vm5, %v10681_v38, 4286644096  ;;  %v12088_v8 = vunpack.i.l.bf16 %v12086_v44 }
 0x4e9   :  { %23497 = vst [vmem:[#allocation27_spill] sm:$0xff] %v20897_v39  ;;  %v12089_v60 = vunpack.i.h.bf16 %v12086_v44  ;;  %v20905_v24 = vmax.f32 %v12075_v36, %v12076_v12  ;;  %v20908_v49 = vsel %vm11550_vm5, %v10765_v51, 4286644096  ;;  %v9474_v18 = vrot.slane %v15011_v55, %v16632_v16 }
 0x4ea   :  { %23499 = vst [vmem:[#allocation86_spill] sm:$0xff] %v20908_v49  ;;  %v9475_v6 = vcombine.high %v9467_v17, %v9467_v17  ;;  %v20914_v63 = vsel %vm11550_vm5, %v10695_v57, 4286644096  ;;  %v9483_v44 = vrot.slane %v9467_v17, %v16632_v16  ;;  %v9515_v55 = vrot.slane %v15012_v62, %v16632_v16 }
 0x4eb   :  { %v20903_v35 = vpop.f32.mrb[40].mxu1  ;;  %23498 = vst [vmem:[#allocation106_spill] sm:$0xff] %v20905_v24  ;;  %23500 = vst [vmem:[#allocation63_spill] sm:$0xff] %v20914_v63  ;;  %v9476_v36 = vcombine.high %v9474_v18, %v9474_v18  ;;  %v9490_v51 = vrot.slane %v9474_v18, %v16632_v16  ;;  %v20926_v47 = vmax.f32 %v12088_v8, %v12089_v60 }
 0x4ec   :  { %v20911_v20 = vpop.f32.mrb[41].mxu1  ;;  %v9497_v12 = vrot.slane %v9475_v6, %v16632_v16  ;;  %v9505_v38 = vcombine.high %v9483_v44, %v9483_v44  ;;  %v10772_v26 = vrot.slane %v9483_v44, %v16632_v16  ;;  %v9516_v62 = vcombine.high %v9515_v55, %v9515_v55 }
 0x4ed   :  { %v20919_v21 = vpop.f32.mrb[42].mxu1  ;;  %23501 = vst [vmem:[#allocation57_spill] sm:$0xff] %v20926_v47  ;;  %v9504_v39 = vrot.slane %v9476_v36, %v16632_v16  ;;  %v9946_v2 = vunpack.i.h.s16 %v9490_v51  ;;  %v9506_v3 = vcombine.high %v9490_v51, %v9490_v51  ;;  %v9523_v44 = vrot.slane %v9515_v55, %v16632_v16 }
 0x4ee   :  { %v20924_v24 = vpop.f32.mrb[43].mxu1  ;;  %v9507_v63 = vcombine.high %v9497_v12, %v9497_v12  ;;  %v9940_v31 = vunpack.i.h.s16 %v9497_v12  ;;  %v9942_v18 = vunpack.i.h.s16 %v9505_v38  ;;  %v10779_v6 = vrot.slane %v10772_v26, %v16632_v16 }
 0x4ef   :  { %v9948_v8 = vunpack.i.h.s16 %v9504_v39  ;;  %v15042_v57 = vpack.i.b16 %v9504_v39, %v9946_v2  ;;  %v9530_v23 = vrot.slane %v9516_v62, %v16632_v16 }
 0x4f0   :  { %v9944_v29 = vunpack.i.h.s16 %v9507_v63  ;;  %v15039_v60 = vpack.i.b16 %v9505_v38, %v9940_v31  ;;  %v15040_v47 = vpack.i.b16 %v9507_v63, %v9942_v18  ;;  %v12125_v9 = vsel %vm11550_vm5, %v10779_v6, 4286644096 }
 0x4f1   :  { %v15043_v49 = vpack.i.b16 %v9506_v3, %v9948_v8  ;;  %v12127_v12 = vunpack.i.l.bf16 %v12125_v9  ;;  %v10828_v26 = vrot.slane %v15042_v57, %v16632_v16  ;;  %v12128_v13 = vunpack.i.h.bf16 %v12125_v9 }
 0x4f2   :  { %v15041_v17 = vpack.i.b16 %v9490_v51, %v9944_v29  ;;  %v10786_v36 = vrot.slane %v15039_v60, %v16632_v16  ;;  %v10800_v33 = vrot.slane %v15040_v47, %v16632_v16  ;;  %v9122_v63 = vmax.f32 %v20854_v52, 0.0 }
 0x4f3   :  { %v10842_v39 = vrot.slane %v15043_v49, %v16632_v16  ;;  %v10835_v29 = vrot.slane %v10828_v26, %v16632_v16  ;;  %v12129_v38 = vmax.f32 %v12127_v12, %v12128_v13  ;;  %v9531_v51 = vcombine.high %v9523_v44, %v9523_v44  ;;  %v20960_v13 = vld [vmem:[%s22312_s4] ss:$0 sm:$0xff] }
 0x4f4   :  { %v10793_v31 = vrot.slane %v10786_v36, %v16632_v16  ;;  %v10814_v2 = vrot.slane %v15041_v17, %v16632_v16  ;;  %v10807_v3 = vrot.slane %v10800_v33, %v16632_v16  ;;  %v9950_v17 = vunpack.i.h.s16 %v9523_v44 }
 0x4f5   :  { %v10849_v55 = vrot.slane %v10842_v39, %v16632_v16  ;;  %v12130_v49 = vrot.slane %v12129_v38, 4  ;;  %v9952_v33 = vunpack.i.h.s16 %v9530_v23  ;;  %v8890_v6 = vadd.f32 %v20960_v13, %v20844_v7 }
 0x4f6   :  { %v10821_v9 = vrot.slane %v10814_v2, %v16632_v16  ;;  %v20950_v57 = vsel %vm11550_vm5, %v10793_v31, 4286644096  ;;  %v20955_v52 = vsel %vm11550_vm5, %v10807_v3, 4286644096  ;;  %v20971_v44 = vsel %vm11550_vm5, %v10835_v29, 4286644096 }
 0x4f7   :  { %23502 = vst [vmem:[#allocation58_spill] sm:$0xff] %v20950_v57  ;;  %23503 = vst [vmem:[#allocation60_spill] sm:$0xff] %v20955_v52  ;;  %v9532_v36 = vcombine.high %v9530_v23, %v9530_v23  ;;  %v20975_v26 = vmax.f32 %v12129_v38, %v12130_v49  ;;  %v12190_v3 = vsel %vm11550_vm5, %v10849_v55, 4286644096  ;;  %v15044_v8 = vpack.i.b16 %v9530_v23, %v9950_v17  ;;  %v23507_v2 = vld [vmem:[#allocation76_spill] sm:$0xff] }
 0x4f8   :  { %v20968_v60 = vsel %vm11550_vm5, %v10821_v9, 4286644096  ;;  %23505 = vst [vmem:[#allocation56_spill] sm:$0xff] %v20971_v44  ;;  %v9954_v9 = vunpack.i.h.s16 %v9531_v51  ;;  %v15045_v38 = vpack.i.b16 %v9531_v51, %v9952_v33  ;;  %v12192_v49 = vunpack.i.l.bf16 %v12190_v3 }
 0x4f9   :  { %23504 = vst [vmem:[#allocation49_spill] sm:$0xff] %v20968_v60  ;;  %23506 = vst [vmem:[#allocation103_spill] sm:$0xff] %v20975_v26  ;;  %v10856_v31 = vrot.slane %v15044_v8, %v16632_v16  ;;  %v9049_v57 = vadd.f32 %v23507_v2, %v8890_v6  ;;  %v12193_v7 = vunpack.i.h.bf16 %v12190_v3  ;;  %v15277_v55 = vadd.f32 %v20864_v45, %v20862_v61  ;;  %v7894_v60 = vpop.permute.xlu0 %7893 }
 0x4fa   :  { %v20945_v47 = vpop.f32.mrb[44].mxu1  ;;  %v15046_v14 = vpack.i.b16 %v9532_v36, %v9954_v9  ;;  %v10870_v39 = vrot.slane %v15045_v38, %v16632_v16  ;;  %v15280_v23 = vadd.f32 %v20873_v48, %v20869_v42  ;;  %v15283_v33 = vadd.f32 %v20911_v20, %v20903_v35 }
 0x4fb   :  { %v20952_v18 = vpop.f32.mrb[45].mxu1  ;;  %v10863_v17 = vrot.slane %v10856_v31, %v16632_v16  ;;  %v9123_v51 = vmax.f32 %v9049_v57, 0.0  ;;  %v8895_v6 = vadd.f32 %v20960_v13, %v15277_v55  ;;  %v15286_v61 = vadd.f32 %v20924_v24, %v20919_v21  ;;  %v23509_v31 = vld [vmem:[#allocation34_spill] sm:$0xff] }
 0x4fc   :  { %v20964_v62 = vpop.f32.mrb[46].mxu1  ;;  %v10884_v29 = vrot.slane %v15046_v14, %v16632_v16  ;;  %v10877_v8 = vrot.slane %v10870_v39, %v16632_v16  ;;  %v8898_v2 = vadd.f32 %v20960_v13, %v15280_v23  ;;  %v9956_v35 = vunpack.i.h.s16 %v9532_v36 }
 0x4fd   :  { %v20973_v12 = vpop.f32.mrb[47].mxu1  ;;  %v21003_v48 = vsel %vm11550_vm5, %v10863_v17, 4286644096  ;;  %v9144_v42 = vpack.c.bf16 %v9123_v51, %v9122_v63  ;;  %v15013_v14 = vpack.c.bf16 %v9123_v51, %v9123_v51  ;;  %v21010_v39 = vadd.f32 %v23509_v31, %v8895_v6 }
 0x4fe   :  { %v10891_v45 = vrot.slane %v10884_v29, %v16632_v16  ;;  %23508 = vst [vmem:[#allocation69_spill] sm:$0xff] %v21003_v48  ;;  %v21007_v20 = vsel %vm11550_vm5, %v10877_v8, 4286644096  ;;  %v21012_v3 = vmax.f32 %v12192_v49, %v12193_v7  ;;  %v23512_v49 = vld [vmem:[#allocation102_spill] sm:$0xff]  ;;  %v23517_v29 = vld [vmem:[#allocation15_spill] sm:$0xff] }
 0x4ff   :  { %v9540_v9 = vrot.slane %v9144_v42, %v16632_v16  ;;  %v9547_v36 = vrot.slane %v15013_v14, %v16632_v16  ;;  %v9057_v17 = vadd.f32 %v23512_v49, %v8898_v2  ;;  %v9124_v2 = vmax.f32 %v21010_v39, 0.0 }
 0x500   :  { %23510 = vst [vmem:[#allocation44_spill] sm:$0xff] %v21012_v3  ;;  %v21016_v24 = vsel %vm11550_vm5, %v10891_v45, 4286644096  ;;  %v15289_v45 = vadd.f32 %v20952_v18, %v20945_v47 }
 0x501   :  { %23511 = vst [vmem:[#allocation53_spill] sm:$0xff] %v21016_v24  ;;  %v9548_v23 = vcombine.high %v9540_v9, %v9540_v9  ;;  %v9556_v7 = vrot.slane %v9540_v9, %v16632_v16  ;;  %v9549_v8 = vcombine.high %v9547_v36, %v9547_v36  ;;  %v9563_v6 = vrot.slane %v9547_v36, %v16632_v16 }
 0x503   :  { %v9570_v42 = vrot.slane %v9548_v23, %v16632_v16  ;;  %v9578_v31 = vcombine.high %v9556_v7, %v9556_v7  ;;  %v9958_v57 = vunpack.i.h.s16 %v9556_v7  ;;  %v15047_v14 = vpack.i.b16 %v9556_v7, %v9956_v35 }
 0x504   :  { %v9577_v32 = vrot.slane %v9549_v8, %v16632_v16  ;;  %v9579_v58 = vcombine.high %v9563_v6, %v9563_v6  ;;  %v10954_v9 = vrot.slane %v9563_v6, %v16632_v16 }
 0x505   :  { %v9580_v49 = vcombine.high %v9570_v42, %v9570_v42  ;;  %v15048_v55 = vpack.i.b16 %v9570_v42, %v9958_v57  ;;  %v10898_v51 = vrot.slane %v15047_v14, %v16632_v16  ;;  %v10926_v36 = vrot.slane %v9578_v31, %v16632_v16 }
 0x506   :  { %v9581_v21 = vcombine.high %v9577_v32, %v9577_v32  ;;  %v10961_v47 = vrot.slane %v10954_v9, %v16632_v16  ;;  %v10968_v18 = vrot.slane %v9577_v32, %v16632_v16  ;;  %v10982_v35 = vrot.slane %v9579_v58, %v16632_v16 }
 0x507   :  { %v10905_v23 = vrot.slane %v10898_v51, %v16632_v16  ;;  %v10912_v7 = vrot.slane %v15048_v55, %v16632_v16  ;;  %v10933_v8 = vrot.slane %v10926_v36, %v16632_v16  ;;  %v10940_v39 = vrot.slane %v9580_v49, %v16632_v16 }
 0x508   :  { %v10975_v6 = vrot.slane %v10968_v18, %v16632_v16  ;;  %v12294_v42 = vsel %vm11550_vm5, %v10961_v47, 4286644096  ;;  %v9125_v31 = vmax.f32 %v9057_v17, 0.0  ;;  %v8903_v14 = vadd.f32 %v20960_v13, %v15283_v33 }
 0x509   :  { %v10919_v32 = vrot.slane %v10912_v7, %v16632_v16  ;;  %v10947_v58 = vrot.slane %v10940_v39, %v16632_v16  ;;  %v21049_v51 = vsel %vm11550_vm5, %v10905_v23, 4286644096  ;;  %v21052_v55 = vsel %vm11550_vm5, %v10933_v8, 4286644096 }
 0x50a   :  { %v15293_v57 = vpop.f32.mrb[48].mxu1  ;;  %23513 = vst [vmem:[#allocation75_spill] sm:$0xff] %v21052_v55  ;;  %v9970_v36 = vunpack.i.h.s16 %v9581_v21  ;;  %v10989_v18 = vrot.slane %v10982_v35, %v16632_v16  ;;  %v8906_v33 = vadd.f32 %v20960_v13, %v15286_v61  ;;  %v12296_v39 = vunpack.i.l.bf16 %v12294_v42  ;;  %v23518_v61 = vld [vmem:[#allocation46_spill] sm:$0xff] }
 0x50b   :  { %v15294_v9 = vpop.f32.mrb[49].mxu1  ;;  %v21062_v7 = vsel %vm11550_vm5, %v10919_v32, 4286644096  ;;  %v21065_v23 = vsel %vm11550_vm5, %v10947_v58, 4286644096  ;;  %v12297_v8 = vunpack.i.h.bf16 %v12294_v42  ;;  %v9145_v17 = vpack.c.bf16 %v9125_v31, %v9124_v2 }
 0x50c   :  { %v21054_v49 = vpop.f32.mrb[50].mxu1  ;;  %23514 = vst [vmem:[#allocation50_spill] sm:$0xff] %v21062_v7  ;;  %v12307_v32 = vsel %vm11550_vm5, %v10975_v6, 4286644096  ;;  %v21078_v63 = vsel %vm11550_vm5, %v10989_v18, 4286644096  ;;  %v15014_v21 = vpack.c.bf16 %v9125_v31, %v9125_v31  ;;  %v9062_v26 = vadd.f32 %v23517_v29, %v8903_v14 }
 0x50d   :  { %v21059_v47 = vpop.f32.mrb[51].mxu1  ;;  %v21075_v3 = vmax.f32 %v12296_v39, %v12297_v8  ;;  %v12309_v42 = vunpack.i.l.bf16 %v12307_v32  ;;  %23516 = vst [vmem:[#allocation5_spill] sm:$0xff] %v21078_v63  ;;  %v9589_v35 = vrot.slane %v9145_v17, %v16632_v16  ;;  %v9065_v44 = vadd.f32 %v23518_v61, %v8906_v33  ;;  %v23519_v33 = vld [vmem:[#allocation83_spill] sm:$0xff] }
 0x50e   :  { %v12310_v38 = vunpack.i.h.bf16 %v12307_v32  ;;  %v8911_v6 = vadd.f32 %v20960_v13, %v15289_v45  ;;  %v15292_v2 = vadd.f32 %v20973_v12, %v20964_v62  ;;  %v8587_v39 = vsel %vm8412_vm4, %v20550_v28, %v7894_v60 }
 0x50f   :  { %23515 = vst [vmem:[#allocation111_spill] sm:$0xff] %v21075_v3  ;;  %v9596_v18 = vrot.slane %v15014_v21, %v16632_v16  ;;  %v9597_v31 = vcombine.high %v9589_v35, %v9589_v35  ;;  %v9605_v17 = vrot.slane %v9589_v35, %v16632_v16  ;;  %8940 = vmatprep.mubr.bf16.mxu1 %v8587_v39  ;;  %v9126_v29 = vmax.f32 %v9062_v26, 0.0 }
 0x510   :  { %v9127_v14 = vmax.f32 %v9065_v44, 0.0  ;;  %v21092_v61 = vadd.f32 %v23519_v33, %v8911_v6  ;;  %8941 = vmatmul.mubr.bf16.gmra.mrb[60].mxu1 %v20802_v43  ;;  %v21095_v45 = vadd.f32 %v15294_v9, %v15293_v57 }
 0x511   :  { %v9598_v62 = vcombine.high %v9596_v18, %v9596_v18  ;;  %v9612_v28 = vrot.slane %v9596_v18, %v16632_v16  ;;  %v9619_v60 = vrot.slane %v9597_v31, %v16632_v16  ;;  %v9627_v12 = vcombine.high %v9605_v17, %v9605_v17 }
 0x512   :  { %v9972_v21 = vunpack.i.h.s16 %v9605_v17  ;;  %v15049_v32 = vpack.i.b16 %v9605_v17, %v9970_v36  ;;  %v9146_v8 = vpack.c.bf16 %v9127_v14, %v9126_v29  ;;  %v15015_v35 = vpack.c.bf16 %v9127_v14, %v9127_v14 }
 0x513   :  { %v9626_v26 = vrot.slane %v9598_v62, %v16632_v16  ;;  %v9628_v44 = vcombine.high %v9612_v28, %v9612_v28  ;;  %v9629_v39 = vcombine.high %v9619_v60, %v9619_v60  ;;  %v9974_v6 = vunpack.i.h.s16 %v9619_v60 }
 0x514   :  { %v9976_v33 = vunpack.i.h.s16 %v9627_v12  ;;  %v15050_v58 = vpack.i.b16 %v9619_v60, %v9972_v21  ;;  %v10996_v43 = vrot.slane %v15049_v32, %v16632_v16  ;;  %v9638_v57 = vrot.slane %v9146_v8, %v16632_v16 }
 0x515   :  { %v9630_v9 = vcombine.high %v9626_v26, %v9626_v26  ;;  %v9978_v18 = vunpack.i.h.s16 %v9629_v39  ;;  %v15051_v52 = vpack.i.b16 %v9627_v12, %v9974_v6  ;;  %v11066_v31 = vrot.slane %v9626_v26, %v16632_v16 }
 0x516   :  { %v15052_v7 = vpack.i.b16 %v9629_v39, %v9976_v33  ;;  %v11003_v36 = vrot.slane %v10996_v43, %v16632_v16  ;;  %v11010_v17 = vrot.slane %v15050_v58, %v16632_v16  ;;  %v11080_v29 = vrot.slane %v9628_v44, %v16632_v16  ;;  %v23523_v58 = vld [vmem:[#allocation16_spill] sm:$0xff] }
 0x517   :  { %v15053_v14 = vpack.i.b16 %v9612_v28, %v9978_v18  ;;  %v11024_v62 = vrot.slane %v15051_v52, %v16632_v16  ;;  %v11073_v60 = vrot.slane %v11066_v31, %v16632_v16  ;;  %v11094_v21 = vrot.slane %v9630_v9, %v16632_v16 }
 0x518   :  { %v11017_v8 = vrot.slane %v11010_v17, %v16632_v16  ;;  %v11038_v12 = vrot.slane %v15052_v7, %v16632_v16  ;;  %v11087_v32 = vrot.slane %v11080_v29, %v16632_v16  ;;  %v21113_v26 = vsel %vm11550_vm5, %v11003_v36, 4286644096 }
 0x519   :  { %v11031_v44 = vrot.slane %v11024_v62, %v16632_v16  ;;  %v11052_v28 = vrot.slane %v15053_v14, %v16632_v16  ;;  %v11101_v52 = vrot.slane %v11094_v21, %v16632_v16  ;;  %v21119_v39 = vmax.f32 %v12309_v42, %v12310_v38 }
 0x51a   :  { %v12398_v33 = vsel %vm11550_vm5, %v11073_v60, 4286644096  ;;  %v8914_v7 = vadd.f32 %v20960_v13, %v15292_v2  ;;  %v21125_v43 = vrot.slane %v11038_v12, %v16632_v16  ;;  %v21129_v36 = vsel %vm11550_vm5, %v11017_v8, 4286644096 }
 0x51b   :  { %v11059_v9 = vrot.slane %v11052_v28, %v16632_v16  ;;  %v12400_v18 = vunpack.i.l.bf16 %v12398_v33  ;;  %v12401_v31 = vunpack.i.h.bf16 %v12398_v33  ;;  %23521 = vst [vmem:[#allocation104_spill] sm:$0xff] %v21129_v36  ;;  %v21132_v17 = vsel %vm11550_vm5, %v11087_v32, 4286644096 }
 0x51c   :  { %23520 = vst [vmem:[#allocation105_spill] sm:$0xff] %v21125_v43  ;;  %23522 = vst [vmem:[#allocation74_spill] sm:$0xff] %v21132_v17  ;;  %v9645_v38 = vrot.slane %v15015_v35, %v16632_v16  ;;  %v9646_v42 = vcombine.high %v9638_v57, %v9638_v57  ;;  %v21137_v2 = vsel %vm11550_vm5, %v11031_v44, 4286644096  ;;  %v21141_v62 = vsel %vm11550_vm5, %v11101_v52, 4286644096 }
 0x51d   :  { %v12385_v14 = vsel %vm11550_vm5, %v11059_v9, 4286644096  ;;  %v21143_v21 = vmax.f32 %v12400_v18, %v12401_v31  ;;  %v9654_v35 = vrot.slane %v9638_v57, %v16632_v16  ;;  %v9128_v9 = vmax.f32 %v21092_v61, 0.0 }
 0x51e   :  { %v12387_v60 = vunpack.i.l.bf16 %v12385_v14  ;;  %v9647_v32 = vcombine.high %v9645_v38, %v9645_v38  ;;  %v9661_v28 = vrot.slane %v9645_v38, %v16632_v16  ;;  %v9668_v44 = vrot.slane %v9646_v42, %v16632_v16 }
 0x51f   :  { %v12388_v33 = vunpack.i.h.bf16 %v12385_v14  ;;  %v9073_v52 = vadd.f32 %v23523_v58, %v8914_v7  ;;  %v8919_v18 = vadd.f32 %v20960_v13, %v21095_v45  ;;  %v9676_v8 = vcombine.high %v9654_v35, %v9654_v35 }
 0x520   :  { %v9675_v31 = vrot.slane %v9647_v32, %v16632_v16  ;;  %v9677_v6 = vcombine.high %v9661_v28, %v9661_v28  ;;  %v9678_v12 = vcombine.high %v9668_v44, %v9668_v44  ;;  %v9994_v29 = vunpack.i.h.s16 %v9661_v28 }
 0x521   :  { %v11108_v57 = vrot.slane %v9654_v35, %v16632_v16  ;;  %v11122_v38 = vrot.slane %v9668_v44, %v16632_v16  ;;  %v9129_v43 = vmax.f32 %v9073_v52, 0.0  ;;  %v9990_v14 = vunpack.i.h.s16 %v9676_v8 }
 0x522   :  { %v9679_v42 = vcombine.high %v9675_v31, %v9675_v31  ;;  %v9992_v17 = vunpack.i.h.s16 %v9678_v12  ;;  %v9996_v61 = vunpack.i.h.s16 %v9675_v31  ;;  %v9998_v36 = vunpack.i.h.s16 %v9677_v6 }
 0x523   :  { %v15056_v58 = vpack.i.b16 %v9675_v31, %v9994_v29  ;;  %v11115_v7 = vrot.slane %v11108_v57, %v16632_v16  ;;  %v11129_v45 = vrot.slane %v11122_v38, %v16632_v16  ;;  %v15054_v32 = vpack.i.b16 %v9678_v12, %v9990_v14 }
 0x524   :  { %v15055_v63 = vpack.i.b16 %v9661_v28, %v9992_v17  ;;  %v15057_v3 = vpack.i.b16 %v9677_v6, %v9996_v61  ;;  %v9147_v24 = vpack.c.bf16 %v9129_v43, %v9128_v9  ;;  %v15058_v55 = vpack.i.b16 %v9679_v42, %v9998_v36 }
 0x525   :  { %v11164_v35 = vrot.slane %v15056_v58, %v16632_v16  ;;  %v12437_v44 = vsel %vm11550_vm5, %v11115_v7, 4286644096  ;;  %v12450_v52 = vsel %vm11550_vm5, %v11129_v45, 4286644096  ;;  %v11136_v8 = vrot.slane %v15054_v32, %v16632_v16 }
 0x526   :  { %v11150_v48 = vrot.slane %v15055_v63, %v16632_v16  ;;  %v11178_v29 = vrot.slane %v15057_v3, %v16632_v16  ;;  %v12439_v31 = vunpack.i.l.bf16 %v12437_v44  ;;  %v11192_v17 = vrot.slane %v15058_v55, %v16632_v16 }
 0x527   :  { %v11171_v57 = vrot.slane %v11164_v35, %v16632_v16  ;;  %v12440_v6 = vunpack.i.h.bf16 %v12437_v44  ;;  %v12452_v12 = vunpack.i.l.bf16 %v12450_v52  ;;  %v11143_v36 = vrot.slane %v11136_v8, %v16632_v16 }
 0x528   :  { %v11157_v28 = vrot.slane %v11150_v48, %v16632_v16  ;;  %v11185_v9 = vrot.slane %v11178_v29, %v16632_v16  ;;  %v12453_v38 = vunpack.i.h.bf16 %v12450_v52  ;;  %v21170_v42 = vmax.f32 %v12387_v60, %v12388_v33 }
 0x529   :  { %v15016_v14 = vpack.c.bf16 %v9129_v43, %v9129_v43  ;;  %v21175_v61 = vrot.slane %v11192_v17, %v16632_v16  ;;  %v21177_v55 = vmax.f32 %v12439_v31, %v12440_v6  ;;  %v21180_v58 = vsel %vm11550_vm5, %v11143_v36, 4286644096 }
 0x52a   :  { %23526 = vst [vmem:[#allocation62_spill] sm:$0xff] %v21180_v58  ;;  %v21183_v48 = vsel %vm11550_vm5, %v11157_v28, 4286644096  ;;  %v21185_v7 = vmax.f32 %v12452_v12, %v12453_v38  ;;  %v21189_v33 = vsel %vm11550_vm5, %v11171_v57, 4286644096  ;;  %v9687_v45 = vrot.slane %v9147_v24, %v16632_v16 }
 0x52b   :  { %23524 = vst [vmem:[#allocation113_spill] sm:$0xff] %v21175_v61  ;;  %23525 = vst [vmem:[#allocation112_spill] sm:$0xff] %v21177_v55  ;;  %v21192_v43 = vsel %vm11550_vm5, %v11185_v9, 4286644096  ;;  %v9694_v32 = vrot.slane %v15016_v14, %v16632_v16  ;;  %v21197_v35 = vadd.f32 %v20393_v1, %v8919_v18  ;;  %v15298_v44 = vadd.f32 %v21059_v47, %v21054_v49 }
 0x52c   :  { %23527 = vst [vmem:[#allocation85_spill] sm:$0xff] %v21189_v33  ;;  %v23528_v31 = vrot.slane %v20846_v30, 2  ;;  %v9695_v17 = vcombine.high %v9687_v45, %v9687_v45  ;;  %v9703_v6 = vrot.slane %v9687_v45, %v16632_v16  ;;  %v11662_v49 = vrot.slane %v20889_v46, 4 }
 0x52d   :  { %v9696_v24 = vcombine.high %v9694_v32, %v9694_v32  ;;  %v9710_v1 = vrot.slane %v9694_v32, %v16632_v16  ;;  %v8922_v18 = vadd.f32 %v20960_v13, %v15298_v44  ;;  %v23529_v47 = vunpack.i.h.bf16 %v21049_v51 }
 0x52e   :  { %v11600_v57 = vmax.f32 %v20846_v30, %v23528_v31  ;;  %v23530_v12 = vunpack.i.l.bf16 %v21049_v51  ;;  %v12312_v28 = vrot.slane %v21119_v39, 4  ;;  %v9717_v30 = vrot.slane %v9695_v17, %v16632_v16 }
 0x52f   :  { %v9724_v9 = vrot.slane %v9696_v24, %v16632_v16  ;;  %v9725_v38 = vcombine.high %v9703_v6, %v9703_v6  ;;  %v9726_v14 = vcombine.high %v9710_v1, %v9710_v1  ;;  %v11206_v45 = vrot.slane %v9703_v6, %v16632_v16 }
 0x530   :  { %v21215_v36 = vmax.f32 %v23530_v12, %v23529_v47  ;;  %v11262_v13 = vrot.slane %v9710_v1, %v16632_v16  ;;  %v9081_v32 = vadd.f32 %v20397_v11, %v8922_v18  ;;  %v11601_v44 = vrot.slane %v11600_v57, 1 }
 0x531   :  { %v9727_v31 = vcombine.high %v9717_v30, %v9717_v30  ;;  %v21223_v60 = vcombine.high %v9724_v9, %v9724_v9  ;;  %v10010_v51 = vunpack.i.h.s16 %v9724_v9  ;;  %v10012_v47 = vunpack.i.h.s16 %v9726_v14 }
 0x532   :  { %v11213_v12 = vrot.slane %v11206_v45, %v16632_v16  ;;  %v11220_v17 = vrot.slane %v9717_v30, %v16632_v16  ;;  %v11234_v24 = vrot.slane %v9725_v38, %v16632_v16  ;;  %v11269_v52 = vrot.slane %v11262_v13, %v16632_v16 }
 0x533   :  { %v15059_v8 = vpack.i.b16 %v9726_v14, %v10010_v51  ;;  %v15060_v6 = vpack.i.b16 %v21223_v60, %v10012_v47  ;;  %v11248_v1 = vrot.slane %v9727_v31, %v16632_v16  ;;  %v11663_v11 = vmax.f32 %v20889_v46, %v11662_v49 }
 0x534   :  { %v11227_v18 = vrot.slane %v11220_v17, %v16632_v16  ;;  %v11241_v9 = vrot.slane %v11234_v24, %v16632_v16  ;;  %v12528_v29 = vsel %vm11550_vm5, %v11213_v12, 4286644096  ;;  %v12580_v45 = vsel %vm11550_vm5, %v11269_v52, 4286644096 }
 0x535   :  { %v11255_v30 = vrot.slane %v11248_v1, %v16632_v16  ;;  %v11276_v38 = vrot.slane %v15059_v8, %v16632_v16  ;;  %v11290_v14 = vrot.slane %v15060_v6, %v16632_v16  ;;  %v12530_v13 = vunpack.i.l.bf16 %v12528_v29 }
 0x536   :  { %v12531_v51 = vunpack.i.h.bf16 %v12528_v29  ;;  %v12541_v31 = vsel %vm11550_vm5, %v11227_v18, 4286644096  ;;  %v21241_v46 = vsel %vm11550_vm5, %v11241_v9, 4286644096  ;;  %v11602_v49 = vmax.f32 %v11600_v57, %v11601_v44 }
 0x537   :  { %23531 = vst [vmem:[#allocation110_spill] sm:$0xff] %v21241_v46  ;;  %v11283_v47 = vrot.slane %v11276_v38, %v16632_v16  ;;  %v11297_v12 = vrot.slane %v11290_v14, %v16632_v16  ;;  %v12543_v17 = vunpack.i.l.bf16 %v12541_v31  ;;  %v12544_v52 = vunpack.i.h.bf16 %v12541_v31 }
 0x538   :  { %v10014_v24 = vunpack.i.h.s16 %v21223_v60  ;;  %v21247_v8 = vsel %vm11550_vm5, %v11255_v30, 4286644096  ;;  %v12582_v6 = vunpack.i.l.bf16 %v12580_v45  ;;  %v9130_v29 = vmax.f32 %v21197_v35, 0.0 }
 0x539   :  { %v21250_v1 = vmax.f32 %v12530_v13, %v12531_v51  ;;  %v12583_v44 = vunpack.i.h.bf16 %v12580_v45  ;;  %v21254_v9 = vmax.f32 %v12543_v17, %v12544_v52  ;;  %v21258_v14 = vsel %vm11550_vm5, %v11283_v47, 4286644096 }
 0x53a   :  { %v9131_v60 = vmax.f32 %v9081_v32, 0.0  ;;  %v21262_v31 = vsel %vm11550_vm5, %v11297_v12, 4286644096  ;;  %v11603_v35 = vpack.i.bf16 %v11602_v49, %v11602_v49  ;;  %v11664_v13 = vrot.slane %v11663_v11, 2 }
 0x53b   :  { %23532 = vst [vmem:[#allocation84_spill] sm:$0xff] %v21250_v1  ;;  %23533 = vst [vmem:[#allocation82_spill] sm:$0xff] %v21262_v31  ;;  %v12247_v57 = vrot.slane %v21215_v36, 4  ;;  %v12313_v45 = vmax.f32 %v21119_v39, %v12312_v28  ;;  %v21266_v17 = vmax.f32 %v12582_v6, %v12583_v44  ;;  %v11571_v32 = vrot.slane %v20565_v34, 4  ;;  %v15861_v6 = vld [vmem:[%s22313_s5] sm:$0xff]  }
 0x53c   :  { %v9148_v51 = vpack.c.bf16 %v9131_v60, %v9130_v29  ;;  %v15017_v18 = vpack.c.bf16 %v9131_v60, %v9131_v60  ;;  %v11665_v47 = vmax.f32 %v11663_v11, %v11664_v13  ;;  %v21277_v39 = vsel %vm8379_vm3, %v11603_v35, 4286644096  ;;  %v15860_v11 = vld [vmem:[%s22313_s5 + $0x40] sm:$0xff]  }
 0x53d   :  { %23534 = vst [vmem:[#allocation48_spill] sm:$0xff] %v21266_v17  ;;  %v21273_v49 = vmax.f32 %v21215_v36, %v12247_v57  ;;  %v12314_v29 = vrot.slane %v12313_v45, 2  ;;  %v21280_v28 = vmax.f32 %v20565_v34, %v11571_v32  ;;  %v15862_v36 = vld [vmem:[%s22313_s5 + $0x48] sm:$0xff]   ;;  %v23536_v32 = vunpack.i.l.bf16 %v20586_v50  ;;  %15335 = vmatprep.subr.bf16.mxu1 %v15860_v11 }
 0x53e   :  { %v9736_v38 = vrot.slane %v9148_v51, %v16632_v16  ;;  %v9743_v12 = vrot.slane %v15017_v18, %v16632_v16  ;;  %v11666_v30 = vrot.slane %v11665_v47, 1  ;;  %v23535_v51 = vunpack.i.h.bf16 %v20586_v50  ;;  %15336 = vmatpush3.bf16.msra.mxu1 %v15861_v6  ;;  %v15863_v50 = vld [vmem:[%s22313_s5 + $0x8] sm:$0xff]  }
 0x53f   :  { %v12249_v13 = vrot.slane %v21273_v49, 2  ;;  %v23537_v60 = vunpack.i.h.bf16 %v21007_v20  ;;  %v23538_v63 = vunpack.i.l.bf16 %v21007_v20  ;;  %15337 = vmatprep.subr.bf16.mxu1 %v15862_v36 }
 0x540   :  { %v9744_v18 = vcombine.high %v9736_v38, %v9736_v38  ;;  %v9745_v57 = vcombine.high %v9743_v12, %v9743_v12  ;;  %v9752_v44 = vrot.slane %v9736_v38, %v16632_v16  ;;  %v9759_v35 = vrot.slane %v9743_v12, %v16632_v16 }
 0x541   :  { %v21293_v34 = vmax.f32 %v11665_v47, %v11666_v30  ;;  %v21300_v52 = vmax.f32 %v23536_v32, %v23535_v51  ;;  %v21306_v3 = vmax.f32 %v23538_v63, %v23537_v60  ;;  %v21310_v12 = vmax.f32 %v12313_v45, %v12314_v29 }
 0x542   :  { %v9766_v38 = vrot.slane %v9744_v18, %v16632_v16  ;;  %v9773_v30 = vrot.slane %v9745_v57, %v16632_v16  ;;  %v9775_v47 = vcombine.high %v9759_v35, %v9759_v35  ;;  %v9774_v51 = vcombine.high %v9752_v44, %v9752_v44  ;;  %15338 = vmatpush3.bf16.msra.mxu1 %v15863_v50 }
 0x543   :  { %v10016_v32 = vunpack.i.h.s16 %v9752_v44  ;;  %v15061_v17 = vpack.i.b16 %v9752_v44, %v10014_v24  ;;  %v11360_v20 = vrot.slane %v9759_v35, %v16632_v16 }
 0x544   :  { %v9776_v63 = vcombine.high %v9766_v38, %v9766_v38  ;;  %v9777_v60 = vcombine.high %v9773_v30, %v9773_v30  ;;  %v10018_v11 = vunpack.i.h.s16 %v9766_v38  ;;  %v11374_v18 = vrot.slane %v9773_v30, %v16632_v16 }
 0x545   :  { %v15062_v57 = vpack.i.b16 %v9766_v38, %v10016_v32  ;;  %v11304_v45 = vrot.slane %v15061_v17, %v16632_v16  ;;  %v11367_v29 = vrot.slane %v11360_v20, %v16632_v16  ;;  %v11388_v6 = vrot.slane %v9775_v47, %v16632_v16  ;;  %v15865_v47 = vld [vmem:[%s22313_s5 + $0x10] sm:$0xff]  }
 0x546   :  { %v15063_v31 = vpack.i.b16 %v9774_v51, %v10018_v11  ;;  %v11346_v1 = vrot.slane %v9776_v63, %v16632_v16  ;;  %v11381_v24 = vrot.slane %v11374_v18, %v16632_v16  ;;  %v11402_v36 = vrot.slane %v9777_v60, %v16632_v16 }
 0x547   :  { %v11311_v44 = vrot.slane %v11304_v45, %v16632_v16  ;;  %v11318_v35 = vrot.slane %v15062_v57, %v16632_v16  ;;  %v11395_v38 = vrot.slane %v11388_v6, %v16632_v16  ;;  %v12671_v17 = vsel %vm11550_vm5, %v11367_v29, 4286644096 }
 0x548   :  { %v11332_v50 = vrot.slane %v15063_v31, %v16632_v16  ;;  %v11353_v51 = vrot.slane %v11346_v1, %v16632_v16  ;;  %v11409_v32 = vrot.slane %v11402_v36, %v16632_v16  ;;  %v12673_v20 = vunpack.i.l.bf16 %v12671_v17 }
 0x549   :  { %v11325_v60 = vrot.slane %v11318_v35, %v16632_v16  ;;  %v21340_v11 = vsel %vm11550_vm5, %v11311_v44, 4286644096  ;;  %v12674_v18 = vunpack.i.h.bf16 %v12671_v17  ;;  %v12684_v57 = vsel %vm11550_vm5, %v11381_v24, 4286644096 }
 0x54a   :  { %v11339_v29 = vrot.slane %v11332_v50, %v16632_v16  ;;  %v11668_v1 = vpack.i.bf16 %v21293_v34, %v21293_v34  ;;  %v11573_v6 = vrot.slane %v21280_v28, 2  ;;  %v21352_v44 = vsel %vm11550_vm5, %v11353_v51, 4286644096 }
 0x54b   :  { %v12686_v35 = vunpack.i.l.bf16 %v12684_v57  ;;  %v12687_v24 = vunpack.i.h.bf16 %v12684_v57  ;;  %v21355_v17 = vsel %vm11550_vm5, %v11325_v60, 4286644096  ;;  %v21360_v50 = vsel %vm11550_vm5, %v11409_v32, 4286644096 }
 0x54c   :  { %23541 = vst [vmem:[#allocation64_spill] sm:$0xff] %v21355_v17  ;;  %v12250_v34 = vmax.f32 %v21273_v49, %v12249_v13  ;;  %v21369_v51 = vsel %vm11550_vm5, %v11395_v38, 4286644096  ;;  %v12877_v32 = vsel %vm8379_vm3, %v11668_v1, 4286644096  ;;  %v11574_v49 = vmax.f32 %v21280_v28, %v11573_v6 }
 0x54d   :  { %v11636_v13 = vrot.slane %v21300_v52, 4  ;;  %v23544_v57 = vunpack.i.l.bf16 %v21065_v23  ;;  %v11685_v36 = vunpack.i.l.bf16 %v20644_v27 }
 0x54e   :  { %v12251_v31 = vrot.slane %v12250_v34, 1  ;;  %v11575_v17 = vrot.slane %v11574_v49, 1 }
 0x550   :  { %v15565_v61 = vpop.f32.mrb[72].mxu0 }
 0x551   :  { %v21327_v30 = vpop.f32.mrb[73].mxu0  ;;  %v15864_v61 = vld [vmem:[%s22313_s5 + $0x50] sm:$0xff]  }
 0x552   :  { %23539 = vst [vmem:[#allocation28_spill] sm:$0xff] %v21327_v30  ;;  %v15566_v63 = vpop.f32.mrb[74].mxu0  ;;  %15339 = vmatprep.subr.bf16.mxu1 %v15864_v61  ;;  %v21357_v61 = vmax.f32 %v12673_v20, %v12674_v18  ;;  %v12316_v20 = vrot.slane %v21310_v12, 1  ;;  %v12879_v18 = vmax.bf16 %v12877_v32, %v21277_v39  ;;  %v11637_v39 = vmax.f32 %v21300_v52, %v11636_v13 }
 0x553   :  { %v21343_v45 = vpop.f32.mrb[75].mxu0  ;;  %15340 = vmatpush3.bf16.msra.mxu1 %v15865_v47  ;;  %v21364_v63 = vsel %vm11550_vm5, %v11339_v29, 4286644096  ;;  %v21366_v47 = vmax.f32 %v12686_v35, %v12687_v24  ;;  %v12221_v29 = vrot.slane %v21306_v3, 4  ;;  %v12252_v35 = vmax.f32 %v12250_v34, %v12251_v31 }
 0x554   :  { %23540 = vst [vmem:[#allocation91_spill] sm:$0xff] %v21343_v45  ;;  %23542 = vst [vmem:[#allocation87_spill] sm:$0xff] %v21357_v61  ;;  %v12317_v38 = vmax.f32 %v21310_v12, %v12316_v20  ;;  %v23543_v24 = vunpack.i.h.bf16 %v21065_v23  ;;  %v13225_v1 = vunpack.c.l.b16 %v12879_v18  ;;  %v11686_v12 = vunpack.i.h.bf16 %v20644_v27 }
 0x555   :  { %v12222_v28 = vmax.f32 %v21306_v3, %v12221_v29  ;;  %v12253_v32 = vpack.i.bf16 %v12252_v35, %v12252_v35  ;;  %v11576_v61 = vmax.f32 %v11574_v49, %v11575_v17  ;;  %v11638_v23 = vrot.slane %v11637_v39, 2 }
 0x556   :  { %v12285_v60 = vmax.f32 %v23544_v57, %v23543_v24  ;;  %v12318_v31 = vpack.i.bf16 %v12317_v38, %v12317_v38  ;;  %v23545_v24 = vunpack.i.h.bf16 %v20678_v22  ;;  %v23546_v18 = vunpack.i.l.bf16 %v20678_v22 }
 0x557   :  { %v12223_v57 = vrot.slane %v12222_v28, 2  ;;  %v13049_v3 = vsel %vm8379_vm3, %v12253_v32, 4286644096  ;;  %v11687_v35 = vmax.f32 %v11685_v36, %v11686_v12  ;;  %v11577_v46 = vpack.i.bf16 %v11576_v61, %v11576_v61  ;;  %v15866_v61 = vld [vmem:[%s22313_s5 + $0x58] sm:$0xff]  }
 0x558   :  { %v12286_v34 = vrot.slane %v12285_v60, 4  ;;  %v11752_v58 = vmax.f32 %v23546_v18, %v23545_v24  ;;  %v13052_v13 = vsel %vm8379_vm3, %v12318_v31, 4286644096  ;;  %v11639_v17 = vmax.f32 %v11637_v39, %v11638_v23  ;;  %v15867_v39 = vld [vmem:[%s22313_s5 + $0x18] sm:$0xff]   ;;  %15341 = vmatprep.subr.bf16.mxu1 %v15866_v61 }
 0x559   :  { %v13054_v27 = vmax.bf16 %v13052_v13, %v13049_v3  ;;  %v12224_v49 = vmax.f32 %v12222_v28, %v12223_v57  ;;  %v11688_v55 = vrot.slane %v11687_v35, 4  ;;  %v23547_v22 = vunpack.i.h.bf16 %v21113_v26  ;;  %15342 = vmatpush3.bf16.msra.mxu1 %v15867_v39 }
 0x55a   :  { %v12287_v29 = vmax.f32 %v12285_v60, %v12286_v34  ;;  %v11753_v16 = vrot.slane %v11752_v58, 4  ;;  %v23548_v24 = vunpack.i.l.bf16 %v21113_v26  ;;  %v11640_v32 = vrot.slane %v11639_v17, 1  ;;  %v15868_v26 = vld [vmem:[%s22313_s5 + $0xc0] sm:$0xff]  }
 0x55b   :  { %v13226_v45 = vunpack.c.l.b16 %v13054_v27  ;;  %v12225_v30 = vrot.slane %v12224_v49, 1  ;;  %v12860_v60 = vsel %vm8379_vm3, %v11577_v46, 4286644096  ;;  %v11689_v31 = vmax.f32 %v11687_v35, %v11688_v55  ;;  %15357 = vmatprep.subr.bf16.mxu0 %v15868_v26  ;;  %v15871_v27 = vld [vmem:[%s22313_s5 + $0x20] sm:$0xff]  }
 0x55c   :  { %v21387_v6 = vpop.f32.mrb[52].mxu1  ;;  %v12288_v33 = vrot.slane %v12287_v29, 2  ;;  %v12337_v18 = vmax.f32 %v23548_v24, %v23547_v22  ;;  %v11754_v34 = vmax.f32 %v11752_v58, %v11753_v16  ;;  %v11641_v23 = vmax.f32 %v11639_v17, %v11640_v32  ;;  %v15869_v16 = vld [vmem:[%s22313_s5 + $0x80] sm:$0xff]   ;;  %v15873_v32 = vld [vmem:[%s22313_s5 + $0x88] sm:$0xff]  }
 0x55d   :  { %v21390_v20 = vpop.f32.mrb[53].mxu1  ;;  %v13227_v28 = vsel %vm13206_vm6, %v13226_v45, %v13225_v1  ;;  %v12226_v46 = vmax.f32 %v12224_v49, %v12225_v30  ;;  %v12403_v55 = vrot.slane %v21143_v21, 4  ;;  %v15870_v58 = vld [vmem:[%s22313_s5 + $0x60] sm:$0xff]   ;;  %v11690_v3 = vrot.slane %v11689_v31, 2  ;;  %v15872_v30 = vld [vmem:[%s22313_s5 + $0xc8] sm:$0xff]   ;;  %15358 = vmatpush3.bf16.msra.mxu0 %v15869_v16 }
 0x55e   :  { %v21396_v52 = vpop.f32.mrb[54].mxu1  ;;  %v12289_v36 = vmax.f32 %v12287_v29, %v12288_v33  ;;  %v12338_v12 = vrot.slane %v12337_v18, 4  ;;  %v13228_v33 = vpack.c.b16 %v13227_v28, %v13227_v28  ;;  %v11755_v13 = vrot.slane %v11754_v34, 2  ;;  %15343 = vmatprep.subr.bf16.mxu1 %v15870_v58  ;;  %15359 = vmatprep.subr.bf16.mxu0 %v15872_v30 }
 0x55f   :  { %v21400_v38 = vpop.f32.mrb[55].mxu1  ;;  %v11642_v45 = vpack.i.bf16 %v11641_v23, %v11641_v23  ;;  %v12227_v1 = vpack.i.bf16 %v12226_v46, %v12226_v46  ;;  %v12404_v35 = vmax.f32 %v21143_v21, %v12403_v55  ;;  %v11691_v49 = vmax.f32 %v11689_v31, %v11690_v3  ;;  %v15874_v21 = vld [vmem:[%s22313_s5 + $0x68] sm:$0xff]   ;;  %15344 = vmatpush3.bf16.msra.mxu1 %v15871_v27 }
 0x560   :  { %v12290_v57 = vrot.slane %v12289_v36, 1  ;;  %v12339_v29 = vmax.f32 %v12337_v18, %v12338_v12  ;;  %13229 = vrot.lane.b32.xlu0 %v13228_v33, %s15995_s2  ;;  %v11756_v22 = vmax.f32 %v11754_v34, %v11755_v13  ;;  %v11714_v24 = vrot.slane %v20659_v53, 4  ;;  %v15876_v18 = vld [vmem:[%s22313_s5 + $0xd0] sm:$0xff]   ;;  %v15875_v3 = vld [vmem:[%s22313_s5 + $0x28] sm:$0xff]   ;;  %15345 = vmatprep.subr.bf16.mxu1 %v15874_v21 }
 0x561   :  { %v12863_v12 = vsel %vm8379_vm3, %v11642_v45, 4286644096  ;;  %v12405_v34 = vrot.slane %v12404_v35, 2  ;;  %v11692_v26 = vrot.slane %v11691_v49, 1  ;;  %v23549_v16 = vunpack.i.h.bf16 %v20689_v41  ;;  %15360 = vmatpush3.bf16.msra.mxu0 %v15873_v32 }
 0x562   :  { %v12291_v17 = vmax.f32 %v12289_v36, %v12290_v57  ;;  %v13035_v36 = vsel %vm8379_vm3, %v12227_v1, 4286644096  ;;  %v12340_v31 = vrot.slane %v12339_v29, 2  ;;  %v12865_v39 = vmax.bf16 %v12863_v12, %v12860_v60  ;;  %15361 = vmatprep.subr.bf16.mxu0 %v15876_v18  ;;  %v15879_v18 = vld [vmem:[%s22313_s5 + $0x30] sm:$0xff]  }
 0x563   :  { %v11757_v28 = vrot.slane %v11756_v22, 1  ;;  %v12406_v46 = vmax.f32 %v12404_v35, %v12405_v34  ;;  %v11715_v55 = vmax.f32 %v20659_v53, %v11714_v24  ;;  %v23550_v33 = vunpack.i.l.bf16 %v20689_v41  ;;  %v15877_v53 = vld [vmem:[%s22313_s5 + $0x90] sm:$0xff]   ;;  %15346 = vmatpush3.bf16.msra.mxu1 %v15875_v3 }
 0x564   :  { %v12292_v61 = vpack.i.bf16 %v12291_v17, %v12291_v17  ;;  %v12341_v23 = vmax.f32 %v12339_v29, %v12340_v31  ;;  %v13211_v13 = vunpack.c.l.b16 %v12865_v39  ;;  %v11693_v60 = vmax.f32 %v11691_v49, %v11692_v26  ;;  %v15878_v41 = vld [vmem:[%s22313_s5 + $0x70] sm:$0xff]   ;;  %v15880_v49 = vld [vmem:[%s22313_s5 + $0xd8] sm:$0xff]  }
 0x565   :  { %v11778_v57 = vmax.f32 %v23550_v33, %v23549_v16  ;;  %v11758_v30 = vmax.f32 %v11756_v22, %v11757_v28  ;;  %v12407_v35 = vrot.slane %v12406_v46, 1  ;;  %v11716_v27 = vrot.slane %v11715_v55, 2  ;;  %15362 = vmatpush3.bf16.msra.mxu0 %v15877_v53  ;;  %15347 = vmatprep.subr.bf16.mxu1 %v15878_v41 }
 0x566   :  { %v13038_v58 = vsel %vm8379_vm3, %v12292_v61, 4286644096  ;;  %v12342_v29 = vrot.slane %v12341_v23, 1  ;;  %v11694_v22 = vpack.i.bf16 %v11693_v60, %v11693_v60  ;;  %v12361_v21 = vunpack.i.l.bf16 %v21137_v2  ;;  %15363 = vmatprep.subr.bf16.mxu0 %v15880_v49  ;;  %v15882_v60 = vld [vmem:[%s22313_s5 + $0x78] sm:$0xff]  }
 0x567   :  { %v21453_v45 = vpop.f32.mrb[56].mxu1  ;;  %v13040_v1 = vmax.bf16 %v13038_v58, %v13035_v36  ;;  %v11759_v24 = vpack.i.bf16 %v11758_v30, %v11758_v30  ;;  %v11779_v32 = vrot.slane %v11778_v57, 4  ;;  %v12408_v36 = vmax.f32 %v12406_v46, %v12407_v35  ;;  %15348 = vmatpush3.bf16.msra.mxu1 %v15879_v18 }
 0x568   :  { %v21461_v17 = vpop.f32.mrb[57].mxu1  ;;  %v12343_v34 = vmax.f32 %v12341_v23, %v12342_v29  ;;  %v11717_v61 = vmax.f32 %v11715_v55, %v11716_v27  ;;  %v12888_v26 = vsel %vm8379_vm3, %v11694_v22, 4286644096  ;;  %v12362_v33 = vunpack.i.h.bf16 %v21137_v2  ;;  %v15881_v23 = vld [vmem:[%s22313_s5 + $0x98] sm:$0xff]   ;;  %v15884_v2 = vld [vmem:[%s22313_s5 + $0xe0] sm:$0xff]   ;;  %15349 = vmatprep.subr.bf16.mxu1 %v15882_v60 }
 0x569   :  { %v21467_v12 = vpop.f32.mrb[58].mxu1  ;;  %v13212_v31 = vunpack.c.l.b16 %v13040_v1  ;;  %v12891_v28 = vsel %vm8379_vm3, %v11759_v24, 4286644096  ;;  %v11780_v16 = vmax.f32 %v11778_v57, %v11779_v32  ;;  %v12409_v3 = vpack.i.bf16 %v12408_v36, %v12408_v36  ;;  %v15883_v22 = vld [vmem:[%s22313_s5 + $0x38] sm:$0xff]   ;;  %15364 = vmatpush3.bf16.msra.mxu0 %v15881_v23 }
 0x56a   :  { %v21469_v39 = vpop.f32.mrb[59].mxu1  ;;  %v12344_v55 = vpack.i.bf16 %v12343_v34, %v12343_v34  ;;  %v12893_v58 = vmax.bf16 %v12891_v28, %v12888_v26  ;;  %v11718_v30 = vrot.slane %v11717_v61, 1  ;;  %v12363_v41 = vmax.f32 %v12361_v21, %v12362_v33  ;;  %v15885_v34 = vld [vmem:[%s22313_s5 + $0xa0] sm:$0xff]   ;;  %15365 = vmatprep.subr.bf16.mxu0 %v15884_v2 }
 0x56b   :  { %v13213_v46 = vsel %vm13206_vm6, %v13212_v31, %v13211_v13  ;;  %v11781_v53 = vrot.slane %v11780_v16, 2  ;;  %v13066_v13 = vsel %vm8379_vm3, %v12409_v3, 4286644096  ;;  %v23551_v35 = vunpack.i.h.bf16 %v21141_v62  ;;  %15350 = vmatpush3.bf16.msra.mxu1 %v15883_v22 }
 0x56c   :  { %v13214_v57 = vpack.c.b16 %v13213_v46, %v13213_v46  ;;  %v13063_v1 = vsel %vm8379_vm3, %v12344_v55, 4286644096  ;;  %v13239_v29 = vunpack.c.l.b16 %v12893_v58  ;;  %v23552_v27 = vunpack.i.l.bf16 %v21141_v62 }
 0x56d   :  { %v13068_v24 = vmax.bf16 %v13066_v13, %v13063_v1  ;;  %v11719_v32 = vmax.f32 %v11717_v61, %v11718_v30  ;;  %v11782_v21 = vmax.f32 %v11780_v16, %v11781_v53  ;;  %v12364_v31 = vrot.slane %v12363_v41, 4  ;;  %15366 = vmatpush3.bf16.msra.mxu0 %v15885_v34 }
 0x56e   :  { %v12428_v49 = vmax.f32 %v23552_v27, %v23551_v35  ;;  %13215 = vrot.lane.b32.xlu1 %v13214_v57, %s15995_s2  ;;  %v23553_v62 = vunpack.i.h.bf16 %v20662_v56  ;;  %v23554_v18 = vunpack.i.l.bf16 %v20662_v56  ;;  %v23555_v28 = vunpack.i.h.bf16 %v20692_v40 }
 0x56f   :  { %v23556_v33 = vunpack.i.l.bf16 %v20692_v40  ;;  %v12390_v61 = vrot.slane %v21170_v42, 4  ;;  %v13240_v16 = vunpack.c.l.b16 %v13068_v24  ;;  %v11720_v23 = vpack.i.bf16 %v11719_v32, %v11719_v32 }
 0x570   :  { %v12429_v36 = vrot.slane %v12428_v49, 4  ;;  %v11739_v26 = vmax.f32 %v23554_v18, %v23553_v62  ;;  %v11783_v55 = vrot.slane %v11782_v21, 1  ;;  %v12365_v3 = vmax.f32 %v12363_v41, %v12364_v31  ;;  %v15886_v41 = vld [vmem:[%s22313_s5 + $0x140] sm:$0xff]   ;;  %v15888_v62 = vld [vmem:[%s22313_s5 + $0xe8] sm:$0xff]  }
 0x571   :  { %v11804_v46 = vmax.f32 %v23556_v33, %v23555_v28  ;;  %v12391_v53 = vmax.f32 %v21170_v42, %v12390_v61  ;;  %v13241_v56 = vsel %vm13206_vm6, %v13240_v16, %v13239_v29  ;;  %v12902_v40 = vsel %vm8379_vm3, %v11720_v23, 4286644096  ;;  %15379 = vmatprep.subr.bf16.mxu1 %v15886_v41  ;;  %v15889_v18 = vld [vmem:[%s22313_s5 + $0xa8] sm:$0xff]   ;;  %15367 = vmatprep.subr.bf16.mxu0 %v15888_v62 }
 0x572   :  { %v12430_v58 = vmax.f32 %v12428_v49, %v12429_v36  ;;  %v11740_v57 = vrot.slane %v11739_v26, 4  ;;  %v11784_v1 = vmax.f32 %v11782_v21, %v11783_v55  ;;  %v12366_v13 = vrot.slane %v12365_v3, 2  ;;  %15368 = vmatpush3.bf16.msra.mxu0 %v15889_v18  ;;  %v15897_v18 = vld [vmem:[%s22313_s5 + $0xb8] sm:$0xff]  }
 0x573   :  { %v11805_v30 = vrot.slane %v11804_v46, 4  ;;  %v13242_v35 = vpack.c.b16 %v13241_v56, %v13241_v56  ;;  %v12392_v32 = vrot.slane %v12391_v53, 2  ;;  %v12455_v42 = vrot.slane %v21185_v7, 4 }
 0x574   :  { %v12431_v60 = vrot.slane %v12430_v58, 2  ;;  %v11741_v2 = vmax.f32 %v11739_v26, %v11740_v57  ;;  %v11785_v49 = vpack.i.bf16 %v11784_v1, %v11784_v1  ;;  %v12367_v24 = vmax.f32 %v12365_v3, %v12366_v13 }
 0x575   :  { %v11806_v27 = vmax.f32 %v11804_v46, %v11805_v30  ;;  %13243 = vrot.lane.b32.xlu1 %v13242_v35, %s15995_s2  ;;  %v23557_v31 = vunpack.i.h.bf16 %v20698_v25  ;;  %v23558_v34 = vunpack.i.l.bf16 %v20698_v25  ;;  %v12393_v33 = vmax.f32 %v12391_v53, %v12392_v32  ;;  %v15892_v53 = vld [vmem:[%s22313_s5 + $0xf0] sm:$0xff]  }
 0x576   :  { %v12432_v29 = vmax.f32 %v12430_v58, %v12431_v60  ;;  %v11742_v22 = vrot.slane %v11741_v2, 2  ;;  %v12368_v26 = vrot.slane %v12367_v24, 1  ;;  %v12905_v28 = vsel %vm8379_vm3, %v11785_v49, 4286644096  ;;  %15369 = vmatprep.subr.bf16.mxu0 %v15892_v53 }
 0x577   :  { %v11807_v21 = vrot.slane %v11806_v27, 2  ;;  %v11830_v36 = vmax.f32 %v23558_v34, %v23557_v31  ;;  %v12456_v46 = vmax.f32 %v21185_v7, %v12455_v42  ;;  %v12907_v16 = vmax.bf16 %v12905_v28, %v12902_v40  ;;  %v15893_v7 = vld [vmem:[%s22313_s5 + $0xb0] sm:$0xff]  }
 0x578   :  { %v12433_v61 = vrot.slane %v12432_v29, 1  ;;  %v11743_v23 = vmax.f32 %v11741_v2, %v11742_v22  ;;  %v12369_v55 = vmax.f32 %v12367_v24, %v12368_v26  ;;  %v12394_v3 = vrot.slane %v12393_v33, 1  ;;  %15370 = vmatpush3.bf16.msra.mxu0 %v15893_v7 }
 0x579   :  { %v11808_v25 = vmax.f32 %v11806_v27, %v11807_v21  ;;  %v12457_v58 = vrot.slane %v12456_v46, 2  ;;  %v11831_v57 = vrot.slane %v11830_v36, 4  ;;  %v13253_v56 = vunpack.c.l.b16 %v12907_v16 }
 0x57a   :  { %v12434_v30 = vmax.f32 %v12432_v29, %v12433_v61  ;;  %v11744_v1 = vrot.slane %v11743_v23, 1  ;;  %v12370_v40 = vpack.i.bf16 %v12369_v55, %v12369_v55  ;;  %v12395_v35 = vmax.f32 %v12393_v33, %v12394_v3 }
 0x57b   :  { %v11809_v13 = vrot.slane %v11808_v25, 1  ;;  %v12458_v60 = vmax.f32 %v12456_v46, %v12457_v58  ;;  %v11832_v2 = vmax.f32 %v11830_v36, %v11831_v57  ;;  %v11893_v24 = vunpack.i.l.bf16 %v20751_v54  ;;  %v15896_v36 = vld [vmem:[%s22313_s5 + $0xf8] sm:$0xff]  }
 0x57c   :  { %v12435_v27 = vpack.i.bf16 %v12434_v30, %v12434_v30  ;;  %v11745_v41 = vmax.f32 %v11743_v23, %v11744_v1  ;;  %v13077_v32 = vsel %vm8379_vm3, %v12370_v40, 4286644096  ;;  %v12396_v42 = vpack.i.bf16 %v12395_v35, %v12395_v35  ;;  %15371 = vmatprep.subr.bf16.mxu0 %v15896_v36 }
 0x57d   :  { %v11810_v49 = vmax.f32 %v11808_v25, %v11809_v13  ;;  %v12459_v29 = vrot.slane %v12458_v60, 1  ;;  %v11833_v22 = vrot.slane %v11832_v2, 2  ;;  %v11894_v62 = vunpack.i.h.bf16 %v20751_v54  ;;  %15372 = vmatpush3.bf16.msra.mxu0 %v15897_v18 }
 0x57e   :  { %v13080_v21 = vsel %vm8379_vm3, %v12435_v27, 4286644096  ;;  %v11746_v31 = vpack.i.bf16 %v11745_v41, %v11745_v41  ;;  %v13091_v33 = vsel %vm8379_vm3, %v12396_v42, 4286644096  ;;  %v23559_v54 = vunpack.i.h.bf16 %v21183_v48 }
 0x57f   :  { %v11811_v34 = vpack.i.bf16 %v11810_v49, %v11810_v49  ;;  %v13082_v26 = vmax.bf16 %v13080_v21, %v13077_v32  ;;  %v12460_v28 = vmax.f32 %v12458_v60, %v12459_v29  ;;  %v11834_v46 = vmax.f32 %v11832_v2, %v11833_v22 }
 0x580   :  { %v12916_v61 = vsel %vm8379_vm3, %v11746_v31, 4286644096  ;;  %v11895_v23 = vmax.f32 %v11893_v24, %v11894_v62  ;;  %v23560_v25 = vunpack.i.l.bf16 %v21183_v48  ;;  %v12546_v53 = vrot.slane %v21254_v9, 4 }
 0x581   :  { %v12919_v16 = vsel %vm8379_vm3, %v11811_v34, 4286644096  ;;  %v13254_v3 = vunpack.c.l.b16 %v13082_v26  ;;  %v12461_v58 = vpack.i.bf16 %v12460_v28, %v12460_v28  ;;  %v11835_v30 = vrot.slane %v11834_v46, 1 }
 0x582   :  { %v12480_v55 = vmax.f32 %v23560_v25, %v23559_v54  ;;  %v12921_v57 = vmax.bf16 %v12919_v16, %v12916_v61  ;;  %v11896_v1 = vrot.slane %v11895_v23, 4  ;;  %v11857_v7 = vrot.slane %v20759_v15, 4 }
 0x583   :  { %v13255_v40 = vsel %vm13206_vm6, %v13254_v3, %v13253_v56  ;;  %v13094_v35 = vsel %vm8379_vm3, %v12461_v58, 4286644096  ;;  %v11836_v2 = vmax.f32 %v11834_v46, %v11835_v30  ;;  %v12547_v32 = vmax.f32 %v21254_v9, %v12546_v53 }
 0x584   :  { %v12481_v13 = vrot.slane %v12480_v55, 4  ;;  %v13267_v60 = vunpack.c.l.b16 %v12921_v57  ;;  %v13256_v48 = vpack.c.b16 %v13255_v40, %v13255_v40  ;;  %v13096_v27 = vmax.bf16 %v13094_v35, %v13091_v33 }
 0x585   :  { %v11897_v41 = vmax.f32 %v11895_v23, %v11896_v1  ;;  %v11837_v24 = vpack.i.bf16 %v11836_v2, %v11836_v2  ;;  %v11858_v42 = vmax.f32 %v20759_v15, %v11857_v7  ;;  %v11919_v29 = vunpack.i.l.bf16 %v20797_v59 }
 0x586   :  { %v12482_v49 = vmax.f32 %v12480_v55, %v12481_v13  ;;  %13257 = vrot.lane.b32.xlu0 %v13256_v48, %s15995_s2  ;;  %v13268_v22 = vunpack.c.l.b16 %v13096_v27  ;;  %v11920_v31 = vunpack.i.h.bf16 %v20797_v59  ;;  %v12548_v34 = vrot.slane %v12547_v32, 2 }
 0x587   :  { %v11898_v21 = vrot.slane %v11897_v41, 2  ;;  %v12930_v62 = vsel %vm8379_vm3, %v11837_v24, 4286644096  ;;  %v11859_v36 = vrot.slane %v11858_v42, 2  ;;  %v12504_v18 = vunpack.i.l.bf16 %v21192_v43 }
 0x588   :  { %v12483_v56 = vrot.slane %v12482_v49, 2  ;;  %v13269_v26 = vsel %vm13206_vm6, %v13268_v22, %v13267_v60  ;;  %v11921_v15 = vmax.f32 %v11919_v29, %v11920_v31  ;;  %v12549_v46 = vmax.f32 %v12547_v32, %v12548_v34  ;;  %v15900_v60 = vld [vmem:[%s22313_s5 + $0x1c0] sm:$0xff]  }
 0x589   :  { %v11899_v9 = vmax.f32 %v11897_v41, %v11898_v21  ;;  %v13270_v33 = vpack.c.b16 %v13269_v26, %v13269_v26  ;;  %v11860_v61 = vmax.f32 %v11858_v42, %v11859_v36  ;;  %v12505_v16 = vunpack.i.h.bf16 %v21192_v43  ;;  %15401 = vmatprep.subr.bf16.mxu0 %v15900_v60 }
 0x58a   :  { %v12484_v28 = vmax.f32 %v12482_v49, %v12483_v56  ;;  %v11922_v25 = vrot.slane %v11921_v15, 4  ;;  %v23561_v59 = vunpack.i.h.bf16 %v21247_v8  ;;  %v23562_v55 = vunpack.i.l.bf16 %v21247_v8 }
 0x58b   :  { %v11900_v23 = vrot.slane %v11899_v9, 1  ;;  %13271 = vrot.lane.b32.xlu1 %v13270_v33, %s15995_s2  ;;  %v12550_v58 = vrot.slane %v12549_v46, 1  ;;  %v11861_v57 = vrot.slane %v11860_v61, 1  ;;  %v12506_v30 = vmax.f32 %v12504_v18, %v12505_v16 }
 0x58c   :  { %v12485_v54 = vrot.slane %v12484_v28, 1  ;;  %v12571_v3 = vmax.f32 %v23562_v55, %v23561_v59  ;;  %v23563_v1 = vunpack.i.h.bf16 %v20807_v19  ;;  %v23564_v13 = vunpack.i.l.bf16 %v20807_v19 }
 0x58d   :  { %v11901_v7 = vmax.f32 %v11899_v9, %v11900_v23  ;;  %v11923_v40 = vmax.f32 %v11921_v15, %v11922_v25  ;;  %v12551_v8 = vmax.f32 %v12549_v46, %v12550_v58  ;;  %v11862_v2 = vmax.f32 %v11860_v61, %v11861_v57 }
 0x58e   :  { %v11973_v53 = vmax.f32 %v23564_v13, %v23563_v1  ;;  %v12486_v43 = vmax.f32 %v12484_v28, %v12485_v54  ;;  %v12572_v35 = vrot.slane %v12571_v3, 4  ;;  %v12507_v48 = vrot.slane %v12506_v30, 4 }
 0x58f   :  { %v11902_v41 = vpack.i.bf16 %v11901_v7, %v11901_v7  ;;  %v11924_v24 = vrot.slane %v11923_v40, 2  ;;  %v12552_v42 = vpack.i.bf16 %v12551_v8, %v12551_v8  ;;  %v11863_v19 = vpack.i.bf16 %v11862_v2, %v11862_v2 }
 0x590   :  { %v11974_v27 = vrot.slane %v11973_v53, 4  ;;  %v12487_v49 = vpack.i.bf16 %v12486_v43, %v12486_v43  ;;  %v12573_v32 = vmax.f32 %v12571_v3, %v12572_v35  ;;  %v12508_v29 = vmax.f32 %v12506_v30, %v12507_v48 }
 0x591   :  { %v12933_v21 = vsel %vm8379_vm3, %v11902_v41, 4286644096  ;;  %v11925_v31 = vmax.f32 %v11923_v40, %v11924_v24  ;;  %v13108_v18 = vsel %vm8379_vm3, %v12552_v42, 4286644096  ;;  %v12944_v9 = vsel %vm8379_vm3, %v11863_v19, 4286644096 }
 0x592   :  { %v11975_v22 = vmax.f32 %v11973_v53, %v11974_v27  ;;  %v13105_v56 = vsel %vm8379_vm3, %v12487_v49, 4286644096  ;;  %v12574_v34 = vrot.slane %v12573_v32, 2  ;;  %v12935_v36 = vmax.bf16 %v12933_v21, %v12930_v62 }
 0x593   :  { %v12509_v26 = vrot.slane %v12508_v29, 2  ;;  %v13110_v28 = vmax.bf16 %v13108_v18, %v13105_v56  ;;  %v11926_v15 = vrot.slane %v11925_v31, 1  ;;  %v12036_v23 = vunpack.i.l.bf16 %v20901_v4 }
 0x594   :  { %v12575_v33 = vmax.f32 %v12573_v32, %v12574_v34  ;;  %v11976_v46 = vrot.slane %v11975_v22, 2  ;;  %v13281_v61 = vunpack.c.l.b16 %v12935_v36  ;;  %v12037_v54 = vunpack.i.h.bf16 %v20901_v4 }
 0x595   :  { %v12510_v16 = vmax.f32 %v12508_v29, %v12509_v26  ;;  %v13282_v25 = vunpack.c.l.b16 %v13110_v28  ;;  %v11927_v59 = vmax.f32 %v11925_v31, %v11926_v15  ;;  %v23565_v57 = vunpack.i.h.bf16 %v21340_v11 }
 0x596   :  { %v12576_v55 = vrot.slane %v12575_v33, 1  ;;  %v11977_v3 = vmax.f32 %v11975_v22, %v11976_v46  ;;  %v12038_v58 = vmax.f32 %v12036_v23, %v12037_v54  ;;  %v23566_v30 = vunpack.i.l.bf16 %v21340_v11 }
 0x597   :  { %v12511_v62 = vrot.slane %v12510_v16, 1  ;;  %v12689_v13 = vrot.slane %v21366_v47, 4  ;;  %v13283_v53 = vsel %vm13206_vm6, %v13282_v25, %v13281_v61  ;;  %v11928_v7 = vpack.i.bf16 %v11927_v59, %v11927_v59 }
 0x598   :  { %v12623_v1 = vmax.f32 %v23566_v30, %v23565_v57  ;;  %v12577_v43 = vmax.f32 %v12575_v33, %v12576_v55  ;;  %v11978_v40 = vrot.slane %v11977_v3, 1  ;;  %v13284_v35 = vpack.c.b16 %v13283_v53, %v13283_v53 }
 0x599   :  { %v12512_v4 = vmax.f32 %v12510_v16, %v12511_v62  ;;  %v12039_v60 = vrot.slane %v12038_v58, 4  ;;  %v12947_v48 = vsel %vm8379_vm3, %v11928_v7, 4286644096  ;;  %v12690_v41 = vmax.f32 %v21366_v47, %v12689_v13 }
 0x59a   :  { %v12624_v8 = vrot.slane %v12623_v1, 4  ;;  %v12578_v2 = vpack.i.bf16 %v12577_v43, %v12577_v43  ;;  %v11979_v27 = vmax.f32 %v11977_v3, %v11978_v40  ;;  %13285 = vrot.lane.b32.xlu0 %v13284_v35, %s15995_s2  ;;  %v12949_v49 = vmax.bf16 %v12947_v48, %v12944_v9 }
 0x59b   :  { %v12513_v11 = vpack.i.bf16 %v12512_v4, %v12512_v4  ;;  %v12040_v24 = vmax.f32 %v12038_v58, %v12039_v60  ;;  %v12691_v29 = vrot.slane %v12690_v41, 2  ;;  %v11948_v22 = vrot.slane %v20812_v0, 4 }
 0x59c   :  { %v12625_v32 = vmax.f32 %v12623_v1, %v12624_v8  ;;  %v13122_v42 = vsel %vm8379_vm3, %v12578_v2, 4286644096  ;;  %v11980_v19 = vpack.i.bf16 %v11979_v27, %v11979_v27  ;;  %v13295_v56 = vunpack.c.l.b16 %v12949_v49 }
 0x59d   :  { %v13119_v21 = vsel %vm8379_vm3, %v12513_v11, 4286644096  ;;  %v12041_v31 = vrot.slane %v12040_v24, 2  ;;  %v12692_v18 = vmax.f32 %v12690_v41, %v12691_v29  ;;  %v11949_v26 = vmax.f32 %v20812_v0, %v11948_v22 }
 0x59e   :  { %v12626_v34 = vrot.slane %v12625_v32, 2  ;;  %v13124_v36 = vmax.bf16 %v13122_v42, %v13119_v21  ;;  %v12972_v47 = vsel %vm8379_vm3, %v11980_v19, 4286644096  ;;  %v23567_v15 = vunpack.i.h.bf16 %v20818_v5 }
 0x59f   :  { %v12042_v9 = vmax.f32 %v12040_v24, %v12041_v31  ;;  %v23568_v33 = vunpack.i.l.bf16 %v20818_v5  ;;  %v23569_v61 = vunpack.i.h.bf16 %v21258_v14  ;;  %v23570_v16 = vunpack.i.l.bf16 %v21258_v14 }
 0x5a0   :  { %v12627_v28 = vmax.f32 %v12625_v32, %v12626_v34  ;;  %v13296_v54 = vunpack.c.l.b16 %v13124_v36  ;;  %v12693_v25 = vrot.slane %v12692_v18, 1  ;;  %v11950_v59 = vrot.slane %v11949_v26, 2 }
 0x5a1   :  { %v12012_v46 = vmax.f32 %v23568_v33, %v23567_v15  ;;  %v12597_v23 = vmax.f32 %v23570_v16, %v23569_v61  ;;  %v12660_v55 = vunpack.i.l.bf16 %v21352_v44  ;;  %v12043_v3 = vrot.slane %v12042_v9, 1 }
 0x5a2   :  { %v12628_v62 = vrot.slane %v12627_v28, 1  ;;  %v13297_v57 = vsel %vm13206_vm6, %v13296_v54, %v13295_v56  ;;  %v12694_v30 = vmax.f32 %v12692_v18, %v12693_v25  ;;  %v11951_v1 = vmax.f32 %v11949_v26, %v11950_v59 }
 0x5a3   :  { %v12013_v0 = vrot.slane %v12012_v46, 4  ;;  %v12598_v58 = vrot.slane %v12597_v23, 4  ;;  %v12661_v5 = vunpack.i.h.bf16 %v21352_v44  ;;  %v13298_v13 = vpack.c.b16 %v13297_v57, %v13297_v57 }
 0x5a4   :  { %v12044_v53 = vmax.f32 %v12042_v9, %v12043_v3  ;;  %v12629_v7 = vmax.f32 %v12627_v28, %v12628_v62  ;;  %v12695_v43 = vpack.i.bf16 %v12694_v30, %v12694_v30  ;;  %v11952_v40 = vrot.slane %v11951_v1, 1 }
 0x5a5   :  { %v12014_v14 = vmax.f32 %v12012_v46, %v12013_v0  ;;  %v12599_v35 = vmax.f32 %v12597_v23, %v12598_v58  ;;  %v12662_v4 = vmax.f32 %v12660_v55, %v12661_v5  ;;  %13299 = vrot.lane.b32.xlu1 %v13298_v13, %s15995_s2  ;;  %v12000_v48 = vrot.slane %v20834_v37, 4 }
 0x5a6   :  { %v12045_v60 = vpack.i.bf16 %v12044_v53, %v12044_v53  ;;  %v12630_v8 = vpack.i.bf16 %v12629_v7, %v12629_v7  ;;  %v13150_v27 = vsel %vm8379_vm3, %v12695_v43, 4286644096  ;;  %v11953_v41 = vmax.f32 %v11951_v1, %v11952_v40 }
 0x5a7   :  { %v12015_v2 = vrot.slane %v12014_v14, 2  ;;  %v12600_v11 = vrot.slane %v12599_v35, 2  ;;  %v12663_v44 = vrot.slane %v12662_v4, 4  ;;  %v12001_v42 = vmax.f32 %v20834_v37, %v12000_v48 }
 0x5a8   :  { %v12975_v49 = vsel %vm8379_vm3, %v12045_v60, 4286644096  ;;  %v13147_v24 = vsel %vm8379_vm3, %v12630_v8, 4286644096  ;;  %v11954_v22 = vpack.i.bf16 %v11953_v41, %v11953_v41  ;;  %v12060_v36 = vsel %vm11550_vm5, %v20892_v10, 4286644096 }
 0x5a9   :  { %v12016_v32 = vmax.f32 %v12014_v14, %v12015_v2  ;;  %v12977_v19 = vmax.bf16 %v12975_v49, %v12972_v47  ;;  %v13152_v29 = vmax.bf16 %v13150_v27, %v13147_v24  ;;  %v12601_v21 = vmax.f32 %v12599_v35, %v12600_v11  ;;  %v23573_v41 = vld [vmem:[#allocation65_spill] sm:$0xff] }
 0x5aa   :  { %v12664_v31 = vmax.f32 %v12662_v4, %v12663_v44  ;;  %v12002_v34 = vrot.slane %v12001_v42, 2  ;;  %v12958_v28 = vsel %vm8379_vm3, %v11954_v22, 4286644096  ;;  %v12062_v61 = vunpack.i.l.bf16 %v12060_v36 }
 0x5ab   :  { %v12017_v56 = vrot.slane %v12016_v32, 1  ;;  %v13355_v18 = vunpack.c.l.b16 %v12977_v19  ;;  %v13356_v26 = vunpack.c.l.b16 %v13152_v29  ;;  %v12602_v9 = vrot.slane %v12601_v21, 1 }
 0x5ac   :  { %v12665_v33 = vrot.slane %v12664_v31, 2  ;;  %v12003_v46 = vmax.f32 %v12001_v42, %v12002_v34  ;;  %v12063_v16 = vunpack.i.h.bf16 %v12060_v36  ;;  %v12647_v23 = vunpack.i.l.bf16 %v21364_v63 }
 0x5ad   :  { %v12018_v15 = vmax.f32 %v12016_v32, %v12017_v56  ;;  %v13357_v37 = vsel %vm13206_vm6, %v13356_v26, %v13355_v18  ;;  %v12603_v47 = vmax.f32 %v12601_v21, %v12602_v9  ;;  %v12648_v62 = vunpack.i.h.bf16 %v21364_v63  ;;  %v23574_v56 = vld [vmem:[#allocation143_spill] sm:$0xff]  ;;  %v23575_v26 = vld [vmem:[#allocation38_spill] sm:$0xff] }
 0x5ae   :  { %v13358_v54 = vpack.c.b16 %v13357_v37, %v13357_v37  ;;  %v12666_v59 = vmax.f32 %v12664_v31, %v12665_v33  ;;  %v12004_v55 = vrot.slane %v12003_v46, 1  ;;  %v12064_v3 = vmax.f32 %v12062_v61, %v12063_v16  ;;  %v23576_v61 = vld [vmem:[#allocation28_spill] sm:$0xff] }
 0x5af   :  { %v12019_v25 = vpack.i.bf16 %v12018_v15, %v12018_v15  ;;  %v12604_v10 = vpack.i.bf16 %v12603_v47, %v12603_v47  ;;  %v23571_v0 = vunpack.i.h.bf16 %v21360_v50  ;;  %v23572_v58 = vunpack.i.l.bf16 %v21360_v50  ;;  %v15969_v50 = vld [vmem:[%s22312_s4] ss:$0 sm:$0xff] }
 0x5b0   :  { %13359 = vrot.lane.b32.xlu1 %v13358_v54, %s15995_s2  ;;  %v12667_v30 = vrot.slane %v12666_v59, 1  ;;  %v12005_v5 = vmax.f32 %v12003_v46, %v12004_v55  ;;  %v15301_v13 = vadd.f32 %v21390_v20, %v21387_v6  ;;  %v12699_v53 = vunpack.i.l.bf16 %v21369_v51 }
 0x5b1   :  { %v12714_v57 = vmax.f32 %v23572_v58, %v23571_v0  ;;  %v12961_v1 = vsel %vm8379_vm3, %v12019_v25, 4286644096  ;;  %v12065_v14 = vrot.slane %v12064_v3, 4  ;;  %v12649_v43 = vmax.f32 %v12647_v23, %v12648_v62  ;;  %v23578_v0 = vld [vmem:[#allocation13_spill] sm:$0xff] }
 0x5b2   :  { %v12963_v7 = vmax.bf16 %v12961_v1, %v12958_v28  ;;  %v12668_v63 = vmax.f32 %v12666_v59, %v12667_v30  ;;  %v13133_v40 = vsel %vm8379_vm3, %v12604_v10, 4286644096  ;;  %v8927_v4 = vadd.f32 %v15969_v50, %v15301_v13 }
 0x5b3   :  { %v12715_v35 = vrot.slane %v12714_v57, 4  ;;  %v12006_v60 = vpack.i.bf16 %v12005_v5, %v12005_v5  ;;  %v12066_v8 = vmax.f32 %v12064_v3, %v12065_v14  ;;  %v12650_v2 = vrot.slane %v12649_v43, 4 }
 0x5b4   :  { %v15304_v6 = vadd.f32 %v21400_v38, %v21396_v52  ;;  %v12669_v20 = vpack.i.bf16 %v12668_v63, %v12668_v63  ;;  %v13309_v48 = vunpack.c.l.b16 %v12963_v7  ;;  %v9086_v11 = vadd.f32 %v23573_v41, %v8927_v4 }
 0x5b5   :  { %v12716_v27 = vmax.f32 %v12714_v57, %v12715_v35  ;;  %v12067_v44 = vrot.slane %v12066_v8, 2  ;;  %v12651_v49 = vmax.f32 %v12649_v43, %v12650_v2  ;;  %v15307_v32 = vadd.f32 %v21461_v17, %v21453_v45 }
 0x5b6   :  { %v8930_v24 = vadd.f32 %v15969_v50, %v15304_v6  ;;  %v13136_v42 = vsel %vm8379_vm3, %v12669_v20, 4286644096  ;;  %v9132_v29 = vmax.f32 %v9086_v11, 0.0  ;;  %v15310_v22 = vadd.f32 %v21469_v39, %v21467_v12  ;;  %v23577_v12 = vld [vmem:[#allocation91_spill] sm:$0xff] }
 0x5b7   :  { %v12717_v19 = vrot.slane %v12716_v27, 2  ;;  %v13138_v21 = vmax.bf16 %v13136_v42, %v13133_v40  ;;  %v12068_v52 = vmax.f32 %v12066_v8, %v12067_v44  ;;  %v12652_v38 = vrot.slane %v12651_v49, 2 }
 0x5b8   :  { %v9089_v31 = vadd.f32 %v23574_v56, %v8930_v24  ;;  %v8935_v36 = vadd.f32 %v15969_v50, %v15307_v32  ;;  %v8938_v18 = vadd.f32 %v15969_v50, %v15310_v22  ;;  %v11558_v9 = vrot.slane %v23575_v26, 4 }
 0x5b9   :  { %v12718_v34 = vmax.f32 %v12716_v27, %v12717_v19  ;;  %v13310_v28 = vunpack.c.l.b16 %v13138_v21  ;;  %v12069_v15 = vrot.slane %v12068_v52, 1  ;;  %v12653_v45 = vmax.f32 %v12651_v49, %v12652_v38 }
 0x5ba   :  { %v9133_v17 = vmax.f32 %v9089_v31, 0.0  ;;  %v12700_v33 = vunpack.i.h.bf16 %v21369_v51  ;;  %v21645_v37 = vadd.f32 %v23576_v61, %v8935_v36  ;;  %v21648_v39 = vadd.f32 %v23577_v12, %v8938_v18 }
 0x5bb   :  { %v12719_v46 = vrot.slane %v12718_v34, 1  ;;  %v13311_v47 = vsel %vm13206_vm6, %v13310_v28, %v13309_v48  ;;  %v12070_v16 = vmax.f32 %v12068_v52, %v12069_v15  ;;  %v12654_v23 = vrot.slane %v12653_v45, 1 }
 0x5bc   :  { %v9149_v54 = vpack.c.bf16 %v9133_v17, %v9132_v29  ;;  %v13312_v25 = vpack.c.b16 %v13311_v47, %v13311_v47  ;;  %v12986_v55 = vsel %vm8379_vm3, %v12006_v60, 4286644096  ;;  %v15018_v10 = vpack.c.bf16 %v9133_v17, %v9133_v17 }
 0x5bd   :  { %v12720_v59 = vmax.f32 %v12718_v34, %v12719_v46  ;;  %v12071_v3 = vpack.i.bf16 %v12070_v16, %v12070_v16  ;;  %v12655_v62 = vmax.f32 %v12653_v45, %v12654_v23  ;;  %v21654_v57 = vmax.f32 %v23575_v26, %v11558_v9 }
 0x5be   :  { %v9785_v58 = vrot.slane %v9149_v54, %v23578_v0  ;;  %13313 = vrot.lane.b32.xlu0 %v13312_v25, %s15995_s2  ;;  %v9792_v1 = vrot.slane %v15018_v10, %v23578_v0  ;;  %v9134_v5 = vmax.f32 %v21645_v37, 0.0  ;;  %v9135_v13 = vmax.f32 %v21648_v39, 0.0 }
 0x5bf   :  { %v12721_v30 = vpack.i.bf16 %v12720_v59, %v12720_v59  ;;  %v12656_v7 = vpack.i.bf16 %v12655_v62, %v12655_v62  ;;  %v12989_v14 = vsel %vm8379_vm3, %v12071_v3, 4286644096  ;;  %v11560_v16 = vrot.slane %v21654_v57, 2  ;;  %v23579_v59 = vld [vmem:[#allocation90_spill] sm:$0xff] }
 0x5c0   :  { %v9793_v43 = vcombine.high %v9785_v58, %v9785_v58  ;;  %v9801_v63 = vrot.slane %v9785_v58, %v23578_v0  ;;  %v12991_v40 = vmax.bf16 %v12989_v14, %v12986_v55  ;;  %v9794_v50 = vcombine.high %v9792_v1, %v9792_v1 }
 0x5c1   :  { %v13164_v35 = vsel %vm8379_vm3, %v12721_v30, 4286644096  ;;  %v9808_v4 = vrot.slane %v9792_v1, %v23578_v0  ;;  %v13161_v60 = vsel %vm8379_vm3, %v12656_v7, 4286644096  ;;  %v23580_v55 = vunpack.i.h.bf16 %v23579_v59 }
 0x5c2   :  { %v9815_v8 = vrot.slane %v9793_v43, %v23578_v0  ;;  %v9823_v2 = vcombine.high %v9801_v63, %v9801_v63  ;;  %v10030_v6 = vunpack.i.h.s16 %v9801_v63  ;;  %v13166_v20 = vmax.bf16 %v13164_v35, %v13161_v60 }
 0x5c3   :  { %v13369_v48 = vunpack.c.l.b16 %v12991_v40  ;;  %v9822_v27 = vrot.slane %v9794_v50, %v23578_v0  ;;  %v9824_v41 = vcombine.high %v9808_v4, %v9808_v4  ;;  %v10038_v24 = vunpack.i.h.s16 %v9808_v4 }
 0x5c4   :  { %v9825_v11 = vcombine.high %v9815_v8, %v9815_v8  ;;  %v10032_v44 = vunpack.i.h.s16 %v9815_v8  ;;  %v10034_v49 = vunpack.i.h.s16 %v9823_v2  ;;  %v13370_v32 = vunpack.c.l.b16 %v13166_v20 }
 0x5c5   :  { %v9826_v42 = vcombine.high %v9822_v27, %v9822_v27  ;;  %v15064_v19 = vpack.i.b16 %v9815_v8, %v10030_v6  ;;  %v11486_v29 = vrot.slane %v9824_v41, %v23578_v0  ;;  %v15068_v38 = vpack.i.b16 %v9822_v27, %v10038_v24  ;;  %v23582_v41 = vld [vmem:[#allocation69_spill] sm:$0xff] }
 0x5c6   :  { %v10036_v22 = vunpack.i.h.s16 %v9825_v11  ;;  %v15065_v21 = vpack.i.b16 %v9823_v2, %v10032_v44  ;;  %v15066_v52 = vpack.i.b16 %v9825_v11, %v10034_v49  ;;  %v13371_v56 = vsel %vm13206_vm6, %v13370_v32, %v13369_v48 }
 0x5c7   :  { %v11416_v31 = vrot.slane %v15064_v19, %v23578_v0  ;;  %v11493_v34 = vrot.slane %v11486_v29, %v23578_v0  ;;  %v11500_v36 = vrot.slane %v9826_v42, %v23578_v0  ;;  %v13372_v18 = vpack.c.b16 %v13371_v56, %v13371_v56  ;;  %v23585_v42 = vld [vmem:[#allocation75_spill] sm:$0xff] }
 0x5c8   :  { %v15067_v26 = vpack.i.b16 %v9808_v4, %v10036_v22  ;;  %v11430_v9 = vrot.slane %v15065_v21, %v23578_v0  ;;  %v11444_v28 = vrot.slane %v15066_v52, %v23578_v0  ;;  %v11472_v45 = vrot.slane %v15068_v38, %v23578_v0  ;;  %v23591_v38 = vld [vmem:[#allocation42_spill] sm:$0xff] }
 0x5c9   :  { %v11423_v15 = vrot.slane %v11416_v31, %v23578_v0  ;;  %v11507_v17 = vrot.slane %v11500_v36, %v23578_v0  ;;  %v21678_v46 = vsel %vm11550_vm5, %v11493_v34, 4286644096  ;;  %13373 = vrot.lane.b32.xlu0 %v13372_v18, %s15995_s2  ;;  %v23581_v10 = vunpack.i.l.bf16 %v23579_v59 }
 0x5ca   :  { %v11437_v61 = vrot.slane %v11430_v9, %v23578_v0  ;;  %v11451_v12 = vrot.slane %v11444_v28, %v23578_v0  ;;  %v11458_v47 = vrot.slane %v15067_v26, %v23578_v0  ;;  %v11479_v23 = vrot.slane %v11472_v45, %v23578_v0 }
 0x5cb   :  { %v21687_v54 = vsel %vm11550_vm5, %v11423_v15, 4286644096  ;;  %v12790_v25 = vunpack.i.l.bf16 %v21678_v46  ;;  %v11622_v3 = vmax.f32 %v23581_v10, %v23580_v55  ;;  %v12791_v30 = vunpack.i.h.bf16 %v21678_v46 }
 0x5cc   :  { %v11465_v62 = vrot.slane %v11458_v47, %v23578_v0  ;;  %v21696_v58 = vsel %vm11550_vm5, %v11437_v61, 4286644096  ;;  %v21700_v1 = vsel %vm11550_vm5, %v11507_v17, 4286644096  ;;  %v12725_v7 = vunpack.i.l.bf16 %v21687_v54 }
 0x5cd   :  { %v12726_v14 = vunpack.i.h.bf16 %v21687_v54  ;;  %v12738_v43 = vunpack.i.l.bf16 %v21696_v58  ;;  %v12775_v63 = vsel %vm11550_vm5, %v11479_v23, 4286644096  ;;  %v12739_v40 = vunpack.i.h.bf16 %v21696_v58  ;;  %v15895_v58 = vld [vmem:[%s22313_s5 + $0x110] sm:$0xff]  }
 0x5ce   :  { %v21708_v35 = vsel %vm11550_vm5, %v11451_v12, 4286644096  ;;  %v21711_v50 = vsel %vm11550_vm5, %v11465_v62, 4286644096  ;;  %v12777_v4 = vunpack.i.l.bf16 %v12775_v63  ;;  %v12778_v8 = vunpack.i.h.bf16 %v12775_v63  ;;  %v15949_v54 = vld [vmem:[%s22313_s5 + $0x290] sm:$0xff]  }
 0x5cf   :  { %v12764_v60 = vunpack.i.l.bf16 %v21711_v50  ;;  %v12803_v2 = vunpack.i.l.bf16 %v21700_v1  ;;  %v9150_v6 = vpack.c.bf16 %v9135_v13, %v9134_v5  ;;  %v12765_v20 = vunpack.i.h.bf16 %v21711_v50  ;;  %v23588_v5 = vld [vmem:[#allocation6_spill] sm:$0xff] }
 0x5d0   :  { %v11561_v48 = vmax.f32 %v21654_v57, %v11560_v16  ;;  %v11623_v27 = vrot.slane %v11622_v3, 4  ;;  %v23583_v11 = vunpack.i.h.bf16 %v23582_v41  ;;  %v23584_v44 = vunpack.i.l.bf16 %v23582_v41 }
 0x5d1   :  { %v12804_v24 = vunpack.i.h.bf16 %v21700_v1  ;;  %v9833_v32 = vrot.slane %v9150_v6, %v23578_v0  ;;  %v23586_v19 = vunpack.i.h.bf16 %v23585_v42  ;;  %v23587_v37 = vunpack.i.l.bf16 %v23585_v42 }
 0x5d2   :  { %v12207_v49 = vmax.f32 %v23584_v44, %v23583_v11  ;;  %v23589_v13 = vunpack.i.h.bf16 %v23588_v5  ;;  %v23590_v29 = vunpack.i.l.bf16 %v23588_v5  ;;  %v11562_v22 = vrot.slane %v11561_v48, 1 }
 0x5d3   :  { %v12272_v39 = vmax.f32 %v23587_v37, %v23586_v19  ;;  %v11624_v21 = vmax.f32 %v11622_v3, %v11623_v27  ;;  %v23592_v56 = vunpack.i.h.bf16 %v23591_v38  ;;  %v23593_v31 = vunpack.i.l.bf16 %v23591_v38 }
 0x5d4   :  { %v11583_v57 = vmax.f32 %v23590_v29, %v23589_v13  ;;  %v12208_v52 = vrot.slane %v12207_v49, 4  ;;  %v9834_v36 = vcombine.high %v9833_v32, %v9833_v32  ;;  %v9841_v18 = vrot.slane %v9833_v32, %v23578_v0 }
 0x5d5   :  { %v11648_v34 = vmax.f32 %v23593_v31, %v23592_v56  ;;  %v12273_v26 = vrot.slane %v12272_v39, 4  ;;  %v21740_v28 = vmax.f32 %v12777_v4, %v12778_v8  ;;  %v11563_v15 = vmax.f32 %v11561_v48, %v11562_v22 }
 0x5d6   :  { %v11584_v9 = vrot.slane %v11583_v57, 4  ;;  %v11625_v45 = vrot.slane %v11624_v21, 2  ;;  %v12209_v17 = vmax.f32 %v12207_v49, %v12208_v52  ;;  %v9848_v61 = vrot.slane %v9834_v36, %v23578_v0 }
 0x5d7   :  { %v9849_v12 = vcombine.high %v9841_v18, %v9841_v18  ;;  %v11514_v47 = vrot.slane %v9841_v18, %v23578_v0  ;;  %v12274_v16 = vmax.f32 %v12272_v39, %v12273_v26  ;;  %v11649_v10 = vrot.slane %v11648_v34, 4 }
 0x5d8   :  { %v11626_v23 = vmax.f32 %v11624_v21, %v11625_v45  ;;  %v12210_v59 = vrot.slane %v12209_v17, 2  ;;  %v11585_v55 = vmax.f32 %v11583_v57, %v11584_v9  ;;  %v11528_v62 = vrot.slane %v9848_v61, %v23578_v0  ;;  %v23594_v9 = vld [vmem:[#allocation53_spill] sm:$0xff] }
 0x5d9   :  { %v11521_v3 = vrot.slane %v11514_v47, %v23578_v0  ;;  %v11542_v63 = vrot.slane %v9849_v12, %v23578_v0  ;;  %v12275_v4 = vrot.slane %v12274_v16, 2  ;;  %v11564_v8 = vpack.i.bf16 %v11563_v15, %v11563_v15 }
 0x5da   :  { %v11627_v6 = vrot.slane %v11626_v23, 1  ;;  %v12211_v48 = vmax.f32 %v12209_v17, %v12210_v59  ;;  %v11586_v27 = vrot.slane %v11585_v55, 2  ;;  %v11535_v41 = vrot.slane %v11528_v62, %v23578_v0 }
 0x5db   :  { %v11549_v11 = vrot.slane %v11542_v63, %v23578_v0  ;;  %v12814_v44 = vsel %vm11550_vm5, %v11521_v3, 4286644096  ;;  %v12276_v49 = vmax.f32 %v12274_v16, %v12275_v4  ;;  %v12780_v57 = vrot.slane %v21740_v28, 4 }
 0x5dc   :  { %v12816_v32 = vunpack.i.l.bf16 %v12814_v44  ;;  %v12817_v42 = vunpack.i.h.bf16 %v12814_v44  ;;  %v11628_v19 = vmax.f32 %v11626_v23, %v11627_v6  ;;  %v12212_v37 = vrot.slane %v12211_v48, 1 }
 0x5dd   :  { %v12827_v39 = vsel %vm11550_vm5, %v11535_v41, 4286644096  ;;  %v12840_v5 = vsel %vm11550_vm5, %v11549_v11, 4286644096  ;;  %v12277_v13 = vrot.slane %v12276_v49, 1  ;;  %v11587_v29 = vmax.f32 %v11585_v55, %v11586_v27 }
 0x5de   :  { %v12829_v22 = vunpack.i.l.bf16 %v12827_v39  ;;  %v12830_v21 = vunpack.i.h.bf16 %v12827_v39  ;;  %v12853_v52 = vsel %vm8379_vm3, %v11564_v8, 4286644096  ;;  %v12842_v0 = vunpack.i.l.bf16 %v12840_v5  ;;  %v23599_v39 = vld [vmem:[#allocation93_spill] sm:$0xff] }
 0x5df   :  { %v11629_v38 = vpack.i.bf16 %v11628_v19, %v11628_v19  ;;  %v12213_v56 = vmax.f32 %v12211_v48, %v12212_v37  ;;  %v12278_v31 = vmax.f32 %v12276_v49, %v12277_v13  ;;  %v12843_v36 = vunpack.i.h.bf16 %v12840_v5  ;;  %v23598_v49 = vld [vmem:[#allocation37_spill] sm:$0xff] }
 0x5e0   :  { %v11588_v18 = vrot.slane %v11587_v29, 1  ;;  %v11650_v26 = vmax.f32 %v11648_v34, %v11649_v10  ;;  %v23595_v15 = vunpack.i.h.bf16 %v23594_v9  ;;  %v23596_v45 = vunpack.i.l.bf16 %v23594_v9  ;;  %v23597_v10 = vld [vmem:[#allocation111_spill] sm:$0xff] }
 0x5e1   :  { %v21758_v61 = vmax.f32 %v12816_v32, %v12817_v42  ;;  %v12214_v12 = vpack.i.bf16 %v12213_v56, %v12213_v56  ;;  %v12279_v47 = vpack.i.bf16 %v12278_v31, %v12278_v31  ;;  %v12856_v16 = vsel %vm8379_vm3, %v11629_v38, 4286644096  ;;  %v23600_v56 = vld [vmem:[#allocation50_spill] sm:$0xff] }
 0x5e2   :  { %v12233_v17 = vmax.f32 %v23596_v45, %v23595_v15  ;;  %v12858_v23 = vmax.bf16 %v12856_v16, %v12853_v52  ;;  %v11589_v59 = vmax.f32 %v11587_v29, %v11588_v18  ;;  %v11651_v55 = vrot.slane %v11650_v26, 2 }
 0x5e3   :  { %v21761_v62 = vmax.f32 %v12829_v22, %v12830_v21  ;;  %v13028_v63 = vsel %vm8379_vm3, %v12214_v12, 4286644096  ;;  %v13031_v34 = vsel %vm8379_vm3, %v12279_v47, 4286644096  ;;  %v12299_v4 = vrot.slane %v23597_v10, 4 }
 0x5e4   :  { %v12234_v3 = vrot.slane %v12233_v17, 4  ;;  %v21766_v8 = vmax.f32 %v12842_v0, %v12843_v36  ;;  %v13033_v6 = vmax.bf16 %v13031_v34, %v13028_v63  ;;  %v11590_v48 = vpack.i.bf16 %v11589_v59, %v11589_v59  ;;  %v13216_v0 = vpop.permute.xlu1 %13215 }
 0x5e5   :  { %v11652_v27 = vmax.f32 %v11650_v26, %v11651_v55  ;;  %v13204_v41 = vunpack.c.l.b16 %v12858_v23  ;;  %v12300_v44 = vmax.f32 %v23597_v10, %v12299_v4  ;;  %v11610_v32 = vrot.slane %v23598_v49, 4  ;;  %v23603_v26 = vld [vmem:[#allocation5_spill] sm:$0xff] }
 0x5e6   :  { %v12235_v11 = vmax.f32 %v12233_v17, %v12234_v3  ;;  %v13205_v42 = vunpack.c.l.b16 %v13033_v6  ;;  %v12867_v37 = vsel %vm8379_vm3, %v11590_v48, 4286644096  ;;  %v11672_v5 = vunpack.i.l.bf16 %v23599_v39 }
 0x5e7   :  { %v11653_v19 = vrot.slane %v11652_v27, 1  ;;  %v12301_v29 = vrot.slane %v12300_v44, 2  ;;  %v11611_v22 = vmax.f32 %v23598_v49, %v11610_v32  ;;  %v11673_v21 = vunpack.i.h.bf16 %v23599_v39 }
 0x5e8   :  { %v12236_v13 = vrot.slane %v12235_v11, 2  ;;  %v13207_v52 = vsel %vm13206_vm6, %v13205_v42, %v13204_v41  ;;  %v23601_v31 = vunpack.i.h.bf16 %v23600_v56  ;;  %v23602_v36 = vunpack.i.l.bf16 %v23600_v56 }
 0x5e9   :  { %v11654_v38 = vmax.f32 %v11652_v27, %v11653_v19  ;;  %v23604_v9 = vunpack.i.h.bf16 %v23603_v26  ;;  %v23605_v15 = vunpack.i.l.bf16 %v23603_v26  ;;  %v13208_v17 = vpack.c.b16 %v13207_v52, %v13207_v52 }
 0x5ea   :  { %v12259_v18 = vmax.f32 %v23602_v36, %v23601_v31  ;;  %v12237_v12 = vmax.f32 %v12235_v11, %v12236_v13  ;;  %v12302_v47 = vmax.f32 %v12300_v44, %v12301_v29  ;;  %v11612_v16 = vrot.slane %v11611_v22, 2  ;;  %v15311_v29 = vpop.f32.mrb[60].mxu1 }
 0x5eb   :  { %v12324_v45 = vmax.f32 %v23605_v15, %v23604_v9  ;;  %v11655_v23 = vpack.i.bf16 %v11654_v38, %v11654_v38  ;;  %v11674_v59 = vmax.f32 %v11672_v5, %v11673_v21  ;;  %v21784_v63 = vsel %vm8379_vm3, %v13208_v17, %v13216_v0  ;;  %v23606_v5 = vld [vmem:[#allocation92_spill] sm:$0xff]  ;;  %v13230_v29 = vpop.permute.xlu0 %13229 }
 0x5ec   :  { %v12260_v55 = vrot.slane %v12259_v18, 4  ;;  %v12238_v34 = vrot.slane %v12237_v12, 1  ;;  %v12303_v10 = vrot.slane %v12302_v47, 1  ;;  %v11613_v4 = vmax.f32 %v11611_v22, %v11612_v16  ;;  %v15312_v22 = vpop.f32.mrb[61].mxu1 }
 0x5ed   :  { %v12325_v3 = vrot.slane %v12324_v45, 4  ;;  %v12870_v6 = vsel %vm8379_vm3, %v11655_v23, 4286644096  ;;  %v11675_v48 = vrot.slane %v11674_v59, 4  ;;  %v11701_v13 = vrot.slane %v23606_v5, 4  ;;  %v15314_v26 = vpop.f32.mrb[62].mxu1 }
 0x5ee   :  { %v12261_v27 = vmax.f32 %v12259_v18, %v12260_v55  ;;  %v12239_v49 = vmax.f32 %v12237_v12, %v12238_v34  ;;  %v12304_v32 = vmax.f32 %v12302_v47, %v12303_v10  ;;  %v12872_v11 = vmax.bf16 %v12870_v6, %v12867_v37  ;;  %v15315_v16 = vpop.f32.mrb[63].mxu1  ;;  %v23610_v6 = vld [vmem:[#allocation104_spill] sm:$0xff] }
 0x5ef   :  { %v12326_v41 = vmax.f32 %v12324_v45, %v12325_v3  ;;  %v11614_v44 = vrot.slane %v11613_v4, 1  ;;  %v11676_v42 = vmax.f32 %v11674_v59, %v11675_v48  ;;  %v11702_v18 = vmax.f32 %v23606_v5, %v11701_v13  ;;  %v23607_v45 = vld [vmem:[#allocation17_spill] sm:$0xff] }
 0x5f0   :  { %v12262_v19 = vrot.slane %v12261_v27, 2  ;;  %v12240_v21 = vpack.i.bf16 %v12239_v49, %v12239_v49  ;;  %v12305_v52 = vpack.i.bf16 %v12304_v32, %v12304_v32  ;;  %v13219_v0 = vunpack.c.l.b16 %v12872_v11 }
 0x5f1   :  { %v12327_v39 = vrot.slane %v12326_v41, 2  ;;  %v11615_v38 = vmax.f32 %v11613_v4, %v11614_v44  ;;  %v11677_v56 = vrot.slane %v11676_v42, 2  ;;  %v23608_v17 = vunpack.i.h.bf16 %v23607_v45 }
 0x5f2   :  { %v12263_v31 = vmax.f32 %v12261_v27, %v12262_v19  ;;  %v13042_v37 = vsel %vm8379_vm3, %v12240_v21, 4286644096  ;;  %v13045_v9 = vsel %vm8379_vm3, %v12305_v52, 4286644096  ;;  %v23609_v12 = vunpack.i.l.bf16 %v23607_v45 }
 0x5f3   :  { %v12328_v36 = vmax.f32 %v12326_v41, %v12327_v39  ;;  %v11616_v15 = vpack.i.bf16 %v11615_v38, %v11615_v38  ;;  %v13047_v23 = vmax.bf16 %v13045_v9, %v13042_v37  ;;  %v11678_v59 = vmax.f32 %v11676_v42, %v11677_v56  ;;  %v23611_v39 = vld [vmem:[#allocation74_spill] sm:$0xff] }
 0x5f4   :  { %v11765_v47 = vmax.f32 %v23609_v12, %v23608_v17  ;;  %v12264_v55 = vrot.slane %v12263_v31, 1  ;;  %v11703_v10 = vrot.slane %v11702_v18, 2  ;;  %v12348_v48 = vunpack.i.l.bf16 %v23610_v6 }
 0x5f5   :  { %v12329_v3 = vrot.slane %v12328_v36, 1  ;;  %v12881_v34 = vsel %vm8379_vm3, %v11616_v15, 4286644096  ;;  %v13220_v27 = vunpack.c.l.b16 %v13047_v23  ;;  %v11679_v41 = vrot.slane %v11678_v59, 1 }
 0x5f6   :  { %v11766_v4 = vrot.slane %v11765_v47, 4  ;;  %v12265_v49 = vmax.f32 %v12263_v31, %v12264_v55  ;;  %v11704_v11 = vmax.f32 %v11702_v18, %v11703_v10  ;;  %v12349_v19 = vunpack.i.h.bf16 %v23610_v6 }
 0x5f7   :  { %v12330_v32 = vmax.f32 %v12328_v36, %v12329_v3  ;;  %v23612_v5 = vunpack.i.h.bf16 %v23611_v39  ;;  %v23613_v42 = vunpack.i.l.bf16 %v23611_v39  ;;  %v13221_v21 = vsel %vm13206_vm6, %v13220_v27, %v13219_v0  ;;  %v15887_v36 = vld [vmem:[%s22313_s5 + $0x100] sm:$0xff]   ;;  %v15890_v0 = vld [vmem:[%s22313_s5 + $0x148] sm:$0xff]  }
 0x5f8   :  { %v11767_v44 = vmax.f32 %v11765_v47, %v11766_v4  ;;  %v11680_v52 = vmax.f32 %v11678_v59, %v11679_v41  ;;  %v12266_v38 = vpack.i.bf16 %v12265_v49, %v12265_v49  ;;  %v13222_v56 = vpack.c.b16 %v13221_v21, %v13221_v21  ;;  %v23614_v3 = vld [vmem:[#allocation57_spill] sm:$0xff] }
 0x5f9   :  { %v12415_v13 = vmax.f32 %v23613_v42, %v23612_v5  ;;  %v12331_v22 = vpack.i.bf16 %v12330_v32, %v12330_v32  ;;  %v11705_v26 = vrot.slane %v11704_v11, 1  ;;  %v12350_v31 = vmax.f32 %v12348_v48, %v12349_v19  ;;  %v15891_v41 = vld [vmem:[%s22313_s5 + $0x108] sm:$0xff]  }
 0x5fa   :  { %v11768_v37 = vrot.slane %v11767_v44, 2  ;;  %v11681_v18 = vpack.i.bf16 %v11680_v52, %v11680_v52  ;;  %v13056_v9 = vsel %vm8379_vm3, %v12266_v38, 4286644096  ;;  %v13321_v17 = vsel %vm8379_vm3, %v13222_v56, %v13230_v29 }
 0x5fb   :  { %v13059_v15 = vsel %vm8379_vm3, %v12331_v22, 4286644096  ;;  %v12416_v45 = vrot.slane %v12415_v13, 4  ;;  %v11706_v47 = vmax.f32 %v11704_v11, %v11705_v26  ;;  %14267 = vmatprep.mubr.bf16.mxu1 %v13321_v17  ;;  %v12351_v59 = vrot.slane %v12350_v31, 4  ;;  %v13244_v26 = vpop.permute.xlu1 %13243 }
 0x5fc   :  { %v13061_v12 = vmax.bf16 %v13059_v15, %v13056_v9  ;;  %v11769_v16 = vmax.f32 %v11767_v44, %v11768_v37  ;;  %v12884_v23 = vsel %vm8379_vm3, %v11681_v18, 4286644096  ;;  %v12091_v10 = vrot.slane %v23614_v3, 4  ;;  %14268 = vmatmul.mubr.bf16.vlgmr.msra.gmra.mrb[64].mxu1 %v21784_v63  ;;  %v23615_v44 = vld [vmem:[#allocation60_spill] sm:$0xff] }
 0x5fd   :  { %v12417_v55 = vmax.f32 %v12415_v13, %v12416_v45  ;;  %v12886_v4 = vmax.bf16 %v12884_v23, %v12881_v34  ;;  %v11707_v48 = vpack.i.bf16 %v11706_v47, %v11706_v47  ;;  %15380 = vmatpush3.bf16.msra.mxu1 %v15887_v36  ;;  %v12352_v49 = vmax.f32 %v12350_v31, %v12351_v59  ;;  %v15894_v34 = vld [vmem:[%s22313_s5 + $0x150] sm:$0xff]   ;;  %v15898_v15 = vld [vmem:[%s22313_s5 + $0x158] sm:$0xff]  }
 0x5fe   :  { %v13234_v6 = vunpack.c.l.b16 %v13061_v12  ;;  %v11770_v27 = vrot.slane %v11769_v16, 1  ;;  %v12092_v11 = vmax.f32 %v23614_v3, %v12091_v10  ;;  %v23616_v19 = vunpack.i.h.bf16 %v23615_v44  ;;  %15381 = vmatprep.subr.bf16.mxu1 %v15890_v0 }
 0x5ff   :  { %v12418_v32 = vrot.slane %v12417_v55, 2  ;;  %v23617_v39 = vunpack.i.l.bf16 %v23615_v44  ;;  %v13233_v63 = vunpack.c.l.b16 %v12886_v4  ;;  %v12895_v13 = vsel %vm8379_vm3, %v11707_v48, 4286644096  ;;  %v23618_v48 = vld [vmem:[#allocation121_spill] sm:$0xff] }
 0x600   :  { %v11771_v42 = vmax.f32 %v11769_v16, %v11770_v27  ;;  %v12740_v29 = vmax.f32 %v12738_v43, %v12739_v40  ;;  %v12353_v21 = vrot.slane %v12352_v49, 2  ;;  %v12093_v38 = vrot.slane %v12092_v11, 2 }
 0x601   :  { %v12155_v5 = vmax.f32 %v23617_v39, %v23616_v19  ;;  %v12419_v52 = vmax.f32 %v12417_v55, %v12418_v32  ;;  %v13235_v56 = vsel %vm13206_vm6, %v13234_v6, %v13233_v63  ;;  %v12805_v36 = vmax.f32 %v12803_v2, %v12804_v24  ;;  %15382 = vmatpush3.bf16.msra.mxu1 %v15891_v41  ;;  %v15899_v6 = vld [vmem:[%s22313_s5 + $0x118] sm:$0xff]   ;;  %v15901_v32 = vld [vmem:[%s22313_s5 + $0x160] sm:$0xff]  }
 0x602   :  { %v11772_v37 = vpack.i.bf16 %v11771_v42, %v11771_v42  ;;  %v12741_v31 = vrot.slane %v12740_v29, 4  ;;  %v13236_v18 = vpack.c.b16 %v13235_v56, %v13235_v56  ;;  %v12354_v43 = vmax.f32 %v12352_v49, %v12353_v21  ;;  %15383 = vmatprep.subr.bf16.mxu1 %v15894_v34  ;;  %v23621_v42 = vld [vmem:[#allocation26_spill] sm:$0xff] }
 0x603   :  { %v12156_v22 = vrot.slane %v12155_v5, 4  ;;  %v12420_v40 = vrot.slane %v12419_v52, 1  ;;  %v12094_v9 = vmax.f32 %v12092_v11, %v12093_v38  ;;  %v12806_v1 = vrot.slane %v12805_v36, 4 }
 0x604   :  { %v12898_v45 = vsel %vm8379_vm3, %v11772_v37, 4286644096  ;;  %v12742_v0 = vmax.f32 %v12740_v29, %v12741_v31  ;;  %v21844_v2 = vsel %vm8379_vm3, %v13236_v18, %v13244_v26  ;;  %v12355_v24 = vrot.slane %v12354_v43, 1  ;;  %v15903_v37 = vld [vmem:[%s22313_s5 + $0x120] sm:$0xff]  }
 0x605   :  { %v12157_v17 = vmax.f32 %v12155_v5, %v12156_v22  ;;  %v12421_v12 = vmax.f32 %v12419_v52, %v12420_v40  ;;  %v12900_v47 = vmax.bf16 %v12898_v45, %v12895_v13  ;;  %v12095_v16 = vrot.slane %v12094_v9, 1  ;;  %15384 = vmatpush3.bf16.msra.mxu1 %v15895_v58  ;;  %v23624_v18 = vld [vmem:[#allocation105_spill] sm:$0xff] }
 0x606   :  { %v12743_v59 = vrot.slane %v12742_v0, 2  ;;  %v12807_v55 = vmax.f32 %v12805_v36, %v12806_v1  ;;  %v12356_v3 = vmax.f32 %v12354_v43, %v12355_v24  ;;  %v23619_v27 = vunpack.i.h.bf16 %v23618_v48  ;;  %15385 = vmatprep.subr.bf16.mxu1 %v15898_v15  ;;  %v15905_v45 = vld [vmem:[%s22313_s5 + $0x168] sm:$0xff]  }
 0x607   :  { %v12158_v23 = vrot.slane %v12157_v17, 2  ;;  %v12422_v10 = vpack.i.bf16 %v12421_v12, %v12421_v12  ;;  %v13247_v4 = vunpack.c.l.b16 %v12900_v47  ;;  %v23620_v41 = vunpack.i.l.bf16 %v23618_v48  ;;  %v15907_v48 = vld [vmem:[%s22313_s5 + $0x128] sm:$0xff]  }
 0x608   :  { %v12096_v11 = vmax.f32 %v12094_v9, %v12095_v16  ;;  %v12744_v19 = vmax.f32 %v12742_v0, %v12743_v59  ;;  %v12808_v39 = vrot.slane %v12807_v55, 2  ;;  %v12357_v5 = vpack.i.bf16 %v12356_v3, %v12356_v3 }
 0x609   :  { %v11726_v49 = vmax.f32 %v23620_v41, %v23619_v27  ;;  %v12159_v44 = vmax.f32 %v12157_v17, %v12158_v23  ;;  %v13073_v63 = vsel %vm8379_vm3, %v12422_v10, 4286644096  ;;  %v23622_v13 = vunpack.i.h.bf16 %v23621_v42  ;;  %15386 = vmatpush3.bf16.msra.mxu1 %v15899_v6  ;;  %v23625_v10 = vld [vmem:[#allocation112_spill] sm:$0xff]  ;;  %v13258_v27 = vpop.permute.xlu0 %13257 }
 0x60a   :  { %v23623_v29 = vunpack.i.l.bf16 %v23621_v42  ;;  %v12097_v52 = vpack.i.bf16 %v12096_v11, %v12096_v11  ;;  %v12745_v22 = vrot.slane %v12744_v19, 1  ;;  %v12809_v56 = vmax.f32 %v12807_v55, %v12808_v39  ;;  %15387 = vmatprep.subr.bf16.mxu1 %v15901_v32 }
 0x60b   :  { %v11727_v34 = vrot.slane %v11726_v49, 4  ;;  %v12160_v38 = vrot.slane %v12159_v44, 1  ;;  %v13070_v26 = vsel %vm8379_vm3, %v12357_v5, 4286644096  ;;  %v12372_v58 = vsel %vm11550_vm5, %v23624_v18, 4286644096 }
 0x60c   :  { %v11791_v21 = vmax.f32 %v23623_v29, %v23622_v13  ;;  %v13075_v43 = vmax.bf16 %v13073_v63, %v13070_v26  ;;  %v12746_v9 = vmax.f32 %v12744_v19, %v12745_v22  ;;  %v12810_v15 = vrot.slane %v12809_v56, 1  ;;  %v23626_v29 = vld [vmem:[#allocation86_spill] sm:$0xff] }
 0x60d   :  { %v11728_v31 = vmax.f32 %v11726_v49, %v11727_v34  ;;  %v12161_v40 = vmax.f32 %v12159_v44, %v12160_v38  ;;  %v13000_v17 = vsel %vm8379_vm3, %v12097_v52, 4286644096  ;;  %v12374_v24 = vunpack.i.l.bf16 %v12372_v58  ;;  %15388 = vmatpush3.bf16.msra.mxu1 %v15903_v37  ;;  %v15909_v44 = vld [vmem:[%s22313_s5 + $0x170] sm:$0xff]   ;;  %v15902_v34 = vld [vmem:[%s22313_s5 + $0x180] sm:$0xff]  }
 0x60e   :  { %v11792_v36 = vrot.slane %v11791_v21, 4  ;;  %v13248_v12 = vunpack.c.l.b16 %v13075_v43  ;;  %v12747_v16 = vpack.i.bf16 %v12746_v9, %v12746_v9  ;;  %v12811_v23 = vmax.f32 %v12809_v56, %v12810_v15  ;;  %15389 = vmatprep.subr.bf16.mxu1 %v15905_v45  ;;  %v15913_v9 = vld [vmem:[%s22313_s5 + $0x178] sm:$0xff]  }
 0x60f   :  { %v11729_v0 = vrot.slane %v11728_v31, 2  ;;  %v12162_v47 = vpack.i.bf16 %v12161_v40, %v12161_v40  ;;  %v12375_v3 = vunpack.i.h.bf16 %v12372_v58  ;;  %v12442_v6 = vrot.slane %v23625_v10, 4 }
 0x610   :  { %v11793_v1 = vmax.f32 %v11791_v21, %v11792_v36  ;;  %v13249_v41 = vsel %vm13206_vm6, %v13248_v12, %v13247_v4  ;;  %v12812_v49 = vpack.i.bf16 %v12811_v23, %v12811_v23  ;;  %v13175_v11 = vsel %vm8379_vm3, %v12747_v16, 4286644096  ;;  %v15911_v36 = vld [vmem:[%s22313_s5 + $0x130] sm:$0xff]  }
 0x611   :  { %v11730_v59 = vmax.f32 %v11728_v31, %v11729_v0  ;;  %v13003_v32 = vsel %vm8379_vm3, %v12162_v47, 4286644096  ;;  %v13250_v19 = vpack.c.b16 %v13249_v41, %v13249_v41  ;;  %v12376_v42 = vmax.f32 %v12374_v24, %v12375_v3  ;;  %v15904_v31 = vld [vmem:[%s22313_s5 + $0x1c8] sm:$0xff]   ;;  %15390 = vmatpush3.bf16.msra.mxu1 %v15907_v48 }
 0x612   :  { %v11794_v55 = vrot.slane %v11793_v1, 2  ;;  %v13005_v39 = vmax.bf16 %v13003_v32, %v13000_v17  ;;  %v13178_v4 = vsel %vm8379_vm3, %v12812_v49, 4286644096  ;;  %v12443_v13 = vmax.f32 %v23625_v10, %v12442_v6  ;;  %15391 = vmatprep.subr.bf16.mxu1 %v15909_v44  ;;  %v23629_v17 = vld [vmem:[#allocation56_spill] sm:$0xff]  ;;  %v15908_v10 = vld [vmem:[%s22313_s5 + $0x1d0] sm:$0xff]  }
 0x613   :  { %v11731_v5 = vrot.slane %v11730_v59, 1  ;;  %v23627_v21 = vunpack.i.h.bf16 %v23626_v29  ;;  %v23628_v52 = vunpack.i.l.bf16 %v23626_v29  ;;  %v13329_v22 = vsel %vm8379_vm3, %v13250_v19, %v13258_v27  ;;  %v15918_v49 = vld [vmem:[%s22313_s5 + $0x240] sm:$0xff]  }
 0x614   :  { %v11795_v63 = vmax.f32 %v11793_v1, %v11794_v55  ;;  %v13180_v56 = vmax.bf16 %v13178_v4, %v13175_v11  ;;  %v13383_v26 = vunpack.c.l.b16 %v13005_v39  ;;  %14307 = vmatprep.mubr.bf16.mxu0 %v13329_v22  ;;  %v12377_v58 = vrot.slane %v12376_v42, 4  ;;  %v23632_v4 = vld [vmem:[#allocation98_spill] sm:$0xff] }
 0x615   :  { %v12116_v38 = vmax.f32 %v23628_v52, %v23627_v21  ;;  %v11732_v37 = vmax.f32 %v11730_v59, %v11731_v5  ;;  %v12444_v43 = vrot.slane %v12443_v13, 2  ;;  %14308 = vmatmul.mubr.bf16.vlgmr.msra.gmra.mrb[76].mxu0 %v21844_v2  ;;  %v23630_v0 = vunpack.i.h.bf16 %v23629_v17  ;;  %v15906_v2 = vld [vmem:[%s22313_s5 + $0x188] sm:$0xff]   ;;  %15392 = vmatpush3.bf16.msra.mxu1 %v15911_v36 }
 0x616   :  { %v11796_v18 = vrot.slane %v11795_v63, 1  ;;  %v13384_v15 = vunpack.c.l.b16 %v13180_v56  ;;  %v23631_v1 = vunpack.i.l.bf16 %v23629_v17  ;;  %v12766_v12 = vmax.f32 %v12764_v60, %v12765_v20  ;;  %15402 = vmatpush3.bf16.msra.mxu0 %v15902_v34  ;;  %v15915_v20 = vld [vmem:[%s22313_s5 + $0x138] sm:$0xff]   ;;  %15393 = vmatprep.subr.bf16.mxu1 %v15913_v9  ;;  %v15910_v34 = vld [vmem:[%s22313_s5 + $0x190] sm:$0xff]  }
 0x617   :  { %v12117_v40 = vrot.slane %v12116_v38, 4  ;;  %v11733_v45 = vpack.i.bf16 %v11732_v37, %v11732_v37  ;;  %v12378_v16 = vmax.f32 %v12376_v42, %v12377_v58  ;;  %v12445_v23 = vmax.f32 %v12443_v13, %v12444_v43  ;;  %15403 = vmatprep.subr.bf16.mxu0 %v15904_v31 }
 0x618   :  { %v12181_v24 = vmax.f32 %v23631_v1, %v23630_v0  ;;  %v11797_v47 = vmax.f32 %v11795_v63, %v11796_v18  ;;  %v13385_v55 = vsel %vm13206_vm6, %v13384_v15, %v13383_v26  ;;  %v12767_v60 = vrot.slane %v12766_v12, 4  ;;  %v15914_v15 = vld [vmem:[%s22313_s5 + $0x198] sm:$0xff]   ;;  %v15916_v1 = vld [vmem:[%s22313_s5 + $0x1e0] sm:$0xff]  }
 0x619   :  { %v12118_v59 = vmax.f32 %v12116_v38, %v12117_v40  ;;  %v12909_v3 = vsel %vm8379_vm3, %v11733_v45, 4286644096  ;;  %v13386_v6 = vpack.c.b16 %v13385_v55, %v13385_v55  ;;  %v12379_v27 = vrot.slane %v12378_v16, 2  ;;  %v15912_v38 = vld [vmem:[%s22313_s5 + $0x1d8] sm:$0xff]   ;;  %15394 = vmatpush3.bf16.msra.mxu1 %v15915_v20 }
 0x61a   :  { %v12182_v50 = vrot.slane %v12181_v24, 4  ;;  %v11798_v48 = vpack.i.bf16 %v11797_v47, %v11797_v47  ;;  %v12446_v41 = vrot.slane %v12445_v23, 1  ;;  %v12768_v44 = vmax.f32 %v12766_v12, %v12767_v60  ;;  %15404 = vmatpush3.bf16.msra.mxu0 %v15906_v2  ;;  %15423 = vmatprep.subr.bf16.mxu1 %v15918_v49 }
 0x61b   :  { %v12119_v32 = vrot.slane %v12118_v59, 2  ;;  %v12832_v19 = vrot.slane %v21761_v62, 4  ;;  %13387 = vrot.lane.b32.xlu1 %v13386_v6, %s15995_s2  ;;  %v12380_v39 = vmax.f32 %v12378_v16, %v12379_v27  ;;  %v11844_v42 = vrot.slane %v23632_v4, 4  ;;  %15405 = vmatprep.subr.bf16.mxu0 %v15908_v10 }
 0x61c   :  { %v12183_v11 = vmax.f32 %v12181_v24, %v12182_v50  ;;  %v12447_v5 = vmax.f32 %v12445_v23, %v12446_v41  ;;  %v12912_v63 = vsel %vm8379_vm3, %v11798_v48, 4286644096  ;;  %v12769_v52 = vrot.slane %v12768_v44, 2  ;;  %v23633_v24 = vld [vmem:[#allocation47_spill] sm:$0xff]  ;;  %v15917_v48 = vld [vmem:[%s22313_s5 + $0x1a0] sm:$0xff]  }
 0x61d   :  { %v12914_v13 = vmax.bf16 %v12912_v63, %v12909_v3  ;;  %v12120_v29 = vmax.f32 %v12118_v59, %v12119_v32  ;;  %v12381_v22 = vrot.slane %v12380_v39, 1  ;;  %v12833_v26 = vmax.f32 %v21761_v62, %v12832_v19  ;;  %v23634_v32 = vld [vmem:[#allocation85_spill] sm:$0xff] }
 0x61e   :  { %v12184_v21 = vrot.slane %v12183_v11, 2  ;;  %v12448_v56 = vpack.i.bf16 %v12447_v5, %v12447_v5  ;;  %v11845_v37 = vmax.f32 %v23632_v4, %v11844_v42  ;;  %v12845_v31 = vrot.slane %v21766_v8, 4  ;;  %15406 = vmatpush3.bf16.msra.mxu0 %v15910_v34 }
 0x61f   :  { %v12121_v36 = vrot.slane %v12120_v29, 1  ;;  %v12770_v58 = vmax.f32 %v12768_v44, %v12769_v52  ;;  %v12382_v43 = vmax.f32 %v12380_v39, %v12381_v22  ;;  %v12834_v9 = vrot.slane %v12833_v26, 2  ;;  %15407 = vmatprep.subr.bf16.mxu0 %v15912_v38  ;;  %v15920_v44 = vld [vmem:[%s22313_s5 + $0x1e8] sm:$0xff]  }
 0x620   :  { %v12185_v18 = vmax.f32 %v12183_v11, %v12184_v21  ;;  %v13087_v40 = vsel %vm8379_vm3, %v12448_v56, 4286644096  ;;  %v11846_v45 = vrot.slane %v11845_v37, 2  ;;  %v11906_v12 = vunpack.i.l.bf16 %v23633_v24 }
 0x621   :  { %v12122_v17 = vmax.f32 %v12120_v29, %v12121_v36  ;;  %v12771_v0 = vrot.slane %v12770_v58, 1  ;;  %v12383_v47 = vpack.i.bf16 %v12382_v43, %v12382_v43  ;;  %v12835_v16 = vmax.f32 %v12833_v26, %v12834_v9  ;;  %v23638_v43 = vld [vmem:[#allocation77_spill] sm:$0xff] }
 0x622   :  { %v12186_v62 = vrot.slane %v12185_v18, 1  ;;  %v11847_v23 = vmax.f32 %v11845_v37, %v11846_v45  ;;  %v11907_v2 = vunpack.i.h.bf16 %v23633_v24  ;;  %v13261_v59 = vunpack.c.l.b16 %v12914_v13  ;;  %15408 = vmatpush3.bf16.msra.mxu0 %v15914_v15  ;;  %v23635_v13 = vld [vmem:[#allocation110_spill] sm:$0xff] }
 0x623   :  { %v12123_v55 = vpack.i.bf16 %v12122_v17, %v12122_v17  ;;  %v12772_v10 = vmax.f32 %v12770_v58, %v12771_v0  ;;  %v13084_v50 = vsel %vm8379_vm3, %v12383_v47, 4286644096  ;;  %v12836_v60 = vrot.slane %v12835_v16, 1  ;;  %15409 = vmatprep.subr.bf16.mxu0 %v15916_v1  ;;  %v15921_v37 = vld [vmem:[%s22313_s5 + $0x1a8] sm:$0xff]   ;;  %v15924_v45 = vld [vmem:[%s22313_s5 + $0x1f0] sm:$0xff]  }
 0x624   :  { %v12187_v3 = vmax.f32 %v12185_v18, %v12186_v62  ;;  %v11848_v20 = vrot.slane %v11847_v23, 1  ;;  %v11908_v6 = vmax.f32 %v11906_v12, %v11907_v2  ;;  %v13089_v27 = vmax.bf16 %v13087_v40, %v13084_v50 }
 0x625   :  { %v12773_v49 = vpack.i.bf16 %v12772_v10, %v12772_v10  ;;  %v12491_v11 = vunpack.i.l.bf16 %v23634_v32  ;;  %v12837_v19 = vmax.f32 %v12835_v16, %v12836_v60  ;;  %v12492_v63 = vunpack.i.h.bf16 %v23634_v32  ;;  %v15925_v60 = vld [vmem:[%s22313_s5 + $0x1b0] sm:$0xff]  }
 0x626   :  { %v12188_v41 = vpack.i.bf16 %v12187_v3, %v12187_v3  ;;  %v11849_v39 = vmax.f32 %v11847_v23, %v11848_v20  ;;  %v11909_v5 = vrot.slane %v11908_v6, 4  ;;  %v13262_v34 = vunpack.c.l.b16 %v13089_v27  ;;  %15410 = vmatpush3.bf16.msra.mxu0 %v15917_v48  ;;  %v23644_v27 = vld [vmem:[#allocation62_spill] sm:$0xff] }
 0x627   :  { %v13014_v4 = vsel %vm8379_vm3, %v12123_v55, 4286644096  ;;  %v23636_v29 = vunpack.i.h.bf16 %v23635_v13  ;;  %v23637_v21 = vunpack.i.l.bf16 %v23635_v13  ;;  %v12838_v38 = vpack.i.bf16 %v12837_v19, %v12837_v19  ;;  %15411 = vmatprep.subr.bf16.mxu0 %v15920_v44  ;;  %v23641_v55 = vld [vmem:[#allocation43_spill] sm:$0xff] }
 0x628   :  { %v13017_v42 = vsel %vm8379_vm3, %v12188_v41, 4286644096  ;;  %v11850_v56 = vpack.i.bf16 %v11849_v39, %v11849_v39  ;;  %v11910_v26 = vmax.f32 %v11908_v6, %v11909_v5  ;;  %v21964_v36 = vsel %vm13206_vm6, %v13262_v34, %v13261_v59  ;;  %v23647_v5 = vld [vmem:[#allocation84_spill] sm:$0xff] }
 0x629   :  { %v12558_v52 = vmax.f32 %v23637_v21, %v23636_v29  ;;  %v13019_v22 = vmax.bf16 %v13017_v42, %v13014_v4  ;;  %v12493_v18 = vmax.f32 %v12491_v11, %v12492_v63  ;;  %v23639_v40 = vunpack.i.h.bf16 %v23638_v43  ;;  %v15928_v11 = vld [vmem:[%s22313_s5 + $0x1f8] sm:$0xff]  }
 0x62a   :  { %v23640_v9 = vunpack.i.l.bf16 %v23638_v43  ;;  %v13264_v17 = vpack.c.b16 %v21964_v36, %v21964_v36  ;;  %v13189_v62 = vsel %vm8379_vm3, %v12773_v49, 4286644096  ;;  %v13192_v0 = vsel %vm8379_vm3, %v12838_v38, 4286644096  ;;  %15412 = vmatpush3.bf16.msra.mxu0 %v15921_v37 }
 0x62b   :  { %v12559_v58 = vrot.slane %v12558_v52, 4  ;;  %v11911_v1 = vrot.slane %v11910_v26, 2  ;;  %v13194_v24 = vmax.bf16 %v13192_v0, %v13189_v62  ;;  %v13397_v12 = vunpack.c.l.b16 %v13019_v22  ;;  %15413 = vmatprep.subr.bf16.mxu0 %v15924_v45  ;;  %v15929_v22 = vld [vmem:[%s22313_s5 + $0x1b8] sm:$0xff]  }
 0x62c   :  { %v11817_v15 = vmax.f32 %v23640_v9, %v23639_v40  ;;  %v12494_v47 = vrot.slane %v12493_v18, 4  ;;  %v12937_v2 = vsel %vm8379_vm3, %v11850_v56, 4286644096  ;;  %v23642_v3 = vunpack.i.h.bf16 %v23641_v55 }
 0x62d   :  { %v12560_v16 = vmax.f32 %v12558_v52, %v12559_v58  ;;  %v11912_v23 = vmax.f32 %v11910_v26, %v11911_v1  ;;  %v23643_v10 = vunpack.i.l.bf16 %v23641_v55  ;;  %v13398_v20 = vunpack.c.l.b16 %v13194_v24  ;;  %v15944_v58 = vld [vmem:[%s22313_s5 + $0x2c0] sm:$0xff]  }
 0x62e   :  { %v11818_v59 = vrot.slane %v11817_v15, 4  ;;  %v12495_v6 = vmax.f32 %v12493_v18, %v12494_v47  ;;  %v23645_v41 = vunpack.i.h.bf16 %v23644_v27  ;;  %v23646_v49 = vunpack.i.l.bf16 %v23644_v27  ;;  %15414 = vmatpush3.bf16.msra.mxu0 %v15925_v60 }
 0x62f   :  { %v11882_v50 = vmax.f32 %v23643_v10, %v23642_v3  ;;  %v12561_v48 = vrot.slane %v12560_v16, 2  ;;  %v11913_v44 = vrot.slane %v11912_v23, 1  ;;  %v12533_v63 = vrot.slane %v23647_v5, 4  ;;  %15415 = vmatprep.subr.bf16.mxu0 %v15928_v11 }
 0x630   :  { %v12467_v32 = vmax.f32 %v23646_v49, %v23645_v41  ;;  %v11819_v19 = vmax.f32 %v11817_v15, %v11818_v59  ;;  %v13399_v34 = vsel %vm13206_vm6, %v13398_v20, %v13397_v12  ;;  %v12496_v4 = vrot.slane %v12495_v6, 2  ;;  %v23648_v15 = vld [vmem:[#allocation100_spill] sm:$0xff] }
 0x631   :  { %v11883_v39 = vrot.slane %v11882_v50, 4  ;;  %v12562_v42 = vmax.f32 %v12560_v16, %v12561_v48  ;;  %v13400_v29 = vpack.c.b16 %v13399_v34, %v13399_v34  ;;  %v11914_v21 = vmax.f32 %v11912_v23, %v11913_v44 }
 0x632   :  { %v12468_v13 = vrot.slane %v12467_v32, 4  ;;  %v11820_v52 = vrot.slane %v11819_v19, 2  ;;  %v12497_v56 = vmax.f32 %v12495_v6, %v12496_v4  ;;  %v12534_v18 = vmax.f32 %v23647_v5, %v12533_v63  ;;  %15416 = vmatpush3.bf16.msra.mxu0 %v15929_v22  ;;  %v23651_v4 = vld [vmem:[#allocation24_spill] sm:$0xff] }
 0x633   :  { %v11884_v38 = vmax.f32 %v11882_v50, %v11883_v39  ;;  %v12563_v26 = vrot.slane %v12562_v42, 1  ;;  %13401 = vrot.lane.b32.xlu0 %v13400_v29, %s15995_s2  ;;  %v11915_v43 = vpack.i.bf16 %v11914_v21, %v11914_v21  ;;  %v23649_v45 = vunpack.i.h.bf16 %v23648_v15  ;;  %15445 = vmatprep.subr.bf16.mxu0 %v15944_v58  ;;  %v23654_v29 = vld [vmem:[#allocation82_spill] sm:$0xff] }
 0x634   :  { %v12469_v37 = vmax.f32 %v12467_v32, %v12468_v13  ;;  %v11821_v40 = vmax.f32 %v11819_v19, %v11820_v52  ;;  %v23650_v62 = vunpack.i.l.bf16 %v23648_v15  ;;  %v12498_v1 = vrot.slane %v12497_v56, 1 }
 0x635   :  { %v11885_v9 = vrot.slane %v11884_v38, 2  ;;  %v12564_v24 = vmax.f32 %v12562_v42, %v12563_v26  ;;  %v12535_v47 = vrot.slane %v12534_v18, 2  ;;  %v12940_v16 = vsel %vm8379_vm3, %v11915_v43, 4286644096  ;;  %v13272_v43 = vpop.permute.xlu1 %13271 }
 0x636   :  { %v11960_v0 = vmax.f32 %v23650_v62, %v23649_v45  ;;  %v12470_v12 = vrot.slane %v12469_v37, 2  ;;  %v11822_v23 = vrot.slane %v11821_v40, 1  ;;  %v12499_v3 = vmax.f32 %v12497_v56, %v12498_v1  ;;  %v23655_v45 = vld [vmem:[#allocation87_spill] sm:$0xff] }
 0x637   :  { %v11886_v59 = vmax.f32 %v11884_v38, %v11885_v9  ;;  %v12565_v10 = vpack.i.bf16 %v12564_v24, %v12564_v24  ;;  %v12942_v50 = vmax.bf16 %v12940_v16, %v12937_v2  ;;  %v12536_v48 = vmax.f32 %v12534_v18, %v12535_v47 }
 0x638   :  { %v11961_v55 = vrot.slane %v11960_v0, 4  ;;  %v12471_v60 = vmax.f32 %v12469_v37, %v12470_v12  ;;  %v11823_v20 = vmax.f32 %v11821_v40, %v11822_v23  ;;  %v12500_v41 = vpack.i.bf16 %v12499_v3, %v12499_v3 }
 0x639   :  { %v11887_v6 = vrot.slane %v11886_v59, 1  ;;  %v13115_v49 = vsel %vm8379_vm3, %v12565_v10, 4286644096  ;;  %v13289_v32 = vunpack.c.l.b16 %v12942_v50  ;;  %v12537_v39 = vrot.slane %v12536_v48, 1 }
 0x63a   :  { %v11962_v27 = vmax.f32 %v11960_v0, %v11961_v55  ;;  %v12472_v11 = vrot.slane %v12471_v60, 1  ;;  %v11824_v44 = vpack.i.bf16 %v11823_v20, %v11823_v20  ;;  %v13112_v63 = vsel %vm8379_vm3, %v12500_v41, 4286644096 }
 0x63b   :  { %v11888_v19 = vmax.f32 %v11886_v59, %v11887_v6  ;;  %v23652_v2 = vunpack.i.h.bf16 %v23651_v4  ;;  %v23653_v42 = vunpack.i.l.bf16 %v23651_v4  ;;  %v12608_v21 = vunpack.i.l.bf16 %v23654_v29 }
 0x63c   :  { %v11963_v5 = vrot.slane %v11962_v27, 2  ;;  %v12473_v34 = vmax.f32 %v12471_v60, %v12472_v11  ;;  %v13117_v52 = vmax.bf16 %v13115_v49, %v13112_v63  ;;  %v12538_v22 = vmax.f32 %v12536_v48, %v12537_v39  ;;  %v23656_v48 = vld [vmem:[#allocation19_spill] sm:$0xff] }
 0x63d   :  { %v12025_v13 = vmax.f32 %v23653_v42, %v23652_v2  ;;  %v11889_v38 = vpack.i.bf16 %v11888_v19, %v11888_v19  ;;  %v12923_v56 = vsel %vm8379_vm3, %v11824_v44, 4286644096  ;;  %v12609_v58 = vunpack.i.h.bf16 %v23654_v29  ;;  %v23659_v19 = vld [vmem:[#allocation101_spill] sm:$0xff]  ;;  %v13286_v2 = vpop.permute.xlu0 %13285 }
 0x63e   :  { %v12474_v26 = vpack.i.bf16 %v12473_v34, %v12473_v34  ;;  %v11964_v37 = vmax.f32 %v11962_v27, %v11963_v5  ;;  %v13290_v40 = vunpack.c.l.b16 %v13117_v52  ;;  %v12539_v9 = vpack.i.bf16 %v12538_v22, %v12538_v22 }
 0x63f   :  { %v12026_v18 = vrot.slane %v12025_v13, 4  ;;  %v12926_v15 = vsel %vm8379_vm3, %v11889_v38, 4286644096  ;;  %v12676_v62 = vrot.slane %v23655_v45, 4  ;;  %v12610_v23 = vmax.f32 %v12608_v21, %v12609_v58  ;;  %v23662_v21 = vld [vmem:[#allocation113_spill] sm:$0xff] }
 0x640   :  { %v12928_v0 = vmax.bf16 %v12926_v15, %v12923_v56  ;;  %v13098_v1 = vsel %vm8379_vm3, %v12474_v26, 4286644096  ;;  %v11965_v24 = vrot.slane %v11964_v37, 1  ;;  %v22020_v47 = vsel %vm13206_vm6, %v13290_v40, %v13289_v32  ;;  %v15922_v15 = vld [vmem:[%s22313_s5 + $0x248] sm:$0xff]  }
 0x641   :  { %v12027_v12 = vmax.f32 %v12025_v13, %v12026_v18  ;;  %v13101_v16 = vsel %vm8379_vm3, %v12539_v9, 4286644096  ;;  %v12677_v59 = vmax.f32 %v23655_v45, %v12676_v62  ;;  %v13333_v55 = vsel %vm8379_vm3, %v13264_v17, %v13272_v43 }
 0x642   :  { %v13292_v3 = vpack.c.b16 %v22020_v47, %v22020_v47  ;;  %v13103_v10 = vmax.bf16 %v13101_v16, %v13098_v1  ;;  %v11966_v50 = vmax.f32 %v11964_v37, %v11965_v24  ;;  %v12611_v20 = vrot.slane %v12610_v23, 4  ;;  %v15919_v37 = vld [vmem:[%s22313_s5 + $0x200] sm:$0xff]  }
 0x643   :  { %v12028_v60 = vrot.slane %v12027_v12, 2  ;;  %v12678_v6 = vrot.slane %v12677_v59, 2  ;;  %v23657_v27 = vunpack.i.h.bf16 %v23656_v48  ;;  %v23658_v41 = vunpack.i.l.bf16 %v23656_v48  ;;  %v23663_v16 = vld [vmem:[#allocation48_spill] sm:$0xff] }
 0x644   :  { %v13275_v32 = vunpack.c.l.b16 %v12928_v0  ;;  %v13276_v11 = vunpack.c.l.b16 %v13103_v10  ;;  %v11967_v44 = vpack.i.bf16 %v11966_v50, %v11966_v50  ;;  %v23660_v36 = vunpack.i.h.bf16 %v23659_v19 }
 0x645   :  { %v11869_v49 = vmax.f32 %v23658_v41, %v23657_v27  ;;  %v23661_v17 = vunpack.i.l.bf16 %v23659_v19  ;;  %v12029_v5 = vmax.f32 %v12027_v12, %v12028_v60  ;;  %v12612_v63 = vmax.f32 %v12610_v23, %v12611_v20  ;;  %v23664_v60 = vld [vmem:[#allocation123_spill] sm:$0xff] }
 0x646   :  { %v12679_v34 = vmax.f32 %v12677_v59, %v12678_v6  ;;  %v13277_v42 = vsel %vm13206_vm6, %v13276_v11, %v13275_v32  ;;  %v12965_v13 = vsel %vm8379_vm3, %v11967_v44, 4286644096  ;;  %v12515_v52 = vsel %vm11550_vm5, %v23662_v21, 4286644096  ;;  %v15923_v6 = vld [vmem:[%s22313_s5 + $0x208] sm:$0xff]  }
 0x647   :  { %v11934_v39 = vmax.f32 %v23661_v17, %v23660_v36  ;;  %v11870_v4 = vrot.slane %v11869_v49, 4  ;;  %v13278_v38 = vpack.c.b16 %v13277_v42, %v13277_v42  ;;  %v12030_v22 = vrot.slane %v12029_v5, 1 }
 0x648   :  { %v12613_v56 = vrot.slane %v12612_v63, 2  ;;  %v12680_v26 = vrot.slane %v12679_v34, 1  ;;  %v12517_v43 = vunpack.i.l.bf16 %v12515_v52  ;;  %v12518_v40 = vunpack.i.h.bf16 %v12515_v52 }
 0x649   :  { %v11935_v29 = vrot.slane %v11934_v39, 4  ;;  %v11871_v18 = vmax.f32 %v11869_v49, %v11870_v4  ;;  %v13337_v9 = vsel %vm8379_vm3, %v13278_v38, %v13286_v2  ;;  %v12031_v45 = vmax.f32 %v12029_v5, %v12030_v22  ;;  %v23665_v2 = vld [vmem:[#allocation63_spill] sm:$0xff] }
 0x64a   :  { %v12614_v62 = vmax.f32 %v12612_v63, %v12613_v56  ;;  %v12681_v0 = vmax.f32 %v12679_v34, %v12680_v26  ;;  %14347 = vmatprep.mubr.bf16.mxu1 %v13337_v9  ;;  %v12519_v12 = vmax.f32 %v12517_v43, %v12518_v40  ;;  %v12585_v23 = vrot.slane %v23663_v16, 4  ;;  %v15930_v56 = vld [vmem:[%s22313_s5 + $0x258] sm:$0xff]  }
 0x64b   :  { %v11936_v58 = vmax.f32 %v11934_v39, %v11935_v29  ;;  %v11872_v1 = vrot.slane %v11871_v18, 2  ;;  %14348 = vmatmul.mubr.bf16.vlgmr.msra.gmra.mrb[68].mxu1 %v13333_v55  ;;  %v12032_v59 = vpack.i.bf16 %v12031_v45, %v12031_v45  ;;  %v11987_v20 = vrot.slane %v23664_v60, 4  ;;  %v15926_v55 = vld [vmem:[%s22313_s5 + $0x250] sm:$0xff]  }
 0x64c   :  { %v12615_v10 = vrot.slane %v12614_v62, 1  ;;  %v12682_v50 = vpack.i.bf16 %v12681_v0, %v12681_v0  ;;  %15424 = vmatpush3.bf16.msra.mxu1 %v15919_v37  ;;  %v12520_v41 = vrot.slane %v12519_v12, 4  ;;  %v12586_v49 = vmax.f32 %v23663_v16, %v12585_v23  ;;  %v15927_v29 = vld [vmem:[%s22313_s5 + $0x210] sm:$0xff]   ;;  %v23666_v0 = vld [vmem:[#allocation64_spill] sm:$0xff] }
 0x64d   :  { %v11937_v24 = vrot.slane %v11936_v58, 2  ;;  %v11873_v48 = vmax.f32 %v11871_v18, %v11872_v1  ;;  %15425 = vmatprep.subr.bf16.mxu1 %v15922_v15  ;;  %v12968_v11 = vsel %vm8379_vm3, %v12032_v59, 4286644096  ;;  %v11988_v19 = vmax.f32 %v23664_v60, %v11987_v20  ;;  %v15931_v16 = vld [vmem:[%s22313_s5 + $0x218] sm:$0xff]   ;;  %v15932_v20 = vld [vmem:[%s22313_s5 + $0x260] sm:$0xff]  }
 0x64e   :  { %v12616_v32 = vmax.f32 %v12614_v62, %v12615_v10  ;;  %v13143_v44 = vsel %vm8379_vm3, %v12682_v50, 4286644096  ;;  %v12970_v36 = vmax.bf16 %v12968_v11, %v12965_v13  ;;  %v12521_v5 = vmax.f32 %v12519_v12, %v12520_v41 }
 0x64f   :  { %v11938_v27 = vmax.f32 %v11936_v58, %v11937_v24  ;;  %v11874_v17 = vrot.slane %v11873_v48, 1  ;;  %v12587_v34 = vrot.slane %v12586_v49, 2  ;;  %v11989_v4 = vrot.slane %v11988_v19, 2  ;;  %v13300_v24 = vpop.permute.xlu1 %13299 }
 0x650   :  { %v12617_v63 = vpack.i.bf16 %v12616_v32, %v12616_v32  ;;  %v12049_v42 = vunpack.i.l.bf16 %v23665_v2  ;;  %15426 = vmatpush3.bf16.msra.mxu1 %v15923_v6  ;;  %v13349_v21 = vunpack.c.l.b16 %v12970_v36  ;;  %v12522_v22 = vrot.slane %v12521_v5, 2 }
 0x651   :  { %v11939_v39 = vrot.slane %v11938_v27, 1  ;;  %v11875_v52 = vmax.f32 %v11873_v48, %v11874_v17  ;;  %15427 = vmatprep.subr.bf16.mxu1 %v15926_v55  ;;  %v12588_v26 = vmax.f32 %v12586_v49, %v12587_v34  ;;  %v11990_v37 = vmax.f32 %v11988_v19, %v11989_v4  ;;  %v15933_v17 = vld [vmem:[%s22313_s5 + $0x220] sm:$0xff]  }
 0x652   :  { %v13140_v13 = vsel %vm8379_vm3, %v12617_v63, 4286644096  ;;  %v12050_v18 = vunpack.i.h.bf16 %v23665_v2  ;;  %v12523_v9 = vmax.f32 %v12521_v5, %v12522_v22  ;;  %v12634_v1 = vunpack.i.l.bf16 %v23666_v0 }
 0x653   :  { %v11940_v38 = vmax.f32 %v11938_v27, %v11939_v39  ;;  %v13145_v58 = vmax.bf16 %v13143_v44, %v13140_v13  ;;  %v11876_v43 = vpack.i.bf16 %v11875_v52, %v11875_v52  ;;  %v12589_v15 = vrot.slane %v12588_v26, 1  ;;  %v15934_v39 = vld [vmem:[%s22313_s5 + $0x268] sm:$0xff]   ;;  %v23669_v52 = vld [vmem:[#allocation44_spill] sm:$0xff] }
 0x654   :  { %v11991_v45 = vrot.slane %v11990_v37, 1  ;;  %v12051_v62 = vmax.f32 %v12049_v42, %v12050_v18  ;;  %15428 = vmatpush3.bf16.msra.mxu1 %v15927_v29  ;;  %v12524_v23 = vrot.slane %v12523_v9, 1  ;;  %v12635_v49 = vunpack.i.h.bf16 %v23666_v0  ;;  %v23667_v42 = vld [vmem:[#allocation103_spill] sm:$0xff] }
 0x655   :  { %v11941_v40 = vpack.i.bf16 %v11940_v38, %v11940_v38  ;;  %v13350_v12 = vunpack.c.l.b16 %v13145_v58  ;;  %v12951_v59 = vsel %vm8379_vm3, %v11876_v43, 4286644096  ;;  %15429 = vmatprep.subr.bf16.mxu1 %v15930_v56  ;;  %v12590_v50 = vmax.f32 %v12588_v26, %v12589_v15  ;;  %v15935_v26 = vld [vmem:[%s22313_s5 + $0x228] sm:$0xff]   ;;  %v15936_v58 = vld [vmem:[%s22313_s5 + $0x270] sm:$0xff]  }
 0x656   :  { %v11992_v6 = vmax.f32 %v11990_v37, %v11991_v45  ;;  %v12052_v48 = vrot.slane %v12051_v62, 4  ;;  %v12525_v41 = vmax.f32 %v12523_v9, %v12524_v23  ;;  %v12701_v55 = vmax.f32 %v12699_v53, %v12700_v33 }
 0x657   :  { %v12954_v10 = vsel %vm8379_vm3, %v11941_v40, 4286644096  ;;  %v22080_v27 = vsel %vm13206_vm6, %v13350_v12, %v13349_v21  ;;  %v12846_v32 = vmax.f32 %v21766_v8, %v12845_v31  ;;  %v22094_v11 = vsel %vm8379_vm3, %v13292_v3, %v13300_v24 }
 0x658   :  { %v12956_v60 = vmax.bf16 %v12954_v10, %v12951_v59  ;;  %v12591_v44 = vpack.i.bf16 %v12590_v50, %v12590_v50  ;;  %v11993_v19 = vpack.i.bf16 %v11992_v6, %v11992_v6  ;;  %15430 = vmatpush3.bf16.msra.mxu1 %v15931_v16  ;;  %v12526_v36 = vpack.i.bf16 %v12525_v41, %v12525_v41  ;;  %v15937_v50 = vld [vmem:[%s22313_s5 + $0x230] sm:$0xff]  }
 0x659   :  { %v12053_v51 = vmax.f32 %v12051_v62, %v12052_v48  ;;  %v12636_v53 = vmax.f32 %v12634_v1, %v12635_v49  ;;  %v12702_v33 = vrot.slane %v12701_v55, 4  ;;  %v13352_v8 = vpack.c.b16 %v22080_v27, %v22080_v27  ;;  %15431 = vmatprep.subr.bf16.mxu1 %v15932_v20  ;;  %v13314_v1 = vpop.permute.xlu0 %13313 }
 0x65a   :  { %v13129_v31 = vsel %vm8379_vm3, %v12591_v44, 4286644096  ;;  %v13303_v47 = vunpack.c.l.b16 %v12956_v60  ;;  %v22103_v3 = vsel %vm8379_vm3, %v11993_v19, 4286644096  ;;  %v13126_v5 = vsel %vm8379_vm3, %v12526_v36, 4286644096 }
 0x65b   :  { %v12054_v63 = vrot.slane %v12053_v51, 2  ;;  %v12637_v34 = vrot.slane %v12636_v53, 4  ;;  %v12703_v4 = vmax.f32 %v12701_v55, %v12702_v33  ;;  %v13131_v2 = vmax.bf16 %v13129_v31, %v13126_v5  ;;  %v15938_v60 = vld [vmem:[%s22313_s5 + $0x278] sm:$0xff]   ;;  %v15945_v19 = vld [vmem:[%s22313_s5 + $0x280] sm:$0xff]   ;;  %v15946_v33 = vld [vmem:[%s22313_s5 + $0x2c8] sm:$0xff]  }
 0x65c   :  { %v23668_v29 = vrot.slane %v23667_v42, 2  ;;  %v12195_v38 = vrot.slane %v23669_v52, 4  ;;  %15432 = vmatpush3.bf16.msra.mxu1 %v15933_v17  ;;  %v12781_v37 = vmax.f32 %v21740_v28, %v12780_v57  ;;  %v12847_v9 = vrot.slane %v12846_v32, 2  ;;  %v15939_v5 = vld [vmem:[%s22313_s5 + $0x238] sm:$0xff]  }
 0x65d   :  { %v12055_v22 = vmax.f32 %v12053_v51, %v12054_v63  ;;  %v12638_v13 = vmax.f32 %v12636_v53, %v12637_v34  ;;  %v12704_v56 = vrot.slane %v12703_v4, 2  ;;  %v13304_v18 = vunpack.c.l.b16 %v13131_v2  ;;  %15433 = vmatprep.subr.bf16.mxu1 %v15934_v39  ;;  %v23670_v63 = vld [vmem:[#allocation106_spill] sm:$0xff] }
 0x65e   :  { %v12133_v21 = vmax.f32 %v23667_v42, %v23668_v29  ;;  %v12196_v40 = vmax.f32 %v23669_v52, %v12195_v38  ;;  %v12782_v0 = vrot.slane %v12781_v37, 2  ;;  %v12848_v28 = vmax.f32 %v12846_v32, %v12847_v9  ;;  %v15947_v52 = vld [vmem:[%s22313_s5 + $0x288] sm:$0xff]  }
 0x65f   :  { %v12056_v15 = vrot.slane %v12055_v22, 1  ;;  %v12639_v45 = vrot.slane %v12638_v13, 2  ;;  %v12705_v62 = vmax.f32 %v12703_v4, %v12704_v56  ;;  %v13305_v24 = vsel %vm13206_vm6, %v13304_v18, %v13303_v47 }
 0x660   :  { %v12134_v43 = vrot.slane %v12133_v21, 1  ;;  %v12197_v16 = vrot.slane %v12196_v40, 2  ;;  %v13306_v57 = vpack.c.b16 %v13305_v24, %v13305_v24  ;;  %15434 = vmatpush3.bf16.msra.mxu1 %v15935_v26  ;;  %v12783_v48 = vmax.f32 %v12781_v37, %v12782_v0 }
 0x661   :  { %v12057_v23 = vmax.f32 %v12055_v22, %v12056_v15  ;;  %v12640_v59 = vmax.f32 %v12638_v13, %v12639_v45  ;;  %v12706_v10 = vrot.slane %v12705_v62, 1  ;;  %15435 = vmatprep.subr.bf16.mxu1 %v15936_v58  ;;  %v12849_v41 = vrot.slane %v12848_v28, 1  ;;  %v23671_v22 = vld [vmem:[#allocation58_spill] sm:$0xff] }
 0x662   :  { %v12135_v12 = vmax.f32 %v12133_v21, %v12134_v43  ;;  %v12198_v6 = vmax.f32 %v12196_v40, %v12197_v16  ;;  %v13345_v49 = vsel %vm8379_vm3, %v13306_v57, %v13314_v1  ;;  %v12784_v17 = vrot.slane %v12783_v48, 1  ;;  %v15948_v43 = vld [vmem:[%s22313_s5 + $0x2d0] sm:$0xff]  }
 0x663   :  { %v12058_v55 = vpack.i.bf16 %v12057_v23, %v12057_v23  ;;  %v12641_v32 = vrot.slane %v12640_v59, 1  ;;  %v12707_v44 = vmax.f32 %v12705_v62, %v12706_v10  ;;  %14387 = vmatprep.mubr.bf16.mxu0 %v13345_v49  ;;  %v12850_v51 = vmax.f32 %v12848_v28, %v12849_v41  ;;  %v15950_v23 = vld [vmem:[%s22313_s5 + $0x2d8] sm:$0xff]   ;;  %v13374_v49 = vpop.permute.xlu0 %13373 }
 0x664   :  { %v12136_v20 = vpack.i.bf16 %v12135_v12, %v12135_v12  ;;  %v12199_v36 = vrot.slane %v12198_v6, 1  ;;  %14388 = vmatmul.mubr.bf16.vlgmr.msra.gmra.mrb[80].mxu0 %v22094_v11  ;;  %15436 = vmatpush3.bf16.msra.mxu1 %v15937_v50  ;;  %v12078_v34 = vrot.slane %v23670_v63, 4  ;;  %v12785_v42 = vmax.f32 %v12783_v48, %v12784_v17  ;;  %v23674_v50 = vld [vmem:[#allocation27_spill] sm:$0xff] }
 0x665   :  { %v12642_v31 = vmax.f32 %v12640_v59, %v12641_v32  ;;  %v12708_v47 = vpack.i.bf16 %v12707_v44, %v12707_v44  ;;  %v12982_v39 = vsel %vm8379_vm3, %v12058_v55, 4286644096  ;;  %15437 = vmatprep.subr.bf16.mxu1 %v15938_v60  ;;  %v12851_v29 = vpack.i.bf16 %v12850_v51, %v12850_v51  ;;  %15446 = vmatpush3.bf16.msra.mxu0 %v15945_v19  ;;  %v13360_v60 = vpop.permute.xlu1 %13359  ;;  %v15951_v51 = vld [vmem:[%s22313_s5 + $0x298] sm:$0xff]  }
 0x666   :  { %v13021_v53 = vsel %vm8379_vm3, %v12136_v20, 4286644096  ;;  %v12984_v4 = vmax.bf16 %v12982_v39, %v22103_v3  ;;  %v12200_v2 = vmax.f32 %v12198_v6, %v12199_v36  ;;  %v12079_v38 = vmax.f32 %v23670_v63, %v12078_v34  ;;  %15447 = vmatprep.subr.bf16.mxu0 %v15946_v33 }
 0x667   :  { %v12643_v21 = vpack.i.bf16 %v12642_v31, %v12642_v31  ;;  %v13157_v11 = vsel %vm8379_vm3, %v12708_v47, 4286644096  ;;  %v23672_v13 = vunpack.i.h.bf16 %v23671_v22  ;;  %v23673_v56 = vunpack.i.l.bf16 %v23671_v22  ;;  %v15940_v47 = vld [vmem:[%s22313_s5 + $0x300] sm:$0xff]  }
 0x668   :  { %v13363_v3 = vunpack.c.l.b16 %v12984_v4  ;;  %v12201_v37 = vpack.i.bf16 %v12200_v2, %v12200_v2  ;;  %v12786_v18 = vpack.i.bf16 %v12785_v42, %v12785_v42  ;;  %v13199_v58 = vsel %vm8379_vm3, %v12851_v29, 4286644096  ;;  %15438 = vmatpush3.bf16.msra.mxu1 %v15939_v5  ;;  %v15952_v4 = vld [vmem:[%s22313_s5 + $0x2e0] sm:$0xff]  }
 0x669   :  { %v12142_v26 = vmax.f32 %v23673_v56, %v23672_v13  ;;  %v13154_v40 = vsel %vm8379_vm3, %v12643_v21, 4286644096  ;;  %v12080_v9 = vrot.slane %v12079_v38, 2  ;;  %v12727_v45 = vmax.f32 %v12725_v7, %v12726_v14  ;;  %15448 = vmatpush3.bf16.msra.mxu0 %v15947_v52  ;;  %v23677_v42 = vld [vmem:[#allocation49_spill] sm:$0xff] }
 0x66a   :  { %v13159_v62 = vmax.bf16 %v13157_v11, %v13154_v40  ;;  %v15998_v0 = vmov 0.0   ;;  %v13024_v1 = vsel %vm8379_vm3, %v12201_v37, 4286644096  ;;  %v13196_v24 = vsel %vm8379_vm3, %v12786_v18, 4286644096  ;;  %15449 = vmatprep.subr.bf16.mxu0 %v15948_v43  ;;  %v15953_v22 = vld [vmem:[%s22313_s5 + $0x2a0] sm:$0xff]  }
 0x66b   :  { %v12143_v15 = vrot.slane %v12142_v26, 4  ;;  %15567 = vmatprep.subr.bf16.mxu1 %v15998_v0  ;;  %v12792_v12 = vmax.f32 %v12790_v25, %v12791_v30  ;;  %v13026_v16 = vmax.bf16 %v13024_v1, %v13021_v53  ;;  %v13201_v28 = vmax.bf16 %v13199_v58, %v13196_v24  ;;  %v15941_v37 = vld [vmem:[%s22313_s5 + $0x308] sm:$0xff]  }
 0x66c   :  { %v12081_v7 = vmax.f32 %v12079_v38, %v12080_v9  ;;  %v13364_v57 = vunpack.c.l.b16 %v13159_v62  ;;  %v12728_v59 = vrot.slane %v12727_v45, 4  ;;  %v23675_v46 = vunpack.i.h.bf16 %v23674_v50  ;;  %v15954_v18 = vld [vmem:[%s22313_s5 + $0x2e8] sm:$0xff]  }
 0x66d   :  { %v12144_v14 = vmax.f32 %v12142_v26, %v12143_v15  ;;  %v12793_v10 = vrot.slane %v12792_v12, 4  ;;  %v23676_v25 = vunpack.i.l.bf16 %v23674_v50  ;;  %v13405_v20 = vunpack.c.l.b16 %v13026_v16  ;;  %15450 = vmatpush3.bf16.msra.mxu0 %v15949_v54  ;;  %v15955_v62 = vld [vmem:[%s22313_s5 + $0x2a8] sm:$0xff]  }
 0x66e   :  { %v13406_v6 = vunpack.c.l.b16 %v13201_v28  ;;  %v12082_v48 = vrot.slane %v12081_v7, 1  ;;  %v13365_v55 = vsel %vm13206_vm6, %v13364_v57, %v13363_v3  ;;  %v12729_v32 = vmax.f32 %v12727_v45, %v12728_v59  ;;  %15451 = vmatprep.subr.bf16.mxu0 %v15950_v23  ;;  %v15942_v57 = vld [vmem:[%s22313_s5 + $0x310] sm:$0xff]  }
 0x66f   :  { %v12103_v30 = vmax.f32 %v23676_v25, %v23675_v46  ;;  %v12145_v41 = vrot.slane %v12144_v14, 2  ;;  %v12794_v44 = vmax.f32 %v12792_v12, %v12793_v10  ;;  %v13366_v36 = vpack.c.b16 %v13365_v55, %v13365_v55 }
 0x670   :  { %v22182_v17 = vsel %vm13206_vm6, %v13406_v6, %v13405_v20  ;;  %v12083_v53 = vmax.f32 %v12081_v7, %v12082_v48  ;;  %v13411_v31 = vsel %vm8379_vm3, %v13352_v8, %v13360_v60  ;;  %v12730_v39 = vrot.slane %v12729_v32, 2 }
 0x671   :  { %v12104_v19 = vrot.slane %v12103_v30, 4  ;;  %v12146_v33 = vmax.f32 %v12144_v14, %v12145_v41  ;;  %v12795_v5 = vrot.slane %v12794_v44, 2  ;;  %v13415_v34 = vsel %vm8379_vm3, %v13366_v36, %v13374_v49  ;;  %15452 = vmatpush3.bf16.msra.mxu0 %v15951_v51  ;;  %v15957_v41 = vld [vmem:[%s22313_s5 + $0x2b0] sm:$0xff]  }
 0x672   :  { %v23678_v29 = vunpack.i.h.bf16 %v23677_v42  ;;  %v23679_v27 = vunpack.i.l.bf16 %v23677_v42  ;;  %14427 = vmatprep.mubr.bf16.mxu1 %v13415_v34  ;;  %v12731_v21 = vmax.f32 %v12729_v32, %v12730_v39  ;;  %v12751_v38 = vunpack.i.l.bf16 %v21708_v35  ;;  %15453 = vmatprep.subr.bf16.mxu0 %v15952_v4  ;;  %v15943_v32 = vld [vmem:[%s22313_s5 + $0x318] sm:$0xff]  }
 0x673   :  { %v12105_v63 = vmax.f32 %v12103_v30, %v12104_v19  ;;  %v12147_v2 = vrot.slane %v12146_v33, 1  ;;  %v12796_v11 = vmax.f32 %v12794_v44, %v12795_v5  ;;  %14428 = vmatmul.mubr.bf16.vlgmr.msra.gmra.mrb[72].mxu1 %v13411_v31  ;;  %v12084_v13 = vpack.i.bf16 %v12083_v53, %v12083_v53  ;;  %v15958_v19 = vld [vmem:[%s22313_s5 + $0x2f8] sm:$0xff]  }
 0x674   :  { %v12168_v8 = vmax.f32 %v23679_v27, %v23678_v29  ;;  %v12752_v3 = vunpack.i.h.bf16 %v21708_v35  ;;  %15568 = vmatpush3.bf16.msra.mxu1 %v15940_v47  ;;  %15575 = vmatprep.mubr.msk.bf16.mxu1 %vm15999_vm7, %v15998_v0  ;;  %v12732_v58 = vrot.slane %v12731_v21, 1  ;;  %v12819_v9 = vrot.slane %v21758_v61, 4  ;;  %v15959_v5 = vld [vmem:[%s22313_s5 + $0x2b8] sm:$0xff]  }
 0x675   :  { %v12106_v52 = vrot.slane %v12105_v63, 2  ;;  %v12148_v56 = vmax.f32 %v12146_v33, %v12147_v2  ;;  %v12797_v43 = vrot.slane %v12796_v11, 1  ;;  %15569 = vmatprep.subr.bf16.mxu1 %v15998_v0  ;;  %15454 = vmatpush3.bf16.msra.mxu0 %v15953_v22  ;;  %v12993_v28 = vsel %vm8379_vm3, %v12084_v13, 4286644096 }
 0x676   :  { %v12169_v26 = vrot.slane %v12168_v8, 4  ;;  %v12753_v45 = vmax.f32 %v12751_v38, %v12752_v3  ;;  %v12733_v1 = vmax.f32 %v12731_v21, %v12732_v58  ;;  %v12820_v16 = vmax.f32 %v21758_v61, %v12819_v9  ;;  %15455 = vmatprep.subr.bf16.mxu0 %v15954_v18  ;;  %v15956_v61 = vld [vmem:[%s22313_s5 + $0x2f0] sm:$0xff]  }
 0x677   :  { %v12107_v40 = vmax.f32 %v12105_v63, %v12106_v52  ;;  %v12149_v35 = vpack.i.bf16 %v12148_v56, %v12148_v56  ;;  %v12798_v24 = vmax.f32 %v12796_v11, %v12797_v43  ;;  %v13408_v2 = vpack.c.b16 %v22182_v17, %v22182_v17 }
 0x678   :  { %v12170_v15 = vmax.f32 %v12168_v8, %v12169_v26  ;;  %v12754_v14 = vrot.slane %v12753_v45, 4  ;;  %15570 = vmatpush3.bf16.msra.mxu1 %v15941_v37  ;;  %v12734_v23 = vpack.i.bf16 %v12733_v1, %v12733_v1  ;;  %v12821_v50 = vrot.slane %v12820_v16, 2  ;;  %v15962_v1 = vld [vmem:[%s22315_s7 + $0x10] sm:$0xff]  }
 0x679   :  { %v12108_v12 = vrot.slane %v12107_v40, 1  ;;  %v12996_v54 = vsel %vm8379_vm3, %v12149_v35, 4286644096  ;;  %v12799_v59 = vpack.i.bf16 %v12798_v24, %v12798_v24  ;;  %15571 = vmatprep.subr.bf16.mxu1 %v15998_v0  ;;  %15456 = vmatpush3.bf16.msra.mxu0 %v15955_v62  ;;  %v15961_v62 = vld [vmem:[%s22315_s7 + $0x8] sm:$0xff]   ;;  %v15963_v24 = vld [vmem:[%s22315_s7 + $0x18] sm:$0xff]  }
 0x67a   :  { %v12171_v7 = vrot.slane %v12170_v15, 2  ;;  %v12998_v10 = vmax.bf16 %v12996_v54, %v12993_v28  ;;  %v12755_v30 = vmax.f32 %v12753_v45, %v12754_v14  ;;  %v13168_v60 = vsel %vm8379_vm3, %v12734_v23, 4286644096  ;;  %15457 = vmatprep.subr.bf16.mxu0 %v15956_v61  ;;  %v15966_v61 = vld [vmem:[%s22315_s7 + $0x30] sm:$0xff]  }
 0x67b   :  { %v12109_v46 = vmax.f32 %v12107_v40, %v12108_v12  ;;  %v13171_v20 = vsel %vm8379_vm3, %v12799_v59, 4286644096  ;;  %v12822_v6 = vmax.f32 %v12820_v16, %v12821_v50  ;;  %v15964_v12 = vld [vmem:[%s22315_s7 + $0x20] sm:$0xff]   ;;  %v15967_v50 = vld [vmem:[%s22315_s7 + $0x38] sm:$0xff]  }
 0x67c   :  { %v12172_v25 = vmax.f32 %v12170_v15, %v12171_v7  ;;  %v13173_v48 = vmax.bf16 %v13171_v20, %v13168_v60  ;;  %v12756_v55 = vrot.slane %v12755_v30, 2  ;;  %15572 = vmatpush3.bf16.msra.mxu1 %v15942_v57  ;;  %v13377_v44 = vunpack.c.l.b16 %v12998_v10  ;;  %v15960_v15 = vld [vmem:[%s22315_s7] sm:$0xff]   ;;  %v15965_v10 = vld [vmem:[%s22315_s7 + $0x28] sm:$0xff]  }
 0x67d   :  { %v12823_v36 = vrot.slane %v12822_v6, 1  ;;  %15573 = vmatprep.subr.bf16.mxu1 %v15998_v0  ;;  %v12110_v53 = vpack.i.bf16 %v12109_v46, %v12109_v46  ;;  %15458 = vmatpush3.bf16.msra.mxu0 %v15957_v41  ;;  %v15069_v16 = vld [vmem:[%s22314_s6] ss:$0 sm:$0xff] }
 0x67e   :  { %v12173_v49 = vrot.slane %v12172_v25, 1  ;;  %v13378_v51 = vunpack.c.l.b16 %v13173_v48  ;;  %v12757_v31 = vmax.f32 %v12755_v30, %v12756_v55  ;;  %15459 = vmatprep.subr.bf16.mxu0 %v15958_v19 }
 0x67f   :  { %v12824_v47 = vmax.f32 %v12822_v6, %v12823_v36  ;;  %v13007_v29 = vsel %vm8379_vm3, %v12110_v53, 4286644096 }
 0x680   :  { %v12174_v33 = vmax.f32 %v12172_v25, %v12173_v49  ;;  %v13379_v39 = vsel %vm13206_vm6, %v13378_v51, %v13377_v44  ;;  %v12758_v34 = vrot.slane %v12757_v31, 1  ;;  %15574 = vmatpush3.bf16.msra.mxu1 %v15943_v32 }
 0x681   :  { %v12825_v4 = vpack.i.bf16 %v12824_v47, %v12824_v47  ;;  %15460 = vmatpush3.bf16.msra.mxu0 %v15959_v5  ;;  %v13380_v3 = vpack.c.b16 %v13379_v39, %v13379_v39 }
 0x682   :  { %v12175_v63 = vpack.i.bf16 %v12174_v33, %v12174_v33  ;;  %v12759_v42 = vmax.f32 %v12757_v31, %v12758_v34  ;;  %15579 = vmatprep.subr.bf16.mxu0 %v15998_v0 }
 0x683   :  { %15576 = vmatmul.mubr.msk.bf16.vlgmr.msra.gmra.mrb[76].mxu1 %vm8379_vm3, %v13408_v2  ;;  %v13185_v11 = vsel %vm8379_vm3, %v12825_v4, 4286644096 }
 0x684   :  { %v13010_v27 = vsel %vm8379_vm3, %v12175_v63, 4286644096  ;;  %v12760_v21 = vpack.i.bf16 %v12759_v42, %v12759_v42 }
 0x685   :  { %v13012_v8 = vmax.bf16 %v13010_v27, %v13007_v29 }
 0x686   :  { %v13182_v52 = vsel %vm8379_vm3, %v12760_v21, 4286644096 }
 0x687   :  { %v13187_v38 = vmax.bf16 %v13185_v11, %v13182_v52  ;;  %v13391_v22 = vunpack.c.l.b16 %v13012_v8  ;;  %v15171_v11 = vld [vmem:[%s22316_s8] ss:$0 sm:$0xff] }
 0x689   :  { %v13392_v13 = vunpack.c.l.b16 %v13187_v38 }
 0x68b   :  { %v13393_v17 = vsel %vm13206_vm6, %v13392_v13, %v13391_v22 }
 0x68c   :  { %v13394_v26 = vpack.c.b16 %v13393_v17, %v13393_v17 }
 0x68d   :  { %v13388_v56 = vpop.permute.xlu1 %13387 }
 0x68e   :  { %v13419_v58 = vsel %vm8379_vm3, %v13380_v3, %v13388_v56 }
 0x6a5   :  { %v13402_v37 = vpop.permute.xlu0 %13401 }
 0x6a6   :  { %v13423_v18 = vsel %vm8379_vm3, %v13394_v26, %v13402_v37 }
 0x6a7   :  { %14467 = vmatprep.mubr.bf16.mxu0 %v13423_v18 }
 0x6a8   :  { %14468 = vmatmul.mubr.bf16.vlgmr.msra.gmra.mrb[84].mxu0 %v13419_v58 }
 0x6a9   :  { %15595 = vmatprep.mubr.msk.bf16.mxu0 %vm15999_vm7, %v15998_v0  ;;  %15580 = vmatpush3.bf16.msra.mxu0 %v15960_v15 }
 0x6aa   :  { %15581 = vmatprep.subr.bf16.mxu0 %v15998_v0 }
 0x6ad   :  { %15582 = vmatpush3.bf16.msra.mxu0 %v15961_v62 }
 0x6ae   :  { %15583 = vmatprep.subr.bf16.mxu0 %v15998_v0 }
 0x6b1   :  { %15584 = vmatpush3.bf16.msra.mxu0 %v15962_v1 }
 0x6b2   :  { %15585 = vmatprep.subr.bf16.mxu0 %v15998_v0 }
 0x6b5   :  { %15586 = vmatpush3.bf16.msra.mxu0 %v15963_v24 }
 0x6b6   :  { %15587 = vmatprep.subr.bf16.mxu0 %v15998_v0 }
 0x6b9   :  { %15588 = vmatpush3.bf16.msra.mxu0 %v15964_v12 }
 0x6ba   :  { %15589 = vmatprep.subr.bf16.mxu0 %v15998_v0 }
 0x6bd   :  { %15590 = vmatpush3.bf16.msra.mxu0 %v15965_v10 }
 0x6be   :  { %15591 = vmatprep.subr.bf16.mxu0 %v15998_v0 }
 0x6c1   :  { %15592 = vmatpush3.bf16.msra.mxu0 %v15966_v61 }
 0x6c2   :  { %15593 = vmatprep.subr.bf16.mxu0 %v15998_v0 }
 0x6c5   :  { %15594 = vmatpush3.bf16.msra.mxu0 %v15967_v50 }
 0x6cf   :  { %v15351_v43 = vpop.f32.mrb[64].mxu1 }
 0x6d0   :  { %v15352_v40 = vpop.f32.mrb[65].mxu1 }
 0x6d1   :  { %v15353_v9 = vadd.f32 %v15352_v40, %v15351_v43  ;;  %v15354_v35 = vpop.f32.mrb[66].mxu1 }
 0x6d2   :  { %v15355_v45 = vpop.f32.mrb[67].mxu1 }
 0x6d3   :  { %v14270_v7 = vadd.f32 %v15353_v9, %v15069_v16 }
 0x6e8   :  { %v15373_v28 = vpop.f32.mrb[76].mxu0 }
 0x6e9   :  { %v15374_v54 = vpop.f32.mrb[77].mxu0 }
 0x6ea   :  { %v15375_v14 = vadd.f32 %v15374_v54, %v15373_v28  ;;  %v15376_v57 = vpop.f32.mrb[78].mxu0 }
 0x6eb   :  { %v15377_v23 = vpop.f32.mrb[79].mxu0 }
 0x6ec   :  { %v14310_v59 = vadd.f32 %v15375_v14, %v14270_v7 }
 0x71e   :  { %v15395_v46 = vpop.f32.mrb[68].mxu1 }
 0x71f   :  { %v15396_v25 = vpop.f32.mrb[69].mxu1 }
 0x720   :  { %v15397_v30 = vadd.f32 %v15396_v25, %v15395_v46  ;;  %v15398_v60 = vpop.f32.mrb[70].mxu1 }
 0x721   :  { %v15399_v20 = vpop.f32.mrb[71].mxu1 }
 0x722   :  { %v14350_v6 = vadd.f32 %v15397_v30, %v14310_v59 }
 0x737   :  { %v15417_v48 = vpop.f32.mrb[80].mxu0 }
 0x738   :  { %v15418_v41 = vpop.f32.mrb[81].mxu0 }
 0x739   :  { %v15419_v49 = vadd.f32 %v15418_v41, %v15417_v48  ;;  %v15420_v55 = vpop.f32.mrb[82].mxu0 }
 0x73a   :  { %v15421_v32 = vpop.f32.mrb[83].mxu0 }
 0x73b   :  { %v14390_v44 = vadd.f32 %v15419_v49, %v14350_v6 }
 0x746   :  { %v15439_v19 = vpop.f32.mrb[72].mxu1 }
 0x747   :  { %v15440_v36 = vpop.f32.mrb[73].mxu1 }
 0x748   :  { %v15441_v51 = vadd.f32 %v15440_v36, %v15439_v19  ;;  %v15442_v53 = vpop.f32.mrb[74].mxu1 }
 0x749   :  { %v15443_v33 = vpop.f32.mrb[75].mxu1 }
 0x74a   :  { %v14430_v31 = vadd.f32 %v15441_v51, %v14390_v44 }
 0x756   :  { %v14509_v0 = vpop.f32.mrb[76].mxu1 }
 0x757   :  { %v15577_v47 = vpop.f32.mrb[77].mxu1 }
 0x758   :  { %v14512_v39 = vpop.f32.mrb[78].mxu1 }
 0x759   :  { %v15578_v5 = vpop.f32.mrb[79].mxu1 }
 0x77b   :  { %v15461_v63 = vpop.f32.mrb[84].mxu0 }
 0x77c   :  { %v15462_v34 = vpop.f32.mrb[85].mxu0 }
 0x77d   :  { %v15463_v4 = vadd.f32 %v15462_v34, %v15461_v63  ;;  %v15464_v2 = vpop.f32.mrb[86].mxu0 }
 0x77e   :  { %v15465_v42 = vpop.f32.mrb[87].mxu0 }
 0x77f   :  { %v14470_v29 = vadd.f32 %v15463_v4, %v14430_v31 }
 0x781   :  { %v14510_v27 = vadd.f32 %v14509_v0, %v14470_v29 }
 0x783   :  { %v14515_v8 = vmax.f32 %v14510_v27, 0.0 }
 0x785   :  { %v14516_v21 = vpack.c.bf16 %v14515_v8, %v14515_v8 }
 0x787   :  { %15596 = vmatmul.mubr.bf16.vlgmr.msra.gmra.mrb[88].mxu0 %v14516_v21 }
 0x85a   :  { %v14622_v52 = vpop.f32.mrb[88].mxu0 }
 0x85b   :  { %v14623_v38 = vadd.f32 %v15171_v11, %v14622_v52  ;;  %v15597_v22 = vpop.f32.mrb[89].mxu0 }
 0x85c   :  { %v14625_v13 = vpop.f32.mrb[90].mxu0 }
 0x85d   :  { %14628 = vst [vmem:[#allocation2] sm:$0x3] %v14623_v38  ;;  %v15598_v17 = vpop.f32.mrb[91].mxu0 }
 0x85e   :  { %15981 = shalt.err (!%p15978_p4)
}
 0x85f   :  { %s15982_s8 = scalar_lea.hbm %s22317_s9, 32 }
 0x860   :  { %p15983_p5 = scmp.ne.s32.totalorder %s22317_s9, %s15982_s8  ;;  %p15986_p6 = scmp.lt.u32.totalorder %s15982_s8, %s22317_s9 }
 0x862   :  { %p15988_p7 = pnand %p15986_p6, %p15983_p5 }
 0x864   :  { %15991 = shalt.err (!%p15988_p7)
}
 0x865   :  { %14638 = dma.vmem_to_hbm [thread:$0]  %s14636_s30, 32, %s22317_s9, [#allocation3]  }
 0x866   :  { %15992 = dma.done.wait [#allocation3], 32  }
 0x867   :  { %15993 = vsyncadd [#allocation3], 4294967264 }
 0x868   :  { %14642 = vsyncpa [#allocation3], 1 }

</bundles_post_ra>
